<compile_context>
chip_gen: v5e
topology: v5e:2x2
jax: 0.10.0
libtpu: 0.0.40
codegen_flags: <defaults>
</compile_context>

<pallas_src>
import jax
import jax.numpy as jnp
from jax import lax
from jax.experimental import pallas as pl
from jax.experimental.pallas import tpu as pltpu


LATENT = 4
CHANNELS = 64
IMAGE_SIZE = 84            # encoder on 84x84 yields 10x10, matching resize
LATENT_VAR_SIZE = 32
RESIZE = LATENT * 10 * 10  # 400


# ----------------------------------------------------------------------------
# activation helper (usable both in-kernel and in XLA epilogues)
# ----------------------------------------------------------------------------
def _apply_act(y, act):
    if act == "leaky":
        return jnp.where(y > 0, y, 0.01 * y)
    if act == "relu":
        return jnp.maximum(y, 0.0)
    if act == "sigmoid":
        return jax.nn.sigmoid(y)
    return y


# ----------------------------------------------------------------------------
# Pallas matmul kernel: single K step (full-K block), fused bias + activation
# ----------------------------------------------------------------------------
def _make_mm_kernel(act, with_bias):
    if with_bias:
        def kernel(a_ref, b_ref, bias_ref, o_ref):
            y = jnp.dot(a_ref[...], b_ref[...],
                        preferred_element_type=jnp.float32)
            o_ref[...] = _apply_act(y + bias_ref[...], act).astype(o_ref.dtype)
    else:
        def kernel(a_ref, b_ref, o_ref):
            y = jnp.dot(a_ref[...], b_ref[...],
                        preferred_element_type=jnp.float32)
            o_ref[...] = _apply_act(y, act).astype(o_ref.dtype)
    return kernel


def matmul_bias_act(a, b, bias2d=None, act="none", tm=512):
    """y = act(a @ b [+ bias]); a:(M,K) f32, b:(K,N) f32, bias2d:(1,N) or None.

    K and N are full-extent blocks (exempt from the (8,128) rule), so the grid is
    1-D over M only; no accumulator scratch and no init/finalize phases.  Partial
    final M tiles are handled by Pallas (masked writeback).
    """
    M, K = a.shape
    K2, N = b.shape
    assert K == K2
    tm_eff = M if M <= tm else tm          # whole-M block when it fits, else 512
    grid = (pl.cdiv(M, tm_eff),)

    in_specs = [
        pl.BlockSpec((tm_eff, K), lambda i: (i, 0)),
        pl.BlockSpec((K, N), lambda i: (0, 0)),
    ]
    args = [a, b]
    if bias2d is not None:
        in_specs.append(pl.BlockSpec((1, N), lambda i: (0, 0)))
        args.append(bias2d)

    return pl.pallas_call(
        _make_mm_kernel(act, bias2d is not None),
        out_shape=jax.ShapeDtypeStruct((M, N), jnp.float32),
        grid_spec=pltpu.PrefetchScalarGridSpec(
            num_scalar_prefetch=0,
            grid=grid,
            in_specs=in_specs,
            out_specs=pl.BlockSpec((tm_eff, N), lambda i: (i, 0)),
        ),
        compiler_params=pltpu.CompilerParams(
            dimension_semantics=("parallel",)),
    )(*args)


# ----------------------------------------------------------------------------
# Fused latent path: [fc1|fc2] matmul -> mu/logvar split -> reparametrize ->
# d1 matmul + ReLU.  One Pallas call, all operands whole-array in VMEM (tiny).
# ----------------------------------------------------------------------------
def _latent_kernel(h_ref, wcat_ref, bcat_ref, eps_ref, wd_ref, bd_ref,
                   mu_ref, lv_ref, h1_ref):
    y = jnp.dot(h_ref[...], wcat_ref[...],
                preferred_element_type=jnp.float32) + bcat_ref[...]
    L = mu_ref.shape[1]
    mu = y[:, :L]
    lv = y[:, L:]
    mu_ref[...] = mu
    lv_ref[...] = lv
    # reparametrize: z = eps * exp(0.5 * logvar) + mu
    z = eps_ref[...] * jnp.exp(0.5 * lv) + mu
    h1 = jnp.dot(z, wd_ref[...],
                 preferred_element_type=jnp.float32) + bd_ref[...]
    h1_ref[...] = jnp.maximum(h1, 0.0)


def latent_path(h_flat, wcat, bcat, eps, wd, bd):
    B = h_flat.shape[0]
    L = eps.shape[1]
    R = wd.shape[1]
    return pl.pallas_call(
        _latent_kernel,
        out_shape=(jax.ShapeDtypeStruct((B, L), jnp.float32),
                   jax.ShapeDtypeStruct((B, L), jnp.float32),
                   jax.ShapeDtypeStruct((B, R), jnp.float32)),
    )(h_flat, wcat, bcat, eps, wd, bd)


# ----------------------------------------------------------------------------
# conv2d: im2col (encoder only, small) + fused Pallas matmul
# ----------------------------------------------------------------------------
def _im2col(x, k, stride, padding):
    """x: NHWC. Returns (B*OH*OW, k*k*C) patches ordered (kh, kw, C)."""
    if padding:
        x = jnp.pad(x, ((0, 0), (padding, padding), (padding, padding), (0, 0)))
    B, H, W, C = x.shape
    OH = (H - k) // stride + 1
    OW = (W - k) // stride + 1
    cols = []
    for i in range(k):
        for j in range(k):
            cols.append(x[:, i:i + OH * stride:stride, j:j + OW * stride:stride, :])
    patches = jnp.concatenate(cols, axis=-1)  # (B, OH, OW, k*k*C)
    return patches.reshape(B * OH * OW, k * k * C), OH, OW


def conv2d(x, wm, bias2d, k, stride, padding, act):
    """x: NHWC, wm: pre-reshaped (k*k*Cin, Cout), bias2d: (1, Cout)."""
    B = x.shape[0]
    cols, OH, OW = _im2col(x, k, stride, padding)
    y = matmul_bias_act(cols, wm, bias2d, act)
    return y.reshape(B, OH, OW, wm.shape[1])


# ----------------------------------------------------------------------------
# conv_transpose2d: dense Pallas matmul (no dilated zeros) + lax.pad col2im
# ----------------------------------------------------------------------------
def conv_transpose2d(x, wm, bias, k, stride, act):
    """x: NHWC (B,H,W,Cin), wm: pre-reshaped (Cin, k*k*Cout), bias: (Cout,)."""
    B, H, W, Cin = x.shape
    N = wm.shape[1]
    Cout = N // (k * k)

    # per-input-pixel contributions: (B*H*W, k*k*Cout) -- zero wasted FLOPs
    patches = matmul_bias_act(x.reshape(B * H * W, Cin), wm, None, act="none")
    patches = patches.reshape(B, H, W, k, k, Cout)

    OH = (H - 1) * stride + k
    OW = (W - 1) * stride + k
    out = jnp.zeros((B, OH, OW, Cout), jnp.float32)
    # overlap-add (col2im): interior-padded pads; XLA fuses the pad+add chain.
    for ky in range(k):
        for kx in range(k):
            out = out + lax.pad(
                patches[:, :, :, ky, kx, :], jnp.float32(0.0),
                ((0, 0, 0),
                 (ky, k - 1 - ky, stride - 1),
                 (kx, k - 1 - kx, stride - 1),
                 (0, 0, 0)))
    out = out + bias                      # bias once per output pixel
    return _apply_act(out, act)


# ----------------------------------------------------------------------------
# Parameters (pre-reshaped / pre-merged once at init time)
# ----------------------------------------------------------------------------
def init_params(key):
    ks = jax.random.split(key, 9)

    def w(k, shape, fan_in):
        return (jax.random.normal(k, shape, jnp.float32) / jnp.sqrt(fan_in)) * 0.5

    def conv_wm(wt):      # torch Conv2d (Cout, Cin, kh, kw) -> (kh*kw*Cin, Cout)
        Cout, Cin, kh, kw = wt.shape
        return jnp.transpose(wt, (2, 3, 1, 0)).reshape(kh * kw * Cin, Cout)

    def deconv_wm(wt):    # torch ConvTranspose2d (Cin, Cout, kh, kw) -> (Cin, kh*kw*Cout)
        Cin, Cout, kh, kw = wt.shape
        return jnp.transpose(wt, (0, 2, 3, 1)).reshape(Cin, kh * kw * Cout)

    p = {}
    # encoder
    p["enc1_wm"] = conv_wm(w(ks[0], (CHANNELS, 1, 4, 4), 1 * 16))
    p["enc1_b"] = jnp.zeros((1, CHANNELS), jnp.float32)
    p["enc2_wm"] = conv_wm(w(ks[1], (CHANNELS, CHANNELS, 4, 4), CHANNELS * 16))
    p["enc2_b"] = jnp.zeros((1, CHANNELS), jnp.float32)
    p["enc3_wm"] = conv_wm(w(ks[2], (LATENT, CHANNELS, 3, 3), CHANNELS * 9))
    p["enc3_b"] = jnp.zeros((1, LATENT), jnp.float32)
    # merged fc1 | fc2
    fc1_w = w(ks[3], (RESIZE, LATENT_VAR_SIZE), RESIZE)
    fc2_w = w(ks[4], (RESIZE, LATENT_VAR_SIZE), RESIZE)
    p["fc_wm"] = jnp.concatenate([fc1_w, fc2_w], axis=1)      # (400, 64)
    p["fc_b"] = jnp.zeros((1, 2 * LATENT_VAR_SIZE), jnp.float32)
    # d1
    p["d1_wm"] = w(ks[5], (LATENT_VAR_SIZE, RESIZE), LATENT_VAR_SIZE)
    p["d1_b"] = jnp.zeros((1, RESIZE), jnp.float32)
    # decoder (ConvTranspose weights in torch (Cin, Cout, k, k) layout, pre-reshaped)
    p["dec1_wm"] = deconv_wm(w(ks[6], (LATENT, CHANNELS, 3, 3), LATENT * 9))
    p["dec1_b"] = jnp.zeros((CHANNELS,), jnp.float32)
    p["dec2_wm"] = deconv_wm(w(ks[7], (CHANNELS, CHANNELS, 4, 4), CHANNELS * 16))
    p["dec2_b"] = jnp.zeros((CHANNELS,), jnp.float32)
    p["dec3_wm"] = deconv_wm(w(ks[8], (CHANNELS, 1, 4, 4), CHANNELS * 16))
    p["dec3_b"] = jnp.zeros((1,), jnp.float32)
    return p


# ----------------------------------------------------------------------------
# Forward pass (matches Norm_3d_15.forward; eps passed explicitly so the
# reparametrization noise is deterministic / testable)
# ----------------------------------------------------------------------------
@jax.jit
def forward(params, x_nchw, eps):
    B = x_nchw.shape[0]
    x = x_nchw.transpose(0, 2, 3, 1)  # NCHW -> NHWC

    # ---- encode ----
    h = conv2d(x, params["enc1_wm"], params["enc1_b"], k=4, stride=2, padding=0, act="leaky")
    # block(channels, dropout=...) -> identity (see TODO(synk) at top of file)
    h = conv2d(h, params["enc2_wm"], params["enc2_b"], k=4, stride=2, padding=0, act="leaky")
    h = conv2d(h, params["enc3_wm"], params["enc3_b"], k=3, stride=2, padding=1, act="none")
    # (B, 10, 10, latent): torch .view(-1, latent*10*10) flattens in NCHW order
    h_flat = h.transpose(0, 3, 1, 2).reshape(B, RESIZE)

    # ---- fc1/fc2 + reparametrize + d1 (one fused Pallas call) ----
    mu, logvar, h1 = latent_path(h_flat, params["fc_wm"], params["fc_b"], eps,
                                 params["d1_wm"], params["d1_b"])

    # ---- decode ----
    h1 = h1.reshape(B, LATENT, 10, 10).transpose(0, 2, 3, 1)  # NCHW view -> NHWC
    h1 = conv_transpose2d(h1, params["dec1_wm"], params["dec1_b"], k=3, stride=2, act="leaky")
    h1 = conv_transpose2d(h1, params["dec2_wm"], params["dec2_b"], k=4, stride=2, act="leaky")
    h1 = conv_transpose2d(h1, params["dec3_wm"], params["dec3_b"], k=4, stride=2, act="sigmoid")
    # CropImage((image_size, image_size)): (B, 90, 90, 1) -> (B, 84, 84, 1)
    H = h1.shape[1]
    dr = H - IMAGE_SIZE
    dr1, dr2 = dr // 2, dr - dr // 2
    h1 = h1[:, dr1:H - dr2, dr1:H - dr2, :]
    res = h1.transpose(0, 3, 1, 2)  # back to NCHW
    return res, mu, logvar


if __name__ == "__main__":
    key = jax.random.PRNGKey(0)
    k_x, k_p, k_eps = jax.random.split(key, 3)

    x = jax.random.normal(k_x, (2, 1, IMAGE_SIZE, IMAGE_SIZE), jnp.float32)
    params = init_params(k_p)
    eps = jax.random.normal(k_eps, (2, LATENT_VAR_SIZE), jnp.float32)

    res, mu, logvar = forward(params, x, eps)
    jax.block_until_ready((res, mu, logvar))

    assert res.shape == (2, 1, IMAGE_SIZE, IMAGE_SIZE)
    assert mu.shape == (2, LATENT_VAR_SIZE)
    assert logvar.shape == (2, LATENT_VAR_SIZE)
    assert bool(jnp.all(jnp.isfinite(res)))
    assert bool(jnp.all((res >= 0.0) & (res <= 1.0)))   # sigmoid output range
    print("KERNEL_OK")
</pallas_src>

<mosaic_0001>
module attributes {stable_mosaic.version = 11 : i64} {
  func.func @kernel(%arg0: i32, %arg1: memref<512x16xf32, #tpu.memory_space<vmem>>, %arg2: memref<16x64xf32, #tpu.memory_space<vmem>>, %arg3: memref<1x64xf32, #tpu.memory_space<vmem>>, %arg4: memref<512x64xf32, #tpu.memory_space<vmem>>) attributes {dimension_semantics = [#tpu.dimension_semantics<parallel>], iteration_bounds = array<i64: 7>, scalar_prefetch = 0 : i64, scratch_operands = 0 : i64, tpu.core_type = #tpu.core_type<tc>, window_params = [{transform_indices = @transform_0, window_bounds = array<i64: 512, 16>}, {pipeline_mode = #tpu.pipeline_mode<synchronous>, transform_indices = @transform_1, window_bounds = array<i64: 16, 64>}, {pipeline_mode = #tpu.pipeline_mode<synchronous>, transform_indices = @transform_2, window_bounds = array<i64: 1, 64>}, {transform_indices = @transform_3, window_bounds = array<i64: 512, 64>}]} {
    %c0 = arith.constant 0 : index
    %c0_0 = arith.constant 0 : index
    %0 = vector.load %arg1[%c0, %c0_0] : memref<512x16xf32, #tpu.memory_space<vmem>>, vector<512x16xf32>
    %c0_1 = arith.constant 0 : index
    %c0_2 = arith.constant 0 : index
    %1 = vector.load %arg2[%c0_1, %c0_2] : memref<16x64xf32, #tpu.memory_space<vmem>>, vector<16x64xf32>
    %cst = arith.constant dense<0.000000e+00> : vector<512x64xf32>
    %2 = tpu.matmul %0, %1, %cst {dimension_numbers = #tpu.dot_dimension_numbers<[1], [0], [0], [1], [0, 0, 1, 1], [], []>} : vector<512x16xf32>, vector<16x64xf32>, vector<512x64xf32> -> vector<512x64xf32>
    %c0_3 = arith.constant 0 : index
    %c0_4 = arith.constant 0 : index
    %3 = vector.load %arg3[%c0_3, %c0_4] : memref<1x64xf32, #tpu.memory_space<vmem>>, vector<1x64xf32>
    %4 = vector.broadcast %3 : vector<1x64xf32> to vector<512x64xf32>
    %5 = arith.addf %2, %4 : vector<512x64xf32>
    %cst_5 = arith.constant 0.000000e+00 : f32
    %6 = vector.broadcast %cst_5 : f32 to vector<512x64xf32>
    %7 = arith.cmpf ogt, %5, %6 : vector<512x64xf32>
    %cst_6 = arith.constant 0.00999999977 : f32
    %8 = vector.broadcast %cst_6 : f32 to vector<512x64xf32>
    %9 = arith.mulf %8, %5 : vector<512x64xf32>
    %10 = arith.select %7, %5, %9 : vector<512x64xi1>, vector<512x64xf32>
    %c0_7 = arith.constant 0 : index
    %c0_8 = arith.constant 0 : index
    %11 = vector.load %arg4[%c0_7, %c0_8] : memref<512x64xf32, #tpu.memory_space<vmem>>, vector<512x64xf32>
    tpu.vector_store %arg4[%c0_7, %c0_8], %10 {strides = array<i32>} : memref<512x64xf32, #tpu.memory_space<vmem>>, vector<512x64xf32>,
    return
  }
  func.func @transform_0(%arg0: i32) -> (i32, i32) {
    %c0_i32 = arith.constant 0 : i32
    %c0_i32_0 = arith.constant 0 : i32
    return %arg0, %c0_i32 : i32, i32
  }
  func.func @transform_1(%arg0: i32) -> (i32, i32) {
    %c0_i32 = arith.constant 0 : i32
    %c0_i32_0 = arith.constant 0 : i32
    %c0_i32_1 = arith.constant 0 : i32
    return %c0_i32, %c0_i32_0 : i32, i32
  }
  func.func @transform_2(%arg0: i32) -> (i32, i32) {
    %c0_i32 = arith.constant 0 : i32
    %c0_i32_0 = arith.constant 0 : i32
    %c0_i32_1 = arith.constant 0 : i32
    return %c0_i32, %c0_i32_0 : i32, i32
  }
  func.func @transform_3(%arg0: i32) -> (i32, i32) {
    %c0_i32 = arith.constant 0 : i32
    %c0_i32_0 = arith.constant 0 : i32
    return %arg0, %c0_i32 : i32, i32
  }
}

module attributes {stable_mosaic.version = 11 : i64} {
  func.func @kernel(%arg0: i32, %arg1: memref<512x1024xf32, #tpu.memory_space<vmem>>, %arg2: memref<1024x64xf32, #tpu.memory_space<vmem>>, %arg3: memref<1x64xf32, #tpu.memory_space<vmem>>, %arg4: memref<512x64xf32, #tpu.memory_space<vmem>>) attributes {dimension_semantics = [#tpu.dimension_semantics<parallel>], iteration_bounds = array<i64: 2>, scalar_prefetch = 0 : i64, scratch_operands = 0 : i64, tpu.core_type = #tpu.core_type<tc>, window_params = [{transform_indices = @transform_0, window_bounds = array<i64: 512, 1024>}, {pipeline_mode = #tpu.pipeline_mode<synchronous>, transform_indices = @transform_1, window_bounds = array<i64: 1024, 64>}, {pipeline_mode = #tpu.pipeline_mode<synchronous>, transform_indices = @transform_2, window_bounds = array<i64: 1, 64>}, {transform_indices = @transform_3, window_bounds = array<i64: 512, 64>}]} {
    %c0 = arith.constant 0 : index
    %c0_0 = arith.constant 0 : index
    %0 = vector.load %arg1[%c0, %c0_0] : memref<512x1024xf32, #tpu.memory_space<vmem>>, vector<512x1024xf32>
    %c0_1 = arith.constant 0 : index
    %c0_2 = arith.constant 0 : index
    %1 = vector.load %arg2[%c0_1, %c0_2] : memref<1024x64xf32, #tpu.memory_space<vmem>>, vector<1024x64xf32>
    %cst = arith.constant dense<0.000000e+00> : vector<512x64xf32>
    %2 = tpu.matmul %0, %1, %cst {dimension_numbers = #tpu.dot_dimension_numbers<[1], [0], [0], [1], [0, 0, 1, 1], [], []>} : vector<512x1024xf32>, vector<1024x64xf32>, vector<512x64xf32> -> vector<512x64xf32>
    %c0_3 = arith.constant 0 : index
    %c0_4 = arith.constant 0 : index
    %3 = vector.load %arg3[%c0_3, %c0_4] : memref<1x64xf32, #tpu.memory_space<vmem>>, vector<1x64xf32>
    %4 = vector.broadcast %3 : vector<1x64xf32> to vector<512x64xf32>
    %5 = arith.addf %2, %4 : vector<512x64xf32>
    %cst_5 = arith.constant 0.000000e+00 : f32
    %6 = vector.broadcast %cst_5 : f32 to vector<512x64xf32>
    %7 = arith.cmpf ogt, %5, %6 : vector<512x64xf32>
    %cst_6 = arith.constant 0.00999999977 : f32
    %8 = vector.broadcast %cst_6 : f32 to vector<512x64xf32>
    %9 = arith.mulf %8, %5 : vector<512x64xf32>
    %10 = arith.select %7, %5, %9 : vector<512x64xi1>, vector<512x64xf32>
    %c0_7 = arith.constant 0 : index
    %c0_8 = arith.constant 0 : index
    %11 = vector.load %arg4[%c0_7, %c0_8] : memref<512x64xf32, #tpu.memory_space<vmem>>, vector<512x64xf32>
    tpu.vector_store %arg4[%c0_7, %c0_8], %10 {strides = array<i32>} : memref<512x64xf32, #tpu.memory_space<vmem>>, vector<512x64xf32>,
    return
  }
  func.func @transform_0(%arg0: i32) -> (i32, i32) {
    %c0_i32 = arith.constant 0 : i32
    %c0_i32_0 = arith.constant 0 : i32
    return %arg0, %c0_i32 : i32, i32
  }
  func.func @transform_1(%arg0: i32) -> (i32, i32) {
    %c0_i32 = arith.constant 0 : i32
    %c0_i32_0 = arith.constant 0 : i32
    %c0_i32_1 = arith.constant 0 : i32
    return %c0_i32, %c0_i32_0 : i32, i32
  }
  func.func @transform_2(%arg0: i32) -> (i32, i32) {
    %c0_i32 = arith.constant 0 : i32
    %c0_i32_0 = arith.constant 0 : i32
    %c0_i32_1 = arith.constant 0 : i32
    return %c0_i32, %c0_i32_0 : i32, i32
  }
  func.func @transform_3(%arg0: i32) -> (i32, i32) {
    %c0_i32 = arith.constant 0 : i32
    %c0_i32_0 = arith.constant 0 : i32
    return %arg0, %c0_i32 : i32, i32
  }
}

module attributes {stable_mosaic.version = 11 : i64} {
  func.func @kernel(%arg0: i32, %arg1: memref<200x576xf32, #tpu.memory_space<vmem>>, %arg2: memref<576x4xf32, #tpu.memory_space<vmem>>, %arg3: memref<1x4xf32, #tpu.memory_space<vmem>>, %arg4: memref<200x4xf32, #tpu.memory_space<vmem>>) attributes {dimension_semantics = [#tpu.dimension_semantics<parallel>], iteration_bounds = array<i64: 1>, scalar_prefetch = 0 : i64, scratch_operands = 0 : i64, tpu.core_type = #tpu.core_type<tc>, window_params = [{transform_indices = @transform_0, window_bounds = array<i64: 200, 576>}, {pipeline_mode = #tpu.pipeline_mode<synchronous>, transform_indices = @transform_1, window_bounds = array<i64: 576, 4>}, {pipeline_mode = #tpu.pipeline_mode<synchronous>, transform_indices = @transform_2, window_bounds = array<i64: 1, 4>}, {transform_indices = @transform_3, window_bounds = array<i64: 200, 4>}]} {
    %c0 = arith.constant 0 : index
    %c0_0 = arith.constant 0 : index
    %0 = vector.load %arg1[%c0, %c0_0] : memref<200x576xf32, #tpu.memory_space<vmem>>, vector<200x576xf32>
    %c0_1 = arith.constant 0 : index
    %c0_2 = arith.constant 0 : index
    %1 = vector.load %arg2[%c0_1, %c0_2] : memref<576x4xf32, #tpu.memory_space<vmem>>, vector<576x4xf32>
    %cst = arith.constant dense<0.000000e+00> : vector<200x4xf32>
    %2 = tpu.matmul %0, %1, %cst {dimension_numbers = #tpu.dot_dimension_numbers<[1], [0], [0], [1], [0, 0, 1, 1], [], []>} : vector<200x576xf32>, vector<576x4xf32>, vector<200x4xf32> -> vector<200x4xf32>
    %c0_3 = arith.constant 0 : index
    %c0_4 = arith.constant 0 : index
    %3 = vector.load %arg3[%c0_3, %c0_4] : memref<1x4xf32, #tpu.memory_space<vmem>>, vector<1x4xf32>
    %4 = vector.broadcast %3 : vector<1x4xf32> to vector<200x4xf32>
    %5 = arith.addf %2, %4 : vector<200x4xf32>
    %c0_5 = arith.constant 0 : index
    %c0_6 = arith.constant 0 : index
    %6 = vector.load %arg4[%c0_5, %c0_6] : memref<200x4xf32, #tpu.memory_space<vmem>>, vector<200x4xf32>
    tpu.vector_store %arg4[%c0_5, %c0_6], %5 {strides = array<i32>} : memref<200x4xf32, #tpu.memory_space<vmem>>, vector<200x4xf32>,
    return
  }
  func.func @transform_0(%arg0: i32) -> (i32, i32) {
    %c0_i32 = arith.constant 0 : i32
    %c0_i32_0 = arith.constant 0 : i32
    return %arg0, %c0_i32 : i32, i32
  }
  func.func @transform_1(%arg0: i32) -> (i32, i32) {
    %c0_i32 = arith.constant 0 : i32
    %c0_i32_0 = arith.constant 0 : i32
    %c0_i32_1 = arith.constant 0 : i32
    return %c0_i32, %c0_i32_0 : i32, i32
  }
  func.func @transform_2(%arg0: i32) -> (i32, i32) {
    %c0_i32 = arith.constant 0 : i32
    %c0_i32_0 = arith.constant 0 : i32
    %c0_i32_1 = arith.constant 0 : i32
    return %c0_i32, %c0_i32_0 : i32, i32
  }
  func.func @transform_3(%arg0: i32) -> (i32, i32) {
    %c0_i32 = arith.constant 0 : i32
    %c0_i32_0 = arith.constant 0 : i32
    return %arg0, %c0_i32 : i32, i32
  }
}

module attributes {stable_mosaic.version = 11 : i64} {
  func.func @_latent_kernel(%arg0: memref<2x400xf32, #tpu.memory_space<vmem>>, %arg1: memref<400x64xf32, #tpu.memory_space<vmem>>, %arg2: memref<1x64xf32, #tpu.memory_space<vmem>>, %arg3: memref<2x32xf32, #tpu.memory_space<vmem>>, %arg4: memref<32x400xf32, #tpu.memory_space<vmem>>, %arg5: memref<1x400xf32, #tpu.memory_space<vmem>>, %arg6: memref<2x32xf32, #tpu.memory_space<vmem>>, %arg7: memref<2x32xf32, #tpu.memory_space<vmem>>, %arg8: memref<2x400xf32, #tpu.memory_space<vmem>>) attributes {dimension_semantics = [], scalar_prefetch = 0 : i64, scratch_operands = 0 : i64, tpu.core_type = #tpu.core_type<tc>} {
    %c0 = arith.constant 0 : index
    %c0_0 = arith.constant 0 : index
    %0 = vector.load %arg0[%c0, %c0_0] : memref<2x400xf32, #tpu.memory_space<vmem>>, vector<2x400xf32>
    %c0_1 = arith.constant 0 : index
    %c0_2 = arith.constant 0 : index
    %1 = vector.load %arg1[%c0_1, %c0_2] : memref<400x64xf32, #tpu.memory_space<vmem>>, vector<400x64xf32>
    %cst = arith.constant dense<0.000000e+00> : vector<2x64xf32>
    %2 = tpu.matmul %0, %1, %cst {dimension_numbers = #tpu.dot_dimension_numbers<[1], [0], [0], [1], [0, 0, 1, 1], [], []>} : vector<2x400xf32>, vector<400x64xf32>, vector<2x64xf32> -> vector<2x64xf32>
    %c0_3 = arith.constant 0 : index
    %c0_4 = arith.constant 0 : index
    %3 = vector.load %arg2[%c0_3, %c0_4] : memref<1x64xf32, #tpu.memory_space<vmem>>, vector<1x64xf32>
    %4 = vector.broadcast %3 : vector<1x64xf32> to vector<2x64xf32>
    %5 = arith.addf %2, %4 : vector<2x64xf32>
    %6 = vector.extract_strided_slice %5 {offsets = [0, 0], sizes = [2, 32], strides = [1, 1]} : vector<2x64xf32> to vector<2x32xf32>
    %7 = vector.extract_strided_slice %5 {offsets = [0, 32], sizes = [2, 32], strides = [1, 1]} : vector<2x64xf32> to vector<2x32xf32>
    %c0_5 = arith.constant 0 : index
    %c0_6 = arith.constant 0 : index
    %8 = vector.load %arg6[%c0_5, %c0_6] : memref<2x32xf32, #tpu.memory_space<vmem>>, vector<2x32xf32>
    tpu.vector_store %arg6[%c0_5, %c0_6], %6 {strides = array<i32>} : memref<2x32xf32, #tpu.memory_space<vmem>>, vector<2x32xf32>,
    %c0_7 = arith.constant 0 : index
    %c0_8 = arith.constant 0 : index
    %9 = vector.load %arg7[%c0_7, %c0_8] : memref<2x32xf32, #tpu.memory_space<vmem>>, vector<2x32xf32>
    tpu.vector_store %arg7[%c0_7, %c0_8], %7 {strides = array<i32>} : memref<2x32xf32, #tpu.memory_space<vmem>>, vector<2x32xf32>,
    %c0_9 = arith.constant 0 : index
    %c0_10 = arith.constant 0 : index
    %10 = vector.load %arg3[%c0_9, %c0_10] : memref<2x32xf32, #tpu.memory_space<vmem>>, vector<2x32xf32>
    %cst_11 = arith.constant 5.000000e-01 : f32
    %11 = vector.broadcast %cst_11 : f32 to vector<2x32xf32>
    %12 = arith.mulf %11, %7 : vector<2x32xf32>
    %13 = math.exp %12 : vector<2x32xf32>
    %14 = arith.mulf %10, %13 : vector<2x32xf32>
    %15 = arith.addf %14, %6 : vector<2x32xf32>
    %c0_12 = arith.constant 0 : index
    %c0_13 = arith.constant 0 : index
    %16 = vector.load %arg4[%c0_12, %c0_13] : memref<32x400xf32, #tpu.memory_space<vmem>>, vector<32x400xf32>
    %cst_14 = arith.constant dense<0.000000e+00> : vector<2x400xf32>
    %17 = tpu.matmul %15, %16, %cst_14 {dimension_numbers = #tpu.dot_dimension_numbers<[1], [0], [0], [1], [0, 0, 1, 1], [], []>} : vector<2x32xf32>, vector<32x400xf32>, vector<2x400xf32> -> vector<2x400xf32>
    %c0_15 = arith.constant 0 : index
    %c0_16 = arith.constant 0 : index
    %18 = vector.load %arg5[%c0_15, %c0_16] : memref<1x400xf32, #tpu.memory_space<vmem>>, vector<1x400xf32>
    %19 = vector.broadcast %18 : vector<1x400xf32> to vector<2x400xf32>
    %20 = arith.addf %17, %19 : vector<2x400xf32>
    %cst_17 = arith.constant 0.000000e+00 : f32
    %21 = vector.broadcast %cst_17 : f32 to vector<2x400xf32>
    %22 = arith.maximumf %20, %21 : vector<2x400xf32>
    %c0_18 = arith.constant 0 : index
    %c0_19 = arith.constant 0 : index
    %23 = vector.load %arg8[%c0_18, %c0_19] : memref<2x400xf32, #tpu.memory_space<vmem>>, vector<2x400xf32>
    tpu.vector_store %arg8[%c0_18, %c0_19], %22 {strides = array<i32>} : memref<2x400xf32, #tpu.memory_space<vmem>>, vector<2x400xf32>,
    return
  }
}

module attributes {stable_mosaic.version = 11 : i64} {
  func.func @kernel(%arg0: i32, %arg1: memref<200x4xf32, #tpu.memory_space<vmem>>, %arg2: memref<4x576xf32, #tpu.memory_space<vmem>>, %arg3: memref<200x576xf32, #tpu.memory_space<vmem>>) attributes {dimension_semantics = [#tpu.dimension_semantics<parallel>], iteration_bounds = array<i64: 1>, scalar_prefetch = 0 : i64, scratch_operands = 0 : i64, tpu.core_type = #tpu.core_type<tc>, window_params = [{transform_indices = @transform_0, window_bounds = array<i64: 200, 4>}, {pipeline_mode = #tpu.pipeline_mode<synchronous>, transform_indices = @transform_1, window_bounds = array<i64: 4, 576>}, {transform_indices = @transform_2, window_bounds = array<i64: 200, 576>}]} {
    %c0 = arith.constant 0 : index
    %c0_0 = arith.constant 0 : index
    %0 = vector.load %arg1[%c0, %c0_0] : memref<200x4xf32, #tpu.memory_space<vmem>>, vector<200x4xf32>
    %c0_1 = arith.constant 0 : index
    %c0_2 = arith.constant 0 : index
    %1 = vector.load %arg2[%c0_1, %c0_2] : memref<4x576xf32, #tpu.memory_space<vmem>>, vector<4x576xf32>
    %cst = arith.constant dense<0.000000e+00> : vector<200x576xf32>
    %2 = tpu.matmul %0, %1, %cst {dimension_numbers = #tpu.dot_dimension_numbers<[1], [0], [0], [1], [0, 0, 1, 1], [], []>} : vector<200x4xf32>, vector<4x576xf32>, vector<200x576xf32> -> vector<200x576xf32>
    %c0_3 = arith.constant 0 : index
    %c0_4 = arith.constant 0 : index
    %3 = vector.load %arg3[%c0_3, %c0_4] : memref<200x576xf32, #tpu.memory_space<vmem>>, vector<200x576xf32>
    tpu.vector_store %arg3[%c0_3, %c0_4], %2 {strides = array<i32>} : memref<200x576xf32, #tpu.memory_space<vmem>>, vector<200x576xf32>,
    return
  }
  func.func @transform_0(%arg0: i32) -> (i32, i32) {
    %c0_i32 = arith.constant 0 : i32
    %c0_i32_0 = arith.constant 0 : i32
    return %arg0, %c0_i32 : i32, i32
  }
  func.func @transform_1(%arg0: i32) -> (i32, i32) {
    %c0_i32 = arith.constant 0 : i32
    %c0_i32_0 = arith.constant 0 : i32
    %c0_i32_1 = arith.constant 0 : i32
    return %c0_i32, %c0_i32_0 : i32, i32
  }
  func.func @transform_2(%arg0: i32) -> (i32, i32) {
    %c0_i32 = arith.constant 0 : i32
    %c0_i32_0 = arith.constant 0 : i32
    return %arg0, %c0_i32 : i32, i32
  }
}

module attributes {stable_mosaic.version = 11 : i64} {
  func.func @kernel(%arg0: i32, %arg1: memref<512x64xf32, #tpu.memory_space<vmem>>, %arg2: memref<64x1024xf32, #tpu.memory_space<vmem>>, %arg3: memref<512x1024xf32, #tpu.memory_space<vmem>>) attributes {dimension_semantics = [#tpu.dimension_semantics<parallel>], iteration_bounds = array<i64: 2>, scalar_prefetch = 0 : i64, scratch_operands = 0 : i64, tpu.core_type = #tpu.core_type<tc>, window_params = [{transform_indices = @transform_0, window_bounds = array<i64: 512, 64>}, {pipeline_mode = #tpu.pipeline_mode<synchronous>, transform_indices = @transform_1, window_bounds = array<i64: 64, 1024>}, {transform_indices = @transform_2, window_bounds = array<i64: 512, 1024>}]} {
    %c0 = arith.constant 0 : index
    %c0_0 = arith.constant 0 : index
    %0 = vector.load %arg1[%c0, %c0_0] : memref<512x64xf32, #tpu.memory_space<vmem>>, vector<512x64xf32>
    %c0_1 = arith.constant 0 : index
    %c0_2 = arith.constant 0 : index
    %1 = vector.load %arg2[%c0_1, %c0_2] : memref<64x1024xf32, #tpu.memory_space<vmem>>, vector<64x1024xf32>
    %cst = arith.constant dense<0.000000e+00> : vector<512x1024xf32>
    %2 = tpu.matmul %0, %1, %cst {dimension_numbers = #tpu.dot_dimension_numbers<[1], [0], [0], [1], [0, 0, 1, 1], [], []>} : vector<512x64xf32>, vector<64x1024xf32>, vector<512x1024xf32> -> vector<512x1024xf32>
    %c0_3 = arith.constant 0 : index
    %c0_4 = arith.constant 0 : index
    %3 = vector.load %arg3[%c0_3, %c0_4] : memref<512x1024xf32, #tpu.memory_space<vmem>>, vector<512x1024xf32>
    tpu.vector_store %arg3[%c0_3, %c0_4], %2 {strides = array<i32>} : memref<512x1024xf32, #tpu.memory_space<vmem>>, vector<512x1024xf32>,
    return
  }
  func.func @transform_0(%arg0: i32) -> (i32, i32) {
    %c0_i32 = arith.constant 0 : i32
    %c0_i32_0 = arith.constant 0 : i32
    return %arg0, %c0_i32 : i32, i32
  }
  func.func @transform_1(%arg0: i32) -> (i32, i32) {
    %c0_i32 = arith.constant 0 : i32
    %c0_i32_0 = arith.constant 0 : i32
    %c0_i32_1 = arith.constant 0 : i32
    return %c0_i32, %c0_i32_0 : i32, i32
  }
  func.func @transform_2(%arg0: i32) -> (i32, i32) {
    %c0_i32 = arith.constant 0 : i32
    %c0_i32_0 = arith.constant 0 : i32
    return %arg0, %c0_i32 : i32, i32
  }
}

module attributes {stable_mosaic.version = 11 : i64} {
  func.func @kernel(%arg0: i32, %arg1: memref<512x64xf32, #tpu.memory_space<vmem>>, %arg2: memref<64x16xf32, #tpu.memory_space<vmem>>, %arg3: memref<512x16xf32, #tpu.memory_space<vmem>>) attributes {dimension_semantics = [#tpu.dimension_semantics<parallel>], iteration_bounds = array<i64: 8>, scalar_prefetch = 0 : i64, scratch_operands = 0 : i64, tpu.core_type = #tpu.core_type<tc>, window_params = [{transform_indices = @transform_0, window_bounds = array<i64: 512, 64>}, {pipeline_mode = #tpu.pipeline_mode<synchronous>, transform_indices = @transform_1, window_bounds = array<i64: 64, 16>}, {transform_indices = @transform_2, window_bounds = array<i64: 512, 16>}]} {
    %c0 = arith.constant 0 : index
    %c0_0 = arith.constant 0 : index
    %0 = vector.load %arg1[%c0, %c0_0] : memref<512x64xf32, #tpu.memory_space<vmem>>, vector<512x64xf32>
    %c0_1 = arith.constant 0 : index
    %c0_2 = arith.constant 0 : index
    %1 = vector.load %arg2[%c0_1, %c0_2] : memref<64x16xf32, #tpu.memory_space<vmem>>, vector<64x16xf32>
    %cst = arith.constant dense<0.000000e+00> : vector<512x16xf32>
    %2 = tpu.matmul %0, %1, %cst {dimension_numbers = #tpu.dot_dimension_numbers<[1], [0], [0], [1], [0, 0, 1, 1], [], []>} : vector<512x64xf32>, vector<64x16xf32>, vector<512x16xf32> -> vector<512x16xf32>
    %c0_3 = arith.constant 0 : index
    %c0_4 = arith.constant 0 : index
    %3 = vector.load %arg3[%c0_3, %c0_4] : memref<512x16xf32, #tpu.memory_space<vmem>>, vector<512x16xf32>
    tpu.vector_store %arg3[%c0_3, %c0_4], %2 {strides = array<i32>} : memref<512x16xf32, #tpu.memory_space<vmem>>, vector<512x16xf32>,
    return
  }
  func.func @transform_0(%arg0: i32) -> (i32, i32) {
    %c0_i32 = arith.constant 0 : i32
    %c0_i32_0 = arith.constant 0 : i32
    return %arg0, %c0_i32 : i32, i32
  }
  func.func @transform_1(%arg0: i32) -> (i32, i32) {
    %c0_i32 = arith.constant 0 : i32
    %c0_i32_0 = arith.constant 0 : i32
    %c0_i32_1 = arith.constant 0 : i32
    return %c0_i32, %c0_i32_0 : i32, i32
  }
  func.func @transform_2(%arg0: i32) -> (i32, i32) {
    %c0_i32 = arith.constant 0 : i32
    %c0_i32_0 = arith.constant 0 : i32
    return %arg0, %c0_i32 : i32, i32
  }
}

</mosaic_0001>

<bundles_post_ra>
// kernel: forward.7
= control target key start
LH: loop header
LB: loop body
LE: loop exit
PB: predicated region body
PF: predicated region fallthrough
CT: control target
= control target key end

     0   :  { %s1555_s12 = smov 0   ;;  %s1557_s13 = smov 0   ;;  %s2070_s0 = inlined_call_operand.vmem [shape: f32[3362,16], index: 0, kind: input, shape index: {}]   ;;  %s2071_s1 = inlined_call_operand.vmem [shape: f32[16,64], index: 1, kind: input, shape index: {}]   ;;  %s2072_s2 = inlined_call_operand.vmem [shape: f32[1,64], index: 2, kind: input, shape index: {}]   ;;  %s2073_s3 = inlined_call_operand.vmem [shape: f32[3362,64], index: 3, kind: output, shape index: {}]  }
   0x1   :  { %s1559_s14 = smov 0  }
   0x2 LB: > { %s1568_s15 = sadd.s32 4294967295, %s1501_s14   ;;  %s1570_s16 = sadd.s32 1, %s1501_s14   ;;  %s1501_s14 = sphi %s1559_s14, %s2082_s14   ;;  %s1497_s13 = sphi %s1557_s13, %s2081_s13   ;;  %s1493_s12 = sphi %s1555_s12, %s2080_s12  }
   0x3   : > { %s85_s17 = ssub.s32 %s1501_s14, %s1570_s16  ;;  %s88_s18 = sadd.s32 1, %s1497_s13 }
   0x4   : > { %p86_p0 = scmp.eq.s32.totalorder %s85_s17, 0  ;;  %p98_p1 = scmp.ne.s32.totalorder %s1497_s13, %s1493_s12 }
   0x5   : > { %p99_p2 = scmp.eq.s32.totalorder %s1568_s15, 6  ;;  %p1264_p3 = scmp.ge.s32.totalorder %s1501_s14, 1 }
   0x6   : > { %s1578_s19 = scalar_select %p86_p0, %s1497_s13, %s88_s18  }
   0x7   : > { %p1580_p4 = por %p99_p2, %p98_p1  ;;  %p146_p5 = scmp.lt.s32.totalorder %s1501_s14, 8 }
   0x9   : > { %p147_p6 = pnand %p1264_p3, %p146_p5 }
   0xa   : > { %s1591_s25 = sshll.u32 (!%p147_p6), %s1568_s15, 6  ;;  %s170_s4 = sand.u32 (!%p147_p6), 1, %s1493_s12  }
   0xb   : > { %150 = sbr.rel (%p147_p6) target bundleno = 344 (0x158), region = 32  ;;  %p178_p7 = scmp.lt.s32.totalorder (!%p147_p6), %s1591_s25, 420 }
   0xc   : > { %s1265_s7 = sshll.u32 (!%p147_p6), %s170_s4, 9 }
   0xd   : > { %s1736_s8 = scalar_lea.vmem (!%p147_p6), [#allocation2], %s1265_s7  }
  0x10   : > { %v257_v0 = vld [vmem:[%s2071_s1 + $0x8] sm:$0xff]  ;;  %v256_v1 = vld [vmem:[%s2071_s1] sm:$0xff]  ;;  %s179_s26 = scalar_select %p178_p7, %s1591_s25, 420  ;;  %vm262_vm0 = vcmask 130048   ;;  %vm856_vm1 = vcmask 523264  }
  0x11   : > { %1353 = vmatpush.msra.mxu2 %v257_v0  ;;  %1354 = vmatpush.msra.mxu3 %v257_v0  ;;  %s929_s9 = ssub.s32 (%p1580_p4), 421, %s1591_s25  ;;  %s1349_s10 = sshll.u32 (%p1580_p4), %s1568_s15, 9 }
  0x12   : > { %469 = vmatpush.msra.mxu0 %v257_v0  ;;  %1352 = vmatpush.msra.mxu1 %v257_v0  ;;  %s1267_s27 = sshll.u32 %s179_s26, 3  ;;  %p930_p8 = scmp.lt.s32.totalorder (%p1580_p4), %s929_s9, 64 }
  0x13   : > { %1356 = vmatpush.msra.mxu2 %v256_v1  ;;  %1357 = vmatpush.msra.mxu3 %v256_v1  ;;  %s1598_s30 = scalar_lea.vmem %s2070_s0, %s1267_s27  ;;  %s1935_s14 = scalar_lea.vmem (%p1580_p4), %s2073_s3, %s1349_s10  }
  0x14   : > { %470 = vmatpush.msra.mxu0 %v256_v1  ;;  %1355 = vmatpush.msra.mxu1 %v256_v1  ;;  %v224_v2 = vld [vmem:[%s1598_s30 + $0x100] sm:$0xff]  ;;  %v225_v6 = vld [vmem:[%s1598_s30 + $0x108] sm:$0xff]  ;;  %v226_v10 = vld [vmem:[%s1598_s30 + $0x110] sm:$0xff] }
  0x15   : > { %v240_v3 = vld [vmem:[%s1598_s30 + $0x180] sm:$0xff]  ;;  %1300 = vmatmul.msk.f32.vlgmr.msra.gmra.mxu2 %vm262_vm0, %v224_v2  ;;  %v241_v7 = vld [vmem:[%s1598_s30 + $0x188] sm:$0xff]  ;;  %v242_v11 = vld [vmem:[%s1598_s30 + $0x190] sm:$0xff] }
  0x16   : > { %v192_v4 = vld [vmem:[%s1598_s30] sm:$0xff]  ;;  %1316 = vmatmul.msk.f32.vlgmr.msra.gmra.mxu3 %vm262_vm0, %v240_v3  ;;  %v193_v8 = vld [vmem:[%s1598_s30 + $0x8] sm:$0xff]  ;;  %v194_v12 = vld [vmem:[%s1598_s30 + $0x10] sm:$0xff] }
  0x17   : > { %v208_v5 = vld [vmem:[%s1598_s30 + $0x80] sm:$0xff]  ;;  %1268 = vmatmul.msk.f32.vlgmr.msra.gmra.mxu0 %vm262_vm0, %v192_v4  ;;  %v209_v9 = vld [vmem:[%s1598_s30 + $0x88] sm:$0xff]  ;;  %v210_v13 = vld [vmem:[%s1598_s30 + $0x90] sm:$0xff] }
  0x18   : > { %1284 = vmatmul.msk.f32.vlgmr.msra.gmra.mxu1 %vm262_vm0, %v208_v5  ;;  %v227_v14 = vld [vmem:[%s1598_s30 + $0x118] sm:$0xff]  ;;  %v228_v18 = vld [vmem:[%s1598_s30 + $0x120] sm:$0xff]  ;;  %v229_v22 = vld [vmem:[%s1598_s30 + $0x128] sm:$0xff] }
  0x19   : > { %v243_v15 = vld [vmem:[%s1598_s30 + $0x198] sm:$0xff]  ;;  %v244_v19 = vld [vmem:[%s1598_s30 + $0x1a0] sm:$0xff]  ;;  %v245_v23 = vld [vmem:[%s1598_s30 + $0x1a8] sm:$0xff] }
  0x1a   : > { %v195_v16 = vld [vmem:[%s1598_s30 + $0x18] sm:$0xff]  ;;  %v196_v20 = vld [vmem:[%s1598_s30 + $0x20] sm:$0xff]  ;;  %v197_v24 = vld [vmem:[%s1598_s30 + $0x28] sm:$0xff] }
  0x1b   : > { %v211_v17 = vld [vmem:[%s1598_s30 + $0x98] sm:$0xff]  ;;  %v212_v21 = vld [vmem:[%s1598_s30 + $0xa0] sm:$0xff]  ;;  %v213_v25 = vld [vmem:[%s1598_s30 + $0xa8] sm:$0xff] }
  0x1c   : > { %v230_v26 = vld [vmem:[%s1598_s30 + $0x130] sm:$0xff]  ;;  %v231_v30 = vld [vmem:[%s1598_s30 + $0x138] sm:$0xff]  ;;  %v232_v34 = vld [vmem:[%s1598_s30 + $0x140] sm:$0xff] }
  0x1d   : > { %1301 = vmatmul.msk.f32.gmra.mxu2 %vm262_vm0, %v225_v6  ;;  %v246_v27 = vld [vmem:[%s1598_s30 + $0x1b0] sm:$0xff]  ;;  %v247_v31 = vld [vmem:[%s1598_s30 + $0x1b8] sm:$0xff]  ;;  %v248_v35 = vld [vmem:[%s1598_s30 + $0x1c0] sm:$0xff] }
  0x1e   : > { %1317 = vmatmul.msk.f32.gmra.mxu3 %vm262_vm0, %v241_v7  ;;  %v198_v28 = vld [vmem:[%s1598_s30 + $0x30] sm:$0xff]  ;;  %v199_v32 = vld [vmem:[%s1598_s30 + $0x38] sm:$0xff]  ;;  %v200_v36 = vld [vmem:[%s1598_s30 + $0x40] sm:$0xff] }
  0x1f   : > { %1269 = vmatmul.msk.f32.gmra.mxu0 %vm262_vm0, %v193_v8  ;;  %v214_v29 = vld [vmem:[%s1598_s30 + $0xb0] sm:$0xff]  ;;  %v215_v33 = vld [vmem:[%s1598_s30 + $0xb8] sm:$0xff]  ;;  %v216_v37 = vld [vmem:[%s1598_s30 + $0xc0] sm:$0xff] }
  0x20   : > { %1285 = vmatmul.msk.f32.gmra.mxu1 %vm262_vm0, %v209_v9  ;;  %v233_v38 = vld [vmem:[%s1598_s30 + $0x148] sm:$0xff]  ;;  %v234_v42 = vld [vmem:[%s1598_s30 + $0x150] sm:$0xff]  ;;  %v235_v46 = vld [vmem:[%s1598_s30 + $0x158] sm:$0xff] }
  0x21   : > { %v249_v39 = vld [vmem:[%s1598_s30 + $0x1c8] sm:$0xff]  ;;  %v250_v43 = vld [vmem:[%s1598_s30 + $0x1d0] sm:$0xff]  ;;  %v251_v47 = vld [vmem:[%s1598_s30 + $0x1d8] sm:$0xff] }
  0x22   : > { %v201_v40 = vld [vmem:[%s1598_s30 + $0x48] sm:$0xff]  ;;  %v202_v44 = vld [vmem:[%s1598_s30 + $0x50] sm:$0xff]  ;;  %v203_v48 = vld [vmem:[%s1598_s30 + $0x58] sm:$0xff] }
  0x23   : > { %v217_v41 = vld [vmem:[%s1598_s30 + $0xc8] sm:$0xff]  ;;  %v218_v45 = vld [vmem:[%s1598_s30 + $0xd0] sm:$0xff]  ;;  %v219_v49 = vld [vmem:[%s1598_s30 + $0xd8] sm:$0xff] }
  0x24   : > { %v236_v50 = vld [vmem:[%s1598_s30 + $0x160] sm:$0xff]  ;;  %v237_v54 = vld [vmem:[%s1598_s30 + $0x168] sm:$0xff]  ;;  %v238_v58 = vld [vmem:[%s1598_s30 + $0x170] sm:$0xff] }
  0x25   : > { %1302 = vmatmul.msk.f32.gmra.mxu2 %vm262_vm0, %v226_v10  ;;  %v252_v51 = vld [vmem:[%s1598_s30 + $0x1e0] sm:$0xff]  ;;  %v253_v55 = vld [vmem:[%s1598_s30 + $0x1e8] sm:$0xff]  ;;  %v254_v59 = vld [vmem:[%s1598_s30 + $0x1f0] sm:$0xff] }
  0x26   : > { %1318 = vmatmul.msk.f32.gmra.mxu3 %vm262_vm0, %v242_v11  ;;  %v204_v52 = vld [vmem:[%s1598_s30 + $0x60] sm:$0xff]  ;;  %v205_v56 = vld [vmem:[%s1598_s30 + $0x68] sm:$0xff]  ;;  %v206_v60 = vld [vmem:[%s1598_s30 + $0x70] sm:$0xff] }
  0x27   : > { %1270 = vmatmul.msk.f32.gmra.mxu0 %vm262_vm0, %v194_v12  ;;  %v220_v53 = vld [vmem:[%s1598_s30 + $0xe0] sm:$0xff]  ;;  %v221_v57 = vld [vmem:[%s1598_s30 + $0xe8] sm:$0xff]  ;;  %v222_v61 = vld [vmem:[%s1598_s30 + $0xf0] sm:$0xff] }
  0x28   : > { %1286 = vmatmul.msk.f32.gmra.mxu1 %vm262_vm0, %v210_v13  ;;  %v239_v62 = vld [vmem:[%s1598_s30 + $0x178] sm:$0xff]  ;;  %v1732_v2 = vld [vmem:[%s2072_s2] ss:$0 sm:$0xff] }
  0x29   : > { %v255_v63 = vld [vmem:[%s1598_s30 + $0x1f8] sm:$0xff] }
  0x2a   : > { %v207_v0 = vld [vmem:[%s1598_s30 + $0x78] sm:$0xff] }
  0x2b   : > { %v223_v1 = vld [vmem:[%s1598_s30 + $0xf8] sm:$0xff] }
  0x2d   : > { %1303 = vmatmul.msk.f32.gmra.mxu2 %vm262_vm0, %v227_v14 }
  0x2e   : > { %1319 = vmatmul.msk.f32.gmra.mxu3 %vm262_vm0, %v243_v15 }
  0x2f   : > { %1271 = vmatmul.msk.f32.gmra.mxu0 %vm262_vm0, %v195_v16 }
  0x30   : > { %1287 = vmatmul.msk.f32.gmra.mxu1 %vm262_vm0, %v211_v17 }
  0x35   : > { %1304 = vmatmul.msk.f32.gmra.mxu2 %vm262_vm0, %v228_v18 }
  0x36   : > { %1320 = vmatmul.msk.f32.gmra.mxu3 %vm262_vm0, %v244_v19 }
  0x37   : > { %1272 = vmatmul.msk.f32.gmra.mxu0 %vm262_vm0, %v196_v20 }
  0x38   : > { %1288 = vmatmul.msk.f32.gmra.mxu1 %vm262_vm0, %v212_v21 }
  0x3d   : > { %1305 = vmatmul.msk.f32.gmra.mxu2 %vm262_vm0, %v229_v22 }
  0x3e   : > { %1321 = vmatmul.msk.f32.gmra.mxu3 %vm262_vm0, %v245_v23 }
  0x3f   : > { %1273 = vmatmul.msk.f32.gmra.mxu0 %vm262_vm0, %v197_v24 }
  0x40   : > { %1289 = vmatmul.msk.f32.gmra.mxu1 %vm262_vm0, %v213_v25 }
  0x45   : > { %1306 = vmatmul.msk.f32.gmra.mxu2 %vm262_vm0, %v230_v26 }
  0x46   : > { %1322 = vmatmul.msk.f32.gmra.mxu3 %vm262_vm0, %v246_v27 }
  0x47   : > { %1274 = vmatmul.msk.f32.gmra.mxu0 %vm262_vm0, %v198_v28 }
  0x48   : > { %1290 = vmatmul.msk.f32.gmra.mxu1 %vm262_vm0, %v214_v29 }
  0x4d   : > { %1307 = vmatmul.msk.f32.gmra.mxu2 %vm262_vm0, %v231_v30 }
  0x4e   : > { %1323 = vmatmul.msk.f32.gmra.mxu3 %vm262_vm0, %v247_v31 }
  0x4f   : > { %1275 = vmatmul.msk.f32.gmra.mxu0 %vm262_vm0, %v199_v32 }
  0x50   : > { %1291 = vmatmul.msk.f32.gmra.mxu1 %vm262_vm0, %v215_v33 }
  0x55   : > { %1308 = vmatmul.msk.f32.gmra.mxu2 %vm262_vm0, %v232_v34 }
  0x56   : > { %1324 = vmatmul.msk.f32.gmra.mxu3 %vm262_vm0, %v248_v35 }
  0x57   : > { %1276 = vmatmul.msk.f32.gmra.mxu0 %vm262_vm0, %v200_v36 }
  0x58   : > { %1292 = vmatmul.msk.f32.gmra.mxu1 %vm262_vm0, %v216_v37 }
  0x5d   : > { %1309 = vmatmul.msk.f32.gmra.mxu2 %vm262_vm0, %v233_v38 }
  0x5e   : > { %1325 = vmatmul.msk.f32.gmra.mxu3 %vm262_vm0, %v249_v39 }
  0x5f   : > { %1277 = vmatmul.msk.f32.gmra.mxu0 %vm262_vm0, %v201_v40 }
  0x60   : > { %1293 = vmatmul.msk.f32.gmra.mxu1 %vm262_vm0, %v217_v41 }
  0x65   : > { %1310 = vmatmul.msk.f32.gmra.mxu2 %vm262_vm0, %v234_v42 }
  0x66   : > { %1326 = vmatmul.msk.f32.gmra.mxu3 %vm262_vm0, %v250_v43 }
  0x67   : > { %1278 = vmatmul.msk.f32.gmra.mxu0 %vm262_vm0, %v202_v44 }
  0x68   : > { %1294 = vmatmul.msk.f32.gmra.mxu1 %vm262_vm0, %v218_v45 }
  0x6d   : > { %1311 = vmatmul.msk.f32.gmra.mxu2 %vm262_vm0, %v235_v46 }
  0x6e   : > { %1327 = vmatmul.msk.f32.gmra.mxu3 %vm262_vm0, %v251_v47 }
  0x6f   : > { %1279 = vmatmul.msk.f32.gmra.mxu0 %vm262_vm0, %v203_v48 }
  0x70   : > { %1295 = vmatmul.msk.f32.gmra.mxu1 %vm262_vm0, %v219_v49 }
  0x75   : > { %1312 = vmatmul.msk.f32.gmra.mxu2 %vm262_vm0, %v236_v50 }
  0x76   : > { %1328 = vmatmul.msk.f32.gmra.mxu3 %vm262_vm0, %v252_v51 }
  0x77   : > { %1280 = vmatmul.msk.f32.gmra.mxu0 %vm262_vm0, %v204_v52 }
  0x78   : > { %1296 = vmatmul.msk.f32.gmra.mxu1 %vm262_vm0, %v220_v53 }
  0x7d   : > { %1313 = vmatmul.msk.f32.gmra.mxu2 %vm262_vm0, %v237_v54 }
  0x7e   : > { %1329 = vmatmul.msk.f32.gmra.mxu3 %vm262_vm0, %v253_v55 }
  0x7f   : > { %1281 = vmatmul.msk.f32.gmra.mxu0 %vm262_vm0, %v205_v56 }
  0x80   : > { %1297 = vmatmul.msk.f32.gmra.mxu1 %vm262_vm0, %v221_v57 }
  0x85   : > { %1314 = vmatmul.msk.f32.gmra.mxu2 %vm262_vm0, %v238_v58 }
  0x86   : > { %1330 = vmatmul.msk.f32.gmra.mxu3 %vm262_vm0, %v254_v59 }
  0x87   : > { %1282 = vmatmul.msk.f32.gmra.mxu0 %vm262_vm0, %v206_v60 }
  0x88   : > { %1298 = vmatmul.msk.f32.gmra.mxu1 %vm262_vm0, %v222_v61 }
  0x8d   : > { %1315 = vmatmul.msk.f32.gmra.mxu2 %vm262_vm0, %v239_v62 }
  0x8e   : > { %1331 = vmatmul.msk.f32.gmra.mxu3 %vm262_vm0, %v255_v63 }
  0x8f   : > { %1283 = vmatmul.msk.f32.gmra.mxu0 %vm262_vm0, %v207_v0 }
  0x90   : > { %1299 = vmatmul.msk.f32.gmra.mxu1 %vm262_vm0, %v223_v1 }
  0x94   : > { %v472_v3 = vpop.f32.mrf.mxu0 }
  0x95   : > { %v520_v4 = vpop.f32.mrf.mxu1  ;;  %v473_v5 = vadd.f32 %v1732_v2, %v472_v3 }
  0x96   : > { %v521_v6 = vadd.f32 %v1732_v2, %v520_v4 }
  0x97   : > { %vm664_vm2 = vcmp.gt.f32.partialorder %v473_v5, 0.0  ;;  %v728_v7 = vmul.f32 0.01, %v473_v5 }
  0x98   : > { %vm680_vm3 = vcmp.gt.f32.partialorder %v521_v6, 0.0  ;;  %v744_v8 = vmul.f32 0.01, %v521_v6  ;;  %v568_v11 = vpop.f32.mrf.mxu2 }
  0x99   : > { %v792_v9 = vsel %vm664_vm2, %v473_v5, %v728_v7  ;;  %v616_v12 = vpop.f32.mrf.mxu3  ;;  %v569_v13 = vadd.f32 %v1732_v2, %v568_v11 }
  0x9a   : > { %v808_v10 = vsel %vm680_vm3, %v521_v6, %v744_v8  ;;  %857 = vst.msk [vmem:[%s1736_s8] sm:$0xff] %vm856_vm1, %v792_v9  ;;  %v617_v14 = vadd.f32 %v1732_v2, %v616_v12 }
  0x9b   : > { %873 = vst.msk [vmem:[%s1736_s8 + $0x80] sm:$0xff] %vm856_vm1, %v808_v10  ;;  %vm696_vm4 = vcmp.gt.f32.partialorder %v569_v13, 0.0  ;;  %v760_v15 = vmul.f32 0.01, %v569_v13 }
  0x9c   : > { %vm712_vm5 = vcmp.gt.f32.partialorder %v617_v14, 0.0  ;;  %v776_v16 = vmul.f32 0.01, %v617_v14  ;;  %v475_v17 = vpop.f32.mrf.mxu0 }
  0x9d   : > { %v523_v18 = vpop.f32.mrf.mxu1  ;;  %v476_v19 = vadd.f32 %v1732_v2, %v475_v17  ;;  %v824_v21 = vsel %vm696_vm4, %v569_v13, %v760_v15 }
  0x9e   : > { %v524_v20 = vadd.f32 %v1732_v2, %v523_v18  ;;  %v840_v22 = vsel %vm712_vm5, %v617_v14, %v776_v16  ;;  %889 = vst.msk [vmem:[%s1736_s8 + $0x100] sm:$0xff] %vm856_vm1, %v824_v21 }
  0x9f   : > { %vm665_vm6 = vcmp.gt.f32.partialorder %v476_v19, 0.0  ;;  %v729_v23 = vmul.f32 0.01, %v476_v19  ;;  %905 = vst.msk [vmem:[%s1736_s8 + $0x180] sm:$0xff] %vm856_vm1, %v840_v22 }
  0xa0   : > { %vm681_vm7 = vcmp.gt.f32.partialorder %v524_v20, 0.0  ;;  %v745_v24 = vmul.f32 0.01, %v524_v20  ;;  %v571_v26 = vpop.f32.mrf.mxu2 }
  0xa1   : > { %v793_v25 = vsel %vm665_vm6, %v476_v19, %v729_v23  ;;  %v619_v27 = vpop.f32.mrf.mxu3  ;;  %v572_v29 = vadd.f32 %v1732_v2, %v571_v26 }
  0xa2   : > { %858 = vst.msk [vmem:[%s1736_s8 + $0x8] sm:$0xff] %vm856_vm1, %v793_v25  ;;  %v809_v28 = vsel %vm681_vm7, %v524_v20, %v745_v24  ;;  %v620_v30 = vadd.f32 %v1732_v2, %v619_v27 }
  0xa3   : > { %874 = vst.msk [vmem:[%s1736_s8 + $0x88] sm:$0xff] %vm856_vm1, %v809_v28  ;;  %vm697_vm8 = vcmp.gt.f32.partialorder %v572_v29, 0.0  ;;  %v761_v31 = vmul.f32 0.01, %v572_v29 }
  0xa4   : > { %vm713_vm9 = vcmp.gt.f32.partialorder %v620_v30, 0.0  ;;  %v777_v32 = vmul.f32 0.01, %v620_v30  ;;  %v478_v33 = vpop.f32.mrf.mxu0 }
  0xa5   : > { %v526_v34 = vpop.f32.mrf.mxu1  ;;  %v479_v35 = vadd.f32 %v1732_v2, %v478_v33  ;;  %v825_v37 = vsel %vm697_vm8, %v572_v29, %v761_v31 }
  0xa6   : > { %v527_v36 = vadd.f32 %v1732_v2, %v526_v34  ;;  %v841_v38 = vsel %vm713_vm9, %v620_v30, %v777_v32  ;;  %890 = vst.msk [vmem:[%s1736_s8 + $0x108] sm:$0xff] %vm856_vm1, %v825_v37 }
  0xa7   : > { %vm666_vm10 = vcmp.gt.f32.partialorder %v479_v35, 0.0  ;;  %v730_v39 = vmul.f32 0.01, %v479_v35  ;;  %906 = vst.msk [vmem:[%s1736_s8 + $0x188] sm:$0xff] %vm856_vm1, %v841_v38 }
  0xa8   : > { %vm682_vm11 = vcmp.gt.f32.partialorder %v527_v36, 0.0  ;;  %v746_v40 = vmul.f32 0.01, %v527_v36  ;;  %v574_v42 = vpop.f32.mrf.mxu2 }
  0xa9   : > { %v794_v41 = vsel %vm666_vm10, %v479_v35, %v730_v39  ;;  %v622_v43 = vpop.f32.mrf.mxu3  ;;  %v575_v45 = vadd.f32 %v1732_v2, %v574_v42 }
  0xaa   : > { %859 = vst.msk [vmem:[%s1736_s8 + $0x10] sm:$0xff] %vm856_vm1, %v794_v41  ;;  %v810_v44 = vsel %vm682_vm11, %v527_v36, %v746_v40  ;;  %v623_v46 = vadd.f32 %v1732_v2, %v622_v43 }
  0xab   : > { %875 = vst.msk [vmem:[%s1736_s8 + $0x90] sm:$0xff] %vm856_vm1, %v810_v44  ;;  %vm698_vm12 = vcmp.gt.f32.partialorder %v575_v45, 0.0  ;;  %v762_v47 = vmul.f32 0.01, %v575_v45 }
  0xac   : > { %vm714_vm13 = vcmp.gt.f32.partialorder %v623_v46, 0.0  ;;  %v778_v48 = vmul.f32 0.01, %v623_v46  ;;  %v481_v49 = vpop.f32.mrf.mxu0 }
  0xad   : > { %v529_v50 = vpop.f32.mrf.mxu1  ;;  %v482_v51 = vadd.f32 %v1732_v2, %v481_v49  ;;  %v826_v53 = vsel %vm698_vm12, %v575_v45, %v762_v47 }
  0xae   : > { %v530_v52 = vadd.f32 %v1732_v2, %v529_v50  ;;  %v842_v54 = vsel %vm714_vm13, %v623_v46, %v778_v48  ;;  %891 = vst.msk [vmem:[%s1736_s8 + $0x110] sm:$0xff] %vm856_vm1, %v826_v53 }
  0xaf   : > { %vm667_vm14 = vcmp.gt.f32.partialorder %v482_v51, 0.0  ;;  %v731_v55 = vmul.f32 0.01, %v482_v51  ;;  %907 = vst.msk [vmem:[%s1736_s8 + $0x190] sm:$0xff] %vm856_vm1, %v842_v54 }
  0xb0   : > { %vm683_vm15 = vcmp.gt.f32.partialorder %v530_v52, 0.0  ;;  %v747_v56 = vmul.f32 0.01, %v530_v52  ;;  %v577_v58 = vpop.f32.mrf.mxu2 }
  0xb1   : > { %v795_v57 = vsel %vm667_vm14, %v482_v51, %v731_v55  ;;  %v625_v59 = vpop.f32.mrf.mxu3  ;;  %v578_v61 = vadd.f32 %v1732_v2, %v577_v58 }
  0xb2   : > { %860 = vst.msk [vmem:[%s1736_s8 + $0x18] sm:$0xff] %vm856_vm1, %v795_v57  ;;  %v811_v60 = vsel %vm683_vm15, %v530_v52, %v747_v56  ;;  %v626_v62 = vadd.f32 %v1732_v2, %v625_v59 }
  0xb3   : > { %876 = vst.msk [vmem:[%s1736_s8 + $0x98] sm:$0xff] %vm856_vm1, %v811_v60  ;;  %vm699_vm0 = vcmp.gt.f32.partialorder %v578_v61, 0.0  ;;  %v763_v63 = vmul.f32 0.01, %v578_v61 }
  0xb4   : > { %vm715_vm2 = vcmp.gt.f32.partialorder %v626_v62, 0.0  ;;  %v779_v0 = vmul.f32 0.01, %v626_v62  ;;  %v484_v1 = vpop.f32.mrf.mxu0 }
  0xb5   : > { %v532_v3 = vpop.f32.mrf.mxu1  ;;  %v485_v4 = vadd.f32 %v1732_v2, %v484_v1  ;;  %v827_v6 = vsel %vm699_vm0, %v578_v61, %v763_v63 }
  0xb6   : > { %v533_v5 = vadd.f32 %v1732_v2, %v532_v3  ;;  %v843_v7 = vsel %vm715_vm2, %v626_v62, %v779_v0  ;;  %892 = vst.msk [vmem:[%s1736_s8 + $0x118] sm:$0xff] %vm856_vm1, %v827_v6 }
  0xb7   : > { %vm668_vm3 = vcmp.gt.f32.partialorder %v485_v4, 0.0  ;;  %v732_v8 = vmul.f32 0.01, %v485_v4  ;;  %908 = vst.msk [vmem:[%s1736_s8 + $0x198] sm:$0xff] %vm856_vm1, %v843_v7 }
  0xb8   : > { %vm684_vm4 = vcmp.gt.f32.partialorder %v533_v5, 0.0  ;;  %v748_v9 = vmul.f32 0.01, %v533_v5  ;;  %v580_v11 = vpop.f32.mrf.mxu2 }
  0xb9   : > { %v796_v10 = vsel %vm668_vm3, %v485_v4, %v732_v8  ;;  %v628_v12 = vpop.f32.mrf.mxu3  ;;  %v581_v14 = vadd.f32 %v1732_v2, %v580_v11 }
  0xba   : > { %861 = vst.msk [vmem:[%s1736_s8 + $0x20] sm:$0xff] %vm856_vm1, %v796_v10  ;;  %v812_v13 = vsel %vm684_vm4, %v533_v5, %v748_v9  ;;  %v629_v15 = vadd.f32 %v1732_v2, %v628_v12 }
  0xbb   : > { %877 = vst.msk [vmem:[%s1736_s8 + $0xa0] sm:$0xff] %vm856_vm1, %v812_v13  ;;  %vm700_vm5 = vcmp.gt.f32.partialorder %v581_v14, 0.0  ;;  %v764_v16 = vmul.f32 0.01, %v581_v14 }
  0xbc   : > { %vm716_vm6 = vcmp.gt.f32.partialorder %v629_v15, 0.0  ;;  %v780_v17 = vmul.f32 0.01, %v629_v15  ;;  %v487_v18 = vpop.f32.mrf.mxu0 }
  0xbd   : > { %v535_v19 = vpop.f32.mrf.mxu1  ;;  %v488_v20 = vadd.f32 %v1732_v2, %v487_v18  ;;  %v828_v22 = vsel %vm700_vm5, %v581_v14, %v764_v16 }
  0xbe   : > { %v536_v21 = vadd.f32 %v1732_v2, %v535_v19  ;;  %v844_v23 = vsel %vm716_vm6, %v629_v15, %v780_v17  ;;  %893 = vst.msk [vmem:[%s1736_s8 + $0x120] sm:$0xff] %vm856_vm1, %v828_v22 }
  0xbf   : > { %vm669_vm7 = vcmp.gt.f32.partialorder %v488_v20, 0.0  ;;  %v733_v24 = vmul.f32 0.01, %v488_v20  ;;  %909 = vst.msk [vmem:[%s1736_s8 + $0x1a0] sm:$0xff] %vm856_vm1, %v844_v23 }
  0xc0   : > { %vm685_vm8 = vcmp.gt.f32.partialorder %v536_v21, 0.0  ;;  %v749_v25 = vmul.f32 0.01, %v536_v21  ;;  %v583_v27 = vpop.f32.mrf.mxu2 }
  0xc1   : > { %v797_v26 = vsel %vm669_vm7, %v488_v20, %v733_v24  ;;  %v631_v28 = vpop.f32.mrf.mxu3  ;;  %v584_v30 = vadd.f32 %v1732_v2, %v583_v27 }
  0xc2   : > { %862 = vst.msk [vmem:[%s1736_s8 + $0x28] sm:$0xff] %vm856_vm1, %v797_v26  ;;  %v813_v29 = vsel %vm685_vm8, %v536_v21, %v749_v25  ;;  %v632_v31 = vadd.f32 %v1732_v2, %v631_v28 }
  0xc3   : > { %878 = vst.msk [vmem:[%s1736_s8 + $0xa8] sm:$0xff] %vm856_vm1, %v813_v29  ;;  %vm701_vm9 = vcmp.gt.f32.partialorder %v584_v30, 0.0  ;;  %v765_v32 = vmul.f32 0.01, %v584_v30 }
  0xc4   : > { %vm717_vm10 = vcmp.gt.f32.partialorder %v632_v31, 0.0  ;;  %v781_v33 = vmul.f32 0.01, %v632_v31  ;;  %v490_v34 = vpop.f32.mrf.mxu0 }
  0xc5   : > { %v538_v35 = vpop.f32.mrf.mxu1  ;;  %v491_v36 = vadd.f32 %v1732_v2, %v490_v34  ;;  %v829_v38 = vsel %vm701_vm9, %v584_v30, %v765_v32 }
  0xc6   : > { %v539_v37 = vadd.f32 %v1732_v2, %v538_v35  ;;  %v845_v39 = vsel %vm717_vm10, %v632_v31, %v781_v33  ;;  %894 = vst.msk [vmem:[%s1736_s8 + $0x128] sm:$0xff] %vm856_vm1, %v829_v38 }
  0xc7   : > { %vm670_vm11 = vcmp.gt.f32.partialorder %v491_v36, 0.0  ;;  %v734_v40 = vmul.f32 0.01, %v491_v36  ;;  %910 = vst.msk [vmem:[%s1736_s8 + $0x1a8] sm:$0xff] %vm856_vm1, %v845_v39 }
  0xc8   : > { %vm686_vm12 = vcmp.gt.f32.partialorder %v539_v37, 0.0  ;;  %v750_v41 = vmul.f32 0.01, %v539_v37  ;;  %v586_v43 = vpop.f32.mrf.mxu2 }
  0xc9   : > { %v798_v42 = vsel %vm670_vm11, %v491_v36, %v734_v40  ;;  %v634_v44 = vpop.f32.mrf.mxu3  ;;  %v587_v46 = vadd.f32 %v1732_v2, %v586_v43 }
  0xca   : > { %863 = vst.msk [vmem:[%s1736_s8 + $0x30] sm:$0xff] %vm856_vm1, %v798_v42  ;;  %v814_v45 = vsel %vm686_vm12, %v539_v37, %v750_v41  ;;  %v635_v47 = vadd.f32 %v1732_v2, %v634_v44 }
  0xcb   : > { %879 = vst.msk [vmem:[%s1736_s8 + $0xb0] sm:$0xff] %vm856_vm1, %v814_v45  ;;  %vm702_vm13 = vcmp.gt.f32.partialorder %v587_v46, 0.0  ;;  %v766_v48 = vmul.f32 0.01, %v587_v46 }
  0xcc   : > { %vm718_vm14 = vcmp.gt.f32.partialorder %v635_v47, 0.0  ;;  %v782_v49 = vmul.f32 0.01, %v635_v47  ;;  %v493_v50 = vpop.f32.mrf.mxu0 }
  0xcd   : > { %v541_v51 = vpop.f32.mrf.mxu1  ;;  %v494_v52 = vadd.f32 %v1732_v2, %v493_v50  ;;  %v830_v54 = vsel %vm702_vm13, %v587_v46, %v766_v48 }
  0xce   : > { %v542_v53 = vadd.f32 %v1732_v2, %v541_v51  ;;  %v846_v55 = vsel %vm718_vm14, %v635_v47, %v782_v49  ;;  %895 = vst.msk [vmem:[%s1736_s8 + $0x130] sm:$0xff] %vm856_vm1, %v830_v54 }
  0xcf   : > { %vm671_vm15 = vcmp.gt.f32.partialorder %v494_v52, 0.0  ;;  %v735_v56 = vmul.f32 0.01, %v494_v52  ;;  %911 = vst.msk [vmem:[%s1736_s8 + $0x1b0] sm:$0xff] %vm856_vm1, %v846_v55 }
  0xd0   : > { %vm687_vm0 = vcmp.gt.f32.partialorder %v542_v53, 0.0  ;;  %v751_v57 = vmul.f32 0.01, %v542_v53  ;;  %v589_v59 = vpop.f32.mrf.mxu2 }
  0xd1   : > { %v799_v58 = vsel %vm671_vm15, %v494_v52, %v735_v56  ;;  %v637_v60 = vpop.f32.mrf.mxu3  ;;  %v590_v62 = vadd.f32 %v1732_v2, %v589_v59 }
  0xd2   : > { %864 = vst.msk [vmem:[%s1736_s8 + $0x38] sm:$0xff] %vm856_vm1, %v799_v58  ;;  %v815_v61 = vsel %vm687_vm0, %v542_v53, %v751_v57  ;;  %v638_v63 = vadd.f32 %v1732_v2, %v637_v60 }
  0xd3   : > { %880 = vst.msk [vmem:[%s1736_s8 + $0xb8] sm:$0xff] %vm856_vm1, %v815_v61  ;;  %vm703_vm2 = vcmp.gt.f32.partialorder %v590_v62, 0.0  ;;  %v767_v0 = vmul.f32 0.01, %v590_v62 }
  0xd4   : > { %vm719_vm3 = vcmp.gt.f32.partialorder %v638_v63, 0.0  ;;  %v783_v1 = vmul.f32 0.01, %v638_v63  ;;  %v496_v3 = vpop.f32.mrf.mxu0 }
  0xd5   : > { %v544_v4 = vpop.f32.mrf.mxu1  ;;  %v497_v5 = vadd.f32 %v1732_v2, %v496_v3  ;;  %v831_v7 = vsel %vm703_vm2, %v590_v62, %v767_v0 }
  0xd6   : > { %v545_v6 = vadd.f32 %v1732_v2, %v544_v4  ;;  %v847_v8 = vsel %vm719_vm3, %v638_v63, %v783_v1  ;;  %896 = vst.msk [vmem:[%s1736_s8 + $0x138] sm:$0xff] %vm856_vm1, %v831_v7 }
  0xd7   : > { %vm672_vm4 = vcmp.gt.f32.partialorder %v497_v5, 0.0  ;;  %v736_v9 = vmul.f32 0.01, %v497_v5  ;;  %912 = vst.msk [vmem:[%s1736_s8 + $0x1b8] sm:$0xff] %vm856_vm1, %v847_v8 }
  0xd8   : > { %vm688_vm5 = vcmp.gt.f32.partialorder %v545_v6, 0.0  ;;  %v752_v10 = vmul.f32 0.01, %v545_v6  ;;  %v592_v12 = vpop.f32.mrf.mxu2 }
  0xd9   : > { %v800_v11 = vsel %vm672_vm4, %v497_v5, %v736_v9  ;;  %v640_v13 = vpop.f32.mrf.mxu3  ;;  %v593_v15 = vadd.f32 %v1732_v2, %v592_v12 }
  0xda   : > { %865 = vst.msk [vmem:[%s1736_s8 + $0x40] sm:$0xff] %vm856_vm1, %v800_v11  ;;  %v816_v14 = vsel %vm688_vm5, %v545_v6, %v752_v10  ;;  %v641_v16 = vadd.f32 %v1732_v2, %v640_v13 }
  0xdb   : > { %881 = vst.msk [vmem:[%s1736_s8 + $0xc0] sm:$0xff] %vm856_vm1, %v816_v14  ;;  %vm704_vm6 = vcmp.gt.f32.partialorder %v593_v15, 0.0  ;;  %v768_v17 = vmul.f32 0.01, %v593_v15 }
  0xdc   : > { %vm720_vm7 = vcmp.gt.f32.partialorder %v641_v16, 0.0  ;;  %v784_v18 = vmul.f32 0.01, %v641_v16  ;;  %v499_v19 = vpop.f32.mrf.mxu0 }
  0xdd   : > { %v547_v20 = vpop.f32.mrf.mxu1  ;;  %v500_v21 = vadd.f32 %v1732_v2, %v499_v19  ;;  %v832_v23 = vsel %vm704_vm6, %v593_v15, %v768_v17 }
  0xde   : > { %v548_v22 = vadd.f32 %v1732_v2, %v547_v20  ;;  %v848_v24 = vsel %vm720_vm7, %v641_v16, %v784_v18  ;;  %897 = vst.msk [vmem:[%s1736_s8 + $0x140] sm:$0xff] %vm856_vm1, %v832_v23 }
  0xdf   : > { %vm673_vm8 = vcmp.gt.f32.partialorder %v500_v21, 0.0  ;;  %v737_v25 = vmul.f32 0.01, %v500_v21  ;;  %913 = vst.msk [vmem:[%s1736_s8 + $0x1c0] sm:$0xff] %vm856_vm1, %v848_v24 }
  0xe0   : > { %vm689_vm9 = vcmp.gt.f32.partialorder %v548_v22, 0.0  ;;  %v753_v26 = vmul.f32 0.01, %v548_v22  ;;  %v595_v28 = vpop.f32.mrf.mxu2 }
  0xe1   : > { %v801_v27 = vsel %vm673_vm8, %v500_v21, %v737_v25  ;;  %v643_v29 = vpop.f32.mrf.mxu3  ;;  %v596_v31 = vadd.f32 %v1732_v2, %v595_v28 }
  0xe2   : > { %866 = vst.msk [vmem:[%s1736_s8 + $0x48] sm:$0xff] %vm856_vm1, %v801_v27  ;;  %v817_v30 = vsel %vm689_vm9, %v548_v22, %v753_v26  ;;  %v644_v32 = vadd.f32 %v1732_v2, %v643_v29 }
  0xe3   : > { %882 = vst.msk [vmem:[%s1736_s8 + $0xc8] sm:$0xff] %vm856_vm1, %v817_v30  ;;  %vm705_vm10 = vcmp.gt.f32.partialorder %v596_v31, 0.0  ;;  %v769_v33 = vmul.f32 0.01, %v596_v31 }
  0xe4   : > { %vm721_vm11 = vcmp.gt.f32.partialorder %v644_v32, 0.0  ;;  %v785_v34 = vmul.f32 0.01, %v644_v32  ;;  %v502_v35 = vpop.f32.mrf.mxu0 }
  0xe5   : > { %v550_v36 = vpop.f32.mrf.mxu1  ;;  %v503_v37 = vadd.f32 %v1732_v2, %v502_v35  ;;  %v833_v39 = vsel %vm705_vm10, %v596_v31, %v769_v33 }
  0xe6   : > { %v551_v38 = vadd.f32 %v1732_v2, %v550_v36  ;;  %v849_v40 = vsel %vm721_vm11, %v644_v32, %v785_v34  ;;  %898 = vst.msk [vmem:[%s1736_s8 + $0x148] sm:$0xff] %vm856_vm1, %v833_v39 }
  0xe7   : > { %vm674_vm12 = vcmp.gt.f32.partialorder %v503_v37, 0.0  ;;  %v738_v41 = vmul.f32 0.01, %v503_v37  ;;  %914 = vst.msk [vmem:[%s1736_s8 + $0x1c8] sm:$0xff] %vm856_vm1, %v849_v40 }
  0xe8   : > { %vm690_vm13 = vcmp.gt.f32.partialorder %v551_v38, 0.0  ;;  %v754_v42 = vmul.f32 0.01, %v551_v38  ;;  %v598_v44 = vpop.f32.mrf.mxu2 }
  0xe9   : > { %v802_v43 = vsel %vm674_vm12, %v503_v37, %v738_v41  ;;  %v646_v45 = vpop.f32.mrf.mxu3  ;;  %v599_v47 = vadd.f32 %v1732_v2, %v598_v44 }
  0xea   : > { %867 = vst.msk [vmem:[%s1736_s8 + $0x50] sm:$0xff] %vm856_vm1, %v802_v43  ;;  %v818_v46 = vsel %vm690_vm13, %v551_v38, %v754_v42  ;;  %v647_v48 = vadd.f32 %v1732_v2, %v646_v45 }
  0xeb   : > { %883 = vst.msk [vmem:[%s1736_s8 + $0xd0] sm:$0xff] %vm856_vm1, %v818_v46  ;;  %vm706_vm14 = vcmp.gt.f32.partialorder %v599_v47, 0.0  ;;  %v770_v49 = vmul.f32 0.01, %v599_v47 }
  0xec   : > { %vm722_vm15 = vcmp.gt.f32.partialorder %v647_v48, 0.0  ;;  %v786_v50 = vmul.f32 0.01, %v647_v48  ;;  %v505_v51 = vpop.f32.mrf.mxu0 }
  0xed   : > { %v553_v52 = vpop.f32.mrf.mxu1  ;;  %v506_v53 = vadd.f32 %v1732_v2, %v505_v51  ;;  %v834_v55 = vsel %vm706_vm14, %v599_v47, %v770_v49 }
  0xee   : > { %v554_v54 = vadd.f32 %v1732_v2, %v553_v52  ;;  %v850_v56 = vsel %vm722_vm15, %v647_v48, %v786_v50  ;;  %899 = vst.msk [vmem:[%s1736_s8 + $0x150] sm:$0xff] %vm856_vm1, %v834_v55 }
  0xef   : > { %vm675_vm0 = vcmp.gt.f32.partialorder %v506_v53, 0.0  ;;  %v739_v57 = vmul.f32 0.01, %v506_v53  ;;  %915 = vst.msk [vmem:[%s1736_s8 + $0x1d0] sm:$0xff] %vm856_vm1, %v850_v56 }
  0xf0   : > { %vm691_vm2 = vcmp.gt.f32.partialorder %v554_v54, 0.0  ;;  %v755_v58 = vmul.f32 0.01, %v554_v54  ;;  %v601_v60 = vpop.f32.mrf.mxu2 }
  0xf1   : > { %v803_v59 = vsel %vm675_vm0, %v506_v53, %v739_v57  ;;  %v649_v61 = vpop.f32.mrf.mxu3  ;;  %v602_v63 = vadd.f32 %v1732_v2, %v601_v60 }
  0xf2   : > { %868 = vst.msk [vmem:[%s1736_s8 + $0x58] sm:$0xff] %vm856_vm1, %v803_v59  ;;  %v819_v62 = vsel %vm691_vm2, %v554_v54, %v755_v58  ;;  %v650_v0 = vadd.f32 %v1732_v2, %v649_v61 }
  0xf3   : > { %884 = vst.msk [vmem:[%s1736_s8 + $0xd8] sm:$0xff] %vm856_vm1, %v819_v62  ;;  %vm707_vm3 = vcmp.gt.f32.partialorder %v602_v63, 0.0  ;;  %v771_v1 = vmul.f32 0.01, %v602_v63 }
  0xf4   : > { %vm723_vm4 = vcmp.gt.f32.partialorder %v650_v0, 0.0  ;;  %v787_v3 = vmul.f32 0.01, %v650_v0  ;;  %v508_v4 = vpop.f32.mrf.mxu0 }
  0xf5   : > { %v556_v5 = vpop.f32.mrf.mxu1  ;;  %v509_v6 = vadd.f32 %v1732_v2, %v508_v4  ;;  %v835_v8 = vsel %vm707_vm3, %v602_v63, %v771_v1 }
  0xf6   : > { %v557_v7 = vadd.f32 %v1732_v2, %v556_v5  ;;  %v851_v9 = vsel %vm723_vm4, %v650_v0, %v787_v3  ;;  %900 = vst.msk [vmem:[%s1736_s8 + $0x158] sm:$0xff] %vm856_vm1, %v835_v8 }
  0xf7   : > { %vm676_vm5 = vcmp.gt.f32.partialorder %v509_v6, 0.0  ;;  %v740_v10 = vmul.f32 0.01, %v509_v6  ;;  %916 = vst.msk [vmem:[%s1736_s8 + $0x1d8] sm:$0xff] %vm856_vm1, %v851_v9 }
  0xf8   : > { %vm692_vm6 = vcmp.gt.f32.partialorder %v557_v7, 0.0  ;;  %v756_v11 = vmul.f32 0.01, %v557_v7  ;;  %v604_v13 = vpop.f32.mrf.mxu2 }
  0xf9   : > { %v804_v12 = vsel %vm676_vm5, %v509_v6, %v740_v10  ;;  %v652_v14 = vpop.f32.mrf.mxu3  ;;  %v605_v16 = vadd.f32 %v1732_v2, %v604_v13 }
  0xfa   : > { %869 = vst.msk [vmem:[%s1736_s8 + $0x60] sm:$0xff] %vm856_vm1, %v804_v12  ;;  %v820_v15 = vsel %vm692_vm6, %v557_v7, %v756_v11  ;;  %v653_v17 = vadd.f32 %v1732_v2, %v652_v14 }
  0xfb   : > { %885 = vst.msk [vmem:[%s1736_s8 + $0xe0] sm:$0xff] %vm856_vm1, %v820_v15  ;;  %vm708_vm7 = vcmp.gt.f32.partialorder %v605_v16, 0.0  ;;  %v772_v18 = vmul.f32 0.01, %v605_v16 }
  0xfc   : > { %vm724_vm8 = vcmp.gt.f32.partialorder %v653_v17, 0.0  ;;  %v788_v19 = vmul.f32 0.01, %v653_v17  ;;  %v511_v20 = vpop.f32.mrf.mxu0 }
  0xfd   : > { %v559_v21 = vpop.f32.mrf.mxu1  ;;  %v512_v22 = vadd.f32 %v1732_v2, %v511_v20  ;;  %v836_v24 = vsel %vm708_vm7, %v605_v16, %v772_v18 }
  0xfe   : > { %v560_v23 = vadd.f32 %v1732_v2, %v559_v21  ;;  %v852_v25 = vsel %vm724_vm8, %v653_v17, %v788_v19  ;;  %901 = vst.msk [vmem:[%s1736_s8 + $0x160] sm:$0xff] %vm856_vm1, %v836_v24 }
  0xff   : > { %vm677_vm9 = vcmp.gt.f32.partialorder %v512_v22, 0.0  ;;  %v741_v26 = vmul.f32 0.01, %v512_v22  ;;  %917 = vst.msk [vmem:[%s1736_s8 + $0x1e0] sm:$0xff] %vm856_vm1, %v852_v25 }
 0x100   : > { %vm693_vm10 = vcmp.gt.f32.partialorder %v560_v23, 0.0  ;;  %v757_v27 = vmul.f32 0.01, %v560_v23  ;;  %v607_v29 = vpop.f32.mrf.mxu2 }
 0x101   : > { %v805_v28 = vsel %vm677_vm9, %v512_v22, %v741_v26  ;;  %v655_v30 = vpop.f32.mrf.mxu3  ;;  %v608_v32 = vadd.f32 %v1732_v2, %v607_v29 }
 0x102   : > { %870 = vst.msk [vmem:[%s1736_s8 + $0x68] sm:$0xff] %vm856_vm1, %v805_v28  ;;  %v821_v31 = vsel %vm693_vm10, %v560_v23, %v757_v27  ;;  %v656_v33 = vadd.f32 %v1732_v2, %v655_v30 }
 0x103   : > { %886 = vst.msk [vmem:[%s1736_s8 + $0xe8] sm:$0xff] %vm856_vm1, %v821_v31  ;;  %vm709_vm11 = vcmp.gt.f32.partialorder %v608_v32, 0.0  ;;  %v773_v34 = vmul.f32 0.01, %v608_v32 }
 0x104   : > { %vm725_vm12 = vcmp.gt.f32.partialorder %v656_v33, 0.0  ;;  %v789_v35 = vmul.f32 0.01, %v656_v33  ;;  %v514_v36 = vpop.f32.mrf.mxu0 }
 0x105   : > { %v562_v37 = vpop.f32.mrf.mxu1  ;;  %v515_v38 = vadd.f32 %v1732_v2, %v514_v36  ;;  %v837_v40 = vsel %vm709_vm11, %v608_v32, %v773_v34 }
 0x106   : > { %v563_v39 = vadd.f32 %v1732_v2, %v562_v37  ;;  %v853_v41 = vsel %vm725_vm12, %v656_v33, %v789_v35  ;;  %902 = vst.msk [vmem:[%s1736_s8 + $0x168] sm:$0xff] %vm856_vm1, %v837_v40 }
 0x107   : > { %vm678_vm13 = vcmp.gt.f32.partialorder %v515_v38, 0.0  ;;  %v742_v42 = vmul.f32 0.01, %v515_v38  ;;  %918 = vst.msk [vmem:[%s1736_s8 + $0x1e8] sm:$0xff] %vm856_vm1, %v853_v41 }
 0x108   : > { %vm694_vm14 = vcmp.gt.f32.partialorder %v563_v39, 0.0  ;;  %v758_v43 = vmul.f32 0.01, %v563_v39  ;;  %v610_v45 = vpop.f32.mrf.mxu2 }
 0x109   : > { %v806_v44 = vsel %vm678_vm13, %v515_v38, %v742_v42  ;;  %v658_v46 = vpop.f32.mrf.mxu3  ;;  %v611_v48 = vadd.f32 %v1732_v2, %v610_v45 }
 0x10a   : > { %871 = vst.msk [vmem:[%s1736_s8 + $0x70] sm:$0xff] %vm856_vm1, %v806_v44  ;;  %v822_v47 = vsel %vm694_vm14, %v563_v39, %v758_v43  ;;  %v659_v49 = vadd.f32 %v1732_v2, %v658_v46 }
 0x10b   : > { %887 = vst.msk [vmem:[%s1736_s8 + $0xf0] sm:$0xff] %vm856_vm1, %v822_v47  ;;  %vm710_vm15 = vcmp.gt.f32.partialorder %v611_v48, 0.0  ;;  %v774_v50 = vmul.f32 0.01, %v611_v48 }
 0x10c   : > { %vm726_vm0 = vcmp.gt.f32.partialorder %v659_v49, 0.0  ;;  %v790_v51 = vmul.f32 0.01, %v659_v49  ;;  %v517_v52 = vpop.f32.mrf.mxu0 }
 0x10d   : > { %v565_v53 = vpop.f32.mrf.mxu1  ;;  %v518_v54 = vadd.f32 %v1732_v2, %v517_v52  ;;  %v838_v56 = vsel %vm710_vm15, %v611_v48, %v774_v50 }
 0x10e   : > { %v566_v55 = vadd.f32 %v1732_v2, %v565_v53  ;;  %v854_v57 = vsel %vm726_vm0, %v659_v49, %v790_v51  ;;  %903 = vst.msk [vmem:[%s1736_s8 + $0x170] sm:$0xff] %vm856_vm1, %v838_v56 }
 0x10f   : > { %vm679_vm2 = vcmp.gt.f32.partialorder %v518_v54, 0.0  ;;  %v743_v58 = vmul.f32 0.01, %v518_v54  ;;  %919 = vst.msk [vmem:[%s1736_s8 + $0x1f0] sm:$0xff] %vm856_vm1, %v854_v57 }
 0x110   : > { %vm695_vm3 = vcmp.gt.f32.partialorder %v566_v55, 0.0  ;;  %v759_v59 = vmul.f32 0.01, %v566_v55  ;;  %v613_v61 = vpop.f32.mrf.mxu2 }
 0x111   : > { %v807_v60 = vsel %vm679_vm2, %v518_v54, %v743_v58  ;;  %v661_v62 = vpop.f32.mrf.mxu3  ;;  %v614_v0 = vadd.f32 %v1732_v2, %v613_v61 }
 0x112   : > { %872 = vst.msk [vmem:[%s1736_s8 + $0x78] sm:$0xff] %vm856_vm1, %v807_v60  ;;  %v823_v63 = vsel %vm695_vm3, %v566_v55, %v759_v59  ;;  %v662_v1 = vadd.f32 %v1732_v2, %v661_v62 }
 0x113   : > { %888 = vst.msk [vmem:[%s1736_s8 + $0xf8] sm:$0xff] %vm856_vm1, %v823_v63  ;;  %vm711_vm4 = vcmp.gt.f32.partialorder %v614_v0, 0.0  ;;  %v775_v3 = vmul.f32 0.01, %v614_v0  ;;  %927 = sbr.rel (!%p1580_p4) target bundleno = 344 (0x158), region = 36 }
 0x114   : > { %vm727_vm5 = vcmp.gt.f32.partialorder %v662_v1, 0.0  ;;  %v791_v4 = vmul.f32 0.01, %v662_v1 }
 0x115   : > { %v839_v5 = vsel %vm711_vm4, %v614_v0, %v775_v3 }
 0x116   : > { %v855_v6 = vsel %vm727_vm5, %v662_v1, %v791_v4  ;;  %904 = vst.msk [vmem:[%s1736_s8 + $0x178] sm:$0xff] %vm856_vm1, %v839_v5 }
 0x117   : > { %920 = vst.msk [vmem:[%s1736_s8 + $0x1f8] sm:$0xff] %vm856_vm1, %v855_v6 }
 0x118   : > { %s2084_s9 = smov (!%p930_p8, %s929_s9), 64 }
 0x119   : > { %s1334_s17 = sshll.u32 %s2084_s9, 3 }
 0x11a   : > { %p1337_p9 = scmp.eq.s32.totalorder %s1334_s17, 0 }
 0x11b   : > { %s1941_s18 = sshrl.u32 (!%p1337_p9), %s2084_s9, 5 }
 0x11c   : > { %938 = sbr.rel (%p1337_p9) target bundleno = 344 (0x158), region = 40  ;;  %p1338_p10 = scmp.le.s32.totalorder (!%p1337_p9), %s1941_s18, 0 }
 0x121   : > { %1217 = sbr.rel (%p1338_p10) target bundleno = 327 (0x147), region = 116  ;;  %s2075_s15 = smov (!%p1338_p10), %s1935_s14 }
 0x122   : > { %s2076_s20 = smov (!%p1338_p10), %s1736_s8  ;;  %s1950_s21 = smov (!%p1338_p10), 0  }
 0x123   : > { %s1952_s22 = smov (!%p1338_p10), 0  }
 0x126 LB: >> { %v1063_v2 = vld [vmem:[%s1509_s20] sm:$0xff]  ;;  %v1065_v7 = vld [vmem:[%s1509_s20 + $0x8] sm:$0xff]  ;;  %v1067_v8 = vld [vmem:[%s1509_s20 + $0x10] sm:$0xff]  ;;  %s1127_s23 = sadd.s32 1, %s1513_s21  ;;  %s1057_s22 = sadd.s32 1, %s1517_s22   ;;  %s1517_s22 = sphi %s1952_s22, %s1057_s22   ;;  %s1513_s21 = sphi %s1950_s21, %s2079_s21   ;;  %s1509_s20 = sphi %s2076_s20, %s2078_s20   ;;  %s1505_s15 = sphi %s2075_s15, %s2077_s15  }
 0x127   : >> { %1064 = vst [vmem:[%s1505_s15] sm:$0xff] %v1063_v2  ;;  %v1069_v9 = vld [vmem:[%s1509_s20 + $0x18] sm:$0xff]  ;;  %p1128_p11 = scmp.ge.s32.totalorder %s1127_s23, %s1941_s18  ;;  %v1071_v10 = vld [vmem:[%s1509_s20 + $0x20] sm:$0xff]  ;;  %v1073_v11 = vld [vmem:[%s1509_s20 + $0x28] sm:$0xff]  ;;  %p1056_p12 = scmp.ge.s32.totalorder %s1057_s22, %s1941_s18 }
 0x128   : >> { %1066 = vst [vmem:[%s1505_s15 + $0x8] sm:$0xff] %v1065_v7  ;;  %v1075_v12 = vld [vmem:[%s1509_s20 + $0x30] sm:$0xff]  ;;  %v1077_v13 = vld [vmem:[%s1509_s20 + $0x38] sm:$0xff]  ;;  %v1079_v14 = vld [vmem:[%s1509_s20 + $0x40] sm:$0xff] }
 0x129   : >> { %1068 = vst [vmem:[%s1505_s15 + $0x10] sm:$0xff] %v1067_v8  ;;  %s2086_s23 = smov (%p1128_p11, %s1127_s23), 0  ;;  %v1081_v15 = vld [vmem:[%s1509_s20 + $0x48] sm:$0xff]  ;;  %v1083_v16 = vld [vmem:[%s1509_s20 + $0x50] sm:$0xff]  ;;  %v1085_v17 = vld [vmem:[%s1509_s20 + $0x58] sm:$0xff] }
 0x12a   : >> { %1070 = vst [vmem:[%s1505_s15 + $0x18] sm:$0xff] %v1069_v9  ;;  %s1339_s24 = sshll.u32 %s2086_s23, 8  ;;  %v1087_v18 = vld [vmem:[%s1509_s20 + $0x60] sm:$0xff]  ;;  %v1089_v19 = vld [vmem:[%s1509_s20 + $0x68] sm:$0xff]  ;;  %v1091_v20 = vld [vmem:[%s1509_s20 + $0x70] sm:$0xff]  ;;  %s2079_s21 = smov %s2086_s23 }
 0x12b   : >> { %1072 = vst [vmem:[%s1505_s15 + $0x20] sm:$0xff] %v1071_v10  ;;  %s1984_s25 = scalar_lea.vmem %s1736_s8, %s1339_s24 [#allocation2]   ;;  %s1987_s26 = scalar_lea.vmem %s1935_s14, %s1339_s24   ;;  %v1093_v21 = vld [vmem:[%s1509_s20 + $0x78] sm:$0xff]  ;;  %v1095_v22 = vld [vmem:[%s1509_s20 + $0x80] sm:$0xff]  ;;  %v1097_v23 = vld [vmem:[%s1509_s20 + $0x88] sm:$0xff] }
 0x12c   : >> { %1074 = vst [vmem:[%s1505_s15 + $0x28] sm:$0xff] %v1073_v11  ;;  %v1099_v24 = vld [vmem:[%s1509_s20 + $0x90] sm:$0xff]  ;;  %v1101_v25 = vld [vmem:[%s1509_s20 + $0x98] sm:$0xff]  ;;  %v1103_v26 = vld [vmem:[%s1509_s20 + $0xa0] sm:$0xff] }
 0x12d   : >> { %1076 = vst [vmem:[%s1505_s15 + $0x30] sm:$0xff] %v1075_v12  ;;  %v1105_v27 = vld [vmem:[%s1509_s20 + $0xa8] sm:$0xff]  ;;  %v1107_v28 = vld [vmem:[%s1509_s20 + $0xb0] sm:$0xff]  ;;  %v1109_v29 = vld [vmem:[%s1509_s20 + $0xb8] sm:$0xff] }
 0x12e   : >> { %1078 = vst [vmem:[%s1505_s15 + $0x38] sm:$0xff] %v1077_v13  ;;  %v1111_v30 = vld [vmem:[%s1509_s20 + $0xc0] sm:$0xff]  ;;  %v1113_v31 = vld [vmem:[%s1509_s20 + $0xc8] sm:$0xff]  ;;  %v1115_v32 = vld [vmem:[%s1509_s20 + $0xd0] sm:$0xff] }
 0x12f   : >> { %1080 = vst [vmem:[%s1505_s15 + $0x40] sm:$0xff] %v1079_v14  ;;  %v1117_v33 = vld [vmem:[%s1509_s20 + $0xd8] sm:$0xff]  ;;  %v1119_v34 = vld [vmem:[%s1509_s20 + $0xe0] sm:$0xff]  ;;  %v1121_v35 = vld [vmem:[%s1509_s20 + $0xe8] sm:$0xff] }
 0x130   : >> { %1082 = vst [vmem:[%s1505_s15 + $0x48] sm:$0xff] %v1081_v15  ;;  %v1123_v36 = vld [vmem:[%s1509_s20 + $0xf0] sm:$0xff]  ;;  %v1125_v37 = vld [vmem:[%s1509_s20 + $0xf8] sm:$0xff]  ;;  %s2078_s20 = smov %s1984_s25 }
 0x131   : >> { %1084 = vst [vmem:[%s1505_s15 + $0x50] sm:$0xff] %v1083_v16 }
 0x132   : >> { %1086 = vst [vmem:[%s1505_s15 + $0x58] sm:$0xff] %v1085_v17 }
 0x133   : >> { %1088 = vst [vmem:[%s1505_s15 + $0x60] sm:$0xff] %v1087_v18 }
 0x134   : >> { %1090 = vst [vmem:[%s1505_s15 + $0x68] sm:$0xff] %v1089_v19 }
 0x135   : >> { %1092 = vst [vmem:[%s1505_s15 + $0x70] sm:$0xff] %v1091_v20 }
 0x136   : >> { %1094 = vst [vmem:[%s1505_s15 + $0x78] sm:$0xff] %v1093_v21 }
 0x137   : >> { %1096 = vst [vmem:[%s1505_s15 + $0x80] sm:$0xff] %v1095_v22 }
 0x138   : >> { %1098 = vst [vmem:[%s1505_s15 + $0x88] sm:$0xff] %v1097_v23 }
 0x139   : >> { %1100 = vst [vmem:[%s1505_s15 + $0x90] sm:$0xff] %v1099_v24 }
 0x13a   : >> { %1102 = vst [vmem:[%s1505_s15 + $0x98] sm:$0xff] %v1101_v25 }
 0x13b   : >> { %1104 = vst [vmem:[%s1505_s15 + $0xa0] sm:$0xff] %v1103_v26 }
 0x13c   : >> { %1106 = vst [vmem:[%s1505_s15 + $0xa8] sm:$0xff] %v1105_v27 }
 0x13d   : >> { %1108 = vst [vmem:[%s1505_s15 + $0xb0] sm:$0xff] %v1107_v28 }
 0x13e   : >> { %1110 = vst [vmem:[%s1505_s15 + $0xb8] sm:$0xff] %v1109_v29 }
 0x13f   : >> { %1112 = vst [vmem:[%s1505_s15 + $0xc0] sm:$0xff] %v1111_v30 }
 0x140   : >> { %1114 = vst [vmem:[%s1505_s15 + $0xc8] sm:$0xff] %v1113_v31 }
 0x141   : >> { %1116 = vst [vmem:[%s1505_s15 + $0xd0] sm:$0xff] %v1115_v32 }
 0x142   : >> { %1118 = vst [vmem:[%s1505_s15 + $0xd8] sm:$0xff] %v1117_v33  ;;  %1059 = sbr.rel (!%p1056_p12) target bundleno = 294 (0x126), region = 122 }
 0x143   : >> { %1120 = vst [vmem:[%s1505_s15 + $0xe0] sm:$0xff] %v1119_v34 }
 0x144   : >> { %1122 = vst [vmem:[%s1505_s15 + $0xe8] sm:$0xff] %v1121_v35 }
 0x145   : >> { %1124 = vst [vmem:[%s1505_s15 + $0xf0] sm:$0xff] %v1123_v36 }
 0x146   : >> { %1126 = vst [vmem:[%s1505_s15 + $0xf8] sm:$0xff] %v1125_v37  ;;  %s2077_s15 = smov %s1987_s26 }
 0x147 PF: > { %s2052_s27 = sand.u32 31, %s2084_s9   ;;  %s1350_s28 = sshll.u32 %s1941_s18, 8 }
 0x148   : > { %s1138_s29 = scalar_lea.vmem %s1736_s8, %s1350_s28 [#allocation2]   ;;  %s1140_s30 = scalar_lea.vmem %s1935_s14, %s1350_s28  }
 0x149   : > { %p1344_p13 = scmp.le.s32.totalorder %s2052_s27, 0 }
 0x14a   : > { %s1519_s4 = smov (!%p1344_p13), %s1140_s30   ;;  %s1523_s5 = smov (!%p1344_p13), %s1138_s29  }
 0x14b   : > { %1231 = sbr.rel (%p1344_p13) target bundleno = 344 (0x158), region = 127  ;;  %s1527_s6 = smov (!%p1344_p13), 0  }
 0x14c   : > { %s1531_s7 = smov (!%p1344_p13), 0  }
 0x150 LB: >> { %v1150_v38 = vld [vmem:[%s1525_s5] sm:$0xff]  ;;  %s1152_s9 = sadd.s32 1, %s1529_s6  ;;  %s1144_s7 = sadd.s32 1, %s1533_s7   ;;  %s1533_s7 = sphi %s1531_s7, %s1144_s7   ;;  %s1529_s6 = sphi %s1527_s6, %s1528_s6   ;;  %s1525_s5 = sphi %s1523_s5, %s1157_s5   ;;  %s1521_s4 = sphi %s1519_s4, %s1158_s4  }
 0x151   : >> { %1151 = vst [vmem:[%s1521_s4] sm:$0xff] %v1150_v38  ;;  %p1153_p0 = scmp.ge.s32.totalorder %s1152_s9, %s2052_s27  ;;  %p1143_p1 = scmp.ge.s32.totalorder %s1144_s7, %s2052_s27 }
 0x153   : >> { %s2088_s9 = smov (%p1153_p0, %s1152_s9), 0  ;;  %1146 = sbr.rel (!%p1143_p1) target bundleno = 336 (0x150), region = 133 }
 0x154   : >> { %s1345_s8 = sshll.u32 %s2088_s9, 3  ;;  %s1528_s6 = smov %s2088_s9  }
 0x155   : >> { %s1157_s5 = scalar_lea.vmem %s1138_s29, %s1345_s8 [#allocation2]   ;;  %s1158_s4 = scalar_lea.vmem %s1140_s30, %s1345_s8  }
 0x158 PF: > { %p10_p2 = scmp.ge.s32.totalorder %s1570_s16, 9   ;;  %s2080_s12 = smov %s1497_s13 }
 0x159   : > { %s2081_s13 = smov %s1578_s19  ;;  %s2082_s14 = smov %s1570_s16 }
 0x15a   :  { %12 = sbr.rel (!%p10_p2) target bundleno = 2 (0x2), region = 144 }

// kernel: forward.8
= control target key start
LH: loop header
LB: loop body
LE: loop exit
PB: predicated region body
PF: predicated region fallthrough
CT: control target
= control target key end

     0   :  { %s3341_s12 = smov 0   ;;  %s3343_s13 = smov 0   ;;  %s4819_s0 = inlined_call_operand.vmem [shape: f32[722,1024], index: 0, kind: input, shape index: {}]   ;;  %s4820_s1 = inlined_call_operand.vmem [shape: f32[1024,64], index: 1, kind: input, shape index: {}]   ;;  %s4821_s2 = inlined_call_operand.vmem [shape: f32[1,64], index: 2, kind: input, shape index: {}]   ;;  %s4822_s3 = inlined_call_operand.vmem [shape: f32[722,64], index: 3, kind: output, shape index: {}]  }
   0x1   :  { %s3345_s14 = smov 0  }
   0x2 LB: > { %s3354_s15 = sadd.s32 4294967295, %s3287_s14   ;;  %s3356_s16 = sadd.s32 1, %s3287_s14   ;;  %s3287_s14 = sphi %s3345_s14, %s4863_s14   ;;  %s3283_s13 = sphi %s3343_s13, %s4862_s13   ;;  %s3279_s12 = sphi %s3341_s12, %s4861_s12  }
   0x3   : > { %s85_s17 = ssub.s32 %s3287_s14, %s3356_s16  ;;  %s88_s18 = sadd.s32 1, %s3283_s13 }
   0x4   : > { %p86_p0 = scmp.eq.s32.totalorder %s85_s17, 0  ;;  %p98_p1 = scmp.ne.s32.totalorder %s3283_s13, %s3279_s12 }
   0x5   : > { %p99_p2 = scmp.eq.s32.totalorder %s3354_s15, 1  ;;  %p3116_p3 = scmp.ge.s32.totalorder %s3287_s14, 1 }
   0x6   : > { %s3364_s19 = scalar_select %p86_p0, %s3283_s13, %s88_s18  }
   0x7   : > { %p3366_p4 = por %p99_p2, %p98_p1  ;;  %p149_p5 = scmp.lt.s32.totalorder %s3287_s14, 3 }
   0x9   : > { %p150_p6 = pnand %p3116_p3, %p149_p5 }
   0xb   : > { %153 = sbr.rel (%p150_p6) target bundleno = 1270 (0x4f6), region = 32 }
  0x10   : > { %v727_v0 = vld [vmem:[%s4820_s1 + $0x78] sm:$0xff]  ;;  %v726_v2 = vld [vmem:[%s4820_s1 + $0x70] sm:$0xff]  ;;  %v725_v6 = vld [vmem:[%s4820_s1 + $0x68] sm:$0xff]  ;;  %s3461_s14 = sshll.u32 %s3354_s15, 6  ;;  %vm2708_vm1 = vcmask 523264   ;;  %s3139_s8 = sshll.u32 (%p3366_p4), %s3354_s15, 9 }
  0x11   : > { %v759_v1 = vld [vmem:[%s4820_s1 + $0x178] sm:$0xff]  ;;  %844 = vmatpush.msra.mxu0 %v727_v0  ;;  %v758_v4 = vld [vmem:[%s4820_s1 + $0x170] sm:$0xff]  ;;  %v757_v8 = vld [vmem:[%s4820_s1 + $0x168] sm:$0xff]  ;;  %p184_p7 = scmp.lt.s32.totalorder %s3461_s14, 90  ;;  %s4684_s11 = scalar_lea.vmem (%p3366_p4), %s4822_s3, %s3139_s8  }
  0x12   : > { %1262 = vmatpush.msra.mxu2 %v759_v1  ;;  %v743_v3 = vld [vmem:[%s4820_s1 + $0xf8] sm:$0xff]  ;;  %v742_v7 = vld [vmem:[%s4820_s1 + $0xf0] sm:$0xff]  ;;  %v741_v10 = vld [vmem:[%s4820_s1 + $0xe8] sm:$0xff] }
  0x13   : > { %v775_v5 = vld [vmem:[%s4820_s1 + $0x1f8] sm:$0xff]  ;;  %1053 = vmatpush.msra.mxu1 %v743_v3  ;;  %845 = vmatpush.msra.mxu0 %v726_v2  ;;  %v774_v9 = vld [vmem:[%s4820_s1 + $0x1f0] sm:$0xff]  ;;  %v724_v11 = vld [vmem:[%s4820_s1 + $0x60] sm:$0xff]  ;;  %s3509_s27 = scalar_select %p184_p7, %s3461_s14, 90 }
  0x14   : > { %1471 = vmatpush.msra.mxu3 %v775_v5  ;;  %1263 = vmatpush.msra.mxu2 %v758_v4  ;;  %v756_v12 = vld [vmem:[%s4820_s1 + $0x160] sm:$0xff]  ;;  %v773_v13 = vld [vmem:[%s4820_s1 + $0x1e8] sm:$0xff]  ;;  %v723_v16 = vld [vmem:[%s4820_s1 + $0x58] sm:$0xff] }
  0x15   : > { %1054 = vmatpush.msra.mxu1 %v742_v7  ;;  %846 = vmatpush.msra.mxu0 %v725_v6  ;;  %v740_v14 = vld [vmem:[%s4820_s1 + $0xe0] sm:$0xff]  ;;  %v755_v17 = vld [vmem:[%s4820_s1 + $0x158] sm:$0xff]  ;;  %v722_v20 = vld [vmem:[%s4820_s1 + $0x50] sm:$0xff]  ;;  %s3138_s24 = sshll.u32 %s3509_s27, 6  ;;  %s175_s27 = sand.u32 1, %s3279_s12  }
  0x16   : > { %1472 = vmatpush.msra.mxu3 %v774_v9  ;;  %1264 = vmatpush.msra.mxu2 %v757_v8  ;;  %v772_v15 = vld [vmem:[%s4820_s1 + $0x1e0] sm:$0xff]  ;;  %v739_v18 = vld [vmem:[%s4820_s1 + $0xd8] sm:$0xff]  ;;  %v754_v21 = vld [vmem:[%s4820_s1 + $0x150] sm:$0xff]  ;;  %s3557_s17 = scalar_lea.vmem %s4819_s0, %s3138_s24  ;;  %s3117_s7 = sshll.u32 %s175_s27, 9 }
  0x17   : > { %1055 = vmatpush.msra.mxu1 %v741_v10  ;;  %847 = vmatpush.msra.mxu0 %v724_v11  ;;  %v771_v19 = vld [vmem:[%s4820_s1 + $0x1d8] sm:$0xff]  ;;  %v738_v22 = vld [vmem:[%s4820_s1 + $0xd0] sm:$0xff]  ;;  %v721_v24 = vld [vmem:[%s4820_s1 + $0x48] sm:$0xff]  ;;  %s4301_s12 = scalar_lea.vmem [#allocation2], %s3117_s7  }
  0x18   : > { %1473 = vmatpush.msra.mxu3 %v773_v13  ;;  %1265 = vmatpush.msra.mxu2 %v756_v12  ;;  %v770_v23 = vld [vmem:[%s4820_s1 + $0x1d0] sm:$0xff]  ;;  %v753_v25 = vld [vmem:[%s4820_s1 + $0x148] sm:$0xff]  ;;  %v720_v28 = vld [vmem:[%s4820_s1 + $0x40] sm:$0xff] }
  0x19   : > { %1056 = vmatpush.msra.mxu1 %v740_v14  ;;  %848 = vmatpush.msra.mxu0 %v723_v16  ;;  %v737_v26 = vld [vmem:[%s4820_s1 + $0xc8] sm:$0xff]  ;;  %v752_v29 = vld [vmem:[%s4820_s1 + $0x140] sm:$0xff]  ;;  %v719_v32 = vld [vmem:[%s4820_s1 + $0x38] sm:$0xff] }
  0x1a   : > { %1474 = vmatpush.msra.mxu3 %v772_v15  ;;  %1266 = vmatpush.msra.mxu2 %v755_v17  ;;  %v769_v27 = vld [vmem:[%s4820_s1 + $0x1c8] sm:$0xff]  ;;  %v736_v30 = vld [vmem:[%s4820_s1 + $0xc0] sm:$0xff]  ;;  %v751_v33 = vld [vmem:[%s4820_s1 + $0x138] sm:$0xff] }
  0x1b   : > { %1057 = vmatpush.msra.mxu1 %v739_v18  ;;  %849 = vmatpush.msra.mxu0 %v722_v20  ;;  %v768_v31 = vld [vmem:[%s4820_s1 + $0x1c0] sm:$0xff]  ;;  %v735_v34 = vld [vmem:[%s4820_s1 + $0xb8] sm:$0xff]  ;;  %v718_v36 = vld [vmem:[%s4820_s1 + $0x30] sm:$0xff] }
  0x1c   : > { %1475 = vmatpush.msra.mxu3 %v771_v19  ;;  %1267 = vmatpush.msra.mxu2 %v754_v21  ;;  %v767_v35 = vld [vmem:[%s4820_s1 + $0x1b8] sm:$0xff]  ;;  %v750_v37 = vld [vmem:[%s4820_s1 + $0x130] sm:$0xff]  ;;  %v717_v40 = vld [vmem:[%s4820_s1 + $0x28] sm:$0xff] }
  0x1d   : > { %1058 = vmatpush.msra.mxu1 %v738_v22  ;;  %850 = vmatpush.msra.mxu0 %v721_v24  ;;  %v734_v38 = vld [vmem:[%s4820_s1 + $0xb0] sm:$0xff]  ;;  %v749_v41 = vld [vmem:[%s4820_s1 + $0x128] sm:$0xff]  ;;  %v716_v44 = vld [vmem:[%s4820_s1 + $0x20] sm:$0xff] }
  0x1e   : > { %1476 = vmatpush.msra.mxu3 %v770_v23  ;;  %1268 = vmatpush.msra.mxu2 %v753_v25  ;;  %v766_v39 = vld [vmem:[%s4820_s1 + $0x1b0] sm:$0xff]  ;;  %v733_v42 = vld [vmem:[%s4820_s1 + $0xa8] sm:$0xff]  ;;  %v748_v45 = vld [vmem:[%s4820_s1 + $0x120] sm:$0xff] }
  0x1f   : > { %1059 = vmatpush.msra.mxu1 %v737_v26  ;;  %851 = vmatpush.msra.mxu0 %v720_v28  ;;  %v765_v43 = vld [vmem:[%s4820_s1 + $0x1a8] sm:$0xff]  ;;  %v732_v46 = vld [vmem:[%s4820_s1 + $0xa0] sm:$0xff]  ;;  %v715_v48 = vld [vmem:[%s4820_s1 + $0x18] sm:$0xff] }
  0x20   : > { %1477 = vmatpush.msra.mxu3 %v769_v27  ;;  %1269 = vmatpush.msra.mxu2 %v752_v29  ;;  %v764_v47 = vld [vmem:[%s4820_s1 + $0x1a0] sm:$0xff]  ;;  %v747_v49 = vld [vmem:[%s4820_s1 + $0x118] sm:$0xff]  ;;  %v714_v52 = vld [vmem:[%s4820_s1 + $0x10] sm:$0xff] }
  0x21   : > { %1060 = vmatpush.msra.mxu1 %v736_v30  ;;  %852 = vmatpush.msra.mxu0 %v719_v32  ;;  %v731_v50 = vld [vmem:[%s4820_s1 + $0x98] sm:$0xff]  ;;  %v746_v53 = vld [vmem:[%s4820_s1 + $0x110] sm:$0xff]  ;;  %v713_v56 = vld [vmem:[%s4820_s1 + $0x8] sm:$0xff] }
  0x22   : > { %1478 = vmatpush.msra.mxu3 %v768_v31  ;;  %1270 = vmatpush.msra.mxu2 %v751_v33  ;;  %v763_v51 = vld [vmem:[%s4820_s1 + $0x198] sm:$0xff]  ;;  %v730_v54 = vld [vmem:[%s4820_s1 + $0x90] sm:$0xff]  ;;  %v745_v57 = vld [vmem:[%s4820_s1 + $0x108] sm:$0xff] }
  0x23   : > { %1061 = vmatpush.msra.mxu1 %v735_v34  ;;  %853 = vmatpush.msra.mxu0 %v718_v36  ;;  %v762_v55 = vld [vmem:[%s4820_s1 + $0x190] sm:$0xff]  ;;  %v729_v58 = vld [vmem:[%s4820_s1 + $0x88] sm:$0xff]  ;;  %v712_v60 = vld [vmem:[%s4820_s1] sm:$0xff] }
  0x24   : > { %1479 = vmatpush.msra.mxu3 %v767_v35  ;;  %1271 = vmatpush.msra.mxu2 %v750_v37  ;;  %v761_v59 = vld [vmem:[%s4820_s1 + $0x188] sm:$0xff]  ;;  %v744_v61 = vld [vmem:[%s4820_s1 + $0x100] sm:$0xff]  ;;  %v202_v63 = vld [vmem:[%s3557_s17 + $0x10] sm:$0xff] }
  0x25   : > { %1062 = vmatpush.msra.mxu1 %v734_v38  ;;  %854 = vmatpush.msra.mxu0 %v717_v40  ;;  %v200_v62 = vld [vmem:[%s3557_s17] sm:$0xff]  ;;  %v823_v0 = vld [vmem:[%s4820_s1 + $0x378] sm:$0xff]  ;;  %v201_v3 = vld [vmem:[%s3557_s17 + $0x8] sm:$0xff] }
  0x26   : > { %1480 = vmatpush.msra.mxu3 %v766_v39  ;;  %1272 = vmatpush.msra.mxu2 %v749_v41  ;;  %v728_v1 = vld [vmem:[%s4820_s1 + $0x80] sm:$0xff]  ;;  %v203_v4 = vld [vmem:[%s3557_s17 + $0x18] sm:$0xff]  ;;  %v822_v8 = vld [vmem:[%s4820_s1 + $0x370] sm:$0xff] }
  0x27   : > { %1063 = vmatpush.msra.mxu1 %v733_v42  ;;  %855 = vmatpush.msra.mxu0 %v716_v44  ;;  %v760_v2 = vld [vmem:[%s4820_s1 + $0x180] sm:$0xff]  ;;  %v791_v5 = vld [vmem:[%s4820_s1 + $0x278] sm:$0xff]  ;;  %v790_v9 = vld [vmem:[%s4820_s1 + $0x270] sm:$0xff] }
  0x28   : > { %1481 = vmatpush.msra.mxu3 %v765_v43  ;;  %1273 = vmatpush.msra.mxu2 %v748_v45  ;;  %v839_v6 = vld [vmem:[%s4820_s1 + $0x3f8] sm:$0xff]  ;;  %v838_v10 = vld [vmem:[%s4820_s1 + $0x3f0] sm:$0xff]  ;;  %v208_v12 = vld [vmem:[%s3557_s17 + $0x40] sm:$0xff] }
  0x29   : > { %1064 = vmatpush.msra.mxu1 %v732_v46  ;;  %856 = vmatpush.msra.mxu0 %v715_v48  ;;  %v807_v7 = vld [vmem:[%s4820_s1 + $0x2f8] sm:$0xff]  ;;  %v806_v11 = vld [vmem:[%s4820_s1 + $0x2f0] sm:$0xff]  ;;  %v209_v14 = vld [vmem:[%s3557_s17 + $0x48] sm:$0xff] }
  0x2a   : > { %1482 = vmatpush.msra.mxu3 %v764_v47  ;;  %1274 = vmatpush.msra.mxu2 %v747_v49  ;;  %v210_v13 = vld [vmem:[%s3557_s17 + $0x50] sm:$0xff]  ;;  %v211_v15 = vld [vmem:[%s3557_s17 + $0x58] sm:$0xff]  ;;  %v216_v16 = vld [vmem:[%s3557_s17 + $0x80] sm:$0xff] }
  0x2b   : > { %1065 = vmatpush.msra.mxu1 %v731_v50  ;;  %857 = vmatpush.msra.mxu0 %v714_v52  ;;  %v218_v17 = vld [vmem:[%s3557_s17 + $0x90] sm:$0xff]  ;;  %v217_v18 = vld [vmem:[%s3557_s17 + $0x88] sm:$0xff]  ;;  %v219_v19 = vld [vmem:[%s3557_s17 + $0x98] sm:$0xff] }
  0x2c   : > { %1483 = vmatpush.msra.mxu3 %v763_v51  ;;  %1275 = vmatpush.msra.mxu2 %v746_v53  ;;  %v224_v20 = vld [vmem:[%s3557_s17 + $0xc0] sm:$0xff]  ;;  %v226_v21 = vld [vmem:[%s3557_s17 + $0xd0] sm:$0xff]  ;;  %v225_v22 = vld [vmem:[%s3557_s17 + $0xc8] sm:$0xff] }
  0x2d   : > { %1066 = vmatpush.msra.mxu1 %v730_v54  ;;  %858 = vmatpush.msra.mxu0 %v713_v56  ;;  %v227_v23 = vld [vmem:[%s3557_s17 + $0xd8] sm:$0xff]  ;;  %v232_v24 = vld [vmem:[%s3557_s17 + $0x100] sm:$0xff]  ;;  %v234_v25 = vld [vmem:[%s3557_s17 + $0x110] sm:$0xff] }
  0x2e   : > { %1484 = vmatpush.msra.mxu3 %v762_v55  ;;  %1276 = vmatpush.msra.mxu2 %v745_v57  ;;  %v233_v26 = vld [vmem:[%s3557_s17 + $0x108] sm:$0xff]  ;;  %v235_v27 = vld [vmem:[%s3557_s17 + $0x118] sm:$0xff]  ;;  %v240_v32 = vld [vmem:[%s3557_s17 + $0x140] sm:$0xff] }
  0x2f   : > { %1067 = vmatpush.msra.mxu1 %v729_v58  ;;  %859 = vmatpush.msra.mxu0 %v712_v60  ;;  %v821_v28 = vld [vmem:[%s4820_s1 + $0x368] sm:$0xff]  ;;  %v242_v33 = vld [vmem:[%s3557_s17 + $0x150] sm:$0xff]  ;;  %v243_v35 = vld [vmem:[%s3557_s17 + $0x158] sm:$0xff] }
  0x30   : > { %1485 = vmatpush.msra.mxu3 %v761_v59  ;;  %1277 = vmatpush.msra.mxu2 %v744_v61  ;;  %v789_v29 = vld [vmem:[%s4820_s1 + $0x268] sm:$0xff]  ;;  %v248_v36 = vld [vmem:[%s3557_s17 + $0x180] sm:$0xff]  ;;  %v250_v37 = vld [vmem:[%s3557_s17 + $0x190] sm:$0xff] }
  0x31   : > { %860 = vmatmul.f32.vlgmr.msra.gmra.mxu0 %v200_v62  ;;  %1278 = vmatmul.f32.vlgmr.msra.gmra.mxu2 %v202_v63  ;;  %v837_v30 = vld [vmem:[%s4820_s1 + $0x3e8] sm:$0xff]  ;;  %v251_v39 = vld [vmem:[%s3557_s17 + $0x198] sm:$0xff]  ;;  %v256_v40 = vld [vmem:[%s3557_s17 + $0x1c0] sm:$0xff] }
  0x32   : > { %2098 = vmatpush.msrb.mxu2 %v823_v0  ;;  %1068 = vmatpush.msra.mxu1 %v728_v1  ;;  %v805_v31 = vld [vmem:[%s4820_s1 + $0x2e8] sm:$0xff]  ;;  %v258_v41 = vld [vmem:[%s3557_s17 + $0x1d0] sm:$0xff]  ;;  %v259_v43 = vld [vmem:[%s3557_s17 + $0x1d8] sm:$0xff] }
  0x33   : > { %1486 = vmatpush.msra.mxu3 %v760_v2  ;;  %1069 = vmatmul.f32.vlgmr.msra.gmra.mxu1 %v201_v3  ;;  %v241_v34 = vld [vmem:[%s3557_s17 + $0x148] sm:$0xff]  ;;  %v264_v44 = vld [vmem:[%s3557_s17 + $0x200] sm:$0xff]  ;;  %v266_v45 = vld [vmem:[%s3557_s17 + $0x210] sm:$0xff] }
  0x34   : > { %1487 = vmatmul.f32.vlgmr.msra.gmra.mxu3 %v203_v4  ;;  %1680 = vmatpush.msrb.mxu0 %v791_v5  ;;  %v249_v38 = vld [vmem:[%s3557_s17 + $0x188] sm:$0xff]  ;;  %v267_v47 = vld [vmem:[%s3557_s17 + $0x218] sm:$0xff]  ;;  %v820_v48 = vld [vmem:[%s4820_s1 + $0x360] sm:$0xff] }
  0x35   : > { %2307 = vmatpush.msrb.mxu3 %v839_v6  ;;  %1889 = vmatpush.msrb.mxu1 %v807_v7  ;;  %v257_v42 = vld [vmem:[%s3557_s17 + $0x1c8] sm:$0xff]  ;;  %v788_v49 = vld [vmem:[%s4820_s1 + $0x260] sm:$0xff]  ;;  %v274_v53 = vld [vmem:[%s3557_s17 + $0x250] sm:$0xff] }
  0x36   : > { %2099 = vmatpush.msrb.mxu2 %v822_v8  ;;  %1681 = vmatpush.msrb.mxu0 %v790_v9  ;;  %v265_v46 = vld [vmem:[%s3557_s17 + $0x208] sm:$0xff]  ;;  %v836_v50 = vld [vmem:[%s4820_s1 + $0x3e0] sm:$0xff]  ;;  %v275_v55 = vld [vmem:[%s3557_s17 + $0x258] sm:$0xff] }
  0x37   : > { %2308 = vmatpush.msrb.mxu3 %v838_v10  ;;  %1890 = vmatpush.msrb.mxu1 %v806_v11  ;;  %v804_v51 = vld [vmem:[%s4820_s1 + $0x2e0] sm:$0xff]  ;;  %v273_v54 = vld [vmem:[%s3557_s17 + $0x248] sm:$0xff]  ;;  %v282_v57 = vld [vmem:[%s3557_s17 + $0x290] sm:$0xff] }
  0x38   : > { %2100 = vmatpush.msrb.mxu2 %v821_v28  ;;  %1682 = vmatpush.msrb.mxu0 %v789_v29  ;;  %v272_v52 = vld [vmem:[%s3557_s17 + $0x240] sm:$0xff]  ;;  %v281_v58 = vld [vmem:[%s3557_s17 + $0x288] sm:$0xff]  ;;  %v283_v59 = vld [vmem:[%s3557_s17 + $0x298] sm:$0xff] }
  0x39   : > { %863 = vmatmul.f32.gmra.mxu0 %v208_v12  ;;  %1281 = vmatmul.f32.gmra.mxu2 %v210_v13  ;;  %v280_v56 = vld [vmem:[%s3557_s17 + $0x280] sm:$0xff]  ;;  %v290_v61 = vld [vmem:[%s3557_s17 + $0x2d0] sm:$0xff]  ;;  %v289_v62 = vld [vmem:[%s3557_s17 + $0x2c8] sm:$0xff] }
  0x3a   : > { %2309 = vmatpush.msrb.mxu3 %v837_v30  ;;  %1891 = vmatpush.msrb.mxu1 %v805_v31  ;;  %v288_v60 = vld [vmem:[%s3557_s17 + $0x2c0] sm:$0xff]  ;;  %v291_v63 = vld [vmem:[%s3557_s17 + $0x2d8] sm:$0xff]  ;;  %v298_v1 = vld [vmem:[%s3557_s17 + $0x310] sm:$0xff] }
  0x3b   : > { %1072 = vmatmul.f32.gmra.mxu1 %v209_v14  ;;  %2101 = vmatpush.msrb.mxu2 %v820_v48  ;;  %v296_v0 = vld [vmem:[%s3557_s17 + $0x300] sm:$0xff]  ;;  %v297_v2 = vld [vmem:[%s3557_s17 + $0x308] sm:$0xff]  ;;  %v299_v3 = vld [vmem:[%s3557_s17 + $0x318] sm:$0xff] }
  0x3c   : > { %1490 = vmatmul.f32.gmra.mxu3 %v211_v15  ;;  %1683 = vmatpush.msrb.mxu0 %v788_v49  ;;  %v819_v4 = vld [vmem:[%s4820_s1 + $0x358] sm:$0xff]  ;;  %v304_v8 = vld [vmem:[%s3557_s17 + $0x340] sm:$0xff]  ;;  %v306_v9 = vld [vmem:[%s3557_s17 + $0x350] sm:$0xff] }
  0x3d   : > { %2310 = vmatpush.msrb.mxu3 %v836_v50  ;;  %1892 = vmatpush.msrb.mxu1 %v804_v51  ;;  %v787_v5 = vld [vmem:[%s4820_s1 + $0x258] sm:$0xff]  ;;  %v305_v10 = vld [vmem:[%s3557_s17 + $0x348] sm:$0xff]  ;;  %v312_v12 = vld [vmem:[%s3557_s17 + $0x380] sm:$0xff] }
  0x3e   : > { %2102 = vmatpush.msrb.mxu2 %v819_v4  ;;  %v835_v6 = vld [vmem:[%s4820_s1 + $0x3d8] sm:$0xff]  ;;  %1684 = vmatpush.msrb.mxu0 %v787_v5  ;;  %v314_v13 = vld [vmem:[%s3557_s17 + $0x390] sm:$0xff]  ;;  %v313_v14 = vld [vmem:[%s3557_s17 + $0x388] sm:$0xff] }
  0x3f   : > { %2311 = vmatpush.msrb.mxu3 %v835_v6  ;;  %v803_v7 = vld [vmem:[%s4820_s1 + $0x2d8] sm:$0xff]  ;;  %v818_v29 = vld [vmem:[%s4820_s1 + $0x350] sm:$0xff]  ;;  %v344_v48 = vld [vmem:[%s3557_s17 + $0x480] sm:$0xff] }
  0x40   : > { %1893 = vmatpush.msrb.mxu1 %v803_v7  ;;  %v307_v11 = vld [vmem:[%s3557_s17 + $0x358] sm:$0xff]  ;;  %2103 = vmatpush.msrb.mxu2 %v818_v29  ;;  %v786_v31 = vld [vmem:[%s4820_s1 + $0x250] sm:$0xff] }
  0x41   : > { %866 = vmatmul.f32.gmra.mxu0 %v216_v16  ;;  %1284 = vmatmul.f32.gmra.mxu2 %v218_v17  ;;  %v315_v15 = vld [vmem:[%s3557_s17 + $0x398] sm:$0xff]  ;;  %v320_v16 = vld [vmem:[%s3557_s17 + $0x3c0] sm:$0xff]  ;;  %v322_v17 = vld [vmem:[%s3557_s17 + $0x3d0] sm:$0xff] }
  0x42   : > { %v331_v28 = vld [vmem:[%s3557_s17 + $0x418] sm:$0xff]  ;;  %1685 = vmatpush.msrb.mxu0 %v786_v31  ;;  %v346_v49 = vld [vmem:[%s3557_s17 + $0x490] sm:$0xff]  ;;  %v369_v31 = vld [vmem:[%s3557_s17 + $0x548] sm:$0xff] }
  0x43   : > { %1075 = vmatmul.f32.gmra.mxu1 %v217_v18  ;;  %v321_v18 = vld [vmem:[%s3557_s17 + $0x3c8] sm:$0xff]  ;;  %v355_v4 = vld [vmem:[%s3557_s17 + $0x4d8] sm:$0xff] }
  0x44   : > { %1493 = vmatmul.f32.gmra.mxu3 %v219_v19  ;;  %v323_v19 = vld [vmem:[%s3557_s17 + $0x3d8] sm:$0xff] }
  0x49   : > { %869 = vmatmul.f32.gmra.mxu0 %v224_v20  ;;  %1287 = vmatmul.f32.gmra.mxu2 %v226_v21  ;;  %v3704_v20 = vld [vmem:[%s4821_s2] ss:$0 sm:$0xff] }
  0x4b   : > { %1078 = vmatmul.f32.gmra.mxu1 %v225_v22  ;;  %v328_v22 = vld [vmem:[%s3557_s17 + $0x400] sm:$0xff] }
  0x4c   : > { %1496 = vmatmul.f32.gmra.mxu3 %v227_v23  ;;  %v330_v23 = vld [vmem:[%s3557_s17 + $0x410] sm:$0xff] }
  0x51   : > { %872 = vmatmul.f32.gmra.mxu0 %v232_v24  ;;  %1290 = vmatmul.f32.gmra.mxu2 %v234_v25 }
  0x53   : > { %1081 = vmatmul.f32.gmra.mxu1 %v233_v26  ;;  %v329_v26 = vld [vmem:[%s3557_s17 + $0x408] sm:$0xff] }
  0x54   : > { %1499 = vmatmul.f32.gmra.mxu3 %v235_v27 }
  0x59   : > { %875 = vmatmul.f32.gmra.mxu0 %v240_v32  ;;  %1293 = vmatmul.f32.gmra.mxu2 %v242_v33  ;;  %v834_v32 = vld [vmem:[%s4820_s1 + $0x3d0] sm:$0xff] }
  0x5a   : > { %2312 = vmatpush.msrb.mxu3 %v834_v32 }
  0x5b   : > { %1084 = vmatmul.f32.gmra.mxu1 %v241_v34  ;;  %v802_v34 = vld [vmem:[%s4820_s1 + $0x2d0] sm:$0xff] }
  0x5c   : > { %1502 = vmatmul.f32.gmra.mxu3 %v243_v35  ;;  %1894 = vmatpush.msrb.mxu1 %v802_v34 }
  0x61   : > { %878 = vmatmul.f32.gmra.mxu0 %v248_v36  ;;  %1296 = vmatmul.f32.gmra.mxu2 %v250_v37  ;;  %v336_v36 = vld [vmem:[%s3557_s17 + $0x440] sm:$0xff]  ;;  %v338_v37 = vld [vmem:[%s3557_s17 + $0x450] sm:$0xff] }
  0x63   : > { %1087 = vmatmul.f32.gmra.mxu1 %v249_v38 }
  0x64   : > { %1505 = vmatmul.f32.gmra.mxu3 %v251_v39 }
  0x69   : > { %881 = vmatmul.f32.gmra.mxu0 %v256_v40  ;;  %1299 = vmatmul.f32.gmra.mxu2 %v258_v41 }
  0x6b   : > { %1090 = vmatmul.f32.gmra.mxu1 %v257_v42  ;;  %v337_v42 = vld [vmem:[%s3557_s17 + $0x448] sm:$0xff] }
  0x6c   : > { %1508 = vmatmul.f32.gmra.mxu3 %v259_v43 }
  0x71   : > { %884 = vmatmul.f32.gmra.mxu0 %v264_v44  ;;  %1302 = vmatmul.f32.gmra.mxu2 %v266_v45  ;;  %v339_v44 = vld [vmem:[%s3557_s17 + $0x458] sm:$0xff] }
  0x73   : > { %1093 = vmatmul.f32.gmra.mxu1 %v265_v46 }
  0x74   : > { %1511 = vmatmul.f32.gmra.mxu3 %v267_v47 }
  0x79   : > { %887 = vmatmul.f32.gmra.mxu0 %v272_v52  ;;  %1305 = vmatmul.f32.gmra.mxu2 %v274_v53 }
  0x7b   : > { %1096 = vmatmul.f32.gmra.mxu1 %v273_v54  ;;  %v345_v54 = vld [vmem:[%s3557_s17 + $0x488] sm:$0xff] }
  0x7c   : > { %1514 = vmatmul.f32.gmra.mxu3 %v275_v55 }
  0x81   : > { %890 = vmatmul.f32.gmra.mxu0 %v280_v56  ;;  %1308 = vmatmul.f32.gmra.mxu2 %v282_v57  ;;  %v347_v56 = vld [vmem:[%s3557_s17 + $0x498] sm:$0xff] }
  0x83   : > { %1099 = vmatmul.f32.gmra.mxu1 %v281_v58 }
  0x84   : > { %1517 = vmatmul.f32.gmra.mxu3 %v283_v59 }
  0x89   : > { %893 = vmatmul.f32.gmra.mxu0 %v288_v60  ;;  %1311 = vmatmul.f32.gmra.mxu2 %v290_v61  ;;  %v352_v60 = vld [vmem:[%s3557_s17 + $0x4c0] sm:$0xff]  ;;  %v354_v61 = vld [vmem:[%s3557_s17 + $0x4d0] sm:$0xff] }
  0x8b   : > { %1102 = vmatmul.f32.gmra.mxu1 %v289_v62 }
  0x8c   : > { %1520 = vmatmul.f32.gmra.mxu3 %v291_v63 }
  0x91   : > { %896 = vmatmul.f32.gmra.mxu0 %v296_v0  ;;  %1314 = vmatmul.f32.gmra.mxu2 %v298_v1 }
  0x93   : > { %1105 = vmatmul.f32.gmra.mxu1 %v297_v2  ;;  %v353_v2 = vld [vmem:[%s3557_s17 + $0x4c8] sm:$0xff] }
  0x94   : > { %1523 = vmatmul.f32.gmra.mxu3 %v299_v3 }
  0x99   : > { %899 = vmatmul.f32.gmra.mxu0 %v304_v8  ;;  %1317 = vmatmul.f32.gmra.mxu2 %v306_v9  ;;  %v360_v8 = vld [vmem:[%s3557_s17 + $0x500] sm:$0xff]  ;;  %v362_v9 = vld [vmem:[%s3557_s17 + $0x510] sm:$0xff] }
  0x9b   : > { %1108 = vmatmul.f32.gmra.mxu1 %v305_v10 }
  0x9c   : > { %1526 = vmatmul.f32.gmra.mxu3 %v307_v11 }
  0xa1   : > { %902 = vmatmul.f32.gmra.mxu0 %v312_v12  ;;  %1320 = vmatmul.f32.gmra.mxu2 %v314_v13 }
  0xa3   : > { %1111 = vmatmul.f32.gmra.mxu1 %v313_v14  ;;  %v361_v14 = vld [vmem:[%s3557_s17 + $0x508] sm:$0xff] }
  0xa4   : > { %1529 = vmatmul.f32.gmra.mxu3 %v315_v15 }
  0xa9   : > { %905 = vmatmul.f32.gmra.mxu0 %v320_v16  ;;  %1323 = vmatmul.f32.gmra.mxu2 %v322_v17  ;;  %v363_v16 = vld [vmem:[%s3557_s17 + $0x518] sm:$0xff]  ;;  %v817_v17 = vld [vmem:[%s4820_s1 + $0x348] sm:$0xff] }
  0xaa   : > { %2104 = vmatpush.msrb.mxu2 %v817_v17  ;;  %v400_v17 = vld [vmem:[%s3557_s17 + $0x640] sm:$0xff] }
  0xab   : > { %1114 = vmatmul.f32.gmra.mxu1 %v321_v18 }
  0xac   : > { %1532 = vmatmul.f32.gmra.mxu3 %v323_v19  ;;  %v785_v19 = vld [vmem:[%s4820_s1 + $0x248] sm:$0xff] }
  0xad   : > { %1686 = vmatpush.msrb.mxu0 %v785_v19 }
  0xae   : > { %v861_v21 = vpop.f32.mrf.mxu0 }
  0xaf   : > { %v862_v24 = vadd.f32 %v3704_v20, %v861_v21  ;;  %v833_v21 = vld [vmem:[%s4820_s1 + $0x3c8] sm:$0xff] }
  0xb0   : > { %v1070_v25 = vpop.f32.mrf.mxu1  ;;  %2313 = vmatpush.msrb.mxu3 %v833_v21 }
  0xb1   : > { %v1071_v27 = vadd.f32 %v1070_v25, %v862_v24  ;;  %908 = vmatmul.f32.gmra.mxu0 %v328_v22  ;;  %1326 = vmatmul.f32.gmra.mxu2 %v330_v23  ;;  %v801_v23 = vld [vmem:[%s4820_s1 + $0x2c8] sm:$0xff]  ;;  %v368_v25 = vld [vmem:[%s3557_s17 + $0x540] sm:$0xff] }
  0xb2   : > { %1895 = vmatpush.msrb.mxu1 %v801_v23 }
  0xb3   : > { %1117 = vmatmul.f32.gmra.mxu1 %v329_v26  ;;  %v370_v26 = vld [vmem:[%s3557_s17 + $0x550] sm:$0xff] }
  0xb4   : > { %1535 = vmatmul.f32.gmra.mxu3 %v331_v28  ;;  %v1279_v30 = vpop.f32.mrf.mxu2 }
  0xb5   : > { %v1280_v33 = vadd.f32 %v1279_v30, %v1071_v27 }
  0xb6   : > { %v864_v35 = vpop.f32.mrf.mxu0 }
  0xb7   : > { %v865_v38 = vadd.f32 %v3704_v20, %v864_v35  ;;  %v1488_v39 = vpop.f32.mrf.mxu3 }
  0xb8   : > { %v3726_v40 = vadd.f32 %v1488_v39, %v1280_v33  ;;  %v1073_v41 = vpop.f32.mrf.mxu1  ;;  %v371_v33 = vld [vmem:[%s3557_s17 + $0x558] sm:$0xff] }
  0xb9   : > { %v1074_v43 = vadd.f32 %v1073_v41, %v865_v38  ;;  %911 = vmatmul.f32.gmra.mxu0 %v336_v36  ;;  %1329 = vmatmul.f32.gmra.mxu2 %v338_v37  ;;  %v376_v37 = vld [vmem:[%s3557_s17 + $0x580] sm:$0xff]  ;;  %v378_v38 = vld [vmem:[%s3557_s17 + $0x590] sm:$0xff] }
  0xbb   : > { %1120 = vmatmul.f32.gmra.mxu1 %v337_v42 }
  0xbc   : > { %1538 = vmatmul.f32.gmra.mxu3 %v339_v44  ;;  %v1282_v45 = vpop.f32.mrf.mxu2  ;;  %v377_v44 = vld [vmem:[%s3557_s17 + $0x588] sm:$0xff] }
  0xbd   : > { %v1283_v46 = vadd.f32 %v1282_v45, %v1074_v43 }
  0xbe   : > { %v867_v47 = vpop.f32.mrf.mxu0 }
  0xbf   : > { %v868_v50 = vadd.f32 %v3704_v20, %v867_v47  ;;  %v1491_v51 = vpop.f32.mrf.mxu3 }
  0xc0   : > { %v3733_v52 = vadd.f32 %v1491_v51, %v1283_v46  ;;  %v1076_v53 = vpop.f32.mrf.mxu1  ;;  %v379_v46 = vld [vmem:[%s3557_s17 + $0x598] sm:$0xff]  ;;  %v386_v51 = vld [vmem:[%s3557_s17 + $0x5d0] sm:$0xff] }
  0xc1   : > { %v1077_v55 = vadd.f32 %v1076_v53, %v868_v50  ;;  %914 = vmatmul.f32.gmra.mxu0 %v344_v48  ;;  %1332 = vmatmul.f32.gmra.mxu2 %v346_v49  ;;  %v384_v50 = vld [vmem:[%s3557_s17 + $0x5c0] sm:$0xff] }
  0xc3   : > { %1123 = vmatmul.f32.gmra.mxu1 %v345_v54 }
  0xc4   : > { %1541 = vmatmul.f32.gmra.mxu3 %v347_v56  ;;  %v1285_v57 = vpop.f32.mrf.mxu2 }
  0xc5   : > { %v1286_v58 = vadd.f32 %v1285_v57, %v1077_v55  ;;  %v385_v57 = vld [vmem:[%s3557_s17 + $0x5c8] sm:$0xff] }
  0xc6   : > { %v870_v59 = vpop.f32.mrf.mxu0 }
  0xc7   : > { %v871_v62 = vadd.f32 %v3704_v20, %v870_v59  ;;  %v1494_v63 = vpop.f32.mrf.mxu3  ;;  %v387_v59 = vld [vmem:[%s3557_s17 + $0x5d8] sm:$0xff] }
  0xc8   : > { %v3740_v0 = vadd.f32 %v1494_v63, %v1286_v58  ;;  %v1079_v1 = vpop.f32.mrf.mxu1  ;;  %v392_v63 = vld [vmem:[%s3557_s17 + $0x600] sm:$0xff] }
  0xc9   : > { %v1080_v3 = vadd.f32 %v1079_v1, %v871_v62  ;;  %917 = vmatmul.f32.gmra.mxu0 %v352_v60  ;;  %1335 = vmatmul.f32.gmra.mxu2 %v354_v61  ;;  %v394_v1 = vld [vmem:[%s3557_s17 + $0x610] sm:$0xff] }
  0xcb   : > { %1126 = vmatmul.f32.gmra.mxu1 %v353_v2 }
  0xcc   : > { %1544 = vmatmul.f32.gmra.mxu3 %v355_v4  ;;  %v1288_v5 = vpop.f32.mrf.mxu2 }
  0xcd   : > { %v1289_v6 = vadd.f32 %v1288_v5, %v1080_v3 }
  0xce   : > { %v873_v7 = vpop.f32.mrf.mxu0 }
  0xcf   : > { %v874_v10 = vadd.f32 %v3704_v20, %v873_v7  ;;  %v1497_v11 = vpop.f32.mrf.mxu3 }
  0xd0   : > { %v3747_v12 = vadd.f32 %v1497_v11, %v1289_v6  ;;  %v1082_v13 = vpop.f32.mrf.mxu1  ;;  %v393_v6 = vld [vmem:[%s3557_s17 + $0x608] sm:$0xff]  ;;  %v784_v11 = vld [vmem:[%s4820_s1 + $0x240] sm:$0xff] }
  0xd1   : > { %v1083_v15 = vadd.f32 %v1082_v13, %v874_v10  ;;  %920 = vmatmul.f32.gmra.mxu0 %v360_v8  ;;  %1338 = vmatmul.f32.gmra.mxu2 %v362_v9  ;;  %v395_v8 = vld [vmem:[%s3557_s17 + $0x618] sm:$0xff]  ;;  %v816_v9 = vld [vmem:[%s4820_s1 + $0x340] sm:$0xff] }
  0xd2   : > { %2105 = vmatpush.msrb.mxu2 %v816_v9  ;;  %v832_v13 = vld [vmem:[%s4820_s1 + $0x3c0] sm:$0xff]  ;;  %1687 = vmatpush.msrb.mxu0 %v784_v11  ;;  %v831_v9 = vld [vmem:[%s4820_s1 + $0x3b8] sm:$0xff] }
  0xd3   : > { %1129 = vmatmul.f32.gmra.mxu1 %v361_v14  ;;  %2314 = vmatpush.msrb.mxu3 %v832_v13  ;;  %v799_v11 = vld [vmem:[%s4820_s1 + $0x2b8] sm:$0xff] }
  0xd4   : > { %1547 = vmatmul.f32.gmra.mxu3 %v363_v16  ;;  %v1291_v18 = vpop.f32.mrf.mxu2 }
  0xd5   : > { %v1292_v22 = vadd.f32 %v1291_v18, %v1083_v15  ;;  %v800_v15 = vld [vmem:[%s4820_s1 + $0x2c0] sm:$0xff]  ;;  %v402_v18 = vld [vmem:[%s3557_s17 + $0x650] sm:$0xff]  ;;  %2315 = vmatpush.msrb.mxu3 %v831_v9 }
  0xd6   : > { %v876_v24 = vpop.f32.mrf.mxu0  ;;  %1896 = vmatpush.msrb.mxu1 %v800_v15  ;;  %v434_v15 = vld [vmem:[%s3557_s17 + $0x750] sm:$0xff] }
  0xd7   : > { %v877_v27 = vadd.f32 %v3704_v20, %v876_v24  ;;  %v1500_v28 = vpop.f32.mrf.mxu3  ;;  %v401_v24 = vld [vmem:[%s3557_s17 + $0x648] sm:$0xff]  ;;  %v782_v9 = vld [vmem:[%s4820_s1 + $0x230] sm:$0xff] }
  0xd8   : > { %v3766_v29 = vadd.f32 %v1500_v28, %v1292_v22  ;;  %v1085_v30 = vpop.f32.mrf.mxu1  ;;  %1897 = vmatpush.msrb.mxu1 %v799_v11 }
  0xd9   : > { %v1086_v32 = vadd.f32 %v1085_v30, %v877_v27  ;;  %923 = vmatmul.f32.gmra.mxu0 %v368_v25  ;;  %1341 = vmatmul.f32.gmra.mxu2 %v370_v26  ;;  %v403_v26 = vld [vmem:[%s3557_s17 + $0x658] sm:$0xff] }
  0xdb   : > { %1132 = vmatmul.f32.gmra.mxu1 %v369_v31  ;;  %v408_v31 = vld [vmem:[%s3557_s17 + $0x680] sm:$0xff] }
  0xdc   : > { %1550 = vmatmul.f32.gmra.mxu3 %v371_v33  ;;  %v1294_v34 = vpop.f32.mrf.mxu2 }
  0xdd   : > { %v1295_v35 = vadd.f32 %v1294_v34, %v1086_v32  ;;  %v410_v32 = vld [vmem:[%s3557_s17 + $0x690] sm:$0xff] }
  0xde   : > { %v879_v36 = vpop.f32.mrf.mxu0 }
  0xdf   : > { %v880_v39 = vadd.f32 %v3704_v20, %v879_v36  ;;  %v1503_v41 = vpop.f32.mrf.mxu3 }
  0xe0   : > { %v3773_v42 = vadd.f32 %v1503_v41, %v1295_v35  ;;  %v1088_v43 = vpop.f32.mrf.mxu1 }
  0xe1   : > { %v1089_v45 = vadd.f32 %v1088_v43, %v880_v39  ;;  %926 = vmatmul.f32.gmra.mxu0 %v376_v37  ;;  %1344 = vmatmul.f32.gmra.mxu2 %v378_v38  ;;  %v409_v37 = vld [vmem:[%s3557_s17 + $0x688] sm:$0xff]  ;;  %v411_v39 = vld [vmem:[%s3557_s17 + $0x698] sm:$0xff] }
  0xe3   : > { %1135 = vmatmul.f32.gmra.mxu1 %v377_v44 }
  0xe4   : > { %1553 = vmatmul.f32.gmra.mxu3 %v379_v46  ;;  %v1297_v47 = vpop.f32.mrf.mxu2  ;;  %v418_v46 = vld [vmem:[%s3557_s17 + $0x6d0] sm:$0xff] }
  0xe5   : > { %v1298_v48 = vadd.f32 %v1297_v47, %v1089_v45  ;;  %v416_v45 = vld [vmem:[%s3557_s17 + $0x6c0] sm:$0xff] }
  0xe6   : > { %v882_v49 = vpop.f32.mrf.mxu0 }
  0xe7   : > { %v883_v53 = vadd.f32 %v3704_v20, %v882_v49  ;;  %v1506_v54 = vpop.f32.mrf.mxu3 }
  0xe8   : > { %v3780_v55 = vadd.f32 %v1506_v54, %v1298_v48  ;;  %v1091_v56 = vpop.f32.mrf.mxu1  ;;  %v419_v54 = vld [vmem:[%s3557_s17 + $0x6d8] sm:$0xff] }
  0xe9   : > { %v1092_v58 = vadd.f32 %v1091_v56, %v883_v53  ;;  %929 = vmatmul.f32.gmra.mxu0 %v384_v50  ;;  %1347 = vmatmul.f32.gmra.mxu2 %v386_v51  ;;  %v417_v51 = vld [vmem:[%s3557_s17 + $0x6c8] sm:$0xff] }
  0xeb   : > { %1138 = vmatmul.f32.gmra.mxu1 %v385_v57 }
  0xec   : > { %1556 = vmatmul.f32.gmra.mxu3 %v387_v59  ;;  %v1300_v60 = vpop.f32.mrf.mxu2  ;;  %v424_v59 = vld [vmem:[%s3557_s17 + $0x700] sm:$0xff] }
  0xed   : > { %v1301_v61 = vadd.f32 %v1300_v60, %v1092_v58  ;;  %v426_v60 = vld [vmem:[%s3557_s17 + $0x710] sm:$0xff] }
  0xee   : > { %v885_v62 = vpop.f32.mrf.mxu0 }
  0xef   : > { %v886_v2 = vadd.f32 %v3704_v20, %v885_v62  ;;  %v1509_v3 = vpop.f32.mrf.mxu3 }
  0xf0   : > { %v3787_v4 = vadd.f32 %v1509_v3, %v1301_v61  ;;  %v1094_v5 = vpop.f32.mrf.mxu1 }
  0xf1   : > { %v1095_v7 = vadd.f32 %v1094_v5, %v886_v2  ;;  %932 = vmatmul.f32.gmra.mxu0 %v392_v63  ;;  %1350 = vmatmul.f32.gmra.mxu2 %v394_v1  ;;  %v425_v2 = vld [vmem:[%s3557_s17 + $0x708] sm:$0xff]  ;;  %v427_v5 = vld [vmem:[%s3557_s17 + $0x718] sm:$0xff] }
  0xf3   : > { %1141 = vmatmul.f32.gmra.mxu1 %v393_v6  ;;  %v815_v6 = vld [vmem:[%s4820_s1 + $0x338] sm:$0xff] }
  0xf4   : > { %1559 = vmatmul.f32.gmra.mxu3 %v395_v8  ;;  %v1303_v10 = vpop.f32.mrf.mxu2  ;;  %2106 = vmatpush.msrb.mxu2 %v815_v6  ;;  %v783_v8 = vld [vmem:[%s4820_s1 + $0x238] sm:$0xff] }
  0xf5   : > { %v1304_v14 = vadd.f32 %v1303_v10, %v1095_v7  ;;  %1688 = vmatpush.msrb.mxu0 %v783_v8  ;;  %v459_v6 = vld [vmem:[%s3557_s17 + $0x818] sm:$0xff] }
  0xf6   : > { %v888_v16 = vpop.f32.mrf.mxu0 }
  0xf7   : > { %v889_v19 = vadd.f32 %v3704_v20, %v888_v16  ;;  %v1512_v21 = vpop.f32.mrf.mxu3  ;;  %1689 = vmatpush.msrb.mxu0 %v782_v9  ;;  %v489_v9 = vld [vmem:[%s3557_s17 + $0x908] sm:$0xff] }
  0xf8   : > { %v3806_v22 = vadd.f32 %v1512_v21, %v1304_v14  ;;  %v1097_v23 = vpop.f32.mrf.mxu1  ;;  %v432_v14 = vld [vmem:[%s3557_s17 + $0x740] sm:$0xff]  ;;  %v433_v21 = vld [vmem:[%s3557_s17 + $0x748] sm:$0xff] }
  0xf9   : > { %v1098_v25 = vadd.f32 %v1097_v23, %v889_v19  ;;  %935 = vmatmul.f32.gmra.mxu0 %v400_v17  ;;  %1353 = vmatmul.f32.gmra.mxu2 %v402_v18 }
  0xfb   : > { %1144 = vmatmul.f32.gmra.mxu1 %v401_v24  ;;  %v435_v24 = vld [vmem:[%s3557_s17 + $0x758] sm:$0xff] }
  0xfc   : > { %1562 = vmatmul.f32.gmra.mxu3 %v403_v26  ;;  %v1306_v27 = vpop.f32.mrf.mxu2 }
  0xfd   : > { %v1307_v28 = vadd.f32 %v1306_v27, %v1098_v25 }
  0xfe   : > { %v891_v30 = vpop.f32.mrf.mxu0 }
  0xff   : > { %v892_v33 = vadd.f32 %v3704_v20, %v891_v30  ;;  %v1515_v34 = vpop.f32.mrf.mxu3  ;;  %v442_v30 = vld [vmem:[%s3557_s17 + $0x790] sm:$0xff] }
 0x100   : > { %v3813_v35 = vadd.f32 %v1515_v34, %v1307_v28  ;;  %v1100_v36 = vpop.f32.mrf.mxu1  ;;  %v440_v28 = vld [vmem:[%s3557_s17 + $0x780] sm:$0xff] }
 0x101   : > { %v1101_v38 = vadd.f32 %v1100_v36, %v892_v33  ;;  %938 = vmatmul.f32.gmra.mxu0 %v408_v31  ;;  %1356 = vmatmul.f32.gmra.mxu2 %v410_v32  ;;  %v441_v36 = vld [vmem:[%s3557_s17 + $0x788] sm:$0xff] }
 0x103   : > { %1147 = vmatmul.f32.gmra.mxu1 %v409_v37 }
 0x104   : > { %1565 = vmatmul.f32.gmra.mxu3 %v411_v39  ;;  %v1309_v41 = vpop.f32.mrf.mxu2 }
 0x105   : > { %v1310_v43 = vadd.f32 %v1309_v41, %v1101_v38  ;;  %v443_v38 = vld [vmem:[%s3557_s17 + $0x798] sm:$0xff] }
 0x106   : > { %v894_v44 = vpop.f32.mrf.mxu0 }
 0x107   : > { %v895_v47 = vadd.f32 %v3704_v20, %v894_v44  ;;  %v1518_v48 = vpop.f32.mrf.mxu3  ;;  %v448_v44 = vld [vmem:[%s3557_s17 + $0x7c0] sm:$0xff] }
 0x108   : > { %v3820_v49 = vadd.f32 %v1518_v48, %v1310_v43  ;;  %v1103_v50 = vpop.f32.mrf.mxu1 }
 0x109   : > { %v1104_v53 = vadd.f32 %v1103_v50, %v895_v47  ;;  %941 = vmatmul.f32.gmra.mxu0 %v416_v45  ;;  %1359 = vmatmul.f32.gmra.mxu2 %v418_v46  ;;  %v450_v45 = vld [vmem:[%s3557_s17 + $0x7d0] sm:$0xff] }
 0x10b   : > { %1150 = vmatmul.f32.gmra.mxu1 %v417_v51  ;;  %v449_v51 = vld [vmem:[%s3557_s17 + $0x7c8] sm:$0xff] }
 0x10c   : > { %1568 = vmatmul.f32.gmra.mxu3 %v419_v54  ;;  %v1312_v56 = vpop.f32.mrf.mxu2  ;;  %v451_v54 = vld [vmem:[%s3557_s17 + $0x7d8] sm:$0xff] }
 0x10d   : > { %v1313_v57 = vadd.f32 %v1312_v56, %v1104_v53 }
 0x10e   : > { %v897_v58 = vpop.f32.mrf.mxu0 }
 0x10f   : > { %v898_v61 = vadd.f32 %v3704_v20, %v897_v58  ;;  %v1521_v62 = vpop.f32.mrf.mxu3 }
 0x110   : > { %v3827_v63 = vadd.f32 %v1521_v62, %v1313_v57  ;;  %v1106_v1 = vpop.f32.mrf.mxu1 }
 0x111   : > { %v1107_v3 = vadd.f32 %v1106_v1, %v898_v61  ;;  %944 = vmatmul.f32.gmra.mxu0 %v424_v59  ;;  %1362 = vmatmul.f32.gmra.mxu2 %v426_v60  ;;  %v456_v59 = vld [vmem:[%s3557_s17 + $0x800] sm:$0xff]  ;;  %v458_v60 = vld [vmem:[%s3557_s17 + $0x810] sm:$0xff] }
 0x113   : > { %1153 = vmatmul.f32.gmra.mxu1 %v425_v2 }
 0x114   : > { %1571 = vmatmul.f32.gmra.mxu3 %v427_v5  ;;  %v1315_v7 = vpop.f32.mrf.mxu2 }
 0x115   : > { %v1316_v10 = vadd.f32 %v1315_v7, %v1107_v3  ;;  %v457_v3 = vld [vmem:[%s3557_s17 + $0x808] sm:$0xff]  ;;  %v814_v7 = vld [vmem:[%s4820_s1 + $0x330] sm:$0xff] }
 0x116   : > { %v900_v13 = vpop.f32.mrf.mxu0  ;;  %2107 = vmatpush.msrb.mxu2 %v814_v7 }
 0x117   : > { %v901_v16 = vadd.f32 %v3704_v20, %v900_v13  ;;  %v1524_v17 = vpop.f32.mrf.mxu3  ;;  %v798_v13 = vld [vmem:[%s4820_s1 + $0x2b0] sm:$0xff] }
 0x118   : > { %v3846_v18 = vadd.f32 %v1524_v17, %v1316_v10  ;;  %v1109_v19 = vpop.f32.mrf.mxu1  ;;  %v830_v10 = vld [vmem:[%s4820_s1 + $0x3b0] sm:$0xff]  ;;  %1898 = vmatpush.msrb.mxu1 %v798_v13  ;;  %v813_v13 = vld [vmem:[%s4820_s1 + $0x328] sm:$0xff] }
 0x119   : > { %v1110_v23 = vadd.f32 %v1109_v19, %v901_v16  ;;  %947 = vmatmul.f32.gmra.mxu0 %v432_v14  ;;  %1365 = vmatmul.f32.gmra.mxu2 %v434_v15  ;;  %v464_v15 = vld [vmem:[%s3557_s17 + $0x840] sm:$0xff]  ;;  %v466_v16 = vld [vmem:[%s3557_s17 + $0x850] sm:$0xff] }
 0x11a   : > { %2316 = vmatpush.msrb.mxu3 %v830_v10  ;;  %2108 = vmatpush.msrb.mxu2 %v813_v13  ;;  %v520_v13 = vld [vmem:[%s3557_s17 + $0xa00] sm:$0xff] }
 0x11b   : > { %1156 = vmatmul.f32.gmra.mxu1 %v433_v21 }
 0x11c   : > { %1574 = vmatmul.f32.gmra.mxu3 %v435_v24  ;;  %v1318_v25 = vpop.f32.mrf.mxu2  ;;  %v465_v24 = vld [vmem:[%s3557_s17 + $0x848] sm:$0xff] }
 0x11d   : > { %v1319_v26 = vadd.f32 %v1318_v25, %v1110_v23 }
 0x11e   : > { %v903_v27 = vpop.f32.mrf.mxu0 }
 0x11f   : > { %v904_v31 = vadd.f32 %v3704_v20, %v903_v27  ;;  %v1527_v32 = vpop.f32.mrf.mxu3 }
 0x120   : > { %v3853_v33 = vadd.f32 %v1527_v32, %v1319_v26  ;;  %v1112_v34 = vpop.f32.mrf.mxu1  ;;  %v467_v26 = vld [vmem:[%s3557_s17 + $0x858] sm:$0xff]  ;;  %v474_v32 = vld [vmem:[%s3557_s17 + $0x890] sm:$0xff] }
 0x121   : > { %v1113_v37 = vadd.f32 %v1112_v34, %v904_v31  ;;  %950 = vmatmul.f32.gmra.mxu0 %v440_v28  ;;  %1368 = vmatmul.f32.gmra.mxu2 %v442_v30  ;;  %v472_v31 = vld [vmem:[%s3557_s17 + $0x880] sm:$0xff] }
 0x123   : > { %1159 = vmatmul.f32.gmra.mxu1 %v441_v36 }
 0x124   : > { %1577 = vmatmul.f32.gmra.mxu3 %v443_v38  ;;  %v1321_v39 = vpop.f32.mrf.mxu2 }
 0x125   : > { %v1322_v41 = vadd.f32 %v1321_v39, %v1113_v37  ;;  %v473_v39 = vld [vmem:[%s3557_s17 + $0x888] sm:$0xff] }
 0x126   : > { %v906_v43 = vpop.f32.mrf.mxu0 }
 0x127   : > { %v907_v46 = vadd.f32 %v3704_v20, %v906_v43  ;;  %v1530_v47 = vpop.f32.mrf.mxu3  ;;  %v475_v43 = vld [vmem:[%s3557_s17 + $0x898] sm:$0xff] }
 0x128   : > { %v3860_v48 = vadd.f32 %v1530_v47, %v1322_v41  ;;  %v1115_v50 = vpop.f32.mrf.mxu1  ;;  %v480_v47 = vld [vmem:[%s3557_s17 + $0x8c0] sm:$0xff] }
 0x129   : > { %v1116_v53 = vadd.f32 %v1115_v50, %v907_v46  ;;  %953 = vmatmul.f32.gmra.mxu0 %v448_v44  ;;  %1371 = vmatmul.f32.gmra.mxu2 %v450_v45  ;;  %v482_v50 = vld [vmem:[%s3557_s17 + $0x8d0] sm:$0xff] }
 0x12b   : > { %1162 = vmatmul.f32.gmra.mxu1 %v449_v51 }
 0x12c   : > { %1580 = vmatmul.f32.gmra.mxu3 %v451_v54  ;;  %v1324_v56 = vpop.f32.mrf.mxu2 }
 0x12d   : > { %v1325_v57 = vadd.f32 %v1324_v56, %v1116_v53 }
 0x12e   : > { %v909_v58 = vpop.f32.mrf.mxu0 }
 0x12f   : > { %v910_v61 = vadd.f32 %v3704_v20, %v909_v58  ;;  %v1533_v62 = vpop.f32.mrf.mxu3 }
 0x130   : > { %v3867_v1 = vadd.f32 %v1533_v62, %v1325_v57  ;;  %v1118_v2 = vpop.f32.mrf.mxu1  ;;  %v481_v57 = vld [vmem:[%s3557_s17 + $0x8c8] sm:$0xff] }
 0x131   : > { %v1119_v5 = vadd.f32 %v1118_v2, %v910_v61  ;;  %956 = vmatmul.f32.gmra.mxu0 %v456_v59  ;;  %1374 = vmatmul.f32.gmra.mxu2 %v458_v60  ;;  %v483_v59 = vld [vmem:[%s3557_s17 + $0x8d8] sm:$0xff]  ;;  %v488_v2 = vld [vmem:[%s3557_s17 + $0x900] sm:$0xff] }
 0x133   : > { %1165 = vmatmul.f32.gmra.mxu1 %v457_v3  ;;  %v490_v3 = vld [vmem:[%s3557_s17 + $0x910] sm:$0xff] }
 0x134   : > { %1583 = vmatmul.f32.gmra.mxu3 %v459_v6  ;;  %v1327_v8 = vpop.f32.mrf.mxu2 }
 0x135   : > { %v1328_v11 = vadd.f32 %v1327_v8, %v1119_v5 }
 0x136   : > { %v912_v14 = vpop.f32.mrf.mxu0 }
 0x137   : > { %v913_v17 = vadd.f32 %v3704_v20, %v912_v14  ;;  %v1536_v19 = vpop.f32.mrf.mxu3 }
 0x138   : > { %v3886_v21 = vadd.f32 %v1536_v19, %v1328_v11  ;;  %v1121_v23 = vpop.f32.mrf.mxu1  ;;  %v491_v11 = vld [vmem:[%s3557_s17 + $0x918] sm:$0xff]  ;;  %v797_v19 = vld [vmem:[%s4820_s1 + $0x2a8] sm:$0xff] }
 0x139   : > { %v1122_v25 = vadd.f32 %v1121_v23, %v913_v17  ;;  %959 = vmatmul.f32.gmra.mxu0 %v464_v15  ;;  %1377 = vmatmul.f32.gmra.mxu2 %v466_v16  ;;  %v781_v15 = vld [vmem:[%s4820_s1 + $0x228] sm:$0xff] }
 0x13a   : > { %v829_v16 = vld [vmem:[%s4820_s1 + $0x3a8] sm:$0xff]  ;;  %1690 = vmatpush.msrb.mxu0 %v781_v15  ;;  %1899 = vmatpush.msrb.mxu1 %v797_v19 }
 0x13b   : > { %1168 = vmatmul.f32.gmra.mxu1 %v465_v24  ;;  %2317 = vmatpush.msrb.mxu3 %v829_v16  ;;  %v496_v24 = vld [vmem:[%s3557_s17 + $0x940] sm:$0xff] }
 0x13c   : > { %1586 = vmatmul.f32.gmra.mxu3 %v467_v26  ;;  %v1330_v27 = vpop.f32.mrf.mxu2 }
 0x13d   : > { %v1331_v28 = vadd.f32 %v1330_v27, %v1122_v25  ;;  %v498_v25 = vld [vmem:[%s3557_s17 + $0x950] sm:$0xff] }
 0x13e   : > { %v915_v30 = vpop.f32.mrf.mxu0 }
 0x13f   : > { %v916_v34 = vadd.f32 %v3704_v20, %v915_v30  ;;  %v1539_v36 = vpop.f32.mrf.mxu3 }
 0x140   : > { %v3893_v37 = vadd.f32 %v1539_v36, %v1331_v28  ;;  %v1124_v38 = vpop.f32.mrf.mxu1 }
 0x141   : > { %v1125_v41 = vadd.f32 %v1124_v38, %v916_v34  ;;  %962 = vmatmul.f32.gmra.mxu0 %v472_v31  ;;  %1380 = vmatmul.f32.gmra.mxu2 %v474_v32  ;;  %v497_v31 = vld [vmem:[%s3557_s17 + $0x948] sm:$0xff]  ;;  %v499_v34 = vld [vmem:[%s3557_s17 + $0x958] sm:$0xff] }
 0x143   : > { %1171 = vmatmul.f32.gmra.mxu1 %v473_v39 }
 0x144   : > { %1589 = vmatmul.f32.gmra.mxu3 %v475_v43  ;;  %v1333_v44 = vpop.f32.mrf.mxu2  ;;  %v506_v43 = vld [vmem:[%s3557_s17 + $0x990] sm:$0xff] }
 0x145   : > { %v1334_v45 = vadd.f32 %v1333_v44, %v1125_v41  ;;  %v504_v41 = vld [vmem:[%s3557_s17 + $0x980] sm:$0xff] }
 0x146   : > { %v918_v46 = vpop.f32.mrf.mxu0 }
 0x147   : > { %v919_v51 = vadd.f32 %v3704_v20, %v918_v46  ;;  %v1542_v53 = vpop.f32.mrf.mxu3 }
 0x148   : > { %v3900_v54 = vadd.f32 %v1542_v53, %v1334_v45  ;;  %v1127_v56 = vpop.f32.mrf.mxu1  ;;  %v507_v53 = vld [vmem:[%s3557_s17 + $0x998] sm:$0xff] }
 0x149   : > { %v1128_v58 = vadd.f32 %v1127_v56, %v919_v51  ;;  %965 = vmatmul.f32.gmra.mxu0 %v480_v47  ;;  %1383 = vmatmul.f32.gmra.mxu2 %v482_v50  ;;  %v505_v50 = vld [vmem:[%s3557_s17 + $0x988] sm:$0xff] }
 0x14b   : > { %1174 = vmatmul.f32.gmra.mxu1 %v481_v57 }
 0x14c   : > { %1592 = vmatmul.f32.gmra.mxu3 %v483_v59  ;;  %v1336_v60 = vpop.f32.mrf.mxu2  ;;  %v512_v59 = vld [vmem:[%s3557_s17 + $0x9c0] sm:$0xff] }
 0x14d   : > { %v1337_v61 = vadd.f32 %v1336_v60, %v1128_v58  ;;  %v514_v60 = vld [vmem:[%s3557_s17 + $0x9d0] sm:$0xff] }
 0x14e   : > { %v921_v62 = vpop.f32.mrf.mxu0 }
 0x14f   : > { %v922_v5 = vadd.f32 %v3704_v20, %v921_v62  ;;  %v1545_v6 = vpop.f32.mrf.mxu3 }
 0x150   : > { %v3907_v7 = vadd.f32 %v1545_v6, %v1337_v61  ;;  %v1130_v8 = vpop.f32.mrf.mxu1 }
 0x151   : > { %v1131_v10 = vadd.f32 %v1130_v8, %v922_v5  ;;  %968 = vmatmul.f32.gmra.mxu0 %v488_v2  ;;  %1386 = vmatmul.f32.gmra.mxu2 %v490_v3  ;;  %v513_v5 = vld [vmem:[%s3557_s17 + $0x9c8] sm:$0xff]  ;;  %v515_v8 = vld [vmem:[%s3557_s17 + $0x9d8] sm:$0xff] }
 0x153   : > { %1177 = vmatmul.f32.gmra.mxu1 %v489_v9 }
 0x154   : > { %1595 = vmatmul.f32.gmra.mxu3 %v491_v11  ;;  %v1339_v14 = vpop.f32.mrf.mxu2 }
 0x155   : > { %v1340_v17 = vadd.f32 %v1339_v14, %v1131_v10  ;;  %v522_v14 = vld [vmem:[%s3557_s17 + $0xa10] sm:$0xff] }
 0x156   : > { %v924_v23 = vpop.f32.mrf.mxu0 }
 0x157   : > { %v925_v26 = vadd.f32 %v3704_v20, %v924_v23  ;;  %v1548_v27 = vpop.f32.mrf.mxu3  ;;  %v521_v23 = vld [vmem:[%s3557_s17 + $0xa08] sm:$0xff] }
 0x158   : > { %v3926_v28 = vadd.f32 %v1548_v27, %v1340_v17  ;;  %v1133_v30 = vpop.f32.mrf.mxu1 }
 0x159   : > { %v1134_v32 = vadd.f32 %v1133_v30, %v925_v26  ;;  %971 = vmatmul.f32.gmra.mxu0 %v496_v24  ;;  %1389 = vmatmul.f32.gmra.mxu2 %v498_v25  ;;  %v523_v25 = vld [vmem:[%s3557_s17 + $0xa18] sm:$0xff]  ;;  %v812_v26 = vld [vmem:[%s4820_s1 + $0x320] sm:$0xff] }
 0x15a   : > { %2109 = vmatpush.msrb.mxu2 %v812_v26  ;;  %v780_v30 = vld [vmem:[%s4820_s1 + $0x220] sm:$0xff]  ;;  %v547_v26 = vld [vmem:[%s3557_s17 + $0xad8] sm:$0xff] }
 0x15b   : > { %1180 = vmatmul.f32.gmra.mxu1 %v497_v31  ;;  %v828_v31 = vld [vmem:[%s4820_s1 + $0x3a0] sm:$0xff]  ;;  %1691 = vmatpush.msrb.mxu0 %v780_v30 }
 0x15c   : > { %1598 = vmatmul.f32.gmra.mxu3 %v499_v34  ;;  %v1342_v36 = vpop.f32.mrf.mxu2  ;;  %v796_v34 = vld [vmem:[%s4820_s1 + $0x2a0] sm:$0xff] }
 0x15d   : > { %v1343_v38 = vadd.f32 %v1342_v36, %v1134_v32  ;;  %2318 = vmatpush.msrb.mxu3 %v828_v31  ;;  %1900 = vmatpush.msrb.mxu1 %v796_v34  ;;  %v554_v34 = vld [vmem:[%s3557_s17 + $0xb10] sm:$0xff] }
 0x15e   : > { %v927_v39 = vpop.f32.mrf.mxu0 }
 0x15f   : > { %v928_v44 = vadd.f32 %v3704_v20, %v927_v39  ;;  %v1551_v45 = vpop.f32.mrf.mxu3  ;;  %v530_v39 = vld [vmem:[%s3557_s17 + $0xa50] sm:$0xff] }
 0x160   : > { %v3933_v46 = vadd.f32 %v1551_v45, %v1343_v38  ;;  %v1136_v47 = vpop.f32.mrf.mxu1  ;;  %v528_v38 = vld [vmem:[%s3557_s17 + $0xa40] sm:$0xff] }
 0x161   : > { %v1137_v51 = vadd.f32 %v1136_v47, %v928_v44  ;;  %974 = vmatmul.f32.gmra.mxu0 %v504_v41  ;;  %1392 = vmatmul.f32.gmra.mxu2 %v506_v43  ;;  %v529_v47 = vld [vmem:[%s3557_s17 + $0xa48] sm:$0xff] }
 0x163   : > { %1183 = vmatmul.f32.gmra.mxu1 %v505_v50 }
 0x164   : > { %1601 = vmatmul.f32.gmra.mxu3 %v507_v53  ;;  %v1345_v56 = vpop.f32.mrf.mxu2 }
 0x165   : > { %v1346_v57 = vadd.f32 %v1345_v56, %v1137_v51  ;;  %v531_v51 = vld [vmem:[%s3557_s17 + $0xa58] sm:$0xff] }
 0x166   : > { %v930_v58 = vpop.f32.mrf.mxu0 }
 0x167   : > { %v931_v61 = vadd.f32 %v3704_v20, %v930_v58  ;;  %v1554_v62 = vpop.f32.mrf.mxu3  ;;  %v536_v58 = vld [vmem:[%s3557_s17 + $0xa80] sm:$0xff] }
 0x168   : > { %v3940_v2 = vadd.f32 %v1554_v62, %v1346_v57  ;;  %v1139_v3 = vpop.f32.mrf.mxu1 }
 0x169   : > { %v1140_v6 = vadd.f32 %v1139_v3, %v931_v61  ;;  %977 = vmatmul.f32.gmra.mxu0 %v512_v59  ;;  %1395 = vmatmul.f32.gmra.mxu2 %v514_v60  ;;  %v538_v59 = vld [vmem:[%s3557_s17 + $0xa90] sm:$0xff] }
 0x16b   : > { %1186 = vmatmul.f32.gmra.mxu1 %v513_v5  ;;  %v537_v5 = vld [vmem:[%s3557_s17 + $0xa88] sm:$0xff] }
 0x16c   : > { %1604 = vmatmul.f32.gmra.mxu3 %v515_v8  ;;  %v1348_v9 = vpop.f32.mrf.mxu2  ;;  %v539_v8 = vld [vmem:[%s3557_s17 + $0xa98] sm:$0xff] }
 0x16d   : > { %v1349_v10 = vadd.f32 %v1348_v9, %v1140_v6 }
 0x16e   : > { %v933_v11 = vpop.f32.mrf.mxu0 }
 0x16f   : > { %v934_v15 = vadd.f32 %v3704_v20, %v933_v11  ;;  %v1557_v16 = vpop.f32.mrf.mxu3 }
 0x170   : > { %v3947_v17 = vadd.f32 %v1557_v16, %v1349_v10  ;;  %v1142_v19 = vpop.f32.mrf.mxu1 }
 0x171   : > { %v1143_v24 = vadd.f32 %v1142_v19, %v934_v15  ;;  %980 = vmatmul.f32.gmra.mxu0 %v520_v13  ;;  %1398 = vmatmul.f32.gmra.mxu2 %v522_v14  ;;  %v544_v13 = vld [vmem:[%s3557_s17 + $0xac0] sm:$0xff]  ;;  %v546_v14 = vld [vmem:[%s3557_s17 + $0xad0] sm:$0xff] }
 0x173   : > { %1189 = vmatmul.f32.gmra.mxu1 %v521_v23 }
 0x174   : > { %1607 = vmatmul.f32.gmra.mxu3 %v523_v25  ;;  %v1351_v27 = vpop.f32.mrf.mxu2 }
 0x175   : > { %v1352_v32 = vadd.f32 %v1351_v27, %v1143_v24  ;;  %v545_v24 = vld [vmem:[%s3557_s17 + $0xac8] sm:$0xff] }
 0x176   : > { %v936_v36 = vpop.f32.mrf.mxu0 }
 0x177   : > { %v937_v41 = vadd.f32 %v3704_v20, %v936_v36  ;;  %v1560_v43 = vpop.f32.mrf.mxu3 }
 0x178   : > { %v3966_v44 = vadd.f32 %v1560_v43, %v1352_v32  ;;  %v1145_v45 = vpop.f32.mrf.mxu1  ;;  %v552_v32 = vld [vmem:[%s3557_s17 + $0xb00] sm:$0xff]  ;;  %v553_v43 = vld [vmem:[%s3557_s17 + $0xb08] sm:$0xff] }
 0x179   : > { %v1146_v50 = vadd.f32 %v1145_v45, %v937_v41  ;;  %983 = vmatmul.f32.gmra.mxu0 %v528_v38  ;;  %1401 = vmatmul.f32.gmra.mxu2 %v530_v39 }
 0x17b   : > { %1192 = vmatmul.f32.gmra.mxu1 %v529_v47  ;;  %v555_v47 = vld [vmem:[%s3557_s17 + $0xb18] sm:$0xff] }
 0x17c   : > { %1610 = vmatmul.f32.gmra.mxu3 %v531_v51  ;;  %v1354_v53 = vpop.f32.mrf.mxu2 }
 0x17d   : > { %v1355_v56 = vadd.f32 %v1354_v53, %v1146_v50  ;;  %v811_v50 = vld [vmem:[%s4820_s1 + $0x318] sm:$0xff] }
 0x17e   : > { %v939_v57 = vpop.f32.mrf.mxu0  ;;  %2110 = vmatpush.msrb.mxu2 %v811_v50  ;;  %v827_v53 = vld [vmem:[%s4820_s1 + $0x398] sm:$0xff] }
 0x17f   : > { %v940_v60 = vadd.f32 %v3704_v20, %v939_v57  ;;  %v1563_v61 = vpop.f32.mrf.mxu3  ;;  %2319 = vmatpush.msrb.mxu3 %v827_v53  ;;  %v795_v57 = vld [vmem:[%s4820_s1 + $0x298] sm:$0xff] }
 0x180   : > { %v3973_v62 = vadd.f32 %v1563_v61, %v1355_v56  ;;  %v1148_v3 = vpop.f32.mrf.mxu1  ;;  %1901 = vmatpush.msrb.mxu1 %v795_v57  ;;  %v4008_v61 = vld [vmem:[%s4821_s2] ss:$0 sm:$0xff] }
 0x181   : > { %v1149_v6 = vadd.f32 %v1148_v3, %v940_v60  ;;  %986 = vmatmul.f32.gmra.mxu0 %v536_v58  ;;  %1404 = vmatmul.f32.gmra.mxu2 %v538_v59  ;;  %v560_v59 = vld [vmem:[%s3557_s17 + $0xb40] sm:$0xff]  ;;  %v562_v60 = vld [vmem:[%s3557_s17 + $0xb50] sm:$0xff] }
 0x183   : > { %1195 = vmatmul.f32.gmra.mxu1 %v537_v5 }
 0x184   : > { %1613 = vmatmul.f32.gmra.mxu3 %v539_v8  ;;  %v1357_v9 = vpop.f32.mrf.mxu2 }
 0x185   : > { %v1358_v10 = vadd.f32 %v1357_v9, %v1149_v6  ;;  %v561_v9 = vld [vmem:[%s3557_s17 + $0xb48] sm:$0xff] }
 0x186   : > { %v942_v11 = vpop.f32.mrf.mxu0 }
 0x187   : > { %v943_v15 = vadd.f32 %v3704_v20, %v942_v11  ;;  %v1566_v16 = vpop.f32.mrf.mxu3  ;;  %v563_v11 = vld [vmem:[%s3557_s17 + $0xb58] sm:$0xff] }
 0x188   : > { %v3980_v19 = vadd.f32 %v1566_v16, %v1358_v10  ;;  %v1151_v23 = vpop.f32.mrf.mxu1  ;;  %v568_v16 = vld [vmem:[%s3557_s17 + $0xb80] sm:$0xff] }
 0x189   : > { %v1152_v25 = vadd.f32 %v1151_v23, %v943_v15  ;;  %989 = vmatmul.f32.gmra.mxu0 %v544_v13  ;;  %1407 = vmatmul.f32.gmra.mxu2 %v546_v14  ;;  %v570_v23 = vld [vmem:[%s3557_s17 + $0xb90] sm:$0xff] }
 0x18b   : > { %1198 = vmatmul.f32.gmra.mxu1 %v545_v24 }
 0x18c   : > { %1616 = vmatmul.f32.gmra.mxu3 %v547_v26  ;;  %v1360_v27 = vpop.f32.mrf.mxu2 }
 0x18d   : > { %v1361_v30 = vadd.f32 %v1360_v27, %v1152_v25 }
 0x18e   : > { %v945_v31 = vpop.f32.mrf.mxu0 }
 0x18f   : > { %v946_v36 = vadd.f32 %v3704_v20, %v945_v31  ;;  %v1569_v38 = vpop.f32.mrf.mxu3  ;;  %v779_v20 = vld [vmem:[%s4820_s1 + $0x218] sm:$0xff] }
 0x190   : > { %v3987_v39 = vadd.f32 %v1569_v38, %v1361_v30  ;;  %v1154_v41 = vpop.f32.mrf.mxu1  ;;  %1692 = vmatpush.msrb.mxu0 %v779_v20  ;;  %v569_v30 = vld [vmem:[%s3557_s17 + $0xb88] sm:$0xff] }
 0x191   : > { %v1155_v45 = vadd.f32 %v1154_v41, %v946_v36  ;;  %992 = vmatmul.f32.gmra.mxu0 %v552_v32  ;;  %1410 = vmatmul.f32.gmra.mxu2 %v554_v34  ;;  %v571_v32 = vld [vmem:[%s3557_s17 + $0xb98] sm:$0xff]  ;;  %v576_v41 = vld [vmem:[%s3557_s17 + $0xbc0] sm:$0xff]  ;;  %v577_v20 = vld [vmem:[%s3557_s17 + $0xbc8] sm:$0xff] }
 0x193   : > { %1201 = vmatmul.f32.gmra.mxu1 %v553_v43  ;;  %v578_v43 = vld [vmem:[%s3557_s17 + $0xbd0] sm:$0xff] }
 0x194   : > { %1619 = vmatmul.f32.gmra.mxu3 %v555_v47  ;;  %v1363_v51 = vpop.f32.mrf.mxu2 }
 0x195   : > { %v1364_v56 = vadd.f32 %v1363_v51, %v1155_v45 }
 0x196   : > { %v948_v58 = vpop.f32.mrf.mxu0 }
 0x197   : > { %v949_v3 = vadd.f32 %v4008_v61, %v948_v58  ;;  %v1572_v5 = vpop.f32.mrf.mxu3 }
 0x198   : > { %v4011_v6 = vadd.f32 %v1572_v5, %v1364_v56  ;;  %v1157_v8 = vpop.f32.mrf.mxu1  ;;  %v579_v56 = vld [vmem:[%s3557_s17 + $0xbd8] sm:$0xff] }
 0x199   : > { %v1158_v10 = vadd.f32 %v1157_v8, %v949_v3  ;;  %995 = vmatmul.f32.gmra.mxu0 %v560_v59  ;;  %1413 = vmatmul.f32.gmra.mxu2 %v562_v60  ;;  %v584_v60 = vld [vmem:[%s3557_s17 + $0xc00] sm:$0xff]  ;;  %v586_v3 = vld [vmem:[%s3557_s17 + $0xc10] sm:$0xff] }
 0x19b   : > { %1204 = vmatmul.f32.gmra.mxu1 %v561_v9 }
 0x19c   : > { %1622 = vmatmul.f32.gmra.mxu3 %v563_v11  ;;  %v1366_v13 = vpop.f32.mrf.mxu2  ;;  %v585_v11 = vld [vmem:[%s3557_s17 + $0xc08] sm:$0xff] }
 0x19d   : > { %v1367_v14 = vadd.f32 %v1366_v13, %v1158_v10 }
 0x19e   : > { %v951_v15 = vpop.f32.mrf.mxu0 }
 0x19f   : > { %v952_v24 = vadd.f32 %v4008_v61, %v951_v15  ;;  %v1575_v25 = vpop.f32.mrf.mxu3  ;;  %v810_v15 = vld [vmem:[%s4820_s1 + $0x310] sm:$0xff] }
 0x1a0   : > { %v4018_v26 = vadd.f32 %v1575_v25, %v1367_v14  ;;  %v1160_v27 = vpop.f32.mrf.mxu1  ;;  %v587_v14 = vld [vmem:[%s3557_s17 + $0xc18] sm:$0xff]  ;;  %2111 = vmatpush.msrb.mxu2 %v810_v15  ;;  %v608_v15 = vld [vmem:[%s3557_s17 + $0xcc0] sm:$0xff] }
 0x1a1   : > { %v1161_v31 = vadd.f32 %v1160_v27, %v952_v24  ;;  %998 = vmatmul.f32.gmra.mxu0 %v568_v16  ;;  %1416 = vmatmul.f32.gmra.mxu2 %v570_v23  ;;  %v778_v23 = vld [vmem:[%s4820_s1 + $0x210] sm:$0xff] }
 0x1a2   : > { %v826_v24 = vld [vmem:[%s4820_s1 + $0x390] sm:$0xff]  ;;  %1693 = vmatpush.msrb.mxu0 %v778_v23 }
 0x1a3   : > { %1207 = vmatmul.f32.gmra.mxu1 %v569_v30  ;;  %2320 = vmatpush.msrb.mxu3 %v826_v24  ;;  %v794_v27 = vld [vmem:[%s4820_s1 + $0x290] sm:$0xff] }
 0x1a4   : > { %1625 = vmatmul.f32.gmra.mxu3 %v571_v32  ;;  %v1369_v34 = vpop.f32.mrf.mxu2  ;;  %v594_v32 = vld [vmem:[%s3557_s17 + $0xc50] sm:$0xff]  ;;  %1902 = vmatpush.msrb.mxu1 %v794_v27 }
 0x1a5   : > { %v1370_v36 = vadd.f32 %v1369_v34, %v1161_v31  ;;  %v592_v31 = vld [vmem:[%s3557_s17 + $0xc40] sm:$0xff] }
 0x1a6   : > { %v954_v38 = vpop.f32.mrf.mxu0 }
 0x1a7   : > { %v955_v45 = vadd.f32 %v4008_v61, %v954_v38  ;;  %v1578_v47 = vpop.f32.mrf.mxu3 }
 0x1a8   : > { %v4025_v50 = vadd.f32 %v1578_v47, %v1370_v36  ;;  %v1163_v51 = vpop.f32.mrf.mxu1  ;;  %v595_v47 = vld [vmem:[%s3557_s17 + $0xc58] sm:$0xff] }
 0x1a9   : > { %v1164_v53 = vadd.f32 %v1163_v51, %v955_v45  ;;  %1001 = vmatmul.f32.gmra.mxu0 %v576_v41  ;;  %1419 = vmatmul.f32.gmra.mxu2 %v578_v43  ;;  %v593_v43 = vld [vmem:[%s3557_s17 + $0xc48] sm:$0xff] }
 0x1ab   : > { %1210 = vmatmul.f32.gmra.mxu1 %v577_v20 }
 0x1ac   : > { %1628 = vmatmul.f32.gmra.mxu3 %v579_v56  ;;  %v1372_v57 = vpop.f32.mrf.mxu2  ;;  %v600_v56 = vld [vmem:[%s3557_s17 + $0xc80] sm:$0xff] }
 0x1ad   : > { %v1373_v58 = vadd.f32 %v1372_v57, %v1164_v53  ;;  %v602_v57 = vld [vmem:[%s3557_s17 + $0xc90] sm:$0xff] }
 0x1ae   : > { %v957_v59 = vpop.f32.mrf.mxu0 }
 0x1af   : > { %v958_v5 = vadd.f32 %v4008_v61, %v957_v59  ;;  %v1581_v8 = vpop.f32.mrf.mxu3 }
 0x1b0   : > { %v4032_v9 = vadd.f32 %v1581_v8, %v1373_v58  ;;  %v1166_v10 = vpop.f32.mrf.mxu1 }
 0x1b1   : > { %v1167_v13 = vadd.f32 %v1166_v10, %v958_v5  ;;  %1004 = vmatmul.f32.gmra.mxu0 %v584_v60  ;;  %1422 = vmatmul.f32.gmra.mxu2 %v586_v3  ;;  %v601_v5 = vld [vmem:[%s3557_s17 + $0xc88] sm:$0xff]  ;;  %v603_v10 = vld [vmem:[%s3557_s17 + $0xc98] sm:$0xff] }
 0x1b3   : > { %1213 = vmatmul.f32.gmra.mxu1 %v585_v11 }
 0x1b4   : > { %1631 = vmatmul.f32.gmra.mxu3 %v587_v14  ;;  %v1375_v16 = vpop.f32.mrf.mxu2 }
 0x1b5   : > { %v1376_v25 = vadd.f32 %v1375_v16, %v1167_v13  ;;  %v610_v16 = vld [vmem:[%s3557_s17 + $0xcd0] sm:$0xff] }
 0x1b6   : > { %v960_v30 = vpop.f32.mrf.mxu0 }
 0x1b7   : > { %v961_v34 = vadd.f32 %v4008_v61, %v960_v30  ;;  %v1584_v36 = vpop.f32.mrf.mxu3  ;;  %v609_v30 = vld [vmem:[%s3557_s17 + $0xcc8] sm:$0xff] }
 0x1b8   : > { %v4051_v38 = vadd.f32 %v1584_v36, %v1376_v25  ;;  %v1169_v41 = vpop.f32.mrf.mxu1 }
 0x1b9   : > { %v1170_v45 = vadd.f32 %v1169_v41, %v961_v34  ;;  %1007 = vmatmul.f32.gmra.mxu0 %v592_v31  ;;  %1425 = vmatmul.f32.gmra.mxu2 %v594_v32  ;;  %v611_v32 = vld [vmem:[%s3557_s17 + $0xcd8] sm:$0xff] }
 0x1bb   : > { %1216 = vmatmul.f32.gmra.mxu1 %v593_v43  ;;  %v616_v43 = vld [vmem:[%s3557_s17 + $0xd00] sm:$0xff] }
 0x1bc   : > { %1634 = vmatmul.f32.gmra.mxu3 %v595_v47  ;;  %v1378_v51 = vpop.f32.mrf.mxu2 }
 0x1bd   : > { %v1379_v20 = vadd.f32 %v1378_v51, %v1170_v45  ;;  %v618_v45 = vld [vmem:[%s3557_s17 + $0xd10] sm:$0xff] }
 0x1be   : > { %v963_v53 = vpop.f32.mrf.mxu0 }
 0x1bf   : > { %v964_v58 = vadd.f32 %v4008_v61, %v963_v53  ;;  %v1587_v59 = vpop.f32.mrf.mxu3 }
 0x1c0   : > { %v4058_v60 = vadd.f32 %v1587_v59, %v1379_v20  ;;  %v1172_v3 = vpop.f32.mrf.mxu1  ;;  %v809_v59 = vld [vmem:[%s4820_s1 + $0x308] sm:$0xff] }
 0x1c1   : > { %v1173_v8 = vadd.f32 %v1172_v3, %v964_v58  ;;  %1010 = vmatmul.f32.gmra.mxu0 %v600_v56  ;;  %1428 = vmatmul.f32.gmra.mxu2 %v602_v57  ;;  %v617_v56 = vld [vmem:[%s3557_s17 + $0xd08] sm:$0xff]  ;;  %v619_v58 = vld [vmem:[%s3557_s17 + $0xd18] sm:$0xff] }
 0x1c2   : > { %2112 = vmatpush.msrb.mxu2 %v809_v59  ;;  %v635_v59 = vld [vmem:[%s3557_s17 + $0xd98] sm:$0xff] }
 0x1c3   : > { %1219 = vmatmul.f32.gmra.mxu1 %v601_v5  ;;  %v777_v5 = vld [vmem:[%s4820_s1 + $0x208] sm:$0xff] }
 0x1c4   : > { %1637 = vmatmul.f32.gmra.mxu3 %v603_v10  ;;  %v1381_v11 = vpop.f32.mrf.mxu2  ;;  %1694 = vmatpush.msrb.mxu0 %v777_v5 }
 0x1c5   : > { %v1382_v13 = vadd.f32 %v1381_v11, %v1173_v8  ;;  %v825_v8 = vld [vmem:[%s4820_s1 + $0x388] sm:$0xff] }
 0x1c6   : > { %v966_v14 = vpop.f32.mrf.mxu0  ;;  %2321 = vmatpush.msrb.mxu3 %v825_v8  ;;  %v793_v11 = vld [vmem:[%s4820_s1 + $0x288] sm:$0xff] }
 0x1c7   : > { %v967_v23 = vadd.f32 %v4008_v61, %v966_v14  ;;  %v1590_v24 = vpop.f32.mrf.mxu3  ;;  %v624_v14 = vld [vmem:[%s3557_s17 + $0xd40] sm:$0xff]  ;;  %1903 = vmatpush.msrb.mxu1 %v793_v11  ;;  %v642_v11 = vld [vmem:[%s3557_s17 + $0xdd0] sm:$0xff] }
 0x1c8   : > { %v4065_v25 = vadd.f32 %v1590_v24, %v1382_v13  ;;  %v1175_v27 = vpop.f32.mrf.mxu1 }
 0x1c9   : > { %v1176_v31 = vadd.f32 %v1175_v27, %v967_v23  ;;  %1013 = vmatmul.f32.gmra.mxu0 %v608_v15  ;;  %1431 = vmatmul.f32.gmra.mxu2 %v610_v16  ;;  %v626_v15 = vld [vmem:[%s3557_s17 + $0xd50] sm:$0xff] }
 0x1cb   : > { %1222 = vmatmul.f32.gmra.mxu1 %v609_v30  ;;  %v625_v30 = vld [vmem:[%s3557_s17 + $0xd48] sm:$0xff] }
 0x1cc   : > { %1640 = vmatmul.f32.gmra.mxu3 %v611_v32  ;;  %v1384_v34 = vpop.f32.mrf.mxu2  ;;  %v627_v32 = vld [vmem:[%s3557_s17 + $0xd58] sm:$0xff] }
 0x1cd   : > { %v1385_v36 = vadd.f32 %v1384_v34, %v1176_v31 }
 0x1ce   : > { %v969_v41 = vpop.f32.mrf.mxu0 }
 0x1cf   : > { %v970_v47 = vadd.f32 %v4008_v61, %v969_v41  ;;  %v1593_v51 = vpop.f32.mrf.mxu3 }
 0x1d0   : > { %v4072_v20 = vadd.f32 %v1593_v51, %v1385_v36  ;;  %v1178_v53 = vpop.f32.mrf.mxu1 }
 0x1d1   : > { %v1179_v57 = vadd.f32 %v1178_v53, %v970_v47  ;;  %1016 = vmatmul.f32.gmra.mxu0 %v616_v43  ;;  %1434 = vmatmul.f32.gmra.mxu2 %v618_v45  ;;  %v632_v43 = vld [vmem:[%s3557_s17 + $0xd80] sm:$0xff]  ;;  %v634_v45 = vld [vmem:[%s3557_s17 + $0xd90] sm:$0xff] }
 0x1d3   : > { %1225 = vmatmul.f32.gmra.mxu1 %v617_v56 }
 0x1d4   : > { %1643 = vmatmul.f32.gmra.mxu3 %v619_v58  ;;  %v1387_v3 = vpop.f32.mrf.mxu2 }
 0x1d5   : > { %v1388_v10 = vadd.f32 %v1387_v3, %v1179_v57  ;;  %v633_v57 = vld [vmem:[%s3557_s17 + $0xd88] sm:$0xff] }
 0x1d6   : > { %v972_v13 = vpop.f32.mrf.mxu0 }
 0x1d7   : > { %v973_v16 = vadd.f32 %v4008_v61, %v972_v13  ;;  %v1596_v23 = vpop.f32.mrf.mxu3 }
 0x1d8   : > { %v4091_v24 = vadd.f32 %v1596_v23, %v1388_v10  ;;  %v1181_v27 = vpop.f32.mrf.mxu1  ;;  %v640_v10 = vld [vmem:[%s3557_s17 + $0xdc0] sm:$0xff]  ;;  %v641_v23 = vld [vmem:[%s3557_s17 + $0xdc8] sm:$0xff] }
 0x1d9   : > { %v1182_v31 = vadd.f32 %v1181_v27, %v973_v16  ;;  %1019 = vmatmul.f32.gmra.mxu0 %v624_v14  ;;  %1437 = vmatmul.f32.gmra.mxu2 %v626_v15 }
 0x1db   : > { %1228 = vmatmul.f32.gmra.mxu1 %v625_v30  ;;  %v643_v30 = vld [vmem:[%s3557_s17 + $0xdd8] sm:$0xff] }
 0x1dc   : > { %1646 = vmatmul.f32.gmra.mxu3 %v627_v32  ;;  %v1390_v34 = vpop.f32.mrf.mxu2 }
 0x1dd   : > { %v1391_v36 = vadd.f32 %v1390_v34, %v1182_v31 }
 0x1de   : > { %v975_v41 = vpop.f32.mrf.mxu0 }
 0x1df   : > { %v976_v47 = vadd.f32 %v4008_v61, %v975_v41  ;;  %v1599_v51 = vpop.f32.mrf.mxu3  ;;  %v650_v41 = vld [vmem:[%s3557_s17 + $0xe10] sm:$0xff] }
 0x1e0   : > { %v4098_v53 = vadd.f32 %v1599_v51, %v1391_v36  ;;  %v1184_v56 = vpop.f32.mrf.mxu1  ;;  %v648_v36 = vld [vmem:[%s3557_s17 + $0xe00] sm:$0xff] }
 0x1e1   : > { %v1185_v58 = vadd.f32 %v1184_v56, %v976_v47  ;;  %1022 = vmatmul.f32.gmra.mxu0 %v632_v43  ;;  %1440 = vmatmul.f32.gmra.mxu2 %v634_v45  ;;  %v649_v56 = vld [vmem:[%s3557_s17 + $0xe08] sm:$0xff] }
 0x1e3   : > { %1231 = vmatmul.f32.gmra.mxu1 %v633_v57 }
 0x1e4   : > { %1649 = vmatmul.f32.gmra.mxu3 %v635_v59  ;;  %v1393_v3 = vpop.f32.mrf.mxu2  ;;  %v808_v59 = vld [vmem:[%s4820_s1 + $0x300] sm:$0xff] }
 0x1e5   : > { %v1394_v5 = vadd.f32 %v1393_v3, %v1185_v58  ;;  %v651_v58 = vld [vmem:[%s3557_s17 + $0xe18] sm:$0xff]  ;;  %2113 = vmatpush.msrb.mxu2 %v808_v59 }
 0x1e6   : > { %v978_v8 = vpop.f32.mrf.mxu0 }
 0x1e7   : > { %v979_v13 = vadd.f32 %v4008_v61, %v978_v8  ;;  %v1602_v14 = vpop.f32.mrf.mxu3  ;;  %v824_v8 = vld [vmem:[%s4820_s1 + $0x380] sm:$0xff] }
 0x1e8   : > { %v4105_v15 = vadd.f32 %v1602_v14, %v1394_v5  ;;  %v1187_v16 = vpop.f32.mrf.mxu1  ;;  %v776_v5 = vld [vmem:[%s4820_s1 + $0x200] sm:$0xff]  ;;  %2322 = vmatpush.msrb.mxu3 %v824_v8 }
 0x1e9   : > { %v1188_v27 = vadd.f32 %v1187_v16, %v979_v13  ;;  %1025 = vmatmul.f32.gmra.mxu0 %v640_v10  ;;  %1443 = vmatmul.f32.gmra.mxu2 %v642_v11  ;;  %v792_v11 = vld [vmem:[%s4820_s1 + $0x280] sm:$0xff]  ;;  %v658_v16 = vld [vmem:[%s3557_s17 + $0xe50] sm:$0xff] }
 0x1ea   : > { %1695 = vmatpush.msrb.mxu0 %v776_v5  ;;  %v656_v14 = vld [vmem:[%s3557_s17 + $0xe40] sm:$0xff]  ;;  %1904 = vmatpush.msrb.mxu1 %v792_v11  ;;  %v665_v5 = vld [vmem:[%s3557_s17 + $0xe88] sm:$0xff] }
 0x1eb   : > { %1234 = vmatmul.f32.gmra.mxu1 %v641_v23 }
 0x1ec   : > { %1652 = vmatmul.f32.gmra.mxu3 %v643_v30  ;;  %v1396_v31 = vpop.f32.mrf.mxu2 }
 0x1ed   : > { %v1397_v32 = vadd.f32 %v1396_v31, %v1188_v27 }
 0x1ee   : > { %v981_v34 = vpop.f32.mrf.mxu0 }
 0x1ef   : > { %v982_v43 = vadd.f32 %v4008_v61, %v981_v34  ;;  %v1605_v45 = vpop.f32.mrf.mxu3 }
 0x1f0   : > { %v4112_v47 = vadd.f32 %v1605_v45, %v1397_v32  ;;  %v1190_v51 = vpop.f32.mrf.mxu1  ;;  %v657_v32 = vld [vmem:[%s3557_s17 + $0xe48] sm:$0xff] }
 0x1f1   : > { %v1191_v57 = vadd.f32 %v1190_v51, %v982_v43  ;;  %1028 = vmatmul.f32.gmra.mxu0 %v648_v36  ;;  %1446 = vmatmul.f32.gmra.mxu2 %v650_v41  ;;  %v659_v36 = vld [vmem:[%s3557_s17 + $0xe58] sm:$0xff]  ;;  %v664_v51 = vld [vmem:[%s3557_s17 + $0xe80] sm:$0xff] }
 0x1f3   : > { %1237 = vmatmul.f32.gmra.mxu1 %v649_v56  ;;  %v666_v56 = vld [vmem:[%s3557_s17 + $0xe90] sm:$0xff] }
 0x1f4   : > { %1655 = vmatmul.f32.gmra.mxu3 %v651_v58  ;;  %v1399_v3 = vpop.f32.mrf.mxu2 }
 0x1f5   : > { %v1400_v10 = vadd.f32 %v1399_v3, %v1191_v57 }
 0x1f6   : > { %v984_v13 = vpop.f32.mrf.mxu0 }
 0x1f7   : > { %v985_v23 = vadd.f32 %v4008_v61, %v984_v13  ;;  %v1608_v27 = vpop.f32.mrf.mxu3 }
 0x1f8   : > { %v4131_v30 = vadd.f32 %v1608_v27, %v1400_v10  ;;  %v1193_v31 = vpop.f32.mrf.mxu1  ;;  %v667_v10 = vld [vmem:[%s3557_s17 + $0xe98] sm:$0xff] }
 0x1f9   : > { %v1194_v34 = vadd.f32 %v1193_v31, %v985_v23  ;;  %1031 = vmatmul.f32.gmra.mxu0 %v656_v14  ;;  %1449 = vmatmul.f32.gmra.mxu2 %v658_v16  ;;  %v672_v16 = vld [vmem:[%s3557_s17 + $0xec0] sm:$0xff]  ;;  %v674_v23 = vld [vmem:[%s3557_s17 + $0xed0] sm:$0xff] }
 0x1fb   : > { %1240 = vmatmul.f32.gmra.mxu1 %v657_v32 }
 0x1fc   : > { %1658 = vmatmul.f32.gmra.mxu3 %v659_v36  ;;  %v1402_v41 = vpop.f32.mrf.mxu2  ;;  %v673_v36 = vld [vmem:[%s3557_s17 + $0xec8] sm:$0xff] }
 0x1fd   : > { %v1403_v43 = vadd.f32 %v1402_v41, %v1194_v34 }
 0x1fe   : > { %v987_v45 = vpop.f32.mrf.mxu0 }
 0x1ff   : > { %v988_v57 = vadd.f32 %v4008_v61, %v987_v45  ;;  %v1611_v58 = vpop.f32.mrf.mxu3 }
 0x200   : > { %v4138_v59 = vadd.f32 %v1611_v58, %v1403_v43  ;;  %v1196_v3 = vpop.f32.mrf.mxu1  ;;  %v675_v43 = vld [vmem:[%s3557_s17 + $0xed8] sm:$0xff]  ;;  %v682_v58 = vld [vmem:[%s3557_s17 + $0xf10] sm:$0xff] }
 0x201   : > { %v1197_v8 = vadd.f32 %v1196_v3, %v988_v57  ;;  %1034 = vmatmul.f32.gmra.mxu0 %v664_v51  ;;  %1452 = vmatmul.f32.gmra.mxu2 %v666_v56  ;;  %v680_v57 = vld [vmem:[%s3557_s17 + $0xf00] sm:$0xff] }
 0x203   : > { %1243 = vmatmul.f32.gmra.mxu1 %v665_v5 }
 0x204   : > { %1661 = vmatmul.f32.gmra.mxu3 %v667_v10  ;;  %v1405_v11 = vpop.f32.mrf.mxu2 }
 0x205   : > { %v1406_v13 = vadd.f32 %v1405_v11, %v1197_v8  ;;  %v681_v11 = vld [vmem:[%s3557_s17 + $0xf08] sm:$0xff] }
 0x206   : > { %v990_v14 = vpop.f32.mrf.mxu0 }
 0x207   : > { %v991_v27 = vadd.f32 %v4008_v61, %v990_v14  ;;  %v1614_v31 = vpop.f32.mrf.mxu3  ;;  %v683_v14 = vld [vmem:[%s3557_s17 + $0xf18] sm:$0xff] }
 0x208   : > { %v4145_v32 = vadd.f32 %v1614_v31, %v1406_v13  ;;  %v1199_v34 = vpop.f32.mrf.mxu1  ;;  %v688_v31 = vld [vmem:[%s3557_s17 + $0xf40] sm:$0xff] }
 0x209   : > { %v1200_v41 = vadd.f32 %v1199_v34, %v991_v27  ;;  %1037 = vmatmul.f32.gmra.mxu0 %v672_v16  ;;  %1455 = vmatmul.f32.gmra.mxu2 %v674_v23  ;;  %v690_v34 = vld [vmem:[%s3557_s17 + $0xf50] sm:$0xff] }
 0x20b   : > { %1246 = vmatmul.f32.gmra.mxu1 %v673_v36 }
 0x20c   : > { %1664 = vmatmul.f32.gmra.mxu3 %v675_v43  ;;  %v1408_v45 = vpop.f32.mrf.mxu2 }
 0x20d   : > { %v1409_v51 = vadd.f32 %v1408_v45, %v1200_v41 }
 0x20e   : > { %v993_v56 = vpop.f32.mrf.mxu0 }
 0x20f   : > { %v994_v3 = vadd.f32 %v4008_v61, %v993_v56  ;;  %v1617_v5 = vpop.f32.mrf.mxu3 }
 0x210   : > { %v4152_v8 = vadd.f32 %v1617_v5, %v1409_v51  ;;  %v1202_v10 = vpop.f32.mrf.mxu1  ;;  %v689_v51 = vld [vmem:[%s3557_s17 + $0xf48] sm:$0xff] }
 0x211   : > { %v1203_v13 = vadd.f32 %v1202_v10, %v994_v3  ;;  %1040 = vmatmul.f32.gmra.mxu0 %v680_v57  ;;  %1458 = vmatmul.f32.gmra.mxu2 %v682_v58  ;;  %v691_v57 = vld [vmem:[%s3557_s17 + $0xf58] sm:$0xff]  ;;  %v696_v10 = vld [vmem:[%s3557_s17 + $0xf80] sm:$0xff] }
 0x213   : > { %1249 = vmatmul.f32.gmra.mxu1 %v681_v11  ;;  %v698_v11 = vld [vmem:[%s3557_s17 + $0xf90] sm:$0xff] }
 0x214   : > { %1667 = vmatmul.f32.gmra.mxu3 %v683_v14  ;;  %v1411_v16 = vpop.f32.mrf.mxu2 }
 0x215   : > { %v1412_v23 = vadd.f32 %v1411_v16, %v1203_v13 }
 0x216   : > { %v996_v27 = vpop.f32.mrf.mxu0 }
 0x217   : > { %v997_v36 = vadd.f32 %v4008_v61, %v996_v27  ;;  %v1620_v41 = vpop.f32.mrf.mxu3  ;;  %v697_v27 = vld [vmem:[%s3557_s17 + $0xf88] sm:$0xff] }
 0x218   : > { %v4159_v43 = vadd.f32 %v1620_v41, %v1412_v23  ;;  %v1205_v45 = vpop.f32.mrf.mxu1 }
 0x219   : > { %v1206_v56 = vadd.f32 %v1205_v45, %v997_v36  ;;  %1043 = vmatmul.f32.gmra.mxu0 %v688_v31  ;;  %1461 = vmatmul.f32.gmra.mxu2 %v690_v34  ;;  %v699_v34 = vld [vmem:[%s3557_s17 + $0xf98] sm:$0xff] }
 0x21b   : > { %1252 = vmatmul.f32.gmra.mxu1 %v689_v51  ;;  %v704_v51 = vld [vmem:[%s3557_s17 + $0xfc0] sm:$0xff] }
 0x21c   : > { %1670 = vmatmul.f32.gmra.mxu3 %v691_v57  ;;  %v1414_v58 = vpop.f32.mrf.mxu2 }
 0x21d   : > { %v1415_v3 = vadd.f32 %v1414_v58, %v1206_v56  ;;  %v706_v56 = vld [vmem:[%s3557_s17 + $0xfd0] sm:$0xff] }
 0x21e   : > { %v999_v5 = vpop.f32.mrf.mxu0 }
 0x21f   : > { %v1000_v13 = vadd.f32 %v4008_v61, %v999_v5  ;;  %v1623_v14 = vpop.f32.mrf.mxu3 }
 0x220   : > { %v4166_v16 = vadd.f32 %v1623_v14, %v1415_v3  ;;  %v1208_v23 = vpop.f32.mrf.mxu1 }
 0x221   : > { %v1209_v31 = vadd.f32 %v1208_v23, %v1000_v13  ;;  %1046 = vmatmul.f32.gmra.mxu0 %v696_v10  ;;  %1464 = vmatmul.f32.gmra.mxu2 %v698_v11  ;;  %v705_v13 = vld [vmem:[%s3557_s17 + $0xfc8] sm:$0xff]  ;;  %v707_v11 = vld [vmem:[%s3557_s17 + $0xfd8] sm:$0xff] }
 0x223   : > { %1255 = vmatmul.f32.gmra.mxu1 %v697_v27 }
 0x224   : > { %1673 = vmatmul.f32.gmra.mxu3 %v699_v34  ;;  %v1417_v36 = vpop.f32.mrf.mxu2  ;;  %v206_v34 = vld [vmem:[%s3557_s17 + $0x30] sm:$0xff] }
 0x225   : > { %v1418_v41 = vadd.f32 %v1417_v36, %v1209_v31  ;;  %v204_v31 = vld [vmem:[%s3557_s17 + $0x20] sm:$0xff] }
 0x226   : > { %v1002_v45 = vpop.f32.mrf.mxu0 }
 0x227   : > { %v1003_v57 = vadd.f32 %v4008_v61, %v1002_v45  ;;  %v1626_v58 = vpop.f32.mrf.mxu3 }
 0x228   : > { %v4173_v3 = vadd.f32 %v1626_v58, %v1418_v41  ;;  %v1211_v5 = vpop.f32.mrf.mxu1 }
 0x229   : > { %v1212_v10 = vadd.f32 %v1211_v5, %v1003_v57  ;;  %1049 = vmatmul.f32.gmra.mxu0 %v704_v51  ;;  %1467 = vmatmul.f32.gmra.mxu2 %v706_v56  ;;  %v205_v57 = vld [vmem:[%s3557_s17 + $0x28] sm:$0xff]  ;;  %v207_v56 = vld [vmem:[%s3557_s17 + $0x38] sm:$0xff] }
 0x22a   : > { %4824 = vst [vmem:[#allocation3_spill] sm:$0xff] %v4173_v3  ;;  %v309_v3 = vld [vmem:[%s3557_s17 + $0x368] sm:$0xff] }
 0x22b   : > { %1258 = vmatmul.f32.gmra.mxu1 %v705_v13 }
 0x22c   : > { %1676 = vmatmul.f32.gmra.mxu3 %v707_v11  ;;  %v1420_v14 = vpop.f32.mrf.mxu2  ;;  %v212_v11 = vld [vmem:[%s3557_s17 + $0x60] sm:$0xff] }
 0x22d   : > { %v1421_v23 = vadd.f32 %v1420_v14, %v1212_v10  ;;  %v214_v14 = vld [vmem:[%s3557_s17 + $0x70] sm:$0xff] }
 0x22e   : > { %v1005_v27 = vpop.f32.mrf.mxu0 }
 0x22f   : > { %v1006_v36 = vadd.f32 %v4008_v61, %v1005_v27  ;;  %v1629_v41 = vpop.f32.mrf.mxu3 }
 0x230   : > { %v4180_v45 = vadd.f32 %v1629_v41, %v1421_v23  ;;  %v1214_v58 = vpop.f32.mrf.mxu1 }
 0x231   : > { %v1215_v51 = vadd.f32 %v1214_v58, %v1006_v36  ;;  %1696 = vmatmul.f32.vlgmr.msrb.gmra.mxu0 %v204_v31  ;;  %2114 = vmatmul.f32.vlgmr.msrb.gmra.mxu2 %v206_v34  ;;  %v213_v36 = vld [vmem:[%s3557_s17 + $0x68] sm:$0xff]  ;;  %v215_v34 = vld [vmem:[%s3557_s17 + $0x78] sm:$0xff] }
 0x232   : > { %4825 = vst [vmem:[#allocation4_spill] sm:$0xff] %v4180_v45 }
 0x233   : > { %1905 = vmatmul.f32.vlgmr.msrb.gmra.mxu1 %v205_v57 }
 0x234   : > { %2323 = vmatmul.f32.vlgmr.msrb.gmra.mxu3 %v207_v56  ;;  %v1423_v5 = vpop.f32.mrf.mxu2  ;;  %v220_v56 = vld [vmem:[%s3557_s17 + $0xa0] sm:$0xff] }
 0x235   : > { %v1424_v13 = vadd.f32 %v1423_v5, %v1215_v51  ;;  %v222_v5 = vld [vmem:[%s3557_s17 + $0xb0] sm:$0xff] }
 0x236   : > { %v1008_v10 = vpop.f32.mrf.mxu0 }
 0x237   : > { %v1009_v23 = vadd.f32 %v4008_v61, %v1008_v10  ;;  %v1632_v27 = vpop.f32.mrf.mxu3 }
 0x238   : > { %v4187_v41 = vadd.f32 %v1632_v27, %v1424_v13  ;;  %v1217_v45 = vpop.f32.mrf.mxu1 }
 0x239   : > { %v1218_v31 = vadd.f32 %v1217_v45, %v1009_v23  ;;  %1699 = vmatmul.f32.gmra.mxu0 %v212_v11  ;;  %2117 = vmatmul.f32.gmra.mxu2 %v214_v14  ;;  %v221_v45 = vld [vmem:[%s3557_s17 + $0xa8] sm:$0xff]  ;;  %v223_v14 = vld [vmem:[%s3557_s17 + $0xb8] sm:$0xff] }
 0x23a   : > { %4826 = vst [vmem:[#allocation5_spill] sm:$0xff] %v4187_v41 }
 0x23b   : > { %1908 = vmatmul.f32.gmra.mxu1 %v213_v36 }
 0x23c   : > { %2326 = vmatmul.f32.gmra.mxu3 %v215_v34  ;;  %v1426_v58 = vpop.f32.mrf.mxu2  ;;  %v228_v34 = vld [vmem:[%s3557_s17 + $0xe0] sm:$0xff] }
 0x23d   : > { %v1427_v57 = vadd.f32 %v1426_v58, %v1218_v31  ;;  %v230_v58 = vld [vmem:[%s3557_s17 + $0xf0] sm:$0xff] }
 0x23e   : > { %v1011_v51 = vpop.f32.mrf.mxu0 }
 0x23f   : > { %v1012_v13 = vadd.f32 %v4008_v61, %v1011_v51  ;;  %v1635_v10 = vpop.f32.mrf.mxu3 }
 0x240   : > { %v4194_v27 = vadd.f32 %v1635_v10, %v1427_v57  ;;  %v1220_v41 = vpop.f32.mrf.mxu1 }
 0x241   : > { %v1221_v11 = vadd.f32 %v1220_v41, %v1012_v13  ;;  %1702 = vmatmul.f32.gmra.mxu0 %v220_v56  ;;  %2120 = vmatmul.f32.gmra.mxu2 %v222_v5  ;;  %v229_v41 = vld [vmem:[%s3557_s17 + $0xe8] sm:$0xff]  ;;  %v231_v5 = vld [vmem:[%s3557_s17 + $0xf8] sm:$0xff] }
 0x242   : > { %4827 = vst [vmem:[#allocation6_spill] sm:$0xff] %v4194_v27 }
 0x243   : > { %1911 = vmatmul.f32.gmra.mxu1 %v221_v45 }
 0x244   : > { %2329 = vmatmul.f32.gmra.mxu3 %v223_v14  ;;  %v1429_v23 = vpop.f32.mrf.mxu2  ;;  %v236_v14 = vld [vmem:[%s3557_s17 + $0x120] sm:$0xff] }
 0x245   : > { %v1430_v36 = vadd.f32 %v1429_v23, %v1221_v11  ;;  %v238_v23 = vld [vmem:[%s3557_s17 + $0x130] sm:$0xff] }
 0x246   : > { %v1014_v31 = vpop.f32.mrf.mxu0 }
 0x247   : > { %v1015_v57 = vadd.f32 %v4008_v61, %v1014_v31  ;;  %v1638_v51 = vpop.f32.mrf.mxu3 }
 0x248   : > { %v4201_v10 = vadd.f32 %v1638_v51, %v1430_v36  ;;  %v1223_v27 = vpop.f32.mrf.mxu1 }
 0x249   : > { %v1224_v56 = vadd.f32 %v1223_v27, %v1015_v57  ;;  %1705 = vmatmul.f32.gmra.mxu0 %v228_v34  ;;  %2123 = vmatmul.f32.gmra.mxu2 %v230_v58  ;;  %v237_v27 = vld [vmem:[%s3557_s17 + $0x128] sm:$0xff]  ;;  %v239_v58 = vld [vmem:[%s3557_s17 + $0x138] sm:$0xff] }
 0x24a   : > { %4828 = vst [vmem:[#allocation7_spill] sm:$0xff] %v4201_v10 }
 0x24b   : > { %1914 = vmatmul.f32.gmra.mxu1 %v229_v41 }
 0x24c   : > { %2332 = vmatmul.f32.gmra.mxu3 %v231_v5  ;;  %v1432_v13 = vpop.f32.mrf.mxu2  ;;  %v244_v5 = vld [vmem:[%s3557_s17 + $0x160] sm:$0xff] }
 0x24d   : > { %v1433_v45 = vadd.f32 %v1432_v13, %v1224_v56  ;;  %v246_v13 = vld [vmem:[%s3557_s17 + $0x170] sm:$0xff] }
 0x24e   : > { %v1017_v11 = vpop.f32.mrf.mxu0 }
 0x24f   : > { %v1018_v36 = vadd.f32 %v4008_v61, %v1017_v11  ;;  %v1641_v31 = vpop.f32.mrf.mxu3 }
 0x250   : > { %v4208_v51 = vadd.f32 %v1641_v31, %v1433_v45  ;;  %v1226_v10 = vpop.f32.mrf.mxu1 }
 0x251   : > { %v1227_v34 = vadd.f32 %v1226_v10, %v1018_v36  ;;  %1708 = vmatmul.f32.gmra.mxu0 %v236_v14  ;;  %2126 = vmatmul.f32.gmra.mxu2 %v238_v23  ;;  %v245_v10 = vld [vmem:[%s3557_s17 + $0x168] sm:$0xff]  ;;  %v247_v23 = vld [vmem:[%s3557_s17 + $0x178] sm:$0xff] }
 0x252   : > { %4829 = vst [vmem:[#allocation8_spill] sm:$0xff] %v4208_v51 }
 0x253   : > { %1917 = vmatmul.f32.gmra.mxu1 %v237_v27 }
 0x254   : > { %2335 = vmatmul.f32.gmra.mxu3 %v239_v58  ;;  %v1435_v57 = vpop.f32.mrf.mxu2  ;;  %v252_v58 = vld [vmem:[%s3557_s17 + $0x1a0] sm:$0xff] }
 0x255   : > { %v1436_v41 = vadd.f32 %v1435_v57, %v1227_v34  ;;  %v254_v57 = vld [vmem:[%s3557_s17 + $0x1b0] sm:$0xff] }
 0x256   : > { %v1020_v56 = vpop.f32.mrf.mxu0 }
 0x257   : > { %v1021_v45 = vadd.f32 %v4008_v61, %v1020_v56  ;;  %v1644_v11 = vpop.f32.mrf.mxu3 }
 0x258   : > { %v4215_v31 = vadd.f32 %v1644_v11, %v1436_v41  ;;  %v1229_v51 = vpop.f32.mrf.mxu1 }
 0x259   : > { %v1230_v14 = vadd.f32 %v1229_v51, %v1021_v45  ;;  %1711 = vmatmul.f32.gmra.mxu0 %v244_v5  ;;  %2129 = vmatmul.f32.gmra.mxu2 %v246_v13  ;;  %v253_v51 = vld [vmem:[%s3557_s17 + $0x1a8] sm:$0xff]  ;;  %v255_v13 = vld [vmem:[%s3557_s17 + $0x1b8] sm:$0xff] }
 0x25a   : > { %4830 = vst [vmem:[#allocation9_spill] sm:$0xff] %v4215_v31 }
 0x25b   : > { %1920 = vmatmul.f32.gmra.mxu1 %v245_v10 }
 0x25c   : > { %2338 = vmatmul.f32.gmra.mxu3 %v247_v23  ;;  %v1438_v36 = vpop.f32.mrf.mxu2  ;;  %v260_v23 = vld [vmem:[%s3557_s17 + $0x1e0] sm:$0xff] }
 0x25d   : > { %v1439_v27 = vadd.f32 %v1438_v36, %v1230_v14  ;;  %v262_v36 = vld [vmem:[%s3557_s17 + $0x1f0] sm:$0xff] }
 0x25e   : > { %v1023_v34 = vpop.f32.mrf.mxu0 }
 0x25f   : > { %v1024_v41 = vadd.f32 %v4008_v61, %v1023_v34  ;;  %v1647_v56 = vpop.f32.mrf.mxu3 }
 0x260   : > { %v4222_v11 = vadd.f32 %v1647_v56, %v1439_v27  ;;  %v1232_v31 = vpop.f32.mrf.mxu1 }
 0x261   : > { %v1233_v5 = vadd.f32 %v1232_v31, %v1024_v41  ;;  %1714 = vmatmul.f32.gmra.mxu0 %v252_v58  ;;  %2132 = vmatmul.f32.gmra.mxu2 %v254_v57  ;;  %v261_v31 = vld [vmem:[%s3557_s17 + $0x1e8] sm:$0xff]  ;;  %v263_v57 = vld [vmem:[%s3557_s17 + $0x1f8] sm:$0xff] }
 0x262   : > { %4831 = vst [vmem:[#allocation10_spill] sm:$0xff] %v4222_v11 }
 0x263   : > { %1923 = vmatmul.f32.gmra.mxu1 %v253_v51 }
 0x264   : > { %2341 = vmatmul.f32.gmra.mxu3 %v255_v13  ;;  %v1441_v45 = vpop.f32.mrf.mxu2  ;;  %v268_v13 = vld [vmem:[%s3557_s17 + $0x220] sm:$0xff] }
 0x265   : > { %v1442_v10 = vadd.f32 %v1441_v45, %v1233_v5  ;;  %v270_v45 = vld [vmem:[%s3557_s17 + $0x230] sm:$0xff] }
 0x266   : > { %v1026_v14 = vpop.f32.mrf.mxu0 }
 0x267   : > { %v1027_v27 = vadd.f32 %v4008_v61, %v1026_v14  ;;  %v1650_v34 = vpop.f32.mrf.mxu3 }
 0x268   : > { %v4229_v56 = vadd.f32 %v1650_v34, %v1442_v10  ;;  %v1235_v11 = vpop.f32.mrf.mxu1 }
 0x269   : > { %v1236_v58 = vadd.f32 %v1235_v11, %v1027_v27  ;;  %1717 = vmatmul.f32.gmra.mxu0 %v260_v23  ;;  %2135 = vmatmul.f32.gmra.mxu2 %v262_v36  ;;  %v269_v11 = vld [vmem:[%s3557_s17 + $0x228] sm:$0xff]  ;;  %v271_v36 = vld [vmem:[%s3557_s17 + $0x238] sm:$0xff] }
 0x26a   : > { %4832 = vst [vmem:[#allocation11_spill] sm:$0xff] %v4229_v56 }
 0x26b   : > { %1926 = vmatmul.f32.gmra.mxu1 %v261_v31 }
 0x26c   : > { %2344 = vmatmul.f32.gmra.mxu3 %v263_v57  ;;  %v1444_v41 = vpop.f32.mrf.mxu2  ;;  %v276_v57 = vld [vmem:[%s3557_s17 + $0x260] sm:$0xff] }
 0x26d   : > { %v1445_v51 = vadd.f32 %v1444_v41, %v1236_v58  ;;  %v278_v41 = vld [vmem:[%s3557_s17 + $0x270] sm:$0xff] }
 0x26e   : > { %v1029_v5 = vpop.f32.mrf.mxu0 }
 0x26f   : > { %v1030_v10 = vadd.f32 %v4008_v61, %v1029_v5  ;;  %v1653_v14 = vpop.f32.mrf.mxu3 }
 0x270   : > { %v4236_v34 = vadd.f32 %v1653_v14, %v1445_v51  ;;  %v1238_v56 = vpop.f32.mrf.mxu1 }
 0x271   : > { %v1239_v23 = vadd.f32 %v1238_v56, %v1030_v10  ;;  %1720 = vmatmul.f32.gmra.mxu0 %v268_v13  ;;  %2138 = vmatmul.f32.gmra.mxu2 %v270_v45  ;;  %v277_v56 = vld [vmem:[%s3557_s17 + $0x268] sm:$0xff]  ;;  %v279_v45 = vld [vmem:[%s3557_s17 + $0x278] sm:$0xff] }
 0x272   : > { %4833 = vst [vmem:[#allocation12_spill] sm:$0xff] %v4236_v34 }
 0x273   : > { %1929 = vmatmul.f32.gmra.mxu1 %v269_v11 }
 0x274   : > { %2347 = vmatmul.f32.gmra.mxu3 %v271_v36  ;;  %v1447_v27 = vpop.f32.mrf.mxu2  ;;  %v284_v36 = vld [vmem:[%s3557_s17 + $0x2a0] sm:$0xff] }
 0x275   : > { %v1448_v31 = vadd.f32 %v1447_v27, %v1239_v23  ;;  %v286_v27 = vld [vmem:[%s3557_s17 + $0x2b0] sm:$0xff] }
 0x276   : > { %v1032_v58 = vpop.f32.mrf.mxu0 }
 0x277   : > { %v1033_v51 = vadd.f32 %v4008_v61, %v1032_v58  ;;  %v1656_v5 = vpop.f32.mrf.mxu3 }
 0x278   : > { %v4243_v14 = vadd.f32 %v1656_v5, %v1448_v31  ;;  %v1241_v34 = vpop.f32.mrf.mxu1 }
 0x279   : > { %v1242_v13 = vadd.f32 %v1241_v34, %v1033_v51  ;;  %1723 = vmatmul.f32.gmra.mxu0 %v276_v57  ;;  %2141 = vmatmul.f32.gmra.mxu2 %v278_v41  ;;  %v285_v34 = vld [vmem:[%s3557_s17 + $0x2a8] sm:$0xff]  ;;  %v287_v41 = vld [vmem:[%s3557_s17 + $0x2b8] sm:$0xff] }
 0x27a   : > { %4834 = vst [vmem:[#allocation13_spill] sm:$0xff] %v4243_v14 }
 0x27b   : > { %1932 = vmatmul.f32.gmra.mxu1 %v277_v56 }
 0x27c   : > { %2350 = vmatmul.f32.gmra.mxu3 %v279_v45  ;;  %v1450_v10 = vpop.f32.mrf.mxu2  ;;  %v292_v45 = vld [vmem:[%s3557_s17 + $0x2e0] sm:$0xff] }
 0x27d   : > { %v1451_v11 = vadd.f32 %v1450_v10, %v1242_v13  ;;  %v294_v10 = vld [vmem:[%s3557_s17 + $0x2f0] sm:$0xff] }
 0x27e   : > { %v1035_v23 = vpop.f32.mrf.mxu0 }
 0x27f   : > { %v1036_v31 = vadd.f32 %v4008_v61, %v1035_v23  ;;  %v1659_v58 = vpop.f32.mrf.mxu3 }
 0x280   : > { %v4250_v5 = vadd.f32 %v1659_v58, %v1451_v11  ;;  %v1244_v14 = vpop.f32.mrf.mxu1 }
 0x281   : > { %v1245_v57 = vadd.f32 %v1244_v14, %v1036_v31  ;;  %1726 = vmatmul.f32.gmra.mxu0 %v284_v36  ;;  %2144 = vmatmul.f32.gmra.mxu2 %v286_v27  ;;  %v293_v14 = vld [vmem:[%s3557_s17 + $0x2e8] sm:$0xff]  ;;  %v295_v27 = vld [vmem:[%s3557_s17 + $0x2f8] sm:$0xff] }
 0x282   : > { %4835 = vst [vmem:[#allocation14_spill] sm:$0xff] %v4250_v5 }
 0x283   : > { %1935 = vmatmul.f32.gmra.mxu1 %v285_v34 }
 0x284   : > { %2353 = vmatmul.f32.gmra.mxu3 %v287_v41  ;;  %v1453_v51 = vpop.f32.mrf.mxu2  ;;  %v300_v41 = vld [vmem:[%s3557_s17 + $0x320] sm:$0xff] }
 0x285   : > { %v1454_v56 = vadd.f32 %v1453_v51, %v1245_v57  ;;  %v302_v51 = vld [vmem:[%s3557_s17 + $0x330] sm:$0xff] }
 0x286   : > { %v1038_v13 = vpop.f32.mrf.mxu0 }
 0x287   : > { %v1039_v11 = vadd.f32 %v4008_v61, %v1038_v13  ;;  %v1662_v23 = vpop.f32.mrf.mxu3  ;;  %v3232_v61 = vld [vmem:[%s4821_s2] ss:$0 sm:$0xff] }
 0x288   : > { %v4257_v58 = vadd.f32 %v1662_v23, %v1454_v56  ;;  %v1247_v5 = vpop.f32.mrf.mxu1  ;;  %v303_v23 = vld [vmem:[%s3557_s17 + $0x338] sm:$0xff] }
 0x289   : > { %v1248_v36 = vadd.f32 %v1247_v5, %v1039_v11  ;;  %1729 = vmatmul.f32.gmra.mxu0 %v292_v45  ;;  %2147 = vmatmul.f32.gmra.mxu2 %v294_v10  ;;  %v301_v10 = vld [vmem:[%s3557_s17 + $0x328] sm:$0xff] }
 0x28a   : > { %4836 = vst [vmem:[#allocation15_spill] sm:$0xff] %v4257_v58  ;;  %v310_v58 = vld [vmem:[%s3557_s17 + $0x370] sm:$0xff] }
 0x28b   : > { %1938 = vmatmul.f32.gmra.mxu1 %v293_v14 }
 0x28c   : > { %2356 = vmatmul.f32.gmra.mxu3 %v295_v27  ;;  %v1456_v31 = vpop.f32.mrf.mxu2 }
 0x28d   : > { %v1457_v34 = vadd.f32 %v1456_v31, %v1248_v36  ;;  %v308_v31 = vld [vmem:[%s3557_s17 + $0x360] sm:$0xff] }
 0x28e   : > { %v1041_v57 = vpop.f32.mrf.mxu0 }
 0x28f   : > { %v1042_v56 = vadd.f32 %v3232_v61, %v1041_v57  ;;  %v1665_v5 = vpop.f32.mrf.mxu3 }
 0x290   : > { %v4266_v13 = vadd.f32 %v1665_v5, %v1457_v34  ;;  %v1250_v45 = vpop.f32.mrf.mxu1 }
 0x291   : > { %v1251_v11 = vadd.f32 %v1250_v45, %v1042_v56  ;;  %1732 = vmatmul.f32.gmra.mxu0 %v300_v41  ;;  %2150 = vmatmul.f32.gmra.mxu2 %v302_v51  ;;  %v311_v51 = vld [vmem:[%s3557_s17 + $0x378] sm:$0xff] }
 0x292   : > { %4837 = vst [vmem:[#allocation16_spill] sm:$0xff] %v4266_v13 }
 0x293   : > { %1941 = vmatmul.f32.gmra.mxu1 %v301_v10 }
 0x294   : > { %2359 = vmatmul.f32.gmra.mxu3 %v303_v23  ;;  %v1459_v14 = vpop.f32.mrf.mxu2  ;;  %v318_v23 = vld [vmem:[%s3557_s17 + $0x3b0] sm:$0xff] }
 0x295   : > { %v1460_v36 = vadd.f32 %v1459_v14, %v1251_v11  ;;  %v316_v11 = vld [vmem:[%s3557_s17 + $0x3a0] sm:$0xff] }
 0x296   : > { %v1044_v27 = vpop.f32.mrf.mxu0 }
 0x297   : > { %v1045_v57 = vadd.f32 %v3232_v61, %v1044_v27  ;;  %v1668_v34 = vpop.f32.mrf.mxu3 }
 0x298   : > { %v4272_v5 = vadd.f32 %v1668_v34, %v1460_v36  ;;  %v1253_v13 = vpop.f32.mrf.mxu1 }
 0x299   : > { %v1254_v41 = vadd.f32 %v1253_v13, %v1045_v57  ;;  %1735 = vmatmul.f32.gmra.mxu0 %v308_v31  ;;  %2153 = vmatmul.f32.gmra.mxu2 %v310_v58  ;;  %v319_v58 = vld [vmem:[%s3557_s17 + $0x3b8] sm:$0xff] }
 0x29a   : > { %4838 = vst [vmem:[#allocation17_spill] sm:$0xff] %v4272_v5  ;;  %v317_v5 = vld [vmem:[%s3557_s17 + $0x3a8] sm:$0xff] }
 0x29b   : > { %1944 = vmatmul.f32.gmra.mxu1 %v309_v3 }
 0x29c   : > { %2362 = vmatmul.f32.gmra.mxu3 %v311_v51  ;;  %v1462_v56 = vpop.f32.mrf.mxu2  ;;  %v326_v51 = vld [vmem:[%s3557_s17 + $0x3f0] sm:$0xff] }
 0x29d   : > { %v1463_v45 = vadd.f32 %v1462_v56, %v1254_v41  ;;  %v324_v41 = vld [vmem:[%s3557_s17 + $0x3e0] sm:$0xff] }
 0x29e   : > { %v1047_v10 = vpop.f32.mrf.mxu0 }
 0x29f   : > { %v1048_v14 = vadd.f32 %v3232_v61, %v1047_v10  ;;  %v1671_v36 = vpop.f32.mrf.mxu3 }
 0x2a0   : > { %v4278_v27 = vadd.f32 %v1671_v36, %v1463_v45  ;;  %v1256_v34 = vpop.f32.mrf.mxu1 }
 0x2a1   : > { %v1257_v13 = vadd.f32 %v1256_v34, %v1048_v14  ;;  %1738 = vmatmul.f32.gmra.mxu0 %v316_v11  ;;  %2156 = vmatmul.f32.gmra.mxu2 %v318_v23 }
 0x2a2   : > { %4839 = vst [vmem:[#allocation18_spill] sm:$0xff] %v4278_v27  ;;  %v325_v27 = vld [vmem:[%s3557_s17 + $0x3e8] sm:$0xff] }
 0x2a3   : > { %1947 = vmatmul.f32.gmra.mxu1 %v317_v5  ;;  %v327_v5 = vld [vmem:[%s3557_s17 + $0x3f8] sm:$0xff] }
 0x2a4   : > { %2365 = vmatmul.f32.gmra.mxu3 %v319_v58  ;;  %v1465_v3 = vpop.f32.mrf.mxu2  ;;  %v334_v58 = vld [vmem:[%s3557_s17 + $0x430] sm:$0xff] }
 0x2a5   : > { %v1466_v31 = vadd.f32 %v1465_v3, %v1257_v13  ;;  %v332_v13 = vld [vmem:[%s3557_s17 + $0x420] sm:$0xff] }
 0x2a6   : > { %v1050_v57 = vpop.f32.mrf.mxu0 }
 0x2a7   : > { %v1051_v56 = vadd.f32 %v3232_v61, %v1050_v57  ;;  %v1674_v45 = vpop.f32.mrf.mxu3 }
 0x2a8   : > { %v4284_v10 = vadd.f32 %v1674_v45, %v1466_v31  ;;  %v1259_v36 = vpop.f32.mrf.mxu1 }
 0x2a9   : > { %v1260_v11 = vadd.f32 %v1259_v36, %v1051_v56  ;;  %1741 = vmatmul.f32.gmra.mxu0 %v324_v41  ;;  %2159 = vmatmul.f32.gmra.mxu2 %v326_v51  ;;  %v333_v41 = vld [vmem:[%s3557_s17 + $0x428] sm:$0xff] }
 0x2ab   : > { %1950 = vmatmul.f32.gmra.mxu1 %v325_v27  ;;  %v335_v27 = vld [vmem:[%s3557_s17 + $0x438] sm:$0xff] }
 0x2ac   : > { %2368 = vmatmul.f32.gmra.mxu3 %v327_v5  ;;  %v1468_v23 = vpop.f32.mrf.mxu2  ;;  %v342_v5 = vld [vmem:[%s3557_s17 + $0x470] sm:$0xff] }
 0x2ad   : > { %v1469_v14 = vadd.f32 %v1468_v23, %v1260_v11  ;;  %v340_v11 = vld [vmem:[%s3557_s17 + $0x460] sm:$0xff] }
 0x2ae   : > { %v1697_v34 = vpop.f32.mrf.mxu0 }
 0x2af   : > { %v1677_v61 = vpop.f32.mrf.mxu3  ;;  %v1698_v3 = vadd.f32 %v1697_v34, %v3726_v40 }
 0x2b0   : > { %v4291_v31 = vadd.f32 %v1677_v61, %v1469_v14  ;;  %v1906_v57 = vpop.f32.mrf.mxu1 }
 0x2b1   : > { %1744 = vmatmul.f32.gmra.mxu0 %v332_v13  ;;  %2162 = vmatmul.f32.gmra.mxu2 %v334_v58  ;;  %v1907_v51 = vadd.f32 %v1906_v57, %v1698_v3  ;;  %v341_v13 = vld [vmem:[%s3557_s17 + $0x468] sm:$0xff]  ;;  %v343_v58 = vld [vmem:[%s3557_s17 + $0x478] sm:$0xff] }
 0x2b3   : > { %1953 = vmatmul.f32.gmra.mxu1 %v333_v41 }
 0x2b4   : > { %2371 = vmatmul.f32.gmra.mxu3 %v335_v27  ;;  %v2115_v56 = vpop.f32.mrf.mxu2 }
 0x2b5   : > { %v2116_v45 = vadd.f32 %v2115_v56, %v1907_v51  ;;  %v348_v51 = vld [vmem:[%s3557_s17 + $0x4a0] sm:$0xff]  ;;  %v350_v56 = vld [vmem:[%s3557_s17 + $0x4b0] sm:$0xff] }
 0x2b6   : > { %v1700_v36 = vpop.f32.mrf.mxu0 }
 0x2b7   : > { %v1701_v40 = vadd.f32 %v1700_v36, %v3733_v52  ;;  %v2324_v23 = vpop.f32.mrf.mxu3 }
 0x2b8   : > { %v2325_v14 = vadd.f32 %v2324_v23, %v2116_v45  ;;  %v1909_v34 = vpop.f32.mrf.mxu1  ;;  %v351_v23 = vld [vmem:[%s3557_s17 + $0x4b8] sm:$0xff] }
 0x2b9   : > { %1747 = vmatmul.f32.gmra.mxu0 %v340_v11  ;;  %2165 = vmatmul.f32.gmra.mxu2 %v342_v5  ;;  %v1910_v3 = vadd.f32 %v1909_v34, %v1701_v40  ;;  %v349_v40 = vld [vmem:[%s3557_s17 + $0x4a8] sm:$0xff] }
 0x2ba   : > { %vm2516_vm0 = vcmp.gt.f32.partialorder %v2325_v14, 0.0  ;;  %v2580_v61 = vmul.f32 0.01, %v2325_v14 }
 0x2bb   : > { %1956 = vmatmul.f32.gmra.mxu1 %v341_v13 }
 0x2bc   : > { %v2644_v57 = vsel %vm2516_vm0, %v2325_v14, %v2580_v61  ;;  %2374 = vmatmul.f32.gmra.mxu3 %v343_v58  ;;  %v2118_v52 = vpop.f32.mrf.mxu2 }
 0x2bd   : > { %2709 = vst.msk [vmem:[%s4301_s12] sm:$0xff] %vm2708_vm1, %v2644_v57  ;;  %v2119_v41 = vadd.f32 %v2118_v52, %v1910_v3  ;;  %v356_v3 = vld [vmem:[%s3557_s17 + $0x4e0] sm:$0xff]  ;;  %v358_v57 = vld [vmem:[%s3557_s17 + $0x4f0] sm:$0xff] }
 0x2be   : > { %v1703_v27 = vpop.f32.mrf.mxu0 }
 0x2bf   : > { %v1704_v45 = vadd.f32 %v1703_v27, %v3740_v0  ;;  %v2327_v36 = vpop.f32.mrf.mxu3 }
 0x2c0   : > { %v2328_v11 = vadd.f32 %v2327_v36, %v2119_v41  ;;  %v1912_v5 = vpop.f32.mrf.mxu1 }
 0x2c1   : > { %1750 = vmatmul.f32.gmra.mxu0 %v348_v51  ;;  %2168 = vmatmul.f32.gmra.mxu2 %v350_v56  ;;  %v1913_v34 = vadd.f32 %v1912_v5, %v1704_v45  ;;  %v357_v56 = vld [vmem:[%s3557_s17 + $0x4e8] sm:$0xff]  ;;  %v359_v45 = vld [vmem:[%s3557_s17 + $0x4f8] sm:$0xff] }
 0x2c2   : > { %vm2517_vm2 = vcmp.gt.f32.partialorder %v2328_v11, 0.0  ;;  %v2581_v14 = vmul.f32 0.01, %v2328_v11 }
 0x2c3   : > { %1959 = vmatmul.f32.gmra.mxu1 %v349_v40 }
 0x2c4   : > { %v2645_v13 = vsel %vm2517_vm2, %v2328_v11, %v2581_v14  ;;  %2377 = vmatmul.f32.gmra.mxu3 %v351_v23  ;;  %v2121_v58 = vpop.f32.mrf.mxu2  ;;  %v364_v14 = vld [vmem:[%s3557_s17 + $0x520] sm:$0xff] }
 0x2c5   : > { %2710 = vst.msk [vmem:[%s4301_s12 + $0x8] sm:$0xff] %vm2708_vm1, %v2645_v13  ;;  %v2122_v0 = vadd.f32 %v2121_v58, %v1913_v34  ;;  %v366_v34 = vld [vmem:[%s3557_s17 + $0x530] sm:$0xff] }
 0x2c6   : > { %v1706_v61 = vpop.f32.mrf.mxu0 }
 0x2c7   : > { %v1707_v52 = vadd.f32 %v1706_v61, %v3747_v12  ;;  %v2330_v41 = vpop.f32.mrf.mxu3 }
 0x2c8   : > { %v2331_v27 = vadd.f32 %v2330_v41, %v2122_v0  ;;  %v1915_v51 = vpop.f32.mrf.mxu1 }
 0x2c9   : > { %1753 = vmatmul.f32.gmra.mxu0 %v356_v3  ;;  %2171 = vmatmul.f32.gmra.mxu2 %v358_v57  ;;  %v1916_v11 = vadd.f32 %v1915_v51, %v1707_v52  ;;  %v365_v3 = vld [vmem:[%s3557_s17 + $0x528] sm:$0xff]  ;;  %v367_v57 = vld [vmem:[%s3557_s17 + $0x538] sm:$0xff] }
 0x2ca   : > { %vm2518_vm3 = vcmp.gt.f32.partialorder %v2331_v27, 0.0  ;;  %v2582_v36 = vmul.f32 0.01, %v2331_v27 }
 0x2cb   : > { %1962 = vmatmul.f32.gmra.mxu1 %v357_v56 }
 0x2cc   : > { %v2646_v5 = vsel %vm2518_vm3, %v2331_v27, %v2582_v36  ;;  %2380 = vmatmul.f32.gmra.mxu3 %v359_v45  ;;  %v2124_v40 = vpop.f32.mrf.mxu2  ;;  %v372_v45 = vld [vmem:[%s3557_s17 + $0x560] sm:$0xff]  ;;  %v374_v36 = vld [vmem:[%s3557_s17 + $0x570] sm:$0xff] }
 0x2cd   : > { %2711 = vst.msk [vmem:[%s4301_s12 + $0x10] sm:$0xff] %vm2708_vm1, %v2646_v5  ;;  %v2125_v12 = vadd.f32 %v2124_v40, %v1916_v11 }
 0x2ce   : > { %v1709_v23 = vpop.f32.mrf.mxu0 }
 0x2cf   : > { %v1710_v13 = vadd.f32 %v1709_v23, %v3766_v29  ;;  %v2333_v58 = vpop.f32.mrf.mxu3  ;;  %v373_v23 = vld [vmem:[%s3557_s17 + $0x568] sm:$0xff] }
 0x2d0   : > { %v2334_v0 = vadd.f32 %v2333_v58, %v2125_v12  ;;  %v1918_v61 = vpop.f32.mrf.mxu1 }
 0x2d1   : > { %1756 = vmatmul.f32.gmra.mxu0 %v364_v14  ;;  %2174 = vmatmul.f32.gmra.mxu2 %v366_v34  ;;  %v1919_v41 = vadd.f32 %v1918_v61, %v1710_v13  ;;  %v375_v14 = vld [vmem:[%s3557_s17 + $0x578] sm:$0xff] }
 0x2d2   : > { %vm2519_vm4 = vcmp.gt.f32.partialorder %v2334_v0, 0.0  ;;  %v2583_v52 = vmul.f32 0.01, %v2334_v0 }
 0x2d3   : > { %1965 = vmatmul.f32.gmra.mxu1 %v365_v3  ;;  %v380_v3 = vld [vmem:[%s3557_s17 + $0x5a0] sm:$0xff] }
 0x2d4   : > { %v2647_v27 = vsel %vm2519_vm4, %v2334_v0, %v2583_v52  ;;  %2383 = vmatmul.f32.gmra.mxu3 %v367_v57  ;;  %v2127_v51 = vpop.f32.mrf.mxu2  ;;  %v382_v57 = vld [vmem:[%s3557_s17 + $0x5b0] sm:$0xff] }
 0x2d5   : > { %2712 = vst.msk [vmem:[%s4301_s12 + $0x18] sm:$0xff] %vm2708_vm1, %v2647_v27  ;;  %v2128_v29 = vadd.f32 %v2127_v51, %v1919_v41 }
 0x2d6   : > { %v1712_v56 = vpop.f32.mrf.mxu0 }
 0x2d7   : > { %v1713_v11 = vadd.f32 %v1712_v56, %v3773_v42  ;;  %v2336_v5 = vpop.f32.mrf.mxu3  ;;  %v383_v56 = vld [vmem:[%s3557_s17 + $0x5b8] sm:$0xff] }
 0x2d8   : > { %v2337_v40 = vadd.f32 %v2336_v5, %v2128_v29  ;;  %v1921_v12 = vpop.f32.mrf.mxu1  ;;  %v381_v29 = vld [vmem:[%s3557_s17 + $0x5a8] sm:$0xff] }
 0x2d9   : > { %1759 = vmatmul.f32.gmra.mxu0 %v372_v45  ;;  %2177 = vmatmul.f32.gmra.mxu2 %v374_v36  ;;  %v1922_v13 = vadd.f32 %v1921_v12, %v1713_v11  ;;  %v388_v12 = vld [vmem:[%s3557_s17 + $0x5e0] sm:$0xff] }
 0x2da   : > { %vm2520_vm5 = vcmp.gt.f32.partialorder %v2337_v40, 0.0  ;;  %v2584_v34 = vmul.f32 0.01, %v2337_v40 }
 0x2db   : > { %1968 = vmatmul.f32.gmra.mxu1 %v373_v23  ;;  %v390_v23 = vld [vmem:[%s3557_s17 + $0x5f0] sm:$0xff] }
 0x2dc   : > { %v2648_v58 = vsel %vm2520_vm5, %v2337_v40, %v2584_v34  ;;  %2386 = vmatmul.f32.gmra.mxu3 %v375_v14  ;;  %v2130_v0 = vpop.f32.mrf.mxu2 }
 0x2dd   : > { %2713 = vst.msk [vmem:[%s4301_s12 + $0x20] sm:$0xff] %vm2708_vm1, %v2648_v58  ;;  %v2131_v42 = vadd.f32 %v2130_v0, %v1922_v13  ;;  %v389_v0 = vld [vmem:[%s3557_s17 + $0x5e8] sm:$0xff] }
 0x2de   : > { %v1715_v61 = vpop.f32.mrf.mxu0 }
 0x2df   : > { %v1716_v52 = vadd.f32 %v1715_v61, %v3780_v55  ;;  %v2339_v41 = vpop.f32.mrf.mxu3 }
 0x2e0   : > { %v2340_v27 = vadd.f32 %v2339_v41, %v2131_v42  ;;  %v1924_v51 = vpop.f32.mrf.mxu1  ;;  %v391_v42 = vld [vmem:[%s3557_s17 + $0x5f8] sm:$0xff] }
 0x2e1   : > { %1762 = vmatmul.f32.gmra.mxu0 %v380_v3  ;;  %2180 = vmatmul.f32.gmra.mxu2 %v382_v57  ;;  %v1925_v36 = vadd.f32 %v1924_v51, %v1716_v52  ;;  %v398_v51 = vld [vmem:[%s3557_s17 + $0x630] sm:$0xff] }
 0x2e2   : > { %vm2521_vm6 = vcmp.gt.f32.partialorder %v2340_v27, 0.0  ;;  %v2585_v45 = vmul.f32 0.01, %v2340_v27 }
 0x2e3   : > { %1971 = vmatmul.f32.gmra.mxu1 %v381_v29 }
 0x2e4   : > { %v2649_v11 = vsel %vm2521_vm6, %v2340_v27, %v2585_v45  ;;  %2389 = vmatmul.f32.gmra.mxu3 %v383_v56  ;;  %v2133_v5 = vpop.f32.mrf.mxu2  ;;  %v396_v27 = vld [vmem:[%s3557_s17 + $0x620] sm:$0xff] }
 0x2e5   : > { %2714 = vst.msk [vmem:[%s4301_s12 + $0x28] sm:$0xff] %vm2708_vm1, %v2649_v11  ;;  %v2134_v55 = vadd.f32 %v2133_v5, %v1925_v36  ;;  %v397_v11 = vld [vmem:[%s3557_s17 + $0x628] sm:$0xff]  ;;  %v399_v5 = vld [vmem:[%s3557_s17 + $0x638] sm:$0xff] }
 0x2e6   : > { %v1718_v40 = vpop.f32.mrf.mxu0 }
 0x2e7   : > { %v1719_v14 = vadd.f32 %v1718_v40, %v3787_v4  ;;  %v2342_v34 = vpop.f32.mrf.mxu3 }
 0x2e8   : > { %v2343_v13 = vadd.f32 %v2342_v34, %v2134_v55  ;;  %v1927_v58 = vpop.f32.mrf.mxu1  ;;  %v404_v34 = vld [vmem:[%s3557_s17 + $0x660] sm:$0xff] }
 0x2e9   : > { %1765 = vmatmul.f32.gmra.mxu0 %v388_v12  ;;  %2183 = vmatmul.f32.gmra.mxu2 %v390_v23  ;;  %v1928_v3 = vadd.f32 %v1927_v58, %v1719_v14 }
 0x2ea   : > { %vm2522_vm7 = vcmp.gt.f32.partialorder %v2343_v13, 0.0  ;;  %v2586_v61 = vmul.f32 0.01, %v2343_v13 }
 0x2eb   : > { %1974 = vmatmul.f32.gmra.mxu1 %v389_v0 }
 0x2ec   : > { %v2650_v57 = vsel %vm2522_vm7, %v2343_v13, %v2586_v61  ;;  %2392 = vmatmul.f32.gmra.mxu3 %v391_v42  ;;  %v2136_v52 = vpop.f32.mrf.mxu2  ;;  %v406_v13 = vld [vmem:[%s3557_s17 + $0x670] sm:$0xff] }
 0x2ed   : > { %2715 = vst.msk [vmem:[%s4301_s12 + $0x30] sm:$0xff] %vm2708_vm1, %v2650_v57  ;;  %v2137_v4 = vadd.f32 %v2136_v52, %v1928_v3  ;;  %v405_v3 = vld [vmem:[%s3557_s17 + $0x668] sm:$0xff]  ;;  %v407_v57 = vld [vmem:[%s3557_s17 + $0x678] sm:$0xff] }
 0x2ee   : > { %v1721_v41 = vpop.f32.mrf.mxu0 }
 0x2ef   : > { %v1722_v29 = vadd.f32 %v1721_v41, %v3806_v22  ;;  %v2345_v56 = vpop.f32.mrf.mxu3 }
 0x2f0   : > { %v2346_v45 = vadd.f32 %v2345_v56, %v2137_v4  ;;  %v1930_v36 = vpop.f32.mrf.mxu1  ;;  %v414_v56 = vld [vmem:[%s3557_s17 + $0x6b0] sm:$0xff] }
 0x2f1   : > { %1768 = vmatmul.f32.gmra.mxu0 %v396_v27  ;;  %2186 = vmatmul.f32.gmra.mxu2 %v398_v51  ;;  %v1931_v40 = vadd.f32 %v1930_v36, %v1722_v29  ;;  %v412_v29 = vld [vmem:[%s3557_s17 + $0x6a0] sm:$0xff] }
 0x2f2   : > { %vm2523_vm8 = vcmp.gt.f32.partialorder %v2346_v45, 0.0  ;;  %v2587_v55 = vmul.f32 0.01, %v2346_v45 }
 0x2f3   : > { %1977 = vmatmul.f32.gmra.mxu1 %v397_v11 }
 0x2f4   : > { %v2651_v12 = vsel %vm2523_vm8, %v2346_v45, %v2587_v55  ;;  %2395 = vmatmul.f32.gmra.mxu3 %v399_v5  ;;  %v2139_v23 = vpop.f32.mrf.mxu2  ;;  %v413_v55 = vld [vmem:[%s3557_s17 + $0x6a8] sm:$0xff] }
 0x2f5   : > { %2716 = vst.msk [vmem:[%s4301_s12 + $0x38] sm:$0xff] %vm2708_vm1, %v2651_v12  ;;  %v2140_v22 = vadd.f32 %v2139_v23, %v1931_v40  ;;  %v415_v40 = vld [vmem:[%s3557_s17 + $0x6b8] sm:$0xff] }
 0x2f6   : > { %v1724_v14 = vpop.f32.mrf.mxu0 }
 0x2f7   : > { %v1725_v58 = vadd.f32 %v1724_v14, %v3813_v35  ;;  %v2348_v0 = vpop.f32.mrf.mxu3 }
 0x2f8   : > { %v2349_v42 = vadd.f32 %v2348_v0, %v2140_v22  ;;  %v1933_v61 = vpop.f32.mrf.mxu1 }
 0x2f9   : > { %1771 = vmatmul.f32.gmra.mxu0 %v404_v34  ;;  %2189 = vmatmul.f32.gmra.mxu2 %v406_v13  ;;  %v1934_v4 = vadd.f32 %v1933_v61, %v1725_v58  ;;  %v420_v13 = vld [vmem:[%s3557_s17 + $0x6e0] sm:$0xff]  ;;  %v422_v58 = vld [vmem:[%s3557_s17 + $0x6f0] sm:$0xff] }
 0x2fa   : > { %vm2524_vm9 = vcmp.gt.f32.partialorder %v2349_v42, 0.0  ;;  %v2588_v52 = vmul.f32 0.01, %v2349_v42 }
 0x2fb   : > { %1980 = vmatmul.f32.gmra.mxu1 %v405_v3 }
 0x2fc   : > { %v2652_v41 = vsel %vm2524_vm9, %v2349_v42, %v2588_v52  ;;  %2398 = vmatmul.f32.gmra.mxu3 %v407_v57  ;;  %v2142_v27 = vpop.f32.mrf.mxu2  ;;  %v421_v57 = vld [vmem:[%s3557_s17 + $0x6e8] sm:$0xff]  ;;  %v423_v52 = vld [vmem:[%s3557_s17 + $0x6f8] sm:$0xff] }
 0x2fd   : > { %2717 = vst.msk [vmem:[%s4301_s12 + $0x40] sm:$0xff] %vm2708_vm1, %v2652_v41  ;;  %v2143_v35 = vadd.f32 %v2142_v27, %v1934_v4 }
 0x2fe   : > { %v1727_v51 = vpop.f32.mrf.mxu0 }
 0x2ff   : > { %v1728_v45 = vadd.f32 %v1727_v51, %v3820_v49  ;;  %v2351_v36 = vpop.f32.mrf.mxu3 }
 0x300   : > { %v2352_v11 = vadd.f32 %v2351_v36, %v2143_v35  ;;  %v1936_v5 = vpop.f32.mrf.mxu1 }
 0x301   : > { %1774 = vmatmul.f32.gmra.mxu0 %v412_v29  ;;  %2192 = vmatmul.f32.gmra.mxu2 %v414_v56  ;;  %v1937_v23 = vadd.f32 %v1936_v5, %v1728_v45  ;;  %v428_v29 = vld [vmem:[%s3557_s17 + $0x720] sm:$0xff]  ;;  %v430_v56 = vld [vmem:[%s3557_s17 + $0x730] sm:$0xff] }
 0x302   : > { %vm2525_vm10 = vcmp.gt.f32.partialorder %v2352_v11, 0.0  ;;  %v2589_v12 = vmul.f32 0.01, %v2352_v11 }
 0x303   : > { %1983 = vmatmul.f32.gmra.mxu1 %v413_v55  ;;  %v429_v55 = vld [vmem:[%s3557_s17 + $0x728] sm:$0xff] }
 0x304   : > { %v2653_v22 = vsel %vm2525_vm10, %v2352_v11, %v2589_v12  ;;  %2401 = vmatmul.f32.gmra.mxu3 %v415_v40  ;;  %v2145_v14 = vpop.f32.mrf.mxu2  ;;  %v431_v40 = vld [vmem:[%s3557_s17 + $0x738] sm:$0xff] }
 0x305   : > { %2718 = vst.msk [vmem:[%s4301_s12 + $0x48] sm:$0xff] %vm2708_vm1, %v2653_v22  ;;  %v2146_v49 = vadd.f32 %v2145_v14, %v1937_v23 }
 0x306   : > { %v1730_v34 = vpop.f32.mrf.mxu0 }
 0x307   : > { %v1731_v0 = vadd.f32 %v1730_v34, %v3827_v63  ;;  %v2354_v42 = vpop.f32.mrf.mxu3  ;;  %v436_v34 = vld [vmem:[%s3557_s17 + $0x760] sm:$0xff] }
 0x308   : > { %v2355_v61 = vadd.f32 %v2354_v42, %v2146_v49  ;;  %v1939_v3 = vpop.f32.mrf.mxu1 }
 0x309   : > { %1777 = vmatmul.f32.gmra.mxu0 %v420_v13  ;;  %2195 = vmatmul.f32.gmra.mxu2 %v422_v58  ;;  %v1940_v41 = vadd.f32 %v1939_v3, %v1731_v0  ;;  %v438_v13 = vld [vmem:[%s3557_s17 + $0x770] sm:$0xff]  ;;  %v437_v3 = vld [vmem:[%s3557_s17 + $0x768] sm:$0xff] }
 0x30a   : > { %vm2526_vm11 = vcmp.gt.f32.partialorder %v2355_v61, 0.0  ;;  %v2590_v4 = vmul.f32 0.01, %v2355_v61 }
 0x30b   : > { %1986 = vmatmul.f32.gmra.mxu1 %v421_v57  ;;  %v439_v57 = vld [vmem:[%s3557_s17 + $0x778] sm:$0xff] }
 0x30c   : > { %v2654_v27 = vsel %vm2526_vm11, %v2355_v61, %v2590_v4  ;;  %2404 = vmatmul.f32.gmra.mxu3 %v423_v52  ;;  %v2148_v35 = vpop.f32.mrf.mxu2 }
 0x30d   : > { %2719 = vst.msk [vmem:[%s4301_s12 + $0x50] sm:$0xff] %vm2708_vm1, %v2654_v27  ;;  %v2149_v63 = vadd.f32 %v2148_v35, %v1940_v41 }
 0x30e   : > { %v1733_v51 = vpop.f32.mrf.mxu0 }
 0x30f   : > { %v1734_v45 = vadd.f32 %v1733_v51, %v3846_v18  ;;  %v2357_v36 = vpop.f32.mrf.mxu3  ;;  %v446_v51 = vld [vmem:[%s3557_s17 + $0x7b0] sm:$0xff] }
 0x310   : > { %v2358_v11 = vadd.f32 %v2357_v36, %v2149_v63  ;;  %v1942_v5 = vpop.f32.mrf.mxu1  ;;  %v444_v63 = vld [vmem:[%s3557_s17 + $0x7a0] sm:$0xff] }
 0x311   : > { %1780 = vmatmul.f32.gmra.mxu0 %v428_v29  ;;  %2198 = vmatmul.f32.gmra.mxu2 %v430_v56  ;;  %v1943_v23 = vadd.f32 %v1942_v5, %v1734_v45  ;;  %v447_v5 = vld [vmem:[%s3557_s17 + $0x7b8] sm:$0xff] }
 0x312   : > { %vm2527_vm12 = vcmp.gt.f32.partialorder %v2358_v11, 0.0  ;;  %v2591_v12 = vmul.f32 0.01, %v2358_v11 }
 0x313   : > { %1989 = vmatmul.f32.gmra.mxu1 %v429_v55 }
 0x314   : > { %v2655_v22 = vsel %vm2527_vm12, %v2358_v11, %v2591_v12  ;;  %2407 = vmatmul.f32.gmra.mxu3 %v431_v40  ;;  %v2151_v14 = vpop.f32.mrf.mxu2  ;;  %v445_v11 = vld [vmem:[%s3557_s17 + $0x7a8] sm:$0xff] }
 0x315   : > { %2720 = vst.msk [vmem:[%s4301_s12 + $0x58] sm:$0xff] %vm2708_vm1, %v2655_v22  ;;  %v2152_v18 = vadd.f32 %v2151_v14, %v1943_v23  ;;  %v452_v14 = vld [vmem:[%s3557_s17 + $0x7e0] sm:$0xff] }
 0x316   : > { %v1736_v49 = vpop.f32.mrf.mxu0 }
 0x317   : > { %v1737_v58 = vadd.f32 %v1736_v49, %v3853_v33  ;;  %v2360_v0 = vpop.f32.mrf.mxu3 }
 0x318   : > { %v2361_v42 = vadd.f32 %v2360_v0, %v2152_v18  ;;  %v1945_v61 = vpop.f32.mrf.mxu1  ;;  %v454_v18 = vld [vmem:[%s3557_s17 + $0x7f0] sm:$0xff]  ;;  %v453_v0 = vld [vmem:[%s3557_s17 + $0x7e8] sm:$0xff] }
 0x319   : > { %1783 = vmatmul.f32.gmra.mxu0 %v436_v34  ;;  %2201 = vmatmul.f32.gmra.mxu2 %v438_v13  ;;  %v1946_v4 = vadd.f32 %v1945_v61, %v1737_v58 }
 0x31a   : > { %vm2528_vm13 = vcmp.gt.f32.partialorder %v2361_v42, 0.0  ;;  %v2592_v52 = vmul.f32 0.01, %v2361_v42 }
 0x31b   : > { %1992 = vmatmul.f32.gmra.mxu1 %v437_v3 }
 0x31c   : > { %v2656_v41 = vsel %vm2528_vm13, %v2361_v42, %v2592_v52  ;;  %2410 = vmatmul.f32.gmra.mxu3 %v439_v57  ;;  %v2154_v27 = vpop.f32.mrf.mxu2  ;;  %v455_v42 = vld [vmem:[%s3557_s17 + $0x7f8] sm:$0xff] }
 0x31d   : > { %2721 = vst.msk [vmem:[%s4301_s12 + $0x60] sm:$0xff] %vm2708_vm1, %v2656_v41  ;;  %v2155_v33 = vadd.f32 %v2154_v27, %v1946_v4  ;;  %v460_v41 = vld [vmem:[%s3557_s17 + $0x820] sm:$0xff]  ;;  %v462_v27 = vld [vmem:[%s3557_s17 + $0x830] sm:$0xff] }
 0x31e   : > { %v1739_v35 = vpop.f32.mrf.mxu0 }
 0x31f   : > { %v1740_v29 = vadd.f32 %v1739_v35, %v3860_v48  ;;  %v2363_v56 = vpop.f32.mrf.mxu3 }
 0x320   : > { %v2364_v45 = vadd.f32 %v2363_v56, %v2155_v33  ;;  %v1948_v36 = vpop.f32.mrf.mxu1  ;;  %v463_v56 = vld [vmem:[%s3557_s17 + $0x838] sm:$0xff] }
 0x321   : > { %1786 = vmatmul.f32.gmra.mxu0 %v444_v63  ;;  %2204 = vmatmul.f32.gmra.mxu2 %v446_v51  ;;  %v1949_v40 = vadd.f32 %v1948_v36, %v1740_v29  ;;  %v461_v29 = vld [vmem:[%s3557_s17 + $0x828] sm:$0xff] }
 0x322   : > { %vm2529_vm14 = vcmp.gt.f32.partialorder %v2364_v45, 0.0  ;;  %v2593_v55 = vmul.f32 0.01, %v2364_v45 }
 0x323   : > { %1995 = vmatmul.f32.gmra.mxu1 %v445_v11 }
 0x324   : > { %v2657_v12 = vsel %vm2529_vm14, %v2364_v45, %v2593_v55  ;;  %2413 = vmatmul.f32.gmra.mxu3 %v447_v5  ;;  %v2157_v23 = vpop.f32.mrf.mxu2 }
 0x325   : > { %2722 = vst.msk [vmem:[%s4301_s12 + $0x68] sm:$0xff] %vm2708_vm1, %v2657_v12  ;;  %v2158_v48 = vadd.f32 %v2157_v23, %v1949_v40  ;;  %v468_v40 = vld [vmem:[%s3557_s17 + $0x860] sm:$0xff]  ;;  %v470_v12 = vld [vmem:[%s3557_s17 + $0x870] sm:$0xff] }
 0x326   : > { %v1742_v22 = vpop.f32.mrf.mxu0 }
 0x327   : > { %v1743_v49 = vadd.f32 %v1742_v22, %v3867_v1  ;;  %v2366_v34 = vpop.f32.mrf.mxu3 }
 0x328   : > { %v2367_v13 = vadd.f32 %v2366_v34, %v2158_v48  ;;  %v1951_v58 = vpop.f32.mrf.mxu1 }
 0x329   : > { %1789 = vmatmul.f32.gmra.mxu0 %v452_v14  ;;  %2207 = vmatmul.f32.gmra.mxu2 %v454_v18  ;;  %v1952_v3 = vadd.f32 %v1951_v58, %v1743_v49  ;;  %v469_v18 = vld [vmem:[%s3557_s17 + $0x868] sm:$0xff]  ;;  %v471_v49 = vld [vmem:[%s3557_s17 + $0x878] sm:$0xff] }
 0x32a   : > { %vm2530_vm15 = vcmp.gt.f32.partialorder %v2367_v13, 0.0  ;;  %v2594_v61 = vmul.f32 0.01, %v2367_v13 }
 0x32b   : > { %1998 = vmatmul.f32.gmra.mxu1 %v453_v0 }
 0x32c   : > { %v2658_v57 = vsel %vm2530_vm15, %v2367_v13, %v2594_v61  ;;  %2416 = vmatmul.f32.gmra.mxu3 %v455_v42  ;;  %v2160_v52 = vpop.f32.mrf.mxu2  ;;  %v476_v61 = vld [vmem:[%s3557_s17 + $0x8a0] sm:$0xff] }
 0x32d   : > { %2723 = vst.msk [vmem:[%s4301_s12 + $0x70] sm:$0xff] %vm2708_vm1, %v2658_v57  ;;  %v2161_v1 = vadd.f32 %v2160_v52, %v1952_v3  ;;  %v478_v3 = vld [vmem:[%s3557_s17 + $0x8b0] sm:$0xff] }
 0x32e   : > { %v1745_v4 = vpop.f32.mrf.mxu0 }
 0x32f   : > { %v1746_v33 = vadd.f32 %v1745_v4, %v3886_v21  ;;  %v2369_v35 = vpop.f32.mrf.mxu3 }
 0x330   : > { %v2370_v63 = vadd.f32 %v2369_v35, %v2161_v1  ;;  %v1954_v51 = vpop.f32.mrf.mxu1 }
 0x331   : > { %1792 = vmatmul.f32.gmra.mxu0 %v460_v41  ;;  %2210 = vmatmul.f32.gmra.mxu2 %v462_v27  ;;  %v1955_v36 = vadd.f32 %v1954_v51, %v1746_v33  ;;  %v477_v41 = vld [vmem:[%s3557_s17 + $0x8a8] sm:$0xff]  ;;  %v479_v27 = vld [vmem:[%s3557_s17 + $0x8b8] sm:$0xff] }
 0x332   : > { %vm2531_vm0 = vcmp.gt.f32.partialorder %v2370_v63, 0.0  ;;  %v2595_v45 = vmul.f32 0.01, %v2370_v63 }
 0x333   : > { %2001 = vmatmul.f32.gmra.mxu1 %v461_v29 }
 0x334   : > { %v2659_v11 = vsel %vm2531_vm0, %v2370_v63, %v2595_v45  ;;  %2419 = vmatmul.f32.gmra.mxu3 %v463_v56  ;;  %v2163_v5 = vpop.f32.mrf.mxu2  ;;  %v484_v56 = vld [vmem:[%s3557_s17 + $0x8e0] sm:$0xff]  ;;  %v486_v45 = vld [vmem:[%s3557_s17 + $0x8f0] sm:$0xff] }
 0x335   : > { %2724 = vst.msk [vmem:[%s4301_s12 + $0x78] sm:$0xff] %vm2708_vm1, %v2659_v11  ;;  %v2164_v21 = vadd.f32 %v2163_v5, %v1955_v36 }
 0x336   : > { %v1748_v55 = vpop.f32.mrf.mxu0 }
 0x337   : > { %v1749_v23 = vadd.f32 %v1748_v55, %v3893_v37  ;;  %v2372_v48 = vpop.f32.mrf.mxu3  ;;  %v485_v55 = vld [vmem:[%s3557_s17 + $0x8e8] sm:$0xff] }
 0x338   : > { %v2373_v22 = vadd.f32 %v2372_v48, %v2164_v21  ;;  %v1957_v14 = vpop.f32.mrf.mxu1 }
 0x339   : > { %1795 = vmatmul.f32.gmra.mxu0 %v468_v40  ;;  %2213 = vmatmul.f32.gmra.mxu2 %v470_v12  ;;  %v1958_v13 = vadd.f32 %v1957_v14, %v1749_v23  ;;  %v487_v40 = vld [vmem:[%s3557_s17 + $0x8f8] sm:$0xff] }
 0x33a   : > { %vm2532_vm2 = vcmp.gt.f32.partialorder %v2373_v22, 0.0  ;;  %v2596_v34 = vmul.f32 0.01, %v2373_v22 }
 0x33b   : > { %2004 = vmatmul.f32.gmra.mxu1 %v469_v18  ;;  %v492_v18 = vld [vmem:[%s3557_s17 + $0x920] sm:$0xff] }
 0x33c   : > { %v2660_v58 = vsel %vm2532_vm2, %v2373_v22, %v2596_v34  ;;  %2422 = vmatmul.f32.gmra.mxu3 %v471_v49  ;;  %v2166_v0 = vpop.f32.mrf.mxu2  ;;  %v494_v49 = vld [vmem:[%s3557_s17 + $0x930] sm:$0xff] }
 0x33d   : > { %2725 = vst.msk [vmem:[%s4301_s12 + $0x80] sm:$0xff] %vm2708_vm1, %v2660_v58  ;;  %v2167_v37 = vadd.f32 %v2166_v0, %v1958_v13 }
 0x33e   : > { %v1751_v42 = vpop.f32.mrf.mxu0 }
 0x33f   : > { %v1752_v57 = vadd.f32 %v1751_v42, %v3900_v54  ;;  %v2375_v52 = vpop.f32.mrf.mxu3  ;;  %v495_v42 = vld [vmem:[%s3557_s17 + $0x938] sm:$0xff] }
 0x340   : > { %v2376_v1 = vadd.f32 %v2375_v52, %v2167_v37  ;;  %v1960_v4 = vpop.f32.mrf.mxu1  ;;  %v493_v37 = vld [vmem:[%s3557_s17 + $0x928] sm:$0xff] }
 0x341   : > { %1798 = vmatmul.f32.gmra.mxu0 %v476_v61  ;;  %2216 = vmatmul.f32.gmra.mxu2 %v478_v3  ;;  %v1961_v35 = vadd.f32 %v1960_v4, %v1752_v57  ;;  %v500_v4 = vld [vmem:[%s3557_s17 + $0x960] sm:$0xff] }
 0x342   : > { %vm2533_vm3 = vcmp.gt.f32.partialorder %v2376_v1, 0.0  ;;  %v2597_v33 = vmul.f32 0.01, %v2376_v1 }
 0x343   : > { %2007 = vmatmul.f32.gmra.mxu1 %v477_v41  ;;  %v502_v41 = vld [vmem:[%s3557_s17 + $0x970] sm:$0xff] }
 0x344   : > { %v2661_v63 = vsel %vm2533_vm3, %v2376_v1, %v2597_v33  ;;  %2425 = vmatmul.f32.gmra.mxu3 %v479_v27  ;;  %v2169_v51 = vpop.f32.mrf.mxu2 }
 0x345   : > { %2726 = vst.msk [vmem:[%s4301_s12 + $0x88] sm:$0xff] %vm2708_vm1, %v2661_v63  ;;  %v2170_v54 = vadd.f32 %v2169_v51, %v1961_v35  ;;  %v501_v51 = vld [vmem:[%s3557_s17 + $0x968] sm:$0xff] }
 0x346   : > { %v1754_v29 = vpop.f32.mrf.mxu0 }
 0x347   : > { %v1755_v36 = vadd.f32 %v1754_v29, %v3907_v7  ;;  %v2378_v11 = vpop.f32.mrf.mxu3 }
 0x348   : > { %v2379_v5 = vadd.f32 %v2378_v11, %v2170_v54  ;;  %v1963_v21 = vpop.f32.mrf.mxu1  ;;  %v503_v54 = vld [vmem:[%s3557_s17 + $0x978] sm:$0xff] }
 0x349   : > { %1801 = vmatmul.f32.gmra.mxu0 %v484_v56  ;;  %2219 = vmatmul.f32.gmra.mxu2 %v486_v45  ;;  %v1964_v23 = vadd.f32 %v1963_v21, %v1755_v36  ;;  %v510_v21 = vld [vmem:[%s3557_s17 + $0x9b0] sm:$0xff] }
 0x34a   : > { %vm2534_vm4 = vcmp.gt.f32.partialorder %v2379_v5, 0.0  ;;  %v2598_v12 = vmul.f32 0.01, %v2379_v5 }
 0x34b   : > { %2010 = vmatmul.f32.gmra.mxu1 %v485_v55 }
 0x34c   : > { %v2662_v48 = vsel %vm2534_vm4, %v2379_v5, %v2598_v12  ;;  %2428 = vmatmul.f32.gmra.mxu3 %v487_v40  ;;  %v2172_v22 = vpop.f32.mrf.mxu2  ;;  %v508_v5 = vld [vmem:[%s3557_s17 + $0x9a0] sm:$0xff] }
 0x34d   : > { %2727 = vst.msk [vmem:[%s4301_s12 + $0x90] sm:$0xff] %vm2708_vm1, %v2662_v48  ;;  %v2173_v7 = vadd.f32 %v2172_v22, %v1964_v23  ;;  %v509_v48 = vld [vmem:[%s3557_s17 + $0x9a8] sm:$0xff]  ;;  %v511_v22 = vld [vmem:[%s3557_s17 + $0x9b8] sm:$0xff] }
 0x34e   : > { %v1757_v14 = vpop.f32.mrf.mxu0 }
 0x34f   : > { %v1758_v34 = vadd.f32 %v1757_v14, %v3926_v28  ;;  %v2381_v13 = vpop.f32.mrf.mxu3 }
 0x350   : > { %v2382_v58 = vadd.f32 %v2381_v13, %v2173_v7  ;;  %v1966_v0 = vpop.f32.mrf.mxu1  ;;  %v516_v13 = vld [vmem:[%s3557_s17 + $0x9e0] sm:$0xff] }
 0x351   : > { %1804 = vmatmul.f32.gmra.mxu0 %v492_v18  ;;  %2222 = vmatmul.f32.gmra.mxu2 %v494_v49  ;;  %v1967_v3 = vadd.f32 %v1966_v0, %v1758_v34 }
 0x352   : > { %vm2535_vm5 = vcmp.gt.f32.partialorder %v2382_v58, 0.0  ;;  %v2599_v61 = vmul.f32 0.01, %v2382_v58 }
 0x353   : > { %2013 = vmatmul.f32.gmra.mxu1 %v493_v37 }
 0x354   : > { %v2663_v57 = vsel %vm2535_vm5, %v2382_v58, %v2599_v61  ;;  %2431 = vmatmul.f32.gmra.mxu3 %v495_v42  ;;  %v2175_v52 = vpop.f32.mrf.mxu2  ;;  %v518_v58 = vld [vmem:[%s3557_s17 + $0x9f0] sm:$0xff] }
 0x355   : > { %2728 = vst.msk [vmem:[%s4301_s12 + $0x98] sm:$0xff] %vm2708_vm1, %v2663_v57  ;;  %v2176_v28 = vadd.f32 %v2175_v52, %v1967_v3  ;;  %v517_v3 = vld [vmem:[%s3557_s17 + $0x9e8] sm:$0xff]  ;;  %v519_v57 = vld [vmem:[%s3557_s17 + $0x9f8] sm:$0xff] }
 0x356   : > { %v1760_v1 = vpop.f32.mrf.mxu0 }
 0x357   : > { %v1761_v27 = vadd.f32 %v1760_v1, %v3933_v46  ;;  %v2384_v33 = vpop.f32.mrf.mxu3 }
 0x358   : > { %v2385_v35 = vadd.f32 %v2384_v33, %v2176_v28  ;;  %v1969_v63 = vpop.f32.mrf.mxu1  ;;  %v526_v33 = vld [vmem:[%s3557_s17 + $0xa30] sm:$0xff] }
 0x359   : > { %1807 = vmatmul.f32.gmra.mxu0 %v500_v4  ;;  %2225 = vmatmul.f32.gmra.mxu2 %v502_v41  ;;  %v1970_v56 = vadd.f32 %v1969_v63, %v1761_v27  ;;  %v524_v27 = vld [vmem:[%s3557_s17 + $0xa20] sm:$0xff] }
 0x35a   : > { %vm2536_vm6 = vcmp.gt.f32.partialorder %v2385_v35, 0.0  ;;  %v2600_v29 = vmul.f32 0.01, %v2385_v35 }
 0x35b   : > { %2016 = vmatmul.f32.gmra.mxu1 %v501_v51 }
 0x35c   : > { %v2664_v45 = vsel %vm2536_vm6, %v2385_v35, %v2600_v29  ;;  %2434 = vmatmul.f32.gmra.mxu3 %v503_v54  ;;  %v2178_v36 = vpop.f32.mrf.mxu2  ;;  %v525_v29 = vld [vmem:[%s3557_s17 + $0xa28] sm:$0xff] }
 0x35d   : > { %2729 = vst.msk [vmem:[%s4301_s12 + $0xa0] sm:$0xff] %vm2708_vm1, %v2664_v45  ;;  %v2179_v46 = vadd.f32 %v2178_v36, %v1970_v56  ;;  %v527_v56 = vld [vmem:[%s3557_s17 + $0xa38] sm:$0xff] }
 0x35e   : > { %v1763_v11 = vpop.f32.mrf.mxu0 }
 0x35f   : > { %v1764_v55 = vadd.f32 %v1763_v11, %v3940_v2  ;;  %v2387_v40 = vpop.f32.mrf.mxu3 }
 0x360   : > { %v2388_v12 = vadd.f32 %v2387_v40, %v2179_v46  ;;  %v1972_v23 = vpop.f32.mrf.mxu1 }
 0x361   : > { %1810 = vmatmul.f32.gmra.mxu0 %v508_v5  ;;  %2228 = vmatmul.f32.gmra.mxu2 %v510_v21  ;;  %v1973_v14 = vadd.f32 %v1972_v23, %v1764_v55  ;;  %v532_v21 = vld [vmem:[%s3557_s17 + $0xa60] sm:$0xff]  ;;  %v534_v55 = vld [vmem:[%s3557_s17 + $0xa70] sm:$0xff] }
 0x362   : > { %vm2537_vm7 = vcmp.gt.f32.partialorder %v2388_v12, 0.0  ;;  %v2601_v7 = vmul.f32 0.01, %v2388_v12 }
 0x363   : > { %2019 = vmatmul.f32.gmra.mxu1 %v509_v48 }
 0x364   : > { %v2665_v18 = vsel %vm2537_vm7, %v2388_v12, %v2601_v7  ;;  %2437 = vmatmul.f32.gmra.mxu3 %v511_v22  ;;  %v2181_v49 = vpop.f32.mrf.mxu2  ;;  %v533_v22 = vld [vmem:[%s3557_s17 + $0xa68] sm:$0xff]  ;;  %v535_v7 = vld [vmem:[%s3557_s17 + $0xa78] sm:$0xff] }
 0x365   : > { %2730 = vst.msk [vmem:[%s4301_s12 + $0xa8] sm:$0xff] %vm2708_vm1, %v2665_v18  ;;  %v2182_v2 = vadd.f32 %v2181_v49, %v1973_v14 }
 0x366   : > { %v1766_v34 = vpop.f32.mrf.mxu0 }
 0x367   : > { %v1767_v0 = vadd.f32 %v1766_v34, %v3947_v17  ;;  %v2390_v37 = vpop.f32.mrf.mxu3 }
 0x368   : > { %v2391_v42 = vadd.f32 %v2390_v37, %v2182_v2  ;;  %v1975_v61 = vpop.f32.mrf.mxu1 }
 0x369   : > { %1813 = vmatmul.f32.gmra.mxu0 %v516_v13  ;;  %2231 = vmatmul.f32.gmra.mxu2 %v518_v58  ;;  %v1976_v28 = vadd.f32 %v1975_v61, %v1767_v0  ;;  %v540_v13 = vld [vmem:[%s3557_s17 + $0xaa0] sm:$0xff]  ;;  %v542_v58 = vld [vmem:[%s3557_s17 + $0xab0] sm:$0xff] }
 0x36a   : > { %vm2538_vm8 = vcmp.gt.f32.partialorder %v2391_v42, 0.0  ;;  %v2602_v52 = vmul.f32 0.01, %v2391_v42 }
 0x36b   : > { %2022 = vmatmul.f32.gmra.mxu1 %v517_v3  ;;  %v541_v3 = vld [vmem:[%s3557_s17 + $0xaa8] sm:$0xff] }
 0x36c   : > { %v2666_v1 = vsel %vm2538_vm8, %v2391_v42, %v2602_v52  ;;  %2440 = vmatmul.f32.gmra.mxu3 %v519_v57  ;;  %v2184_v4 = vpop.f32.mrf.mxu2  ;;  %v543_v57 = vld [vmem:[%s3557_s17 + $0xab8] sm:$0xff] }
 0x36d   : > { %2731 = vst.msk [vmem:[%s4301_s12 + $0xb0] sm:$0xff] %vm2708_vm1, %v2666_v1  ;;  %v2185_v17 = vadd.f32 %v2184_v4, %v1976_v28 }
 0x36e   : > { %v1769_v41 = vpop.f32.mrf.mxu0 }
 0x36f   : > { %v1770_v35 = vadd.f32 %v1769_v41, %v3966_v44  ;;  %v2393_v63 = vpop.f32.mrf.mxu3  ;;  %v548_v41 = vld [vmem:[%s3557_s17 + $0xae0] sm:$0xff] }
 0x370   : > { %v2394_v51 = vadd.f32 %v2393_v63, %v2185_v17  ;;  %v1978_v54 = vpop.f32.mrf.mxu1 }
 0x371   : > { %1816 = vmatmul.f32.gmra.mxu0 %v524_v27  ;;  %2234 = vmatmul.f32.gmra.mxu2 %v526_v33  ;;  %v1979_v36 = vadd.f32 %v1978_v54, %v1770_v35  ;;  %v550_v27 = vld [vmem:[%s3557_s17 + $0xaf0] sm:$0xff]  ;;  %v549_v54 = vld [vmem:[%s3557_s17 + $0xae8] sm:$0xff] }
 0x372   : > { %vm2539_vm9 = vcmp.gt.f32.partialorder %v2394_v51, 0.0  ;;  %v2603_v45 = vmul.f32 0.01, %v2394_v51 }
 0x373   : > { %2025 = vmatmul.f32.gmra.mxu1 %v525_v29  ;;  %v551_v29 = vld [vmem:[%s3557_s17 + $0xaf8] sm:$0xff] }
 0x374   : > { %v2667_v46 = vsel %vm2539_vm9, %v2394_v51, %v2603_v45  ;;  %2443 = vmatmul.f32.gmra.mxu3 %v527_v56  ;;  %v2187_v11 = vpop.f32.mrf.mxu2 }
 0x375   : > { %2732 = vst.msk [vmem:[%s4301_s12 + $0xb8] sm:$0xff] %vm2708_vm1, %v2667_v46  ;;  %v2188_v44 = vadd.f32 %v2187_v11, %v1979_v36 }
 0x376   : > { %v1772_v5 = vpop.f32.mrf.mxu0 }
 0x377   : > { %v1773_v40 = vadd.f32 %v1772_v5, %v3973_v62  ;;  %v2396_v12 = vpop.f32.mrf.mxu3  ;;  %v558_v5 = vld [vmem:[%s3557_s17 + $0xb30] sm:$0xff] }
 0x378   : > { %v2397_v23 = vadd.f32 %v2396_v12, %v2188_v44  ;;  %v1981_v48 = vpop.f32.mrf.mxu1  ;;  %v556_v44 = vld [vmem:[%s3557_s17 + $0xb20] sm:$0xff] }
 0x379   : > { %1819 = vmatmul.f32.gmra.mxu0 %v532_v21  ;;  %2237 = vmatmul.f32.gmra.mxu2 %v534_v55  ;;  %v1982_v18 = vadd.f32 %v1981_v48, %v1773_v40  ;;  %v559_v48 = vld [vmem:[%s3557_s17 + $0xb38] sm:$0xff] }
 0x37a   : > { %vm2540_vm10 = vcmp.gt.f32.partialorder %v2397_v23, 0.0  ;;  %v2604_v14 = vmul.f32 0.01, %v2397_v23 }
 0x37b   : > { %2028 = vmatmul.f32.gmra.mxu1 %v533_v22 }
 0x37c   : > { %v2668_v49 = vsel %vm2540_vm10, %v2397_v23, %v2604_v14  ;;  %2446 = vmatmul.f32.gmra.mxu3 %v535_v7  ;;  %v2190_v2 = vpop.f32.mrf.mxu2  ;;  %v557_v23 = vld [vmem:[%s3557_s17 + $0xb28] sm:$0xff] }
 0x37d   : > { %2733 = vst.msk [vmem:[%s4301_s12 + $0xc0] sm:$0xff] %vm2708_vm1, %v2668_v49  ;;  %v2191_v62 = vadd.f32 %v2190_v2, %v1982_v18  ;;  %v564_v2 = vld [vmem:[%s3557_s17 + $0xb60] sm:$0xff] }
 0x37e   : > { %v1775_v34 = vpop.f32.mrf.mxu0 }
 0x37f   : > { %v1776_v0 = vadd.f32 %v1775_v34, %v3980_v19  ;;  %v2399_v37 = vpop.f32.mrf.mxu3 }
 0x380   : > { %v2400_v42 = vadd.f32 %v2399_v37, %v2191_v62  ;;  %v1984_v61 = vpop.f32.mrf.mxu1  ;;  %v566_v62 = vld [vmem:[%s3557_s17 + $0xb70] sm:$0xff]  ;;  %v565_v37 = vld [vmem:[%s3557_s17 + $0xb68] sm:$0xff] }
 0x381   : > { %1822 = vmatmul.f32.gmra.mxu0 %v540_v13  ;;  %2240 = vmatmul.f32.gmra.mxu2 %v542_v58  ;;  %v1985_v28 = vadd.f32 %v1984_v61, %v1776_v0 }
 0x382   : > { %vm2541_vm11 = vcmp.gt.f32.partialorder %v2400_v42, 0.0  ;;  %v2605_v52 = vmul.f32 0.01, %v2400_v42 }
 0x383   : > { %2031 = vmatmul.f32.gmra.mxu1 %v541_v3 }
 0x384   : > { %v2669_v1 = vsel %vm2541_vm11, %v2400_v42, %v2605_v52  ;;  %2449 = vmatmul.f32.gmra.mxu3 %v543_v57  ;;  %v2193_v4 = vpop.f32.mrf.mxu2  ;;  %v567_v42 = vld [vmem:[%s3557_s17 + $0xb78] sm:$0xff] }
 0x385   : > { %2734 = vst.msk [vmem:[%s4301_s12 + $0xc8] sm:$0xff] %vm2708_vm1, %v2669_v1  ;;  %v2194_v19 = vadd.f32 %v2193_v4, %v1985_v28  ;;  %v572_v1 = vld [vmem:[%s3557_s17 + $0xba0] sm:$0xff]  ;;  %v574_v4 = vld [vmem:[%s3557_s17 + $0xbb0] sm:$0xff] }
 0x386   : > { %v1778_v17 = vpop.f32.mrf.mxu0 }
 0x387   : > { %v1779_v33 = vadd.f32 %v1778_v17, %v3987_v39  ;;  %v2402_v35 = vpop.f32.mrf.mxu3 }
 0x388   : > { %v2403_v63 = vadd.f32 %v2402_v35, %v2194_v19  ;;  %v1987_v51 = vpop.f32.mrf.mxu1  ;;  %v575_v35 = vld [vmem:[%s3557_s17 + $0xbb8] sm:$0xff] }
 0x389   : > { %1825 = vmatmul.f32.gmra.mxu0 %v548_v41  ;;  %2243 = vmatmul.f32.gmra.mxu2 %v550_v27  ;;  %v1988_v45 = vadd.f32 %v1987_v51, %v1779_v33  ;;  %v573_v33 = vld [vmem:[%s3557_s17 + $0xba8] sm:$0xff] }
 0x38a   : > { %vm2542_vm12 = vcmp.gt.f32.partialorder %v2403_v63, 0.0  ;;  %v2606_v56 = vmul.f32 0.01, %v2403_v63 }
 0x38b   : > { %2034 = vmatmul.f32.gmra.mxu1 %v549_v54 }
 0x38c   : > { %v2670_v36 = vsel %vm2542_vm12, %v2403_v63, %v2606_v56  ;;  %2452 = vmatmul.f32.gmra.mxu3 %v551_v29  ;;  %v2196_v46 = vpop.f32.mrf.mxu2 }
 0x38d   : > { %2735 = vst.msk [vmem:[%s4301_s12 + $0xd0] sm:$0xff] %vm2708_vm1, %v2670_v36  ;;  %v2197_v39 = vadd.f32 %v2196_v46, %v1988_v45  ;;  %v580_v45 = vld [vmem:[%s3557_s17 + $0xbe0] sm:$0xff]  ;;  %v582_v36 = vld [vmem:[%s3557_s17 + $0xbf0] sm:$0xff] }
 0x38e   : > { %v1781_v11 = vpop.f32.mrf.mxu0 }
 0x38f   : > { %v1782_v21 = vadd.f32 %v1781_v11, %v4011_v6  ;;  %v2405_v55 = vpop.f32.mrf.mxu3 }
 0x390   : > { %v2406_v40 = vadd.f32 %v2405_v55, %v2197_v39  ;;  %v1990_v12 = vpop.f32.mrf.mxu1 }
 0x391   : > { %1828 = vmatmul.f32.gmra.mxu0 %v556_v44  ;;  %2246 = vmatmul.f32.gmra.mxu2 %v558_v5  ;;  %v1991_v7 = vadd.f32 %v1990_v12, %v1782_v21  ;;  %v581_v5 = vld [vmem:[%s3557_s17 + $0xbe8] sm:$0xff]  ;;  %v583_v21 = vld [vmem:[%s3557_s17 + $0xbf8] sm:$0xff] }
 0x392   : > { %vm2543_vm13 = vcmp.gt.f32.partialorder %v2406_v40, 0.0  ;;  %v2607_v22 = vmul.f32 0.01, %v2406_v40 }
 0x393   : > { %2037 = vmatmul.f32.gmra.mxu1 %v557_v23 }
 0x394   : > { %v2671_v14 = vsel %vm2543_vm13, %v2406_v40, %v2607_v22  ;;  %2455 = vmatmul.f32.gmra.mxu3 %v559_v48  ;;  %v2199_v18 = vpop.f32.mrf.mxu2  ;;  %v588_v22 = vld [vmem:[%s3557_s17 + $0xc20] sm:$0xff] }
 0x395   : > { %2736 = vst.msk [vmem:[%s4301_s12 + $0xd8] sm:$0xff] %vm2708_vm1, %v2671_v14  ;;  %v2200_v6 = vadd.f32 %v2199_v18, %v1991_v7  ;;  %v590_v7 = vld [vmem:[%s3557_s17 + $0xc30] sm:$0xff] }
 0x396   : > { %v1784_v49 = vpop.f32.mrf.mxu0 }
 0x397   : > { %v1785_v34 = vadd.f32 %v1784_v49, %v4018_v26  ;;  %v2408_v13 = vpop.f32.mrf.mxu3 }
 0x398   : > { %v2409_v58 = vadd.f32 %v2408_v13, %v2200_v6  ;;  %v1993_v0 = vpop.f32.mrf.mxu1 }
 0x399   : > { %1831 = vmatmul.f32.gmra.mxu0 %v564_v2  ;;  %2249 = vmatmul.f32.gmra.mxu2 %v566_v62  ;;  %v1994_v3 = vadd.f32 %v1993_v0, %v1785_v34  ;;  %v589_v2 = vld [vmem:[%s3557_s17 + $0xc28] sm:$0xff]  ;;  %v591_v62 = vld [vmem:[%s3557_s17 + $0xc38] sm:$0xff] }
 0x39a   : > { %vm2544_vm14 = vcmp.gt.f32.partialorder %v2409_v58, 0.0  ;;  %v2608_v61 = vmul.f32 0.01, %v2409_v58 }
 0x39b   : > { %2040 = vmatmul.f32.gmra.mxu1 %v565_v37 }
 0x39c   : > { %v2672_v57 = vsel %vm2544_vm14, %v2409_v58, %v2608_v61  ;;  %2458 = vmatmul.f32.gmra.mxu3 %v567_v42  ;;  %v2202_v52 = vpop.f32.mrf.mxu2  ;;  %v596_v42 = vld [vmem:[%s3557_s17 + $0xc60] sm:$0xff]  ;;  %v598_v61 = vld [vmem:[%s3557_s17 + $0xc70] sm:$0xff] }
 0x39d   : > { %2737 = vst.msk [vmem:[%s4301_s12 + $0xe0] sm:$0xff] %vm2708_vm1, %v2672_v57  ;;  %v2203_v26 = vadd.f32 %v2202_v52, %v1994_v3 }
 0x39e   : > { %v1787_v28 = vpop.f32.mrf.mxu0 }
 0x39f   : > { %v1788_v19 = vadd.f32 %v1787_v28, %v4025_v50  ;;  %v2411_v17 = vpop.f32.mrf.mxu3  ;;  %v597_v28 = vld [vmem:[%s3557_s17 + $0xc68] sm:$0xff] }
 0x3a0   : > { %v2412_v41 = vadd.f32 %v2411_v17, %v2203_v26  ;;  %v1996_v27 = vpop.f32.mrf.mxu1 }
 0x3a1   : > { %1834 = vmatmul.f32.gmra.mxu0 %v572_v1  ;;  %2252 = vmatmul.f32.gmra.mxu2 %v574_v4  ;;  %v1997_v51 = vadd.f32 %v1996_v27, %v1788_v19  ;;  %v599_v1 = vld [vmem:[%s3557_s17 + $0xc78] sm:$0xff] }
 0x3a2   : > { %vm2545_vm15 = vcmp.gt.f32.partialorder %v2412_v41, 0.0  ;;  %v2609_v63 = vmul.f32 0.01, %v2412_v41 }
 0x3a3   : > { %2043 = vmatmul.f32.gmra.mxu1 %v573_v33  ;;  %v604_v33 = vld [vmem:[%s3557_s17 + $0xca0] sm:$0xff] }
 0x3a4   : > { %v2673_v54 = vsel %vm2545_vm15, %v2412_v41, %v2609_v63  ;;  %2461 = vmatmul.f32.gmra.mxu3 %v575_v35  ;;  %v2205_v29 = vpop.f32.mrf.mxu2  ;;  %v606_v35 = vld [vmem:[%s3557_s17 + $0xcb0] sm:$0xff] }
 0x3a5   : > { %2738 = vst.msk [vmem:[%s4301_s12 + $0xe8] sm:$0xff] %vm2708_vm1, %v2673_v54  ;;  %v2206_v50 = vadd.f32 %v2205_v29, %v1997_v51 }
 0x3a6   : > { %v1790_v56 = vpop.f32.mrf.mxu0 }
 0x3a7   : > { %v1791_v46 = vadd.f32 %v1790_v56, %v4032_v9  ;;  %v2414_v39 = vpop.f32.mrf.mxu3  ;;  %v607_v56 = vld [vmem:[%s3557_s17 + $0xcb8] sm:$0xff] }
 0x3a8   : > { %v2415_v11 = vadd.f32 %v2414_v39, %v2206_v50  ;;  %v1999_v44 = vpop.f32.mrf.mxu1  ;;  %v605_v50 = vld [vmem:[%s3557_s17 + $0xca8] sm:$0xff] }
 0x3a9   : > { %1837 = vmatmul.f32.gmra.mxu0 %v580_v45  ;;  %2255 = vmatmul.f32.gmra.mxu2 %v582_v36  ;;  %v2000_v40 = vadd.f32 %v1999_v44, %v1791_v46  ;;  %v612_v44 = vld [vmem:[%s3557_s17 + $0xce0] sm:$0xff] }
 0x3aa   : > { %vm2546_vm0 = vcmp.gt.f32.partialorder %v2415_v11, 0.0  ;;  %v2610_v55 = vmul.f32 0.01, %v2415_v11 }
 0x3ab   : > { %2046 = vmatmul.f32.gmra.mxu1 %v581_v5  ;;  %v614_v5 = vld [vmem:[%s3557_s17 + $0xcf0] sm:$0xff] }
 0x3ac   : > { %v2674_v12 = vsel %vm2546_vm0, %v2415_v11, %v2610_v55  ;;  %2464 = vmatmul.f32.gmra.mxu3 %v583_v21  ;;  %v2208_v23 = vpop.f32.mrf.mxu2 }
 0x3ad   : > { %2739 = vst.msk [vmem:[%s4301_s12 + $0xf0] sm:$0xff] %vm2708_vm1, %v2674_v12  ;;  %v2209_v9 = vadd.f32 %v2208_v23, %v2000_v40  ;;  %v613_v23 = vld [vmem:[%s3557_s17 + $0xce8] sm:$0xff] }
 0x3ae   : > { %v1793_v48 = vpop.f32.mrf.mxu0 }
 0x3af   : > { %v1794_v14 = vadd.f32 %v1793_v48, %v4051_v38  ;;  %v2417_v18 = vpop.f32.mrf.mxu3 }
 0x3b0   : > { %v2418_v6 = vadd.f32 %v2417_v18, %v2209_v9  ;;  %v2002_v49 = vpop.f32.mrf.mxu1  ;;  %v615_v9 = vld [vmem:[%s3557_s17 + $0xcf8] sm:$0xff] }
 0x3b1   : > { %1840 = vmatmul.f32.gmra.mxu0 %v588_v22  ;;  %2258 = vmatmul.f32.gmra.mxu2 %v590_v7  ;;  %v2003_v13 = vadd.f32 %v2002_v49, %v1794_v14  ;;  %v622_v49 = vld [vmem:[%s3557_s17 + $0xd30] sm:$0xff] }
 0x3b2   : > { %vm2547_vm2 = vcmp.gt.f32.partialorder %v2418_v6, 0.0  ;;  %v2611_v34 = vmul.f32 0.01, %v2418_v6 }
 0x3b3   : > { %2049 = vmatmul.f32.gmra.mxu1 %v589_v2 }
 0x3b4   : > { %v2675_v58 = vsel %vm2547_vm2, %v2418_v6, %v2611_v34  ;;  %2467 = vmatmul.f32.gmra.mxu3 %v591_v62  ;;  %v2211_v0 = vpop.f32.mrf.mxu2  ;;  %v620_v6 = vld [vmem:[%s3557_s17 + $0xd20] sm:$0xff] }
 0x3b5   : > { %2740 = vst.msk [vmem:[%s4301_s12 + $0xf8] sm:$0xff] %vm2708_vm1, %v2675_v58  ;;  %v2212_v38 = vadd.f32 %v2211_v0, %v2003_v13  ;;  %v621_v58 = vld [vmem:[%s3557_s17 + $0xd28] sm:$0xff]  ;;  %v623_v0 = vld [vmem:[%s3557_s17 + $0xd38] sm:$0xff] }
 0x3b6   : > { %v1796_v37 = vpop.f32.mrf.mxu0 }
 0x3b7   : > { %v1797_v3 = vadd.f32 %v1796_v37, %v4058_v60  ;;  %v2420_v57 = vpop.f32.mrf.mxu3 }
 0x3b8   : > { %v2421_v52 = vadd.f32 %v2420_v57, %v2212_v38  ;;  %v2005_v26 = vpop.f32.mrf.mxu1  ;;  %v628_v57 = vld [vmem:[%s3557_s17 + $0xd60] sm:$0xff] }
 0x3b9   : > { %1843 = vmatmul.f32.gmra.mxu0 %v596_v42  ;;  %2261 = vmatmul.f32.gmra.mxu2 %v598_v61  ;;  %v2006_v19 = vadd.f32 %v2005_v26, %v1797_v3 }
 0x3ba   : > { %vm2548_vm3 = vcmp.gt.f32.partialorder %v2421_v52, 0.0  ;;  %v2612_v4 = vmul.f32 0.01, %v2421_v52 }
 0x3bb   : > { %2052 = vmatmul.f32.gmra.mxu1 %v597_v28 }
 0x3bc   : > { %v2676_v17 = vsel %vm2548_vm3, %v2421_v52, %v2612_v4  ;;  %2470 = vmatmul.f32.gmra.mxu3 %v599_v1  ;;  %v2214_v41 = vpop.f32.mrf.mxu2  ;;  %v630_v52 = vld [vmem:[%s3557_s17 + $0xd70] sm:$0xff] }
 0x3bd   : > { %2741 = vst.msk [vmem:[%s4301_s12 + $0x100] sm:$0xff] %vm2708_vm1, %v2676_v17  ;;  %v2215_v60 = vadd.f32 %v2214_v41, %v2006_v19  ;;  %v629_v19 = vld [vmem:[%s3557_s17 + $0xd68] sm:$0xff]  ;;  %v631_v17 = vld [vmem:[%s3557_s17 + $0xd78] sm:$0xff] }
 0x3be   : > { %v1799_v27 = vpop.f32.mrf.mxu0 }
 0x3bf   : > { %v1800_v63 = vadd.f32 %v1799_v27, %v4065_v25  ;;  %v2423_v51 = vpop.f32.mrf.mxu3 }
 0x3c0   : > { %v2424_v54 = vadd.f32 %v2423_v51, %v2215_v60  ;;  %v2008_v29 = vpop.f32.mrf.mxu1  ;;  %v638_v51 = vld [vmem:[%s3557_s17 + $0xdb0] sm:$0xff] }
 0x3c1   : > { %1846 = vmatmul.f32.gmra.mxu0 %v604_v33  ;;  %2264 = vmatmul.f32.gmra.mxu2 %v606_v35  ;;  %v2009_v36 = vadd.f32 %v2008_v29, %v1800_v63  ;;  %v636_v63 = vld [vmem:[%s3557_s17 + $0xda0] sm:$0xff] }
 0x3c2   : > { %vm2549_vm4 = vcmp.gt.f32.partialorder %v2424_v54, 0.0  ;;  %v2613_v45 = vmul.f32 0.01, %v2424_v54 }
 0x3c3   : > { %2055 = vmatmul.f32.gmra.mxu1 %v605_v50 }
 0x3c4   : > { %v2677_v46 = vsel %vm2549_vm4, %v2424_v54, %v2613_v45  ;;  %2473 = vmatmul.f32.gmra.mxu3 %v607_v56  ;;  %v2217_v39 = vpop.f32.mrf.mxu2  ;;  %v637_v45 = vld [vmem:[%s3557_s17 + $0xda8] sm:$0xff] }
 0x3c5   : > { %2742 = vst.msk [vmem:[%s4301_s12 + $0x108] sm:$0xff] %vm2708_vm1, %v2677_v46  ;;  %v2218_v25 = vadd.f32 %v2217_v39, %v2009_v36  ;;  %v639_v36 = vld [vmem:[%s3557_s17 + $0xdb8] sm:$0xff] }
 0x3c6   : > { %v1802_v11 = vpop.f32.mrf.mxu0 }
 0x3c7   : > { %v1803_v21 = vadd.f32 %v1802_v11, %v4072_v20  ;;  %v2426_v55 = vpop.f32.mrf.mxu3 }
 0x3c8   : > { %v2427_v40 = vadd.f32 %v2426_v55, %v2218_v25  ;;  %v2011_v12 = vpop.f32.mrf.mxu1 }
 0x3c9   : > { %1849 = vmatmul.f32.gmra.mxu0 %v612_v44  ;;  %2267 = vmatmul.f32.gmra.mxu2 %v614_v5  ;;  %v2012_v22 = vadd.f32 %v2011_v12, %v1803_v21  ;;  %v644_v5 = vld [vmem:[%s3557_s17 + $0xde0] sm:$0xff]  ;;  %v646_v21 = vld [vmem:[%s3557_s17 + $0xdf0] sm:$0xff] }
 0x3ca   : > { %vm2550_vm5 = vcmp.gt.f32.partialorder %v2427_v40, 0.0  ;;  %v2614_v48 = vmul.f32 0.01, %v2427_v40 }
 0x3cb   : > { %2058 = vmatmul.f32.gmra.mxu1 %v613_v23 }
 0x3cc   : > { %v2678_v7 = vsel %vm2550_vm5, %v2427_v40, %v2614_v48  ;;  %2476 = vmatmul.f32.gmra.mxu3 %v615_v9  ;;  %v2220_v14 = vpop.f32.mrf.mxu2  ;;  %v645_v9 = vld [vmem:[%s3557_s17 + $0xde8] sm:$0xff]  ;;  %v647_v48 = vld [vmem:[%s3557_s17 + $0xdf8] sm:$0xff] }
 0x3cd   : > { %2743 = vst.msk [vmem:[%s4301_s12 + $0x110] sm:$0xff] %vm2708_vm1, %v2678_v7  ;;  %v2221_v20 = vadd.f32 %v2220_v14, %v2012_v22 }
 0x3ce   : > { %v1805_v18 = vpop.f32.mrf.mxu0 }
 0x3cf   : > { %v1806_v2 = vadd.f32 %v1805_v18, %v4091_v24  ;;  %v2429_v62 = vpop.f32.mrf.mxu3 }
 0x3d0   : > { %v2430_v34 = vadd.f32 %v2429_v62, %v2221_v20  ;;  %v2014_v13 = vpop.f32.mrf.mxu1 }
 0x3d1   : > { %1852 = vmatmul.f32.gmra.mxu0 %v620_v6  ;;  %2270 = vmatmul.f32.gmra.mxu2 %v622_v49  ;;  %v2015_v37 = vadd.f32 %v2014_v13, %v1806_v2  ;;  %v652_v6 = vld [vmem:[%s3557_s17 + $0xe20] sm:$0xff]  ;;  %v654_v49 = vld [vmem:[%s3557_s17 + $0xe30] sm:$0xff] }
 0x3d2   : > { %vm2551_vm6 = vcmp.gt.f32.partialorder %v2430_v34, 0.0  ;;  %v2615_v38 = vmul.f32 0.01, %v2430_v34 }
 0x3d3   : > { %2061 = vmatmul.f32.gmra.mxu1 %v621_v58  ;;  %v653_v58 = vld [vmem:[%s3557_s17 + $0xe28] sm:$0xff] }
 0x3d4   : > { %v2679_v42 = vsel %vm2551_vm6, %v2430_v34, %v2615_v38  ;;  %2479 = vmatmul.f32.gmra.mxu3 %v623_v0  ;;  %v2223_v61 = vpop.f32.mrf.mxu2  ;;  %v655_v0 = vld [vmem:[%s3557_s17 + $0xe38] sm:$0xff] }
 0x3d5   : > { %2744 = vst.msk [vmem:[%s4301_s12 + $0x118] sm:$0xff] %vm2708_vm1, %v2679_v42  ;;  %v2224_v24 = vadd.f32 %v2223_v61, %v2015_v37 }
 0x3d6   : > { %v1808_v3 = vpop.f32.mrf.mxu0 }
 0x3d7   : > { %v1809_v26 = vadd.f32 %v1808_v3, %v4098_v53  ;;  %v2432_v28 = vpop.f32.mrf.mxu3  ;;  %v660_v3 = vld [vmem:[%s3557_s17 + $0xe60] sm:$0xff] }
 0x3d8   : > { %v2433_v1 = vadd.f32 %v2432_v28, %v2224_v24  ;;  %v2017_v4 = vpop.f32.mrf.mxu1 }
 0x3d9   : > { %1855 = vmatmul.f32.gmra.mxu0 %v628_v57  ;;  %2273 = vmatmul.f32.gmra.mxu2 %v630_v52  ;;  %v2018_v60 = vadd.f32 %v2017_v4, %v1809_v26  ;;  %v662_v57 = vld [vmem:[%s3557_s17 + $0xe70] sm:$0xff]  ;;  %v661_v4 = vld [vmem:[%s3557_s17 + $0xe68] sm:$0xff] }
 0x3da   : > { %vm2552_vm7 = vcmp.gt.f32.partialorder %v2433_v1, 0.0  ;;  %v2616_v41 = vmul.f32 0.01, %v2433_v1 }
 0x3db   : > { %2064 = vmatmul.f32.gmra.mxu1 %v629_v19  ;;  %v663_v19 = vld [vmem:[%s3557_s17 + $0xe78] sm:$0xff] }
 0x3dc   : > { %v2680_v27 = vsel %vm2552_vm7, %v2433_v1, %v2616_v41  ;;  %2482 = vmatmul.f32.gmra.mxu3 %v631_v17  ;;  %v2226_v33 = vpop.f32.mrf.mxu2 }
 0x3dd   : > { %2745 = vst.msk [vmem:[%s4301_s12 + $0x120] sm:$0xff] %vm2708_vm1, %v2680_v27  ;;  %v2227_v53 = vadd.f32 %v2226_v33, %v2018_v60 }
 0x3de   : > { %v1811_v35 = vpop.f32.mrf.mxu0 }
 0x3df   : > { %v1812_v54 = vadd.f32 %v1811_v35, %v4105_v15  ;;  %v2435_v29 = vpop.f32.mrf.mxu3  ;;  %v670_v35 = vld [vmem:[%s3557_s17 + $0xeb0] sm:$0xff] }
 0x3e0   : > { %v2436_v50 = vadd.f32 %v2435_v29, %v2227_v53  ;;  %v2020_v56 = vpop.f32.mrf.mxu1  ;;  %v668_v53 = vld [vmem:[%s3557_s17 + $0xea0] sm:$0xff] }
 0x3e1   : > { %1858 = vmatmul.f32.gmra.mxu0 %v636_v63  ;;  %2276 = vmatmul.f32.gmra.mxu2 %v638_v51  ;;  %v2021_v39 = vadd.f32 %v2020_v56, %v1812_v54  ;;  %v671_v56 = vld [vmem:[%s3557_s17 + $0xeb8] sm:$0xff] }
 0x3e2   : > { %vm2553_vm8 = vcmp.gt.f32.partialorder %v2436_v50, 0.0  ;;  %v2617_v46 = vmul.f32 0.01, %v2436_v50 }
 0x3e3   : > { %2067 = vmatmul.f32.gmra.mxu1 %v637_v45 }
 0x3e4   : > { %v2681_v25 = vsel %vm2553_vm8, %v2436_v50, %v2617_v46  ;;  %2485 = vmatmul.f32.gmra.mxu3 %v639_v36  ;;  %v2229_v11 = vpop.f32.mrf.mxu2  ;;  %v669_v50 = vld [vmem:[%s3557_s17 + $0xea8] sm:$0xff] }
 0x3e5   : > { %2746 = vst.msk [vmem:[%s4301_s12 + $0x128] sm:$0xff] %vm2708_vm1, %v2681_v25  ;;  %v2230_v15 = vadd.f32 %v2229_v11, %v2021_v39  ;;  %v676_v11 = vld [vmem:[%s3557_s17 + $0xee0] sm:$0xff] }
 0x3e6   : > { %v1814_v44 = vpop.f32.mrf.mxu0 }
 0x3e7   : > { %v1815_v55 = vadd.f32 %v1814_v44, %v4112_v47  ;;  %v2438_v40 = vpop.f32.mrf.mxu3 }
 0x3e8   : > { %v2439_v12 = vadd.f32 %v2438_v40, %v2230_v15  ;;  %v2023_v23 = vpop.f32.mrf.mxu1  ;;  %v678_v15 = vld [vmem:[%s3557_s17 + $0xef0] sm:$0xff]  ;;  %v677_v40 = vld [vmem:[%s3557_s17 + $0xee8] sm:$0xff] }
 0x3e9   : > { %1861 = vmatmul.f32.gmra.mxu0 %v644_v5  ;;  %2279 = vmatmul.f32.gmra.mxu2 %v646_v21  ;;  %v2024_v7 = vadd.f32 %v2023_v23, %v1815_v55 }
 0x3ea   : > { %vm2554_vm9 = vcmp.gt.f32.partialorder %v2439_v12, 0.0  ;;  %v2618_v22 = vmul.f32 0.01, %v2439_v12 }
 0x3eb   : > { %2070 = vmatmul.f32.gmra.mxu1 %v645_v9 }
 0x3ec   : > { %v2682_v14 = vsel %vm2554_vm9, %v2439_v12, %v2618_v22  ;;  %2488 = vmatmul.f32.gmra.mxu3 %v647_v48  ;;  %v2232_v20 = vpop.f32.mrf.mxu2  ;;  %v679_v12 = vld [vmem:[%s3557_s17 + $0xef8] sm:$0xff] }
 0x3ed   : > { %2747 = vst.msk [vmem:[%s4301_s12 + $0x130] sm:$0xff] %vm2708_vm1, %v2682_v14  ;;  %v2233_v47 = vadd.f32 %v2232_v20, %v2024_v7  ;;  %v684_v14 = vld [vmem:[%s3557_s17 + $0xf20] sm:$0xff]  ;;  %v686_v20 = vld [vmem:[%s3557_s17 + $0xf30] sm:$0xff] }
 0x3ee   : > { %v1817_v18 = vpop.f32.mrf.mxu0 }
 0x3ef   : > { %v1818_v2 = vadd.f32 %v1817_v18, %v4131_v30  ;;  %v2441_v62 = vpop.f32.mrf.mxu3 }
 0x3f0   : > { %v2442_v34 = vadd.f32 %v2441_v62, %v2233_v47  ;;  %v2026_v13 = vpop.f32.mrf.mxu1  ;;  %v687_v62 = vld [vmem:[%s3557_s17 + $0xf38] sm:$0xff] }
 0x3f1   : > { %1864 = vmatmul.f32.gmra.mxu0 %v652_v6  ;;  %2282 = vmatmul.f32.gmra.mxu2 %v654_v49  ;;  %v2027_v37 = vadd.f32 %v2026_v13, %v1818_v2  ;;  %v685_v2 = vld [vmem:[%s3557_s17 + $0xf28] sm:$0xff] }
 0x3f2   : > { %vm2555_vm10 = vcmp.gt.f32.partialorder %v2442_v34, 0.0  ;;  %v2619_v38 = vmul.f32 0.01, %v2442_v34 }
 0x3f3   : > { %2073 = vmatmul.f32.gmra.mxu1 %v653_v58 }
 0x3f4   : > { %v2683_v42 = vsel %vm2555_vm10, %v2442_v34, %v2619_v38  ;;  %2491 = vmatmul.f32.gmra.mxu3 %v655_v0  ;;  %v2235_v61 = vpop.f32.mrf.mxu2 }
 0x3f5   : > { %2748 = vst.msk [vmem:[%s4301_s12 + $0x138] sm:$0xff] %vm2708_vm1, %v2683_v42  ;;  %v2236_v30 = vadd.f32 %v2235_v61, %v2027_v37  ;;  %v692_v37 = vld [vmem:[%s3557_s17 + $0xf60] sm:$0xff]  ;;  %v694_v42 = vld [vmem:[%s3557_s17 + $0xf70] sm:$0xff] }
 0x3f6   : > { %v1820_v24 = vpop.f32.mrf.mxu0 }
 0x3f7   : > { %v1821_v52 = vadd.f32 %v1820_v24, %v4138_v59  ;;  %v2444_v26 = vpop.f32.mrf.mxu3 }
 0x3f8   : > { %v2445_v28 = vadd.f32 %v2444_v26, %v2236_v30  ;;  %v2029_v1 = vpop.f32.mrf.mxu1 }
 0x3f9   : > { %1867 = vmatmul.f32.gmra.mxu0 %v660_v3  ;;  %2285 = vmatmul.f32.gmra.mxu2 %v662_v57  ;;  %v2030_v41 = vadd.f32 %v2029_v1, %v1821_v52  ;;  %v693_v57 = vld [vmem:[%s3557_s17 + $0xf68] sm:$0xff]  ;;  %v695_v52 = vld [vmem:[%s3557_s17 + $0xf78] sm:$0xff] }
 0x3fa   : > { %vm2556_vm11 = vcmp.gt.f32.partialorder %v2445_v28, 0.0  ;;  %v2620_v17 = vmul.f32 0.01, %v2445_v28 }
 0x3fb   : > { %2076 = vmatmul.f32.gmra.mxu1 %v661_v4 }
 0x3fc   : > { %v2684_v60 = vsel %vm2556_vm11, %v2445_v28, %v2620_v17  ;;  %2494 = vmatmul.f32.gmra.mxu3 %v663_v19  ;;  %v2238_v27 = vpop.f32.mrf.mxu2  ;;  %v700_v17 = vld [vmem:[%s3557_s17 + $0xfa0] sm:$0xff] }
 0x3fd   : > { %2749 = vst.msk [vmem:[%s4301_s12 + $0x140] sm:$0xff] %vm2708_vm1, %v2684_v60  ;;  %v2239_v59 = vadd.f32 %v2238_v27, %v2030_v41  ;;  %v702_v41 = vld [vmem:[%s3557_s17 + $0xfb0] sm:$0xff]  ;;  %v4840_v60 = vld [vmem:[#allocation3_spill] sm:$0xff] }
 0x3fe   : > { %v1823_v33 = vpop.f32.mrf.mxu0 }
 0x3ff   : > { %v1824_v63 = vadd.f32 %v1823_v33, %v4145_v32  ;;  %v2447_v51 = vpop.f32.mrf.mxu3 }
 0x400   : > { %v2448_v54 = vadd.f32 %v2447_v51, %v2239_v59  ;;  %v2032_v29 = vpop.f32.mrf.mxu1 }
 0x401   : > { %1870 = vmatmul.f32.gmra.mxu0 %v668_v53  ;;  %2288 = vmatmul.f32.gmra.mxu2 %v670_v35  ;;  %v2033_v36 = vadd.f32 %v2032_v29, %v1824_v63  ;;  %v701_v35 = vld [vmem:[%s3557_s17 + $0xfa8] sm:$0xff]  ;;  %v703_v63 = vld [vmem:[%s3557_s17 + $0xfb8] sm:$0xff] }
 0x402   : > { %vm2557_vm12 = vcmp.gt.f32.partialorder %v2448_v54, 0.0  ;;  %v2621_v45 = vmul.f32 0.01, %v2448_v54 }
 0x403   : > { %2079 = vmatmul.f32.gmra.mxu1 %v669_v50 }
 0x404   : > { %v2685_v46 = vsel %vm2557_vm12, %v2448_v54, %v2621_v45  ;;  %2497 = vmatmul.f32.gmra.mxu3 %v671_v56  ;;  %v2241_v39 = vpop.f32.mrf.mxu2 }
 0x405   : > { %2750 = vst.msk [vmem:[%s4301_s12 + $0x148] sm:$0xff] %vm2708_vm1, %v2685_v46  ;;  %v2242_v32 = vadd.f32 %v2241_v39, %v2033_v36  ;;  %v708_v36 = vld [vmem:[%s3557_s17 + $0xfe0] sm:$0xff]  ;;  %v710_v46 = vld [vmem:[%s3557_s17 + $0xff0] sm:$0xff]  ;;  %v4841_v39 = vld [vmem:[#allocation4_spill] sm:$0xff] }
 0x406   : > { %v1826_v25 = vpop.f32.mrf.mxu0 }
 0x407   : > { %v1827_v44 = vadd.f32 %v1826_v25, %v4152_v8  ;;  %v2450_v5 = vpop.f32.mrf.mxu3 }
 0x408   : > { %v2451_v21 = vadd.f32 %v2450_v5, %v2242_v32  ;;  %v2035_v55 = vpop.f32.mrf.mxu1  ;;  %v711_v5 = vld [vmem:[%s3557_s17 + $0xff8] sm:$0xff] }
 0x409   : > { %1873 = vmatmul.f32.gmra.mxu0 %v676_v11  ;;  %2291 = vmatmul.f32.gmra.mxu2 %v678_v15  ;;  %v2036_v9 = vadd.f32 %v2035_v55, %v1827_v44  ;;  %v709_v44 = vld [vmem:[%s3557_s17 + $0xfe8] sm:$0xff]  ;;  %s2781_s17 = ssub.s32 (%p3366_p4), 91, %s3461_s14 }
 0x40a   : > { %vm2558_vm13 = vcmp.gt.f32.partialorder %v2451_v21, 0.0  ;;  %v2622_v23 = vmul.f32 0.01, %v2451_v21  ;;  %p2782_p8 = scmp.lt.s32.totalorder (%p3366_p4), %s2781_s17, 64 }
 0x40b   : > { %2082 = vmatmul.f32.gmra.mxu1 %v677_v40 }
 0x40c   : > { %v2686_v48 = vsel %vm2558_vm13, %v2451_v21, %v2622_v23  ;;  %2500 = vmatmul.f32.gmra.mxu3 %v679_v12  ;;  %v2244_v22 = vpop.f32.mrf.mxu2 }
 0x40d   : > { %2751 = vst.msk [vmem:[%s4301_s12 + $0x150] sm:$0xff] %vm2708_vm1, %v2686_v48  ;;  %v2245_v8 = vadd.f32 %v2244_v22, %v2036_v9  ;;  %v4842_v48 = vld [vmem:[#allocation5_spill] sm:$0xff] }
 0x40e   : > { %v1829_v7 = vpop.f32.mrf.mxu0 }
 0x40f   : > { %v1830_v47 = vadd.f32 %v1829_v7, %v4159_v43  ;;  %v2453_v18 = vpop.f32.mrf.mxu3 }
 0x410   : > { %v2454_v6 = vadd.f32 %v2453_v18, %v2245_v8  ;;  %v2038_v49 = vpop.f32.mrf.mxu1 }
 0x411   : > { %1876 = vmatmul.f32.gmra.mxu0 %v684_v14  ;;  %2294 = vmatmul.f32.gmra.mxu2 %v686_v20  ;;  %v2039_v13 = vadd.f32 %v2038_v49, %v1830_v47 }
 0x412   : > { %vm2559_vm14 = vcmp.gt.f32.partialorder %v2454_v6, 0.0  ;;  %v2623_v34 = vmul.f32 0.01, %v2454_v6 }
 0x413   : > { %2085 = vmatmul.f32.gmra.mxu1 %v685_v2 }
 0x414   : > { %v2687_v58 = vsel %vm2559_vm14, %v2454_v6, %v2623_v34  ;;  %2503 = vmatmul.f32.gmra.mxu3 %v687_v62  ;;  %v2247_v0 = vpop.f32.mrf.mxu2  ;;  %v4843_v62 = vld [vmem:[#allocation6_spill] sm:$0xff] }
 0x415   : > { %2752 = vst.msk [vmem:[%s4301_s12 + $0x158] sm:$0xff] %vm2708_vm1, %v2687_v58  ;;  %v2248_v43 = vadd.f32 %v2247_v0, %v2039_v13 }
 0x416   : > { %v1832_v38 = vpop.f32.mrf.mxu0 }
 0x417   : > { %v1833_v61 = vadd.f32 %v1832_v38, %v4166_v16  ;;  %v2456_v30 = vpop.f32.mrf.mxu3 }
 0x418   : > { %v2457_v24 = vadd.f32 %v2456_v30, %v2248_v43  ;;  %v2041_v3 = vpop.f32.mrf.mxu1 }
 0x419   : > { %1879 = vmatmul.f32.gmra.mxu0 %v692_v37  ;;  %2297 = vmatmul.f32.gmra.mxu2 %v694_v42  ;;  %v2042_v28 = vadd.f32 %v2041_v3, %v1833_v61 }
 0x41a   : > { %vm2560_vm15 = vcmp.gt.f32.partialorder %v2457_v24, 0.0  ;;  %v2624_v26 = vmul.f32 0.01, %v2457_v24 }
 0x41b   : > { %2088 = vmatmul.f32.gmra.mxu1 %v693_v57 }
 0x41c   : > { %v2688_v1 = vsel %vm2560_vm15, %v2457_v24, %v2624_v26  ;;  %2506 = vmatmul.f32.gmra.mxu3 %v695_v52  ;;  %v2250_v4 = vpop.f32.mrf.mxu2  ;;  %v4844_v24 = vld [vmem:[#allocation7_spill] sm:$0xff] }
 0x41d   : > { %2753 = vst.msk [vmem:[%s4301_s12 + $0x160] sm:$0xff] %vm2708_vm1, %v2688_v1  ;;  %v2251_v16 = vadd.f32 %v2250_v4, %v2042_v28 }
 0x41e   : > { %v1835_v19 = vpop.f32.mrf.mxu0 }
 0x41f   : > { %v1836_v27 = vadd.f32 %v1835_v19, %v4840_v60  ;;  %v2459_v59 = vpop.f32.mrf.mxu3 }
 0x420   : > { %v2460_v33 = vadd.f32 %v2459_v59, %v2251_v16  ;;  %v2044_v53 = vpop.f32.mrf.mxu1 }
 0x421   : > { %1882 = vmatmul.f32.gmra.mxu0 %v700_v17  ;;  %2300 = vmatmul.f32.gmra.mxu2 %v702_v41  ;;  %v2045_v54 = vadd.f32 %v2044_v53, %v1836_v27  ;;  %v4845_v41 = vld [vmem:[#allocation8_spill] sm:$0xff] }
 0x422   : > { %vm2561_vm0 = vcmp.gt.f32.partialorder %v2460_v33, 0.0  ;;  %v2625_v51 = vmul.f32 0.01, %v2460_v33 }
 0x423   : > { %2091 = vmatmul.f32.gmra.mxu1 %v701_v35 }
 0x424   : > { %v2689_v29 = vsel %vm2561_vm0, %v2460_v33, %v2625_v51  ;;  %2509 = vmatmul.f32.gmra.mxu3 %v703_v63  ;;  %v2253_v50 = vpop.f32.mrf.mxu2 }
 0x425   : > { %2754 = vst.msk [vmem:[%s4301_s12 + $0x168] sm:$0xff] %vm2708_vm1, %v2689_v29  ;;  %v2254_v56 = vadd.f32 %v2253_v50, %v2045_v54  ;;  %v4846_v50 = vld [vmem:[#allocation9_spill] sm:$0xff] }
 0x426   : > { %v1838_v45 = vpop.f32.mrf.mxu0 }
 0x427   : > { %v1839_v32 = vadd.f32 %v1838_v45, %v4841_v39  ;;  %v2462_v25 = vpop.f32.mrf.mxu3 }
 0x428   : > { %v2463_v11 = vadd.f32 %v2462_v25, %v2254_v56  ;;  %v2047_v15 = vpop.f32.mrf.mxu1 }
 0x429   : > { %1885 = vmatmul.f32.gmra.mxu0 %v708_v36  ;;  %2303 = vmatmul.f32.gmra.mxu2 %v710_v46  ;;  %v2048_v55 = vadd.f32 %v2047_v15, %v1839_v32 }
 0x42a   : > { %vm2562_vm2 = vcmp.gt.f32.partialorder %v2463_v11, 0.0  ;;  %v2626_v21 = vmul.f32 0.01, %v2463_v11 }
 0x42b   : > { %2094 = vmatmul.f32.gmra.mxu1 %v709_v44 }
 0x42c   : > { %v2690_v40 = vsel %vm2562_vm2, %v2463_v11, %v2626_v21  ;;  %2512 = vmatmul.f32.gmra.mxu3 %v711_v5  ;;  %v2256_v12 = vpop.f32.mrf.mxu2  ;;  %v4847_v5 = vld [vmem:[#allocation10_spill] sm:$0xff] }
 0x42d   : > { %2755 = vst.msk [vmem:[%s4301_s12 + $0x170] sm:$0xff] %vm2708_vm1, %v2690_v40  ;;  %v2257_v23 = vadd.f32 %v2256_v12, %v2048_v55 }
 0x42e   : > { %v1841_v9 = vpop.f32.mrf.mxu0 }
 0x42f   : > { %v1842_v22 = vadd.f32 %v1841_v9, %v4842_v48  ;;  %v2465_v8 = vpop.f32.mrf.mxu3 }
 0x430   : > { %v2466_v7 = vadd.f32 %v2465_v8, %v2257_v23  ;;  %v2050_v14 = vpop.f32.mrf.mxu1 }
 0x431   : > { %v2051_v47 = vadd.f32 %v2050_v14, %v1842_v22  ;;  %v4848_v14 = vld [vmem:[#allocation11_spill] sm:$0xff] }
 0x432   : > { %vm2563_vm3 = vcmp.gt.f32.partialorder %v2466_v7, 0.0  ;;  %v2627_v20 = vmul.f32 0.01, %v2466_v7 }
 0x434   : > { %v2691_v18 = vsel %vm2563_vm3, %v2466_v7, %v2627_v20  ;;  %v2259_v6 = vpop.f32.mrf.mxu2 }
 0x435   : > { %2756 = vst.msk [vmem:[%s4301_s12 + $0x178] sm:$0xff] %vm2708_vm1, %v2691_v18  ;;  %v2260_v49 = vadd.f32 %v2259_v6, %v2051_v47 }
 0x436   : > { %v1844_v2 = vpop.f32.mrf.mxu0 }
 0x437   : > { %v1845_v34 = vadd.f32 %v1844_v2, %v4843_v62  ;;  %v2468_v13 = vpop.f32.mrf.mxu3 }
 0x438   : > { %v2469_v58 = vadd.f32 %v2468_v13, %v2260_v49  ;;  %v2053_v0 = vpop.f32.mrf.mxu1 }
 0x439   : > { %v2054_v38 = vadd.f32 %v2053_v0, %v1845_v34  ;;  %v4849_v0 = vld [vmem:[#allocation12_spill] sm:$0xff] }
 0x43a   : > { %vm2564_vm4 = vcmp.gt.f32.partialorder %v2469_v58, 0.0  ;;  %v2628_v43 = vmul.f32 0.01, %v2469_v58 }
 0x43c   : > { %v2692_v37 = vsel %vm2564_vm4, %v2469_v58, %v2628_v43  ;;  %v2262_v42 = vpop.f32.mrf.mxu2 }
 0x43d   : > { %2757 = vst.msk [vmem:[%s4301_s12 + $0x180] sm:$0xff] %vm2708_vm1, %v2692_v37  ;;  %v2263_v61 = vadd.f32 %v2262_v42, %v2054_v38 }
 0x43e   : > { %v1847_v30 = vpop.f32.mrf.mxu0 }
 0x43f   : > { %v1848_v3 = vadd.f32 %v1847_v30, %v4844_v24  ;;  %v2471_v57 = vpop.f32.mrf.mxu3 }
 0x440   : > { %v2472_v52 = vadd.f32 %v2471_v57, %v2263_v61  ;;  %v2056_v26 = vpop.f32.mrf.mxu1 }
 0x441   : > { %v2057_v1 = vadd.f32 %v2056_v26, %v1848_v3  ;;  %v4850_v26 = vld [vmem:[#allocation13_spill] sm:$0xff] }
 0x442   : > { %vm2565_vm5 = vcmp.gt.f32.partialorder %v2472_v52, 0.0  ;;  %v2629_v28 = vmul.f32 0.01, %v2472_v52 }
 0x444   : > { %v2693_v4 = vsel %vm2565_vm5, %v2472_v52, %v2629_v28  ;;  %v2265_v16 = vpop.f32.mrf.mxu2 }
 0x445   : > { %2758 = vst.msk [vmem:[%s4301_s12 + $0x188] sm:$0xff] %vm2708_vm1, %v2693_v4  ;;  %v2266_v19 = vadd.f32 %v2265_v16, %v2057_v1 }
 0x446   : > { %v1850_v17 = vpop.f32.mrf.mxu0 }
 0x447   : > { %v1851_v60 = vadd.f32 %v1850_v17, %v4845_v41  ;;  %v2474_v27 = vpop.f32.mrf.mxu3 }
 0x448   : > { %v2475_v59 = vadd.f32 %v2474_v27, %v2266_v19  ;;  %v2059_v33 = vpop.f32.mrf.mxu1 }
 0x449   : > { %v2060_v35 = vadd.f32 %v2059_v33, %v1851_v60  ;;  %v4851_v33 = vld [vmem:[#allocation14_spill] sm:$0xff] }
 0x44a   : > { %vm2566_vm6 = vcmp.gt.f32.partialorder %v2475_v59, 0.0  ;;  %v2630_v53 = vmul.f32 0.01, %v2475_v59 }
 0x44c   : > { %v2694_v63 = vsel %vm2566_vm6, %v2475_v59, %v2630_v53  ;;  %v2268_v51 = vpop.f32.mrf.mxu2 }
 0x44d   : > { %2759 = vst.msk [vmem:[%s4301_s12 + $0x190] sm:$0xff] %vm2708_vm1, %v2694_v63  ;;  %v2269_v54 = vadd.f32 %v2268_v51, %v2060_v35 }
 0x44e   : > { %v1853_v29 = vpop.f32.mrf.mxu0 }
 0x44f   : > { %v1854_v56 = vadd.f32 %v1853_v29, %v4846_v50  ;;  %v2477_v45 = vpop.f32.mrf.mxu3 }
 0x450   : > { %v2478_v36 = vadd.f32 %v2477_v45, %v2269_v54  ;;  %v2062_v46 = vpop.f32.mrf.mxu1 }
 0x451   : > { %v2063_v32 = vadd.f32 %v2062_v46, %v1854_v56  ;;  %v4852_v46 = vld [vmem:[#allocation15_spill] sm:$0xff] }
 0x452   : > { %vm2567_vm7 = vcmp.gt.f32.partialorder %v2478_v36, 0.0  ;;  %v2631_v39 = vmul.f32 0.01, %v2478_v36 }
 0x454   : > { %v2695_v25 = vsel %vm2567_vm7, %v2478_v36, %v2631_v39  ;;  %v2271_v11 = vpop.f32.mrf.mxu2 }
 0x455   : > { %2760 = vst.msk [vmem:[%s4301_s12 + $0x198] sm:$0xff] %vm2708_vm1, %v2695_v25  ;;  %v2272_v15 = vadd.f32 %v2271_v11, %v2063_v32 }
 0x456   : > { %v1856_v44 = vpop.f32.mrf.mxu0 }
 0x457   : > { %v1857_v21 = vadd.f32 %v1856_v44, %v4847_v5  ;;  %v2480_v55 = vpop.f32.mrf.mxu3 }
 0x458   : > { %v2481_v40 = vadd.f32 %v2480_v55, %v2272_v15  ;;  %v2065_v12 = vpop.f32.mrf.mxu1 }
 0x459   : > { %v2066_v9 = vadd.f32 %v2065_v12, %v1857_v21  ;;  %v4853_v12 = vld [vmem:[#allocation16_spill] sm:$0xff] }
 0x45a   : > { %vm2568_vm8 = vcmp.gt.f32.partialorder %v2481_v40, 0.0  ;;  %v2632_v23 = vmul.f32 0.01, %v2481_v40 }
 0x45c   : > { %v2696_v48 = vsel %vm2568_vm8, %v2481_v40, %v2632_v23  ;;  %v2274_v22 = vpop.f32.mrf.mxu2 }
 0x45d   : > { %2761 = vst.msk [vmem:[%s4301_s12 + $0x1a0] sm:$0xff] %vm2708_vm1, %v2696_v48  ;;  %v2275_v8 = vadd.f32 %v2274_v22, %v2066_v9 }
 0x45e   : > { %v1859_v7 = vpop.f32.mrf.mxu0 }
 0x45f   : > { %v1860_v20 = vadd.f32 %v1859_v7, %v4848_v14  ;;  %v2483_v47 = vpop.f32.mrf.mxu3 }
 0x460   : > { %v2484_v18 = vadd.f32 %v2483_v47, %v2275_v8  ;;  %v2068_v6 = vpop.f32.mrf.mxu1 }
 0x461   : > { %v2069_v2 = vadd.f32 %v2068_v6, %v1860_v20  ;;  %v4854_v6 = vld [vmem:[#allocation17_spill] sm:$0xff] }
 0x462   : > { %vm2569_vm9 = vcmp.gt.f32.partialorder %v2484_v18, 0.0  ;;  %v2633_v49 = vmul.f32 0.01, %v2484_v18 }
 0x464   : > { %v2697_v62 = vsel %vm2569_vm9, %v2484_v18, %v2633_v49  ;;  %v2277_v34 = vpop.f32.mrf.mxu2 }
 0x465   : > { %2762 = vst.msk [vmem:[%s4301_s12 + $0x1a8] sm:$0xff] %vm2708_vm1, %v2697_v62  ;;  %v2278_v13 = vadd.f32 %v2277_v34, %v2069_v2 }
 0x466   : > { %v1862_v58 = vpop.f32.mrf.mxu0 }
 0x467   : > { %v1863_v43 = vadd.f32 %v1862_v58, %v4849_v0  ;;  %v2486_v38 = vpop.f32.mrf.mxu3 }
 0x468   : > { %v2487_v37 = vadd.f32 %v2486_v38, %v2278_v13  ;;  %v2071_v42 = vpop.f32.mrf.mxu1 }
 0x469   : > { %v2072_v30 = vadd.f32 %v2071_v42, %v1863_v43  ;;  %v4855_v42 = vld [vmem:[#allocation18_spill] sm:$0xff] }
 0x46a   : > { %vm2570_vm10 = vcmp.gt.f32.partialorder %v2487_v37, 0.0  ;;  %v2634_v61 = vmul.f32 0.01, %v2487_v37 }
 0x46c   : > { %v2698_v24 = vsel %vm2570_vm10, %v2487_v37, %v2634_v61  ;;  %v2280_v3 = vpop.f32.mrf.mxu2 }
 0x46d   : > { %2763 = vst.msk [vmem:[%s4301_s12 + $0x1b0] sm:$0xff] %vm2708_vm1, %v2698_v24  ;;  %v2281_v57 = vadd.f32 %v2280_v3, %v2072_v30 }
 0x46e   : > { %v1865_v52 = vpop.f32.mrf.mxu0 }
 0x46f   : > { %v1866_v28 = vadd.f32 %v1865_v52, %v4850_v26  ;;  %v2489_v1 = vpop.f32.mrf.mxu3 }
 0x470   : > { %v2490_v4 = vadd.f32 %v2489_v1, %v2281_v57  ;;  %v2074_v16 = vpop.f32.mrf.mxu1 }
 0x471   : > { %v2075_v17 = vadd.f32 %v2074_v16, %v1866_v28 }
 0x472   : > { %vm2571_vm11 = vcmp.gt.f32.partialorder %v2490_v4, 0.0  ;;  %v2635_v19 = vmul.f32 0.01, %v2490_v4 }
 0x474   : > { %v2699_v41 = vsel %vm2571_vm11, %v2490_v4, %v2635_v19  ;;  %v2283_v60 = vpop.f32.mrf.mxu2 }
 0x475   : > { %2764 = vst.msk [vmem:[%s4301_s12 + $0x1b8] sm:$0xff] %vm2708_vm1, %v2699_v41  ;;  %v2284_v27 = vadd.f32 %v2283_v60, %v2075_v17 }
 0x476   : > { %v1868_v59 = vpop.f32.mrf.mxu0 }
 0x477   : > { %v1869_v53 = vadd.f32 %v1868_v59, %v4851_v33  ;;  %v2492_v35 = vpop.f32.mrf.mxu3 }
 0x478   : > { %v2493_v63 = vadd.f32 %v2492_v35, %v2284_v27  ;;  %v2077_v51 = vpop.f32.mrf.mxu1 }
 0x479   : > { %v2078_v29 = vadd.f32 %v2077_v51, %v1869_v53 }
 0x47a   : > { %vm2572_vm12 = vcmp.gt.f32.partialorder %v2493_v63, 0.0  ;;  %v2636_v54 = vmul.f32 0.01, %v2493_v63 }
 0x47c   : > { %v2700_v50 = vsel %vm2572_vm12, %v2493_v63, %v2636_v54  ;;  %v2286_v56 = vpop.f32.mrf.mxu2 }
 0x47d   : > { %2765 = vst.msk [vmem:[%s4301_s12 + $0x1c0] sm:$0xff] %vm2708_vm1, %v2700_v50  ;;  %v2287_v45 = vadd.f32 %v2286_v56, %v2078_v29 }
 0x47e   : > { %v1871_v36 = vpop.f32.mrf.mxu0 }
 0x47f   : > { %v1872_v39 = vadd.f32 %v1871_v36, %v4852_v46  ;;  %v2495_v32 = vpop.f32.mrf.mxu3 }
 0x480   : > { %v2496_v25 = vadd.f32 %v2495_v32, %v2287_v45  ;;  %v2080_v11 = vpop.f32.mrf.mxu1 }
 0x481   : > { %v2081_v44 = vadd.f32 %v2080_v11, %v1872_v39 }
 0x482   : > { %vm2573_vm13 = vcmp.gt.f32.partialorder %v2496_v25, 0.0  ;;  %v2637_v15 = vmul.f32 0.01, %v2496_v25 }
 0x484   : > { %v2701_v5 = vsel %vm2573_vm13, %v2496_v25, %v2637_v15  ;;  %v2289_v21 = vpop.f32.mrf.mxu2 }
 0x485   : > { %2766 = vst.msk [vmem:[%s4301_s12 + $0x1c8] sm:$0xff] %vm2708_vm1, %v2701_v5  ;;  %v2290_v55 = vadd.f32 %v2289_v21, %v2081_v44 }
 0x486   : > { %v1874_v40 = vpop.f32.mrf.mxu0 }
 0x487   : > { %v1875_v23 = vadd.f32 %v1874_v40, %v4853_v12  ;;  %v2498_v9 = vpop.f32.mrf.mxu3 }
 0x488   : > { %v2499_v48 = vadd.f32 %v2498_v9, %v2290_v55  ;;  %v2083_v22 = vpop.f32.mrf.mxu1 }
 0x489   : > { %v2084_v7 = vadd.f32 %v2083_v22, %v1875_v23 }
 0x48a   : > { %vm2574_vm14 = vcmp.gt.f32.partialorder %v2499_v48, 0.0  ;;  %v2638_v8 = vmul.f32 0.01, %v2499_v48 }
 0x48c   : > { %v2702_v14 = vsel %vm2574_vm14, %v2499_v48, %v2638_v8  ;;  %v2292_v20 = vpop.f32.mrf.mxu2 }
 0x48d   : > { %2767 = vst.msk [vmem:[%s4301_s12 + $0x1d0] sm:$0xff] %vm2708_vm1, %v2702_v14  ;;  %v2293_v47 = vadd.f32 %v2292_v20, %v2084_v7 }
 0x48e   : > { %v1877_v18 = vpop.f32.mrf.mxu0 }
 0x48f   : > { %v1878_v49 = vadd.f32 %v1877_v18, %v4854_v6  ;;  %v2501_v2 = vpop.f32.mrf.mxu3 }
 0x490   : > { %v2502_v62 = vadd.f32 %v2501_v2, %v2293_v47  ;;  %v2086_v34 = vpop.f32.mrf.mxu1 }
 0x491   : > { %v2087_v58 = vadd.f32 %v2086_v34, %v1878_v49 }
 0x492   : > { %vm2575_vm15 = vcmp.gt.f32.partialorder %v2502_v62, 0.0  ;;  %v2639_v13 = vmul.f32 0.01, %v2502_v62 }
 0x494   : > { %v2703_v0 = vsel %vm2575_vm15, %v2502_v62, %v2639_v13  ;;  %v2295_v43 = vpop.f32.mrf.mxu2 }
 0x495   : > { %2768 = vst.msk [vmem:[%s4301_s12 + $0x1d8] sm:$0xff] %vm2708_vm1, %v2703_v0  ;;  %v2296_v38 = vadd.f32 %v2295_v43, %v2087_v58 }
 0x496   : > { %v1880_v37 = vpop.f32.mrf.mxu0 }
 0x497   : > { %v1881_v61 = vadd.f32 %v1880_v37, %v4855_v42  ;;  %v2504_v30 = vpop.f32.mrf.mxu3 }
 0x498   : > { %v2505_v24 = vadd.f32 %v2504_v30, %v2296_v38  ;;  %v2089_v3 = vpop.f32.mrf.mxu1 }
 0x499   : > { %v2090_v52 = vadd.f32 %v2089_v3, %v1881_v61 }
 0x49a   : > { %vm2576_vm0 = vcmp.gt.f32.partialorder %v2505_v24, 0.0  ;;  %v2640_v57 = vmul.f32 0.01, %v2505_v24 }
 0x49c   : > { %v2704_v26 = vsel %vm2576_vm0, %v2505_v24, %v2640_v57  ;;  %v2298_v28 = vpop.f32.mrf.mxu2 }
 0x49d   : > { %2769 = vst.msk [vmem:[%s4301_s12 + $0x1e0] sm:$0xff] %vm2708_vm1, %v2704_v26  ;;  %v2299_v1 = vadd.f32 %v2298_v28, %v2090_v52 }
 0x49e   : > { %v1883_v4 = vpop.f32.mrf.mxu0 }
 0x49f   : > { %v1884_v16 = vadd.f32 %v1883_v4, %v4284_v10  ;;  %v2507_v19 = vpop.f32.mrf.mxu3 }
 0x4a0   : > { %v2508_v17 = vadd.f32 %v2507_v19, %v2299_v1  ;;  %v2092_v41 = vpop.f32.mrf.mxu1 }
 0x4a1   : > { %v2093_v27 = vadd.f32 %v2092_v41, %v1884_v16 }
 0x4a2   : > { %vm2577_vm2 = vcmp.gt.f32.partialorder %v2508_v17, 0.0  ;;  %v2641_v60 = vmul.f32 0.01, %v2508_v17 }
 0x4a4   : > { %v2705_v59 = vsel %vm2577_vm2, %v2508_v17, %v2641_v60  ;;  %v2301_v33 = vpop.f32.mrf.mxu2 }
 0x4a5   : > { %2770 = vst.msk [vmem:[%s4301_s12 + $0x1e8] sm:$0xff] %vm2708_vm1, %v2705_v59  ;;  %v2302_v53 = vadd.f32 %v2301_v33, %v2093_v27 }
 0x4a6   : > { %v1886_v35 = vpop.f32.mrf.mxu0 }
 0x4a7   : > { %v1887_v63 = vadd.f32 %v1886_v35, %v4291_v31  ;;  %v2510_v51 = vpop.f32.mrf.mxu3 }
 0x4a8   : > { %v2511_v54 = vadd.f32 %v2510_v51, %v2302_v53  ;;  %v2095_v29 = vpop.f32.mrf.mxu1 }
 0x4a9   : > { %v2096_v50 = vadd.f32 %v2095_v29, %v1887_v63 }
 0x4aa   : > { %vm2578_vm3 = vcmp.gt.f32.partialorder %v2511_v54, 0.0  ;;  %v2642_v10 = vmul.f32 0.01, %v2511_v54 }
 0x4ac   : > { %v2706_v56 = vsel %vm2578_vm3, %v2511_v54, %v2642_v10  ;;  %v2304_v45 = vpop.f32.mrf.mxu2 }
 0x4ad   : > { %2771 = vst.msk [vmem:[%s4301_s12 + $0x1f0] sm:$0xff] %vm2708_vm1, %v2706_v56  ;;  %v2305_v36 = vadd.f32 %v2304_v45, %v2096_v50 }
 0x4af   : > { %v2513_v46 = vpop.f32.mrf.mxu3 }
 0x4b0   : > { %v2514_v39 = vadd.f32 %v2513_v46, %v2305_v36 }
 0x4b1   : > { %2779 = sbr.rel (!%p3366_p4) target bundleno = 1270 (0x4f6), region = 36 }
 0x4b2   : > { %vm2579_vm4 = vcmp.gt.f32.partialorder %v2514_v39, 0.0  ;;  %v2643_v32 = vmul.f32 0.01, %v2514_v39 }
 0x4b4   : > { %v2707_v25 = vsel %vm2579_vm4, %v2514_v39, %v2643_v32 }
 0x4b5   : > { %2772 = vst.msk [vmem:[%s4301_s12 + $0x1f8] sm:$0xff] %vm2708_vm1, %v2707_v25 }
 0x4b6   : > { %s4865_s17 = smov (!%p2782_p8, %s2781_s17), 64 }
 0x4b7   : > { %s3123_s18 = sshll.u32 %s4865_s17, 3 }
 0x4b8   : > { %p3126_p9 = scmp.eq.s32.totalorder %s3123_s18, 0 }
 0x4b9   : > { %s4690_s21 = sshrl.u32 (!%p3126_p9), %s4865_s17, 5 }
 0x4ba   : > { %2790 = sbr.rel (%p3126_p9) target bundleno = 1270 (0x4f6), region = 40  ;;  %p3127_p10 = scmp.le.s32.totalorder (!%p3126_p9), %s4690_s21, 0 }
 0x4bf   : > { %3069 = sbr.rel (%p3127_p10) target bundleno = 1253 (0x4e5), region = 116  ;;  %s4856_s15 = smov (!%p3127_p10), %s4684_s11 }
 0x4c0   : > { %s4857_s20 = smov (!%p3127_p10), %s4301_s12  ;;  %s4699_s14 = smov (!%p3127_p10), 0  }
 0x4c1   : > { %s4701_s22 = smov (!%p3127_p10), 0  }
 0x4c4 LB: >> { %v2915_v31 = vld [vmem:[%s3295_s20] sm:$0xff]  ;;  %v2917_v11 = vld [vmem:[%s3295_s20 + $0x8] sm:$0xff]  ;;  %v2919_v15 = vld [vmem:[%s3295_s20 + $0x10] sm:$0xff]  ;;  %s2979_s23 = sadd.s32 1, %s3299_s14  ;;  %s2909_s22 = sadd.s32 1, %s3303_s22   ;;  %s3303_s22 = sphi %s4701_s22, %s2909_s22   ;;  %s3299_s14 = sphi %s4699_s14, %s4860_s14   ;;  %s3295_s20 = sphi %s4857_s20, %s4859_s20   ;;  %s3291_s15 = sphi %s4856_s15, %s4858_s15  }
 0x4c5   : >> { %2916 = vst [vmem:[%s3291_s15] sm:$0xff] %v2915_v31  ;;  %v2921_v44 = vld [vmem:[%s3295_s20 + $0x18] sm:$0xff]  ;;  %p2980_p11 = scmp.ge.s32.totalorder %s2979_s23, %s4690_s21  ;;  %v2923_v5 = vld [vmem:[%s3295_s20 + $0x20] sm:$0xff]  ;;  %v2925_v21 = vld [vmem:[%s3295_s20 + $0x28] sm:$0xff]  ;;  %p2908_p12 = scmp.ge.s32.totalorder %s2909_s22, %s4690_s21 }
 0x4c6   : >> { %2918 = vst [vmem:[%s3291_s15 + $0x8] sm:$0xff] %v2917_v11  ;;  %v2927_v55 = vld [vmem:[%s3295_s20 + $0x30] sm:$0xff]  ;;  %v2929_v40 = vld [vmem:[%s3295_s20 + $0x38] sm:$0xff]  ;;  %v2931_v12 = vld [vmem:[%s3295_s20 + $0x40] sm:$0xff] }
 0x4c7   : >> { %2920 = vst [vmem:[%s3291_s15 + $0x10] sm:$0xff] %v2919_v15  ;;  %s4867_s23 = smov (%p2980_p11, %s2979_s23), 0  ;;  %v2933_v23 = vld [vmem:[%s3295_s20 + $0x48] sm:$0xff]  ;;  %v2935_v9 = vld [vmem:[%s3295_s20 + $0x50] sm:$0xff]  ;;  %v2937_v48 = vld [vmem:[%s3295_s20 + $0x58] sm:$0xff] }
 0x4c8   : >> { %2922 = vst [vmem:[%s3291_s15 + $0x18] sm:$0xff] %v2921_v44  ;;  %s3128_s25 = sshll.u32 %s4867_s23, 8  ;;  %v2939_v22 = vld [vmem:[%s3295_s20 + $0x60] sm:$0xff]  ;;  %v2941_v8 = vld [vmem:[%s3295_s20 + $0x68] sm:$0xff]  ;;  %v2943_v7 = vld [vmem:[%s3295_s20 + $0x70] sm:$0xff]  ;;  %s4860_s14 = smov %s4867_s23 }
 0x4c9   : >> { %2924 = vst [vmem:[%s3291_s15 + $0x20] sm:$0xff] %v2923_v5  ;;  %s4733_s26 = scalar_lea.vmem %s4301_s12, %s3128_s25 [#allocation2]   ;;  %s4736_s24 = scalar_lea.vmem %s4684_s11, %s3128_s25   ;;  %v2945_v14 = vld [vmem:[%s3295_s20 + $0x78] sm:$0xff]  ;;  %v2947_v20 = vld [vmem:[%s3295_s20 + $0x80] sm:$0xff]  ;;  %v2949_v47 = vld [vmem:[%s3295_s20 + $0x88] sm:$0xff] }
 0x4ca   : >> { %2926 = vst [vmem:[%s3291_s15 + $0x28] sm:$0xff] %v2925_v21  ;;  %v2951_v18 = vld [vmem:[%s3295_s20 + $0x90] sm:$0xff]  ;;  %v2953_v6 = vld [vmem:[%s3295_s20 + $0x98] sm:$0xff]  ;;  %v2955_v49 = vld [vmem:[%s3295_s20 + $0xa0] sm:$0xff] }
 0x4cb   : >> { %2928 = vst [vmem:[%s3291_s15 + $0x30] sm:$0xff] %v2927_v55  ;;  %v2957_v2 = vld [vmem:[%s3295_s20 + $0xa8] sm:$0xff]  ;;  %v2959_v62 = vld [vmem:[%s3295_s20 + $0xb0] sm:$0xff]  ;;  %v2961_v34 = vld [vmem:[%s3295_s20 + $0xb8] sm:$0xff] }
 0x4cc   : >> { %2930 = vst [vmem:[%s3291_s15 + $0x38] sm:$0xff] %v2929_v40  ;;  %v2963_v13 = vld [vmem:[%s3295_s20 + $0xc0] sm:$0xff]  ;;  %v2965_v58 = vld [vmem:[%s3295_s20 + $0xc8] sm:$0xff]  ;;  %v2967_v0 = vld [vmem:[%s3295_s20 + $0xd0] sm:$0xff] }
 0x4cd   : >> { %2932 = vst [vmem:[%s3291_s15 + $0x40] sm:$0xff] %v2931_v12  ;;  %v2969_v43 = vld [vmem:[%s3295_s20 + $0xd8] sm:$0xff]  ;;  %v2971_v38 = vld [vmem:[%s3295_s20 + $0xe0] sm:$0xff]  ;;  %v2973_v37 = vld [vmem:[%s3295_s20 + $0xe8] sm:$0xff] }
 0x4ce   : >> { %2934 = vst [vmem:[%s3291_s15 + $0x48] sm:$0xff] %v2933_v23  ;;  %v2975_v42 = vld [vmem:[%s3295_s20 + $0xf0] sm:$0xff]  ;;  %v2977_v61 = vld [vmem:[%s3295_s20 + $0xf8] sm:$0xff]  ;;  %s4859_s20 = smov %s4733_s26 }
 0x4cf   : >> { %2936 = vst [vmem:[%s3291_s15 + $0x50] sm:$0xff] %v2935_v9 }
 0x4d0   : >> { %2938 = vst [vmem:[%s3291_s15 + $0x58] sm:$0xff] %v2937_v48 }
 0x4d1   : >> { %2940 = vst [vmem:[%s3291_s15 + $0x60] sm:$0xff] %v2939_v22 }
 0x4d2   : >> { %2942 = vst [vmem:[%s3291_s15 + $0x68] sm:$0xff] %v2941_v8 }
 0x4d3   : >> { %2944 = vst [vmem:[%s3291_s15 + $0x70] sm:$0xff] %v2943_v7 }
 0x4d4   : >> { %2946 = vst [vmem:[%s3291_s15 + $0x78] sm:$0xff] %v2945_v14 }
 0x4d5   : >> { %2948 = vst [vmem:[%s3291_s15 + $0x80] sm:$0xff] %v2947_v20 }
 0x4d6   : >> { %2950 = vst [vmem:[%s3291_s15 + $0x88] sm:$0xff] %v2949_v47 }
 0x4d7   : >> { %2952 = vst [vmem:[%s3291_s15 + $0x90] sm:$0xff] %v2951_v18 }
 0x4d8   : >> { %2954 = vst [vmem:[%s3291_s15 + $0x98] sm:$0xff] %v2953_v6 }
 0x4d9   : >> { %2956 = vst [vmem:[%s3291_s15 + $0xa0] sm:$0xff] %v2955_v49 }
 0x4da   : >> { %2958 = vst [vmem:[%s3291_s15 + $0xa8] sm:$0xff] %v2957_v2 }
 0x4db   : >> { %2960 = vst [vmem:[%s3291_s15 + $0xb0] sm:$0xff] %v2959_v62 }
 0x4dc   : >> { %2962 = vst [vmem:[%s3291_s15 + $0xb8] sm:$0xff] %v2961_v34 }
 0x4dd   : >> { %2964 = vst [vmem:[%s3291_s15 + $0xc0] sm:$0xff] %v2963_v13 }
 0x4de   : >> { %2966 = vst [vmem:[%s3291_s15 + $0xc8] sm:$0xff] %v2965_v58 }
 0x4df   : >> { %2968 = vst [vmem:[%s3291_s15 + $0xd0] sm:$0xff] %v2967_v0 }
 0x4e0   : >> { %2970 = vst [vmem:[%s3291_s15 + $0xd8] sm:$0xff] %v2969_v43  ;;  %2911 = sbr.rel (!%p2908_p12) target bundleno = 1220 (0x4c4), region = 122 }
 0x4e1   : >> { %2972 = vst [vmem:[%s3291_s15 + $0xe0] sm:$0xff] %v2971_v38 }
 0x4e2   : >> { %2974 = vst [vmem:[%s3291_s15 + $0xe8] sm:$0xff] %v2973_v37 }
 0x4e3   : >> { %2976 = vst [vmem:[%s3291_s15 + $0xf0] sm:$0xff] %v2975_v42 }
 0x4e4   : >> { %2978 = vst [vmem:[%s3291_s15 + $0xf8] sm:$0xff] %v2977_v61  ;;  %s4858_s15 = smov %s4736_s24 }
 0x4e5 PF: > { %s4801_s28 = sand.u32 31, %s4865_s17   ;;  %s3140_s29 = sshll.u32 %s4690_s21, 8 }
 0x4e6   : > { %s2990_s30 = scalar_lea.vmem %s4301_s12, %s3140_s29 [#allocation2]   ;;  %s2992_s4 = scalar_lea.vmem %s4684_s11, %s3140_s29  }
 0x4e7   : > { %p3133_p13 = scmp.le.s32.totalorder %s4801_s28, 0 }
 0x4e8   : > { %s3305_s5 = smov (!%p3133_p13), %s2992_s4   ;;  %s3309_s6 = smov (!%p3133_p13), %s2990_s30  }
 0x4e9   : > { %3083 = sbr.rel (%p3133_p13) target bundleno = 1270 (0x4f6), region = 127  ;;  %s3313_s27 = smov (!%p3133_p13), 0  }
 0x4ea   : > { %s3317_s7 = smov (!%p3133_p13), 0  }
 0x4ee LB: >> { %v3002_v30 = vld [vmem:[%s3311_s6] sm:$0xff]  ;;  %s3004_s17 = sadd.s32 1, %s3315_s27  ;;  %s2996_s7 = sadd.s32 1, %s3319_s7   ;;  %s3319_s7 = sphi %s3317_s7, %s2996_s7   ;;  %s3315_s27 = sphi %s3313_s27, %s3314_s27   ;;  %s3311_s6 = sphi %s3309_s6, %s3009_s6   ;;  %s3307_s5 = sphi %s3305_s5, %s3010_s5  }
 0x4ef   : >> { %3003 = vst [vmem:[%s3307_s5] sm:$0xff] %v3002_v30  ;;  %p3005_p0 = scmp.ge.s32.totalorder %s3004_s17, %s4801_s28  ;;  %p2995_p1 = scmp.ge.s32.totalorder %s2996_s7, %s4801_s28 }
 0x4f1   : >> { %s4869_s17 = smov (%p3005_p0, %s3004_s17), 0  ;;  %2998 = sbr.rel (!%p2995_p1) target bundleno = 1262 (0x4ee), region = 133 }
 0x4f2   : >> { %s3134_s12 = sshll.u32 %s4869_s17, 3  ;;  %s3314_s27 = smov %s4869_s17  }
 0x4f3   : >> { %s3009_s6 = scalar_lea.vmem %s2990_s30, %s3134_s12 [#allocation2]   ;;  %s3010_s5 = scalar_lea.vmem %s2992_s4, %s3134_s12  }
 0x4f6 PF: > { %p10_p2 = scmp.ge.s32.totalorder %s3356_s16, 4   ;;  %s4861_s12 = smov %s3283_s13 }
 0x4f7   : > { %s4862_s13 = smov %s3364_s19  ;;  %s4863_s14 = smov %s3356_s16 }
 0x4f8   :  { %12 = sbr.rel (!%p10_p2) target bundleno = 2 (0x2), region = 144 }

// kernel: forward.10
= control target key start
LH: loop header
LB: loop body
LE: loop exit
PB: predicated region body
PF: predicated region fallthrough
CT: control target
= control target key end

     0   :  { %14 = vsyncpa [#allocation3], 0  ;;  %s700_s0 = inlined_call_operand.vmem [shape: f32[2,400], index: 0, kind: input, shape index: {}]   ;;  %s701_s1 = inlined_call_operand.vmem [shape: f32[400,64], index: 1, kind: input, shape index: {}]   ;;  %s702_s2 = inlined_call_operand.vmem [shape: f32[1,64], index: 2, kind: input, shape index: {}]   ;;  %s703_s3 = inlined_call_operand.vmem [shape: f32[2,32], index: 3, kind: input, shape index: {}]   ;;  %s704_s4 = inlined_call_operand.vmem [shape: f32[32,400], index: 4, kind: input, shape index: {}]   ;;  %s705_s5 = inlined_call_operand.vmem [shape: f32[1,400], index: 5, kind: input, shape index: {}]   ;;  %s706_s6 = inlined_call_operand.hbm [shape: f32[2,32], index: 6, kind: output, shape index: {0}]   ;;  %s707_s7 = inlined_call_operand.hbm [shape: f32[2,32], index: 7, kind: output, shape index: {1}]   ;;  %s708_s8 = inlined_call_operand.vmem [shape: f32[2,400], index: 8, kind: output, shape index: {2}]  }
   0x1   :  { %v76_v0 = vld [vmem:[%s701_s1 + $0x178] sm:$0xff]  ;;  %v75_v2 = vld [vmem:[%s701_s1 + $0x170] sm:$0xff]  ;;  %v74_v5 = vld [vmem:[%s701_s1 + $0x168] sm:$0xff] }
   0x2   :  { %v44_v1 = vld [vmem:[%s701_s1 + $0x78] sm:$0xff]  ;;  %135 = vmatpush.msra.mxu2 %v76_v0  ;;  %v43_v3 = vld [vmem:[%s701_s1 + $0x70] sm:$0xff]  ;;  %v42_v6 = vld [vmem:[%s701_s1 + $0x68] sm:$0xff] }
   0x3   :  { %95 = vmatpush.msra.mxu0 %v44_v1  ;;  %v60_v4 = vld [vmem:[%s701_s1 + $0xf8] sm:$0xff]  ;;  %v59_v7 = vld [vmem:[%s701_s1 + $0xf0] sm:$0xff]  ;;  %v58_v8 = vld [vmem:[%s701_s1 + $0xe8] sm:$0xff] }
   0x4   :  { %115 = vmatpush.msra.mxu1 %v60_v4  ;;  %136 = vmatpush.msra.mxu2 %v75_v2  ;;  %v73_v9 = vld [vmem:[%s701_s1 + $0x160] sm:$0xff]  ;;  %v72_v12 = vld [vmem:[%s701_s1 + $0x158] sm:$0xff]  ;;  %v71_v15 = vld [vmem:[%s701_s1 + $0x150] sm:$0xff] }
   0x5   :  { %96 = vmatpush.msra.mxu0 %v43_v3  ;;  %v41_v10 = vld [vmem:[%s701_s1 + $0x60] sm:$0xff]  ;;  %v40_v13 = vld [vmem:[%s701_s1 + $0x58] sm:$0xff]  ;;  %v39_v16 = vld [vmem:[%s701_s1 + $0x50] sm:$0xff] }
   0x6   :  { %116 = vmatpush.msra.mxu1 %v59_v7  ;;  %137 = vmatpush.msra.mxu2 %v74_v5  ;;  %v57_v11 = vld [vmem:[%s701_s1 + $0xe0] sm:$0xff]  ;;  %v56_v14 = vld [vmem:[%s701_s1 + $0xd8] sm:$0xff]  ;;  %v55_v17 = vld [vmem:[%s701_s1 + $0xd0] sm:$0xff] }
   0x7   :  { %97 = vmatpush.msra.mxu0 %v42_v6  ;;  %v70_v18 = vld [vmem:[%s701_s1 + $0x148] sm:$0xff]  ;;  %v69_v21 = vld [vmem:[%s701_s1 + $0x140] sm:$0xff]  ;;  %v68_v24 = vld [vmem:[%s701_s1 + $0x138] sm:$0xff] }
   0x8   :  { %117 = vmatpush.msra.mxu1 %v58_v8  ;;  %138 = vmatpush.msra.mxu2 %v73_v9  ;;  %v38_v19 = vld [vmem:[%s701_s1 + $0x48] sm:$0xff]  ;;  %v37_v22 = vld [vmem:[%s701_s1 + $0x40] sm:$0xff]  ;;  %v36_v25 = vld [vmem:[%s701_s1 + $0x38] sm:$0xff] }
   0x9   :  { %98 = vmatpush.msra.mxu0 %v41_v10  ;;  %v54_v20 = vld [vmem:[%s701_s1 + $0xc8] sm:$0xff]  ;;  %v53_v23 = vld [vmem:[%s701_s1 + $0xc0] sm:$0xff]  ;;  %v52_v26 = vld [vmem:[%s701_s1 + $0xb8] sm:$0xff] }
   0xa   :  { %118 = vmatpush.msra.mxu1 %v57_v11  ;;  %139 = vmatpush.msra.mxu2 %v72_v12  ;;  %v78_v27 = vld [vmem:[%s701_s1 + $0x188] sm:$0xff]  ;;  %v28_v28 = vld [vmem:[%s700_s0] sm:$0xff]  ;;  %v67_v29 = vld [vmem:[%s701_s1 + $0x130] sm:$0xff] }
   0xb   :  { %99 = vmatpush.msra.mxu0 %v40_v13  ;;  %v35_v30 = vld [vmem:[%s701_s1 + $0x30] sm:$0xff]  ;;  %169 = vmatpush.msra.mxu3 %v78_v27  ;;  %84 = vst [vmem:[#allocation1] ss:$4 sm:$0xff] %v28_v28  ;;  %v77_v31 = vld [vmem:[%s701_s1 + $0x180] sm:$0xff] }
   0xc   :  { %119 = vmatpush.msra.mxu1 %v56_v14  ;;  %140 = vmatpush.msra.mxu2 %v71_v15  ;;  %v51_v32 = vld [vmem:[%s701_s1 + $0xb0] sm:$0xff] }
   0xd   :  { %100 = vmatpush.msra.mxu0 %v39_v16 }
   0xe   :  { %120 = vmatpush.msra.mxu1 %v55_v17  ;;  %141 = vmatpush.msra.mxu2 %v70_v18 }
   0xf   :  { %101 = vmatpush.msra.mxu0 %v38_v19 }
  0x10   :  { %121 = vmatpush.msra.mxu1 %v54_v20  ;;  %142 = vmatpush.msra.mxu2 %v69_v21 }
  0x11   :  { %102 = vmatpush.msra.mxu0 %v37_v22 }
  0x12   :  { %122 = vmatpush.msra.mxu1 %v53_v23  ;;  %143 = vmatpush.msra.mxu2 %v68_v24 }
  0x13   :  { %103 = vmatpush.msra.mxu0 %v36_v25 }
  0x14   :  { %15 = vsyncpa [#allocation5], 0  ;;  %123 = vmatpush.msra.mxu1 %v52_v26  ;;  %v66_v33 = vld [vmem:[%s701_s1 + $0x128] sm:$0xff]  ;;  %170 = vmatpush.msra.mxu3 %v77_v31  ;;  %v65_v36 = vld [vmem:[%s701_s1 + $0x120] sm:$0xff]  ;;  %vm92_vm0 = vcmask 130048   ;;  %vm175_vm1 = vcmask 254976  }
  0x15   :  { %v34_v34 = vld [vmem:[%s701_s1 + $0x28] sm:$0xff]  ;;  %144 = vmatpush.msra.mxu2 %v67_v29  ;;  %104 = vmatpush.msra.mxu0 %v35_v30  ;;  %v33_v37 = vld [vmem:[%s701_s1 + $0x20] sm:$0xff]  ;;  %v64_v39 = vld [vmem:[%s701_s1 + $0x118] sm:$0xff]  ;;  %vm218_vm2 = vcmask 261120   ;;  %s426_s26 = smov [#allocation2]   ;;  %s333_s29 = sshll.u32 %s706_s6, 4  ;;  %s334_s29 = int_to_ptr.hbm [resolvable:$true] %s333_s29 }
  0x16   :  { %v50_v35 = vld [vmem:[%s701_s1 + $0xa8] sm:$0xff]  ;;  %124 = vmatpush.msra.mxu1 %v51_v32  ;;  %v49_v38 = vld [vmem:[%s701_s1 + $0xa0] sm:$0xff]  ;;  %v32_v40 = vld [vmem:[%s701_s1 + $0x18] sm:$0xff]  ;;  %s331_s0 = sshll.u32 %s426_s26, 4  ;;  %s427_s30 = smov [#allocation4]   ;;  %vm320_vm3 = vcmask 1043458   ;;  %s332_s0 = int_to_ptr.vmem [resolvable:$true] %s331_s0 }
  0x17   :  { %145 = vmatpush.msra.mxu2 %v66_v33  ;;  %105 = vmatpush.msra.mxu0 %v34_v34  ;;  %v48_v41 = vld [vmem:[%s701_s1 + $0x98] sm:$0xff]  ;;  %v63_v42 = vld [vmem:[%s701_s1 + $0x110] sm:$0xff]  ;;  %v62_v46 = vld [vmem:[%s701_s1 + $0x108] sm:$0xff]  ;;  %s342_s9 = sshll.u32 %s427_s30, 4  ;;  %vm313_vm4 = vcmask 1041408   ;;  %vm315_vm6 = vcmask 1045508   ;;  %s343_s9 = int_to_ptr.vmem [resolvable:$true] %s342_s9 }
  0x18   :  { %125 = vmatpush.msra.mxu1 %v50_v35  ;;  %v31_v43 = vld [vmem:[%s701_s1 + $0x10] sm:$0xff]  ;;  %v88_v44 = vld.sshfl [vmem:[#allocation1 + $0x18] sm:$0xff pattern:$0x73625140]  ;;  %v30_v47 = vld [vmem:[%s701_s1 + $0x8] sm:$0xff]  ;;  %vm323_vm8 = vcmask 130054  }
  0x19   :  { %146 = vmatpush.msra.mxu2 %v65_v36  ;;  %106 = vmatpush.msra.mxu0 %v33_v37  ;;  %v47_v45 = vld [vmem:[%s701_s1 + $0x90] sm:$0xff]  ;;  %v46_v48 = vld [vmem:[%s701_s1 + $0x88] sm:$0xff]  ;;  %v61_v49 = vld [vmem:[%s701_s1 + $0x100] sm:$0xff]  ;;  %vm317_vm9 = vcmask 1043456  }
  0x1a   :  { %126 = vmatpush.msra.mxu1 %v49_v38  ;;  %362 = vmatmul.msk.f32.vlgmr.msra.gmra.mxu3 %vm92_vm0, %v88_v44  ;;  %v29_v50 = vld [vmem:[%s701_s1] sm:$0xff]  ;;  %v87_v51 = vld.sshfl [vmem:[#allocation1 + $0x10] sm:$0xff pattern:$0x73625140]  ;;  %v205_v7 = vld [vmem:[%s704_s4 + $0x68] sm:$0xff] }
  0x1b   :  { %147 = vmatpush.msra.mxu2 %v64_v39  ;;  %107 = vmatpush.msra.mxu0 %v32_v40  ;;  %v85_v52 = vld.sshfl [vmem:[#allocation1] sm:$0xff pattern:$0x73625140]  ;;  %v86_v54 = vld.sshfl [vmem:[#allocation1 + $0x8] sm:$0xff pattern:$0x73625140]  ;;  %vm321_vm5 = vmor %vm320_vm3, %vm313_vm4 }
  0x1c   :  { %127 = vmatpush.msra.mxu1 %v48_v41  ;;  %v45_v53 = vld [vmem:[%s701_s1 + $0x80] sm:$0xff]  ;;  %s425_s1 = smov 96   ;;  %v201_v8 = vld [vmem:[%s704_s4 + $0x48] sm:$0xff]  ;;  %v206_v15 = vld [vmem:[%s704_s4 + $0x70] sm:$0xff] }
  0x1d   :  { %148 = vmatpush.msra.mxu2 %v63_v42  ;;  %108 = vmatpush.msra.mxu0 %v31_v43  ;;  %v370_v55 = vld [vmem:[%s702_s2] ss:$0 sm:$0xff]  ;;  %v197_v9 = vld [vmem:[%s704_s4 + $0x28] sm:$0xff]  ;;  %v202_v16 = vld [vmem:[%s704_s4 + $0x50] sm:$0xff] }
  0x1e   :  { %128 = vmatpush.msra.mxu1 %v47_v45  ;;  %v204_v56 = vld [vmem:[%s704_s4 + $0x60] sm:$0xff]  ;;  %v193_v10 = vld [vmem:[%s704_s4 + $0x8] sm:$0xff]  ;;  %v198_v17 = vld [vmem:[%s704_s4 + $0x30] sm:$0xff] }
  0x1f   :  { %149 = vmatpush.msra.mxu2 %v62_v46  ;;  %109 = vmatpush.msra.mxu0 %v30_v47  ;;  %v200_v57 = vld [vmem:[%s704_s4 + $0x40] sm:$0xff]  ;;  %v194_v19 = vld [vmem:[%s704_s4 + $0x10] sm:$0xff]  ;;  %v207_v20 = vld [vmem:[%s704_s4 + $0x78] sm:$0xff] }
  0x20   :  { %129 = vmatpush.msra.mxu1 %v46_v48  ;;  %234 = vmatpush.msrb.mxu3 %v204_v56  ;;  %v196_v5 = vld [vmem:[%s704_s4 + $0x20] sm:$0xff]  ;;  %v203_v21 = vld [vmem:[%s704_s4 + $0x58] sm:$0xff]  ;;  %vm322_vm7 = vmor %vm315_vm6, %vm321_vm5 }
  0x21   :  { %150 = vmatpush.msra.mxu2 %v61_v49  ;;  %110 = vmatpush.msra.mxu0 %v29_v50  ;;  %v192_v6 = vld [vmem:[%s704_s4] sm:$0xff]  ;;  %v199_v22 = vld [vmem:[%s704_s4 + $0x38] sm:$0xff]  ;;  %vm324_vm10 = vmor %vm323_vm8, %vm322_vm7 }
  0x22   :  { %151 = vmatmul.f32.vlgmr.msra.gmra.mxu2 %v87_v51  ;;  %111 = vmatmul.f32.vlgmr.msra.gmra.mxu0 %v85_v52  ;;  %v182_v11 = vld [vmem:[%s703_s3] sm:$0x3]  ;;  %v195_v23 = vld [vmem:[%s704_s4 + $0x18] sm:$0xff]  ;;  %s344_s4 = sshll.u32 %s707_s7, 4  ;;  %s345_s4 = int_to_ptr.hbm [resolvable:$true] %s344_s4 }
  0x23   :  { %130 = vmatpush.msra.mxu1 %v45_v53  ;;  %235 = vmatpush.msrb.mxu3 %v200_v57  ;;  %v208_v26 = vld [vmem:[%s705_s5] sm:$0xf] }
  0x24   :  { %131 = vmatmul.f32.vlgmr.msra.gmra.mxu1 %v86_v54  ;;  %v211_v27 = vperm.slane %v208_v26, 1  ;;  %v212_v29 = vperm.slane %v208_v26, 2  ;;  %v210_v31 = vperm.slane %v208_v26, 0  ;;  %v213_v33 = vperm.slane %v208_v26, 3 }
  0x25   :  { %236 = vmatpush.msrb.mxu3 %v196_v5 }
  0x27   :  { %237 = vmatpush.msrb.mxu3 %v192_v6 }
  0x29   :  { %254 = vmatpush.msra.mxu3 %v205_v7 }
  0x2b   :  { %255 = vmatpush.msra.mxu3 %v201_v8 }
  0x2d   :  { %256 = vmatpush.msra.mxu3 %v197_v9 }
  0x2f   :  { %257 = vmatpush.msra.mxu3 %v193_v10 }
  0x9d   :  { %v172_v63 = vpop.f32.mrf.mxu3 }
  0x9f   :  { %v112_v58 = vpop.f32.mrf.mxu0 }
  0xa0   :  { %v113_v59 = vadd.f32 %v370_v55, %v112_v58 }
  0xa1   :  { %v132_v60 = vpop.f32.mrf.mxu1 }
  0xa2   :  { %v133_v61 = vadd.f32 %v132_v60, %v113_v59 }
  0xa5   :  { %v152_v62 = vpop.f32.mrf.mxu2 }
  0xa6   :  { %v153_v0 = vadd.f32 %v152_v62, %v133_v61 }
  0xa8   :  { %v173_v1 = vadd.f32 %v172_v63, %v153_v0 }
  0xaa   :  { %v183_v2 = vmul.f32 0.5, %v173_v1  ;;  %176 = vst.msk [vmem:[#allocation2] sm:$0x3] %vm175_vm1, %v173_v1 }
  0xab   :  { %336 = dma.vmem_to_hbm [thread:$0]  %s332_s0, 32, %s334_s29, [#allocation3]  }
  0xac   :  { %v184_v3 = vmul.f32 1.442695, %v183_v2 }
  0xae   :  { %371 = vpow2.f32 %v184_v3 }
  0xb4   :  { %v372_v4 = vpop.eup %371 }
  0xb5   :  { %187 = vrot.lane.b32.xlu0 %v372_v4, %s425_s1 }
  0xbd   :  { %178 = vrot.lane.b32.xlu0 %v173_v1, %s425_s1 }
 0x127   :  { %v188_v12 = vpop.permute.xlu0 %187 }
 0x128   :  { %v190_v13 = vmul.f32 %v188_v12, %v182_v11 }
 0x12a   :  { %v191_v14 = vadd.f32 %v190_v13, %v173_v1 }
 0x12c   :  { %363 = vmatmul.msk.f32.vlgmr.msrb.gmra.mxu3 %vm218_vm2, %v191_v14 }
 0x12d   :  { %274 = vmatpush.msrb.mxu3 %v206_v15 }
 0x12f   :  { %v179_v18 = vpop.permute.xlu0 %178  ;;  %275 = vmatpush.msrb.mxu3 %v202_v16 }
 0x130   :  { %181 = vst.msk [vmem:[#allocation4] sm:$0x3] %vm175_vm1, %v179_v18 }
 0x131   :  { %276 = vmatpush.msrb.mxu3 %v198_v17  ;;  %347 = dma.vmem_to_hbm [thread:$0]  %s343_s9, 32, %s345_s4, [#allocation5]  }
 0x133   :  { %277 = vmatpush.msrb.mxu3 %v194_v19 }
 0x134   :  { %364 = vmatmul.msk.f32.vlgmr.msra.gmra.mxu3 %vm218_vm2, %v191_v14 }
 0x135   :  { %294 = vmatpush.msra.mxu3 %v207_v20 }
 0x137   :  { %295 = vmatpush.msra.mxu3 %v203_v21 }
 0x139   :  { %296 = vmatpush.msra.mxu3 %v199_v22 }
 0x13b   :  { %297 = vmatpush.msra.mxu3 %v195_v23 }
 0x13c   :  { %365 = vmatmul.msk.f32.vlgmr.msrb.gmra.mxu3 %vm218_vm2, %v191_v14 }
 0x144   :  { %366 = vmatmul.msk.f32.vlgmr.msra.gmra.mxu3 %vm218_vm2, %v191_v14 }
 0x1af   :  { %v239_v24 = vpop.f32.mrf.mxu3 }
 0x1b0   :  { %v240_v36 = vadd.f32 %v239_v24, %v210_v31 }
 0x1b2   :  { %v302_v41 = vmax.f32 %v240_v36, 0.0 }
 0x1b7   :  { %v259_v25 = vpop.f32.mrf.mxu3 }
 0x1b8   :  { %v260_v30 = vadd.f32 %v259_v25, %v211_v27 }
 0x1ba   :  { %v303_v34 = vmax.f32 %v260_v30, 0.0 }
 0x1bc   :  { %v310_v39 = vrot.slane %v303_v34, 6 }
 0x1be   :  { %v314_v44 = vsel %vm313_vm4, %v302_v41, %v310_v39 }
 0x1bf   :  { %v279_v28 = vpop.f32.mrf.mxu3 }
 0x1c0   :  { %v280_v32 = vadd.f32 %v279_v28, %v212_v29 }
 0x1c2   :  { %v304_v37 = vmax.f32 %v280_v32, 0.0 }
 0x1c4   :  { %v311_v42 = vrot.slane %v304_v37, 4 }
 0x1c7   :  { %v299_v35 = vpop.f32.mrf.mxu3 }
 0x1c8   :  { %v300_v38 = vadd.f32 %v299_v35, %v213_v33 }
 0x1ca   :  { %v305_v40 = vmax.f32 %v300_v38, 0.0 }
 0x1cc   :  { %v312_v43 = vrot.slane %v305_v40, 2 }
 0x1ce   :  { %v316_v45 = vsel %vm315_vm6, %v311_v42, %v312_v43 }
 0x1cf   :  { %v318_v46 = vsel %vm317_vm9, %v314_v44, %v316_v45 }
 0x1d0   :  { %325 = vst.msk [vmem:[%s708_s8] sm:$0xff] %vm324_vm10, %v318_v46 }
 0x1d1   :  { %421 = dma.done.wait [#allocation3], 32  }
 0x1d2   :  { %422 = vsyncadd [#allocation3], 4294967264 }
 0x1d3   :  { %423 = dma.done.wait [#allocation5], 32  }
 0x1d4   :  { %424 = vsyncadd [#allocation5], 4294967264 }
 0x1d5   :  { %360 = vsyncpa [#allocation3], 1 }
 0x1d6   :  { %361 = vsyncpa [#allocation5], 1 }

// kernel: forward.9
= control target key start
LH: loop header
LB: loop body
LE: loop exit
PB: predicated region body
PF: predicated region fallthrough
CT: control target
= control target key end

     0   :  { %vm215_vm0 = vcmask 523264   ;;  %vm751_vm1 = vcmask 31744   ;;  %s1696_s1 = inlined_call_operand.vmem [shape: f32[576,4], index: 1, kind: input, shape index: {}]   ;;  %s1697_s0 = inlined_call_operand.vmem [shape: f32[200,576], index: 0, kind: input, shape index: {}]   ;;  %s1698_s2 = inlined_call_operand.vmem [shape: f32[1,4], index: 2, kind: input, shape index: {}]   ;;  %s1699_s3 = inlined_call_operand.vmem [shape: f32[200,4], index: 3, kind: output, shape index: {}]  }
   0x1   :  { %v154_v0 = vld [vmem:[%s1696_s1 + $0x78] sm:$0xff]  ;;  %v153_v1 = vld [vmem:[%s1696_s1 + $0x70] sm:$0xff]  ;;  %v152_v2 = vld [vmem:[%s1696_s1 + $0x68] sm:$0xff] }
   0x2   :  { %806 = vmatpush.msra.mxu1 %v154_v0  ;;  %808 = vmatpush.msra.mxu3 %v154_v0  ;;  %v151_v3 = vld [vmem:[%s1696_s1 + $0x60] sm:$0xff]  ;;  %v150_v4 = vld [vmem:[%s1696_s1 + $0x58] sm:$0xff]  ;;  %v149_v5 = vld [vmem:[%s1696_s1 + $0x50] sm:$0xff] }
   0x3   :  { %291 = vmatpush.msra.mxu0 %v154_v0  ;;  %807 = vmatpush.msra.mxu2 %v154_v0  ;;  %v148_v6 = vld [vmem:[%s1696_s1 + $0x48] sm:$0xff]  ;;  %v147_v7 = vld [vmem:[%s1696_s1 + $0x40] sm:$0xff]  ;;  %v146_v8 = vld [vmem:[%s1696_s1 + $0x38] sm:$0xff] }
   0x4   :  { %809 = vmatpush.msra.mxu1 %v153_v1  ;;  %811 = vmatpush.msra.mxu3 %v153_v1  ;;  %v145_v9 = vld [vmem:[%s1696_s1 + $0x30] sm:$0xff]  ;;  %v144_v10 = vld [vmem:[%s1696_s1 + $0x28] sm:$0xff]  ;;  %v143_v11 = vld [vmem:[%s1696_s1 + $0x20] sm:$0xff] }
   0x5   :  { %292 = vmatpush.msra.mxu0 %v153_v1  ;;  %810 = vmatpush.msra.mxu2 %v153_v1  ;;  %v142_v12 = vld [vmem:[%s1696_s1 + $0x18] sm:$0xff]  ;;  %v141_v13 = vld [vmem:[%s1696_s1 + $0x10] sm:$0xff]  ;;  %v140_v14 = vld [vmem:[%s1696_s1 + $0x8] sm:$0xff] }
   0x6   :  { %812 = vmatpush.msra.mxu1 %v152_v2  ;;  %814 = vmatpush.msra.mxu3 %v152_v2  ;;  %v139_v15 = vld [vmem:[%s1696_s1] sm:$0xff]  ;;  %v49_v16 = vld [vmem:[%s1697_s0 + $0x118] sm:$0xff]  ;;  %v104_v17 = vld [vmem:[%s1697_s0 + $0x2d0] sm:$0xff] }
   0x7   :  { %293 = vmatpush.msra.mxu0 %v152_v2  ;;  %813 = vmatpush.msra.mxu2 %v152_v2  ;;  %v202_v18 = vld [vmem:[%s1696_s1 + $0x1f8] sm:$0xff]  ;;  %v201_v20 = vld [vmem:[%s1696_s1 + $0x1f0] sm:$0xff]  ;;  %v14_v22 = vld [vmem:[%s1697_s0] sm:$0xff] }
   0x8   :  { %815 = vmatpush.msra.mxu1 %v151_v3  ;;  %817 = vmatpush.msra.mxu3 %v151_v3  ;;  %v170_v19 = vld [vmem:[%s1696_s1 + $0xf8] sm:$0xff]  ;;  %v169_v21 = vld [vmem:[%s1696_s1 + $0xf0] sm:$0xff]  ;;  %v200_v24 = vld [vmem:[%s1696_s1 + $0x1e8] sm:$0xff] }
   0x9   :  { %294 = vmatpush.msra.mxu0 %v151_v3  ;;  %816 = vmatpush.msra.mxu2 %v151_v3  ;;  %v84_v23 = vld [vmem:[%s1697_s0 + $0x230] sm:$0xff]  ;;  %v210_v25 = vld [vmem:[%s1696_s1 + $0x238] sm:$0xff]  ;;  %v168_v26 = vld [vmem:[%s1696_s1 + $0xe8] sm:$0xff] }
   0xa   :  { %818 = vmatpush.msra.mxu1 %v150_v4  ;;  %820 = vmatpush.msra.mxu3 %v150_v4  ;;  %v186_v27 = vld [vmem:[%s1696_s1 + $0x178] sm:$0xff]  ;;  %v199_v28 = vld [vmem:[%s1696_s1 + $0x1e0] sm:$0xff]  ;;  %v209_v29 = vld [vmem:[%s1696_s1 + $0x230] sm:$0xff] }
   0xb   :  { %295 = vmatpush.msra.mxu0 %v150_v4  ;;  %819 = vmatpush.msra.mxu2 %v150_v4  ;;  %v54_v30 = vld [vmem:[%s1697_s0 + $0x140] sm:$0xff]  ;;  %v109_v31 = vld [vmem:[%s1697_s0 + $0x2f8] sm:$0xff]  ;;  %v208_v34 = vld [vmem:[%s1696_s1 + $0x228] sm:$0xff] }
   0xc   :  { %821 = vmatpush.msra.mxu1 %v149_v5  ;;  %823 = vmatpush.msra.mxu3 %v149_v5  ;;  %v167_v32 = vld [vmem:[%s1696_s1 + $0xe0] sm:$0xff]  ;;  %v198_v33 = vld [vmem:[%s1696_s1 + $0x1d8] sm:$0xff]  ;;  %v185_v35 = vld [vmem:[%s1696_s1 + $0x170] sm:$0xff] }
   0xd   :  { %296 = vmatpush.msra.mxu0 %v149_v5  ;;  %822 = vmatpush.msra.mxu2 %v149_v5  ;;  %v166_v36 = vld [vmem:[%s1696_s1 + $0xd8] sm:$0xff]  ;;  %v197_v37 = vld [vmem:[%s1696_s1 + $0x1d0] sm:$0xff]  ;;  %v19_v38 = vld [vmem:[%s1697_s0 + $0x28] sm:$0xff] }
   0xe   :  { %824 = vmatpush.msra.mxu1 %v148_v6  ;;  %826 = vmatpush.msra.mxu3 %v148_v6  ;;  %v184_v39 = vld [vmem:[%s1696_s1 + $0x168] sm:$0xff]  ;;  %v165_v40 = vld [vmem:[%s1696_s1 + $0xd0] sm:$0xff]  ;;  %v183_v42 = vld [vmem:[%s1696_s1 + $0x160] sm:$0xff] }
   0xf   :  { %297 = vmatpush.msra.mxu0 %v148_v6  ;;  %825 = vmatpush.msra.mxu2 %v148_v6  ;;  %v196_v41 = vld [vmem:[%s1696_s1 + $0x1c8] sm:$0xff]  ;;  %v207_v43 = vld [vmem:[%s1696_s1 + $0x220] sm:$0xff]  ;;  %v89_v49 = vld [vmem:[%s1697_s0 + $0x258] sm:$0xff] }
  0x10   :  { %827 = vmatpush.msra.mxu1 %v147_v7  ;;  %829 = vmatpush.msra.mxu3 %v147_v7  ;;  %v164_v44 = vld [vmem:[%s1696_s1 + $0xc8] sm:$0xff]  ;;  %v195_v45 = vld [vmem:[%s1696_s1 + $0x1c0] sm:$0xff]  ;;  %v194_v50 = vld [vmem:[%s1696_s1 + $0x1b8] sm:$0xff] }
  0x11   :  { %298 = vmatpush.msra.mxu0 %v147_v7  ;;  %828 = vmatpush.msra.mxu2 %v147_v7  ;;  %v59_v46 = vld [vmem:[%s1697_s0 + $0x168] sm:$0xff]  ;;  %v114_v47 = vld [vmem:[%s1697_s0 + $0x320] sm:$0xff]  ;;  %v182_v51 = vld [vmem:[%s1696_s1 + $0x158] sm:$0xff] }
  0x12   :  { %830 = vmatpush.msra.mxu1 %v146_v8  ;;  %832 = vmatpush.msra.mxu3 %v146_v8  ;;  %v163_v48 = vld [vmem:[%s1696_s1 + $0xc0] sm:$0xff]  ;;  %v162_v52 = vld [vmem:[%s1696_s1 + $0xb8] sm:$0xff]  ;;  %v24_v54 = vld [vmem:[%s1697_s0 + $0x50] sm:$0xff] }
  0x13   :  { %299 = vmatpush.msra.mxu0 %v146_v8  ;;  %831 = vmatpush.msra.mxu2 %v146_v8  ;;  %v206_v53 = vld [vmem:[%s1696_s1 + $0x218] sm:$0xff]  ;;  %v181_v55 = vld [vmem:[%s1696_s1 + $0x150] sm:$0xff]  ;;  %v180_v58 = vld [vmem:[%s1696_s1 + $0x148] sm:$0xff] }
  0x14   :  { %833 = vmatpush.msra.mxu1 %v145_v9  ;;  %835 = vmatpush.msra.mxu3 %v145_v9  ;;  %v193_v56 = vld [vmem:[%s1696_s1 + $0x1b0] sm:$0xff]  ;;  %v192_v60 = vld [vmem:[%s1696_s1 + $0x1a8] sm:$0xff]  ;;  %v179_v0 = vld [vmem:[%s1696_s1 + $0x140] sm:$0xff] }
  0x15   :  { %300 = vmatpush.msra.mxu0 %v145_v9  ;;  %834 = vmatpush.msra.mxu2 %v145_v9  ;;  %v161_v57 = vld [vmem:[%s1696_s1 + $0xb0] sm:$0xff]  ;;  %v160_v61 = vld [vmem:[%s1696_s1 + $0xa8] sm:$0xff]  ;;  %v191_v1 = vld [vmem:[%s1696_s1 + $0x1a0] sm:$0xff] }
  0x16   :  { %836 = vmatpush.msra.mxu1 %v144_v10  ;;  %838 = vmatpush.msra.mxu3 %v144_v10  ;;  %v205_v59 = vld [vmem:[%s1696_s1 + $0x210] sm:$0xff]  ;;  %v119_v63 = vld [vmem:[%s1697_s0 + $0x348] sm:$0xff]  ;;  %v94_v2 = vld [vmem:[%s1697_s0 + $0x280] sm:$0xff] }
  0x17   :  { %301 = vmatpush.msra.mxu0 %v144_v10  ;;  %837 = vmatpush.msra.mxu2 %v144_v10  ;;  %v64_v62 = vld [vmem:[%s1697_s0 + $0x190] sm:$0xff]  ;;  %v159_v3 = vld [vmem:[%s1696_s1 + $0xa0] sm:$0xff]  ;;  %v178_v4 = vld [vmem:[%s1696_s1 + $0x138] sm:$0xff] }
  0x18   :  { %839 = vmatpush.msra.mxu1 %v143_v11  ;;  %841 = vmatpush.msra.mxu3 %v143_v11  ;;  %v190_v5 = vld [vmem:[%s1696_s1 + $0x198] sm:$0xff]  ;;  %v177_v8 = vld [vmem:[%s1696_s1 + $0x130] sm:$0xff] }
  0x19   :  { %302 = vmatpush.msra.mxu0 %v143_v11  ;;  %840 = vmatpush.msra.mxu2 %v143_v11  ;;  %v29_v6 = vld [vmem:[%s1697_s0 + $0x78] sm:$0xff]  ;;  %v189_v9 = vld [vmem:[%s1696_s1 + $0x190] sm:$0xff]  ;;  %v204_v11 = vld [vmem:[%s1696_s1 + $0x208] sm:$0xff] }
  0x1a   :  { %842 = vmatpush.msra.mxu1 %v142_v12  ;;  %844 = vmatpush.msra.mxu3 %v142_v12  ;;  %v158_v7 = vld [vmem:[%s1696_s1 + $0x98] sm:$0xff]  ;;  %v157_v10 = vld [vmem:[%s1696_s1 + $0x90] sm:$0xff] }
  0x1b   :  { %303 = vmatpush.msra.mxu0 %v142_v12  ;;  %843 = vmatpush.msra.mxu2 %v142_v12  ;;  %v176_v12 = vld [vmem:[%s1696_s1 + $0x128] sm:$0xff] }
  0x1c   :  { %845 = vmatpush.msra.mxu1 %v141_v13  ;;  %847 = vmatpush.msra.mxu3 %v141_v13 }
  0x1d   :  { %304 = vmatpush.msra.mxu0 %v141_v13  ;;  %846 = vmatpush.msra.mxu2 %v141_v13  ;;  %v188_v13 = vld [vmem:[%s1696_s1 + $0x188] sm:$0xff] }
  0x1e   :  { %848 = vmatpush.msra.mxu1 %v140_v14  ;;  %850 = vmatpush.msra.mxu3 %v140_v14 }
  0x1f   :  { %305 = vmatpush.msra.mxu0 %v140_v14  ;;  %849 = vmatpush.msra.mxu2 %v140_v14  ;;  %v69_v14 = vld [vmem:[%s1697_s0 + $0x1b8] sm:$0xff] }
  0x20   :  { %851 = vmatpush.msra.mxu1 %v139_v15  ;;  %853 = vmatpush.msra.mxu3 %v139_v15 }
  0x21   :  { %328 = vmatmul.f32.vlgmr.msra.gmra.mxu1 %v49_v16  ;;  %361 = vmatmul.f32.vlgmr.msra.gmra.mxu3 %v104_v17  ;;  %v175_v16 = vld [vmem:[%s1696_s1 + $0x120] sm:$0xff]  ;;  %v156_v17 = vld [vmem:[%s1696_s1 + $0x88] sm:$0xff] }
  0x22   :  { %567 = vmatpush.msrb.mxu3 %v202_v18  ;;  %383 = vmatpush.msrb.mxu1 %v170_v19  ;;  %v99_v18 = vld [vmem:[%s1697_s0 + $0x2a8] sm:$0xff]  ;;  %v187_v19 = vld [vmem:[%s1696_s1 + $0x180] sm:$0xff] }
  0x23   :  { %306 = vmatpush.msra.mxu0 %v139_v15  ;;  %852 = vmatpush.msra.mxu2 %v139_v15  ;;  %v124_v15 = vld [vmem:[%s1697_s0 + $0x370] sm:$0xff] }
  0x24   :  { %568 = vmatpush.msrb.mxu3 %v201_v20  ;;  %384 = vmatpush.msrb.mxu1 %v169_v21  ;;  %v174_v20 = vld [vmem:[%s1696_s1 + $0x118] sm:$0xff]  ;;  %v155_v21 = vld [vmem:[%s1696_s1 + $0x80] sm:$0xff] }
  0x25   :  { %307 = vmatmul.f32.vlgmr.msra.gmra.mxu0 %v14_v22  ;;  %349 = vmatmul.f32.vlgmr.msra.gmra.mxu2 %v84_v23  ;;  %v34_v22 = vld [vmem:[%s1697_s0 + $0xa0] sm:$0xff]  ;;  %v173_v23 = vld [vmem:[%s1696_s1 + $0x110] sm:$0xff] }
  0x26   :  { %569 = vmatpush.msrb.mxu3 %v200_v24  ;;  %667 = vmatpush.msrb.mxu0 %v210_v25  ;;  %v203_v24 = vld [vmem:[%s1696_s1 + $0x200] sm:$0xff]  ;;  %v172_v25 = vld [vmem:[%s1696_s1 + $0x108] sm:$0xff] }
  0x27   :  { %385 = vmatpush.msrb.mxu1 %v168_v26  ;;  %475 = vmatpush.msrb.mxu2 %v186_v27  ;;  %v74_v26 = vld [vmem:[%s1697_s0 + $0x1e0] sm:$0xff]  ;;  %v129_v27 = vld [vmem:[%s1697_s0 + $0x398] sm:$0xff] }
  0x28   :  { %570 = vmatpush.msrb.mxu3 %v199_v28  ;;  %668 = vmatpush.msrb.mxu0 %v209_v29  ;;  %v171_v28 = vld [vmem:[%s1696_s1 + $0x100] sm:$0xff]  ;;  %v16_v29 = vld [vmem:[%s1697_s0 + $0x10] sm:$0xff] }
  0x29   :  { %331 = vmatmul.f32.gmra.mxu1 %v54_v30  ;;  %364 = vmatmul.f32.gmra.mxu3 %v109_v31  ;;  %v39_v30 = vld [vmem:[%s1697_s0 + $0xc8] sm:$0xff] }
  0x2a   :  { %386 = vmatpush.msrb.mxu1 %v167_v32  ;;  %571 = vmatpush.msrb.mxu3 %v198_v33  ;;  %v79_v31 = vld [vmem:[%s1697_s0 + $0x208] sm:$0xff]  ;;  %v134_v32 = vld [vmem:[%s1697_s0 + $0x3c0] sm:$0xff]  ;;  %v21_v33 = vld [vmem:[%s1697_s0 + $0x38] sm:$0xff] }
  0x2b   :  { %669 = vmatpush.msrb.mxu0 %v208_v34  ;;  %476 = vmatpush.msrb.mxu2 %v185_v35  ;;  %v44_v34 = vld [vmem:[%s1697_s0 + $0xf0] sm:$0xff]  ;;  %v15_v35 = vld [vmem:[%s1697_s0 + $0x8] sm:$0xff] }
  0x2c   :  { %387 = vmatpush.msrb.mxu1 %v166_v36  ;;  %572 = vmatpush.msrb.mxu3 %v197_v37  ;;  %v17_v36 = vld [vmem:[%s1697_s0 + $0x18] sm:$0xff]  ;;  %v26_v37 = vld [vmem:[%s1697_s0 + $0x60] sm:$0xff] }
  0x2d   :  { %310 = vmatmul.f32.gmra.mxu0 %v19_v38  ;;  %477 = vmatpush.msrb.mxu2 %v184_v39  ;;  %v18_v38 = vld [vmem:[%s1697_s0 + $0x20] sm:$0xff]  ;;  %v20_v39 = vld [vmem:[%s1697_s0 + $0x30] sm:$0xff] }
  0x2e   :  { %388 = vmatpush.msrb.mxu1 %v165_v40  ;;  %573 = vmatpush.msrb.mxu3 %v196_v41  ;;  %v22_v40 = vld [vmem:[%s1697_s0 + $0x40] sm:$0xff]  ;;  %v31_v41 = vld [vmem:[%s1697_s0 + $0x88] sm:$0xff] }
  0x2f   :  { %478 = vmatpush.msrb.mxu2 %v183_v42  ;;  %670 = vmatpush.msrb.mxu0 %v207_v43  ;;  %v23_v42 = vld [vmem:[%s1697_s0 + $0x48] sm:$0xff]  ;;  %v25_v43 = vld [vmem:[%s1697_s0 + $0x58] sm:$0xff] }
  0x30   :  { %389 = vmatpush.msrb.mxu1 %v164_v44  ;;  %574 = vmatpush.msrb.mxu3 %v195_v45  ;;  %v27_v44 = vld [vmem:[%s1697_s0 + $0x68] sm:$0xff]  ;;  %v36_v45 = vld [vmem:[%s1697_s0 + $0xb0] sm:$0xff] }
  0x31   :  { %334 = vmatmul.f32.gmra.mxu1 %v59_v46  ;;  %367 = vmatmul.f32.gmra.mxu3 %v114_v47  ;;  %v28_v46 = vld [vmem:[%s1697_s0 + $0x70] sm:$0xff]  ;;  %v30_v47 = vld [vmem:[%s1697_s0 + $0x80] sm:$0xff] }
  0x32   :  { %390 = vmatpush.msrb.mxu1 %v163_v48  ;;  %352 = vmatmul.f32.gmra.mxu2 %v89_v49  ;;  %v32_v48 = vld [vmem:[%s1697_s0 + $0x90] sm:$0xff]  ;;  %v41_v49 = vld [vmem:[%s1697_s0 + $0xd8] sm:$0xff] }
  0x33   :  { %575 = vmatpush.msrb.mxu3 %v194_v50  ;;  %479 = vmatpush.msrb.mxu2 %v182_v51  ;;  %v33_v50 = vld [vmem:[%s1697_s0 + $0x98] sm:$0xff]  ;;  %v35_v51 = vld [vmem:[%s1697_s0 + $0xa8] sm:$0xff] }
  0x34   :  { %391 = vmatpush.msrb.mxu1 %v162_v52  ;;  %671 = vmatpush.msrb.mxu0 %v206_v53  ;;  %v37_v52 = vld [vmem:[%s1697_s0 + $0xb8] sm:$0xff]  ;;  %v46_v53 = vld [vmem:[%s1697_s0 + $0x100] sm:$0xff] }
  0x35   :  { %313 = vmatmul.f32.gmra.mxu0 %v24_v54  ;;  %480 = vmatpush.msrb.mxu2 %v181_v55  ;;  %v38_v54 = vld [vmem:[%s1697_s0 + $0xc0] sm:$0xff]  ;;  %v40_v55 = vld [vmem:[%s1697_s0 + $0xd0] sm:$0xff] }
  0x36   :  { %576 = vmatpush.msrb.mxu3 %v193_v56  ;;  %392 = vmatpush.msrb.mxu1 %v161_v57  ;;  %v42_v56 = vld [vmem:[%s1697_s0 + $0xe0] sm:$0xff]  ;;  %v51_v57 = vld [vmem:[%s1697_s0 + $0x128] sm:$0xff] }
  0x37   :  { %481 = vmatpush.msrb.mxu2 %v180_v58  ;;  %672 = vmatpush.msrb.mxu0 %v205_v59  ;;  %v43_v58 = vld [vmem:[%s1697_s0 + $0xe8] sm:$0xff]  ;;  %v45_v59 = vld [vmem:[%s1697_s0 + $0xf8] sm:$0xff] }
  0x38   :  { %577 = vmatpush.msrb.mxu3 %v192_v60  ;;  %393 = vmatpush.msrb.mxu1 %v160_v61  ;;  %v47_v60 = vld [vmem:[%s1697_s0 + $0x108] sm:$0xff]  ;;  %v56_v61 = vld [vmem:[%s1697_s0 + $0x150] sm:$0xff] }
  0x39   :  { %337 = vmatmul.f32.gmra.mxu1 %v64_v62  ;;  %370 = vmatmul.f32.gmra.mxu3 %v119_v63  ;;  %v48_v62 = vld [vmem:[%s1697_s0 + $0x110] sm:$0xff]  ;;  %v50_v63 = vld [vmem:[%s1697_s0 + $0x120] sm:$0xff] }
  0x3a   :  { %482 = vmatpush.msrb.mxu2 %v179_v0  ;;  %578 = vmatpush.msrb.mxu3 %v191_v1  ;;  %v52_v0 = vld [vmem:[%s1697_s0 + $0x130] sm:$0xff]  ;;  %v61_v1 = vld [vmem:[%s1697_s0 + $0x178] sm:$0xff] }
  0x3b   :  { %355 = vmatmul.f32.gmra.mxu2 %v94_v2  ;;  %394 = vmatpush.msrb.mxu1 %v159_v3  ;;  %v53_v2 = vld [vmem:[%s1697_s0 + $0x138] sm:$0xff]  ;;  %v55_v3 = vld [vmem:[%s1697_s0 + $0x148] sm:$0xff] }
  0x3c   :  { %483 = vmatpush.msrb.mxu2 %v178_v4  ;;  %579 = vmatpush.msrb.mxu3 %v190_v5  ;;  %v57_v4 = vld [vmem:[%s1697_s0 + $0x158] sm:$0xff]  ;;  %v66_v5 = vld [vmem:[%s1697_s0 + $0x1a0] sm:$0xff] }
  0x3d   :  { %316 = vmatmul.f32.gmra.mxu0 %v29_v6  ;;  %395 = vmatpush.msrb.mxu1 %v158_v7  ;;  %v58_v6 = vld [vmem:[%s1697_s0 + $0x160] sm:$0xff] }
  0x3e   :  { %484 = vmatpush.msrb.mxu2 %v177_v8  ;;  %580 = vmatpush.msrb.mxu3 %v189_v9  ;;  %v60_v8 = vld [vmem:[%s1697_s0 + $0x170] sm:$0xff]  ;;  %v62_v9 = vld [vmem:[%s1697_s0 + $0x180] sm:$0xff] }
  0x3f   :  { %396 = vmatpush.msrb.mxu1 %v157_v10  ;;  %673 = vmatpush.msrb.mxu0 %v204_v11  ;;  %v71_v10 = vld [vmem:[%s1697_s0 + $0x1c8] sm:$0xff] }
  0x40   :  { %485 = vmatpush.msrb.mxu2 %v176_v12  ;;  %581 = vmatpush.msrb.mxu3 %v188_v13  ;;  %v63_v12 = vld [vmem:[%s1697_s0 + $0x188] sm:$0xff]  ;;  %v1308_v13 = vld [vmem:[%s1698_s2] ss:$0 sm:$0xff] }
  0x41   :  { %340 = vmatmul.f32.gmra.mxu1 %v69_v14  ;;  %373 = vmatmul.f32.gmra.mxu3 %v124_v15 }
  0x42   :  { %486 = vmatpush.msrb.mxu2 %v175_v16  ;;  %397 = vmatpush.msrb.mxu1 %v156_v17  ;;  %v65_v17 = vld [vmem:[%s1697_s0 + $0x198] sm:$0xff] }
  0x43   :  { %358 = vmatmul.f32.gmra.mxu2 %v99_v18  ;;  %582 = vmatpush.msrb.mxu3 %v187_v19  ;;  %v67_v18 = vld [vmem:[%s1697_s0 + $0x1a8] sm:$0xff]  ;;  %v76_v19 = vld [vmem:[%s1697_s0 + $0x1f0] sm:$0xff] }
  0x44   :  { %487 = vmatpush.msrb.mxu2 %v174_v20  ;;  %398 = vmatpush.msrb.mxu1 %v155_v21  ;;  %v68_v21 = vld [vmem:[%s1697_s0 + $0x1b0] sm:$0xff] }
  0x45   :  { %319 = vmatmul.f32.gmra.mxu0 %v34_v22 }
  0x46   :  { %488 = vmatpush.msrb.mxu2 %v173_v23  ;;  %674 = vmatpush.msrb.mxu0 %v203_v24 }
  0x48   :  { %489 = vmatpush.msrb.mxu2 %v172_v25 }
  0x49   :  { %343 = vmatmul.f32.gmra.mxu1 %v74_v26  ;;  %376 = vmatmul.f32.gmra.mxu3 %v129_v27  ;;  %v70_v26 = vld [vmem:[%s1697_s0 + $0x1c0] sm:$0xff]  ;;  %v72_v27 = vld [vmem:[%s1697_s0 + $0x1d0] sm:$0xff] }
  0x4a   :  { %490 = vmatpush.msrb.mxu2 %v171_v28  ;;  %v81_v28 = vld [vmem:[%s1697_s0 + $0x218] sm:$0xff] }
  0x4b   :  { %491 = vmatmul.f32.vlgmr.msrb.gmra.mxu2 %v16_v29 }
  0x4d   :  { %322 = vmatmul.f32.gmra.mxu0 %v39_v30  ;;  %v73_v30 = vld [vmem:[%s1697_s0 + $0x1d8] sm:$0xff] }
  0x51   :  { %346 = vmatmul.f32.gmra.mxu1 %v79_v31  ;;  %379 = vmatmul.f32.gmra.mxu3 %v134_v32 }
  0x53   :  { %494 = vmatmul.f32.gmra.mxu2 %v21_v33 }
  0x55   :  { %325 = vmatmul.f32.gmra.mxu0 %v44_v34 }
  0x59   :  { %399 = vmatmul.f32.vlgmr.msrb.gmra.mxu1 %v15_v35  ;;  %583 = vmatmul.f32.vlgmr.msrb.gmra.mxu3 %v17_v36  ;;  %v75_v35 = vld [vmem:[%s1697_s0 + $0x1e8] sm:$0xff]  ;;  %v77_v36 = vld [vmem:[%s1697_s0 + $0x1f8] sm:$0xff] }
  0x5b   :  { %497 = vmatmul.f32.gmra.mxu2 %v26_v37 }
  0x5d   :  { %781 = vmatmul.msk.f32.vlgmr.msrb.gmra.mxu0 %vm215_vm0, %v18_v38  ;;  %v86_v38 = vld [vmem:[%s1697_s0 + $0x240] sm:$0xff] }
  0x61   :  { %402 = vmatmul.f32.gmra.mxu1 %v20_v39  ;;  %586 = vmatmul.f32.gmra.mxu3 %v22_v40  ;;  %v78_v40 = vld [vmem:[%s1697_s0 + $0x200] sm:$0xff] }
  0x63   :  { %500 = vmatmul.f32.gmra.mxu2 %v31_v41 }
  0x65   :  { %782 = vmatmul.msk.f32.gmra.mxu0 %vm215_vm0, %v23_v42 }
  0x69   :  { %405 = vmatmul.f32.gmra.mxu1 %v25_v43  ;;  %589 = vmatmul.f32.gmra.mxu3 %v27_v44  ;;  %v80_v44 = vld [vmem:[%s1697_s0 + $0x210] sm:$0xff] }
  0x6b   :  { %503 = vmatmul.f32.gmra.mxu2 %v36_v45  ;;  %v82_v45 = vld [vmem:[%s1697_s0 + $0x220] sm:$0xff] }
  0x6d   :  { %783 = vmatmul.msk.f32.gmra.mxu0 %vm215_vm0, %v28_v46 }
  0x71   :  { %408 = vmatmul.f32.gmra.mxu1 %v30_v47  ;;  %592 = vmatmul.f32.gmra.mxu3 %v32_v48  ;;  %v91_v48 = vld [vmem:[%s1697_s0 + $0x268] sm:$0xff] }
  0x73   :  { %506 = vmatmul.f32.gmra.mxu2 %v41_v49 }
  0x75   :  { %784 = vmatmul.msk.f32.gmra.mxu0 %vm215_vm0, %v33_v50  ;;  %v83_v50 = vld [vmem:[%s1697_s0 + $0x228] sm:$0xff] }
  0x79   :  { %411 = vmatmul.f32.gmra.mxu1 %v35_v51  ;;  %595 = vmatmul.f32.gmra.mxu3 %v37_v52 }
  0x7b   :  { %509 = vmatmul.f32.gmra.mxu2 %v46_v53 }
  0x7d   :  { %785 = vmatmul.msk.f32.gmra.mxu0 %vm215_vm0, %v38_v54  ;;  %v85_v54 = vld [vmem:[%s1697_s0 + $0x238] sm:$0xff] }
  0x81   :  { %414 = vmatmul.f32.gmra.mxu1 %v40_v55  ;;  %598 = vmatmul.f32.gmra.mxu3 %v42_v56  ;;  %v87_v55 = vld [vmem:[%s1697_s0 + $0x248] sm:$0xff] }
  0x83   :  { %512 = vmatmul.f32.gmra.mxu2 %v51_v57 }
  0x85   :  { %786 = vmatmul.msk.f32.gmra.mxu0 %vm215_vm0, %v43_v58  ;;  %v96_v58 = vld [vmem:[%s1697_s0 + $0x290] sm:$0xff] }
  0x89   :  { %417 = vmatmul.f32.gmra.mxu1 %v45_v59  ;;  %601 = vmatmul.f32.gmra.mxu3 %v47_v60  ;;  %v88_v60 = vld [vmem:[%s1697_s0 + $0x250] sm:$0xff] }
  0x8b   :  { %515 = vmatmul.f32.gmra.mxu2 %v56_v61 }
  0x8d   :  { %787 = vmatmul.msk.f32.gmra.mxu0 %vm215_vm0, %v48_v62 }
  0x91   :  { %420 = vmatmul.f32.gmra.mxu1 %v50_v63  ;;  %604 = vmatmul.f32.gmra.mxu3 %v52_v0  ;;  %v90_v0 = vld [vmem:[%s1697_s0 + $0x260] sm:$0xff] }
  0x93   :  { %518 = vmatmul.f32.gmra.mxu2 %v61_v1  ;;  %v92_v1 = vld [vmem:[%s1697_s0 + $0x270] sm:$0xff] }
  0x95   :  { %788 = vmatmul.msk.f32.gmra.mxu0 %vm215_vm0, %v53_v2 }
  0x99   :  { %423 = vmatmul.f32.gmra.mxu1 %v55_v3  ;;  %607 = vmatmul.f32.gmra.mxu3 %v57_v4  ;;  %v101_v3 = vld [vmem:[%s1697_s0 + $0x2b8] sm:$0xff] }
  0x9b   :  { %521 = vmatmul.f32.gmra.mxu2 %v66_v5  ;;  %v93_v5 = vld [vmem:[%s1697_s0 + $0x278] sm:$0xff] }
  0x9d   :  { %789 = vmatmul.msk.f32.gmra.mxu0 %vm215_vm0, %v58_v6 }
  0x9e   :  { %v1289_v7 = vpop.f32.mrf.mxu1 }
  0xa1   :  { %426 = vmatmul.f32.gmra.mxu1 %v60_v8  ;;  %610 = vmatmul.f32.gmra.mxu3 %v62_v9 }
  0xa2   :  { %v1300_v11 = vpop.f32.mrf.mxu0 }
  0xa3   :  { %524 = vmatmul.f32.gmra.mxu2 %v71_v10  ;;  %v309_v8 = vadd.f32 %v1308_v13, %v1300_v11  ;;  %v106_v11 = vld [vmem:[%s1697_s0 + $0x2e0] sm:$0xff] }
  0xa4   :  { %v362_v14 = vpop.f32.mrf.mxu3 }
  0xa5   :  { %v1311_v15 = vadd.f32 %v1308_v13, %v362_v14  ;;  %790 = vmatmul.msk.f32.gmra.mxu0 %vm215_vm0, %v63_v12  ;;  %v95_v12 = vld [vmem:[%s1697_s0 + $0x288] sm:$0xff]  ;;  %v97_v14 = vld [vmem:[%s1697_s0 + $0x298] sm:$0xff] }
  0xa6   :  { %v1314_v16 = vpop.f32.mrf.mxu1 }
  0xa8   :  { %v1330_v22 = vpop.f32.mrf.mxu2 }
  0xa9   :  { %429 = vmatmul.f32.gmra.mxu1 %v65_v17  ;;  %613 = vmatmul.f32.gmra.mxu3 %v67_v18 }
  0xaa   :  { %v1325_v20 = vpop.f32.mrf.mxu0 }
  0xab   :  { %527 = vmatmul.f32.gmra.mxu2 %v76_v19 }
  0xac   :  { %v365_v23 = vpop.f32.mrf.mxu3 }
  0xad   :  { %v1333_v24 = vadd.f32 %v1308_v13, %v365_v23  ;;  %791 = vmatmul.msk.f32.gmra.mxu0 %vm215_vm0, %v68_v21  ;;  %v98_v21 = vld [vmem:[%s1697_s0 + $0x2a0] sm:$0xff] }
  0xae   :  { %v1336_v25 = vpop.f32.mrf.mxu1 }
  0xb1   :  { %432 = vmatmul.f32.gmra.mxu1 %v70_v26  ;;  %616 = vmatmul.f32.gmra.mxu3 %v72_v27  ;;  %v312_v27 = vadd.f32 %v1308_v13, %v1325_v20  ;;  %v111_v20 = vld [vmem:[%s1697_s0 + $0x308] sm:$0xff] }
  0xb2   :  { %v1347_v29 = vpop.f32.mrf.mxu0 }
  0xb3   :  { %530 = vmatmul.f32.gmra.mxu2 %v81_v28 }
  0xb4   :  { %v368_v31 = vpop.f32.mrf.mxu3 }
  0xb5   :  { %v1353_v32 = vadd.f32 %v1308_v13, %v368_v31  ;;  %792 = vmatmul.msk.f32.gmra.mxu0 %vm215_vm0, %v73_v30  ;;  %v353_v33 = vpop.f32.mrf.mxu2  ;;  %v100_v31 = vld [vmem:[%s1697_s0 + $0x2b0] sm:$0xff] }
  0xb6   :  { %v1356_v34 = vpop.f32.mrf.mxu1  ;;  %v1365_v37 = vadd.f32 %v1308_v13, %v353_v33  ;;  %v102_v33 = vld [vmem:[%s1697_s0 + $0x2c0] sm:$0xff] }
  0xb9   :  { %435 = vmatmul.f32.gmra.mxu1 %v75_v35  ;;  %619 = vmatmul.f32.gmra.mxu3 %v77_v36 }
  0xba   :  { %v1370_v39 = vpop.f32.mrf.mxu0 }
  0xbb   :  { %533 = vmatmul.f32.gmra.mxu2 %v86_v38 }
  0xbc   :  { %v371_v41 = vpop.f32.mrf.mxu3 }
  0xbd   :  { %v1376_v42 = vadd.f32 %v1308_v13, %v371_v41  ;;  %793 = vmatmul.msk.f32.gmra.mxu0 %vm215_vm0, %v78_v40  ;;  %v103_v41 = vld [vmem:[%s1697_s0 + $0x2c8] sm:$0xff] }
  0xbe   :  { %v1379_v43 = vpop.f32.mrf.mxu1  ;;  %v356_v46 = vpop.f32.mrf.mxu2 }
  0xbf   :  { %v1388_v47 = vadd.f32 %v1308_v13, %v356_v46  ;;  %v315_v46 = vadd.f32 %v1308_v13, %v1347_v29 }
  0xc1   :  { %438 = vmatmul.f32.gmra.mxu1 %v80_v44  ;;  %622 = vmatmul.f32.gmra.mxu3 %v82_v45 }
  0xc2   :  { %v1393_v49 = vpop.f32.mrf.mxu0 }
  0xc3   :  { %536 = vmatmul.f32.gmra.mxu2 %v91_v48 }
  0xc4   :  { %v374_v51 = vpop.f32.mrf.mxu3 }
  0xc5   :  { %v1399_v52 = vadd.f32 %v1308_v13, %v374_v51  ;;  %794 = vmatmul.msk.f32.gmra.mxu0 %vm215_vm0, %v83_v50  ;;  %v105_v51 = vld [vmem:[%s1697_s0 + $0x2d8] sm:$0xff] }
  0xc6   :  { %v1402_v53 = vpop.f32.mrf.mxu1  ;;  %v359_v56 = vpop.f32.mrf.mxu2 }
  0xc7   :  { %v1411_v57 = vadd.f32 %v1308_v13, %v359_v56 }
  0xc9   :  { %441 = vmatmul.f32.gmra.mxu1 %v85_v54  ;;  %625 = vmatmul.f32.gmra.mxu3 %v87_v55  ;;  %v107_v54 = vld [vmem:[%s1697_s0 + $0x2e8] sm:$0xff] }
  0xca   :  { %v1416_v59 = vpop.f32.mrf.mxu0 }
  0xcb   :  { %539 = vmatmul.f32.gmra.mxu2 %v96_v58 }
  0xcc   :  { %v377_v61 = vpop.f32.mrf.mxu3 }
  0xcd   :  { %v1422_v62 = vadd.f32 %v1308_v13, %v377_v61  ;;  %795 = vmatmul.msk.f32.gmra.mxu0 %vm215_vm0, %v88_v60  ;;  %v116_v60 = vld [vmem:[%s1697_s0 + $0x330] sm:$0xff] }
  0xce   :  { %v1425_v63 = vpop.f32.mrf.mxu1  ;;  %v492_v2 = vpop.f32.mrf.mxu2  ;;  %v108_v61 = vld [vmem:[%s1697_s0 + $0x2f0] sm:$0xff] }
  0xd1   :  { %444 = vmatmul.f32.gmra.mxu1 %v90_v0  ;;  %628 = vmatmul.f32.gmra.mxu3 %v92_v1 }
  0xd2   :  { %v1436_v4 = vpop.f32.mrf.mxu0 }
  0xd3   :  { %542 = vmatmul.f32.gmra.mxu2 %v101_v3 }
  0xd4   :  { %v380_v6 = vpop.f32.mrf.mxu3 }
  0xd5   :  { %v1444_v9 = vadd.f32 %v1308_v13, %v380_v6  ;;  %796 = vmatmul.msk.f32.gmra.mxu0 %vm215_vm0, %v93_v5  ;;  %v110_v6 = vld [vmem:[%s1697_s0 + $0x300] sm:$0xff] }
  0xd6   :  { %v400_v10 = vpop.f32.mrf.mxu1  ;;  %v495_v17 = vpop.f32.mrf.mxu2 }
  0xd7   :  { %v401_v18 = vadd.f32 %v400_v10, %v309_v8  ;;  %v112_v8 = vld [vmem:[%s1697_s0 + $0x310] sm:$0xff] }
  0xd9   :  { %447 = vmatmul.f32.gmra.mxu1 %v95_v12  ;;  %631 = vmatmul.f32.gmra.mxu3 %v97_v14  ;;  %v493_v23 = vadd.f32 %v492_v2, %v401_v18  ;;  %v318_v2 = vadd.f32 %v1308_v13, %v1370_v39  ;;  %v113_v18 = vld [vmem:[%s1697_s0 + $0x318] sm:$0xff] }
  0xda   :  { %v676_v19 = vpop.f32.mrf.mxu0 }
  0xdb   :  { %545 = vmatmul.f32.gmra.mxu2 %v106_v11 }
  0xdc   :  { %v584_v26 = vpop.f32.mrf.mxu3 }
  0xdd   :  { %v585_v28 = vadd.f32 %v584_v26, %v493_v23  ;;  %797 = vmatmul.msk.f32.gmra.mxu0 %vm215_vm0, %v98_v21  ;;  %v321_v21 = vadd.f32 %v1308_v13, %v1393_v49 }
  0xde   :  { %v403_v30 = vpop.f32.mrf.mxu1  ;;  %v498_v35 = vpop.f32.mrf.mxu2 }
  0xdf   :  { %v404_v36 = vadd.f32 %v403_v30, %v312_v27  ;;  %v677_v38 = vadd.f32 %v676_v19, %v585_v28  ;;  %v115_v27 = vld [vmem:[%s1697_s0 + $0x328] sm:$0xff]  ;;  %v117_v28 = vld [vmem:[%s1697_s0 + $0x338] sm:$0xff] }
  0xe1   :  { %752 = vst.msk [vmem:[%s1699_s3] sm:$0xff] %vm751_vm1, %v677_v38  ;;  %450 = vmatmul.f32.gmra.mxu1 %v100_v31  ;;  %634 = vmatmul.f32.gmra.mxu3 %v102_v33  ;;  %v496_v44 = vadd.f32 %v495_v17, %v404_v36  ;;  %v121_v17 = vld [vmem:[%s1697_s0 + $0x358] sm:$0xff]  ;;  %v118_v36 = vld [vmem:[%s1697_s0 + $0x340] sm:$0xff] }
  0xe2   :  { %v679_v40 = vpop.f32.mrf.mxu0 }
  0xe3   :  { %548 = vmatmul.f32.gmra.mxu2 %v111_v20 }
  0xe4   :  { %v587_v45 = vpop.f32.mrf.mxu3 }
  0xe5   :  { %v588_v48 = vadd.f32 %v587_v45, %v496_v44  ;;  %798 = vmatmul.msk.f32.gmra.mxu0 %vm215_vm0, %v103_v41  ;;  %v120_v45 = vld [vmem:[%s1697_s0 + $0x350] sm:$0xff] }
  0xe6   :  { %v406_v50 = vpop.f32.mrf.mxu1  ;;  %v501_v55 = vpop.f32.mrf.mxu2 }
  0xe7   :  { %v407_v56 = vadd.f32 %v406_v50, %v315_v46  ;;  %v680_v58 = vadd.f32 %v679_v40, %v588_v48  ;;  %v324_v40 = vadd.f32 %v1308_v13, %v1416_v59  ;;  %v122_v46 = vld [vmem:[%s1697_s0 + $0x360] sm:$0xff] }
  0xe9   :  { %753 = vst.msk [vmem:[%s1699_s3 + $0x8] sm:$0xff] %vm751_vm1, %v680_v58  ;;  %453 = vmatmul.f32.gmra.mxu1 %v105_v51  ;;  %637 = vmatmul.f32.gmra.mxu3 %v107_v54  ;;  %v499_v0 = vadd.f32 %v498_v35, %v407_v56  ;;  %v126_v35 = vld [vmem:[%s1697_s0 + $0x380] sm:$0xff]  ;;  %v131_v54 = vld [vmem:[%s1697_s0 + $0x3a8] sm:$0xff] }
  0xea   :  { %v682_v29 = vpop.f32.mrf.mxu0 }
  0xeb   :  { %551 = vmatmul.f32.gmra.mxu2 %v116_v60  ;;  %v327_v60 = vadd.f32 %v1308_v13, %v1436_v4 }
  0xec   :  { %v590_v1 = vpop.f32.mrf.mxu3 }
  0xed   :  { %v591_v3 = vadd.f32 %v590_v1, %v499_v0  ;;  %799 = vmatmul.msk.f32.gmra.mxu0 %vm215_vm0, %v108_v61  ;;  %v125_v0 = vld [vmem:[%s1697_s0 + $0x378] sm:$0xff]  ;;  %v127_v1 = vld [vmem:[%s1697_s0 + $0x388] sm:$0xff] }
  0xee   :  { %v409_v5 = vpop.f32.mrf.mxu1  ;;  %v504_v10 = vpop.f32.mrf.mxu2 }
  0xef   :  { %v410_v12 = vadd.f32 %v409_v5, %v318_v2  ;;  %v683_v14 = vadd.f32 %v682_v29, %v591_v3 }
  0xf1   :  { %754 = vst.msk [vmem:[%s1699_s3 + $0x10] sm:$0xff] %vm751_vm1, %v683_v14  ;;  %456 = vmatmul.f32.gmra.mxu1 %v110_v6  ;;  %640 = vmatmul.f32.gmra.mxu3 %v112_v8  ;;  %v502_v11 = vadd.f32 %v501_v55, %v410_v12  ;;  %v123_v55 = vld [vmem:[%s1697_s0 + $0x368] sm:$0xff]  ;;  %v136_v6 = vld [vmem:[%s1697_s0 + $0x3d0] sm:$0xff]  ;;  %v330_v14 = vadd.f32 %v1308_v13, %v1289_v7 }
  0xf2   :  { %v685_v39 = vpop.f32.mrf.mxu0  ;;  %v128_v8 = vld [vmem:[%s1697_s0 + $0x390] sm:$0xff] }
  0xf3   :  { %554 = vmatmul.f32.gmra.mxu2 %v121_v17 }
  0xf4   :  { %v593_v19 = vpop.f32.mrf.mxu3 }
  0xf5   :  { %v594_v23 = vadd.f32 %v593_v19, %v502_v11  ;;  %800 = vmatmul.msk.f32.gmra.mxu0 %vm215_vm0, %v113_v18  ;;  %v130_v18 = vld [vmem:[%s1697_s0 + $0x3a0] sm:$0xff]  ;;  %v132_v11 = vld [vmem:[%s1697_s0 + $0x3b0] sm:$0xff] }
  0xf6   :  { %v412_v26 = vpop.f32.mrf.mxu1  ;;  %v507_v30 = vpop.f32.mrf.mxu2 }
  0xf7   :  { %v413_v31 = vadd.f32 %v412_v26, %v321_v21  ;;  %v686_v33 = vadd.f32 %v685_v39, %v594_v23  ;;  %v133_v26 = vld [vmem:[%s1697_s0 + $0x3b8] sm:$0xff] }
  0xf9   :  { %755 = vst.msk [vmem:[%s1699_s3 + $0x18] sm:$0xff] %vm751_vm1, %v686_v33  ;;  %459 = vmatmul.f32.gmra.mxu1 %v115_v27  ;;  %643 = vmatmul.f32.gmra.mxu3 %v117_v28  ;;  %v505_v38 = vadd.f32 %v504_v10, %v413_v31 }
  0xfa   :  { %v688_v49 = vpop.f32.mrf.mxu0 }
  0xfb   :  { %557 = vmatmul.f32.gmra.mxu2 %v126_v35  ;;  %v135_v35 = vld [vmem:[%s1697_s0 + $0x3c8] sm:$0xff] }
  0xfc   :  { %v596_v20 = vpop.f32.mrf.mxu3 }
  0xfd   :  { %v597_v41 = vadd.f32 %v596_v20, %v505_v38  ;;  %801 = vmatmul.msk.f32.gmra.mxu0 %vm215_vm0, %v118_v36 }
  0xfe   :  { %v415_v44 = vpop.f32.mrf.mxu1  ;;  %v510_v48 = vpop.f32.mrf.mxu2 }
  0xff   :  { %v416_v50 = vadd.f32 %v415_v44, %v324_v40  ;;  %v689_v51 = vadd.f32 %v688_v49, %v597_v41  ;;  %v137_v49 = vld [vmem:[%s1697_s0 + $0x3d8] sm:$0xff]  ;;  %v138_v40 = vld [vmem:[%s1697_s0 + $0x3e0] sm:$0xff] }
 0x101   :  { %756 = vst.msk [vmem:[%s1699_s3 + $0x20] sm:$0xff] %vm751_vm1, %v689_v51  ;;  %462 = vmatmul.f32.gmra.mxu1 %v120_v45  ;;  %646 = vmatmul.f32.gmra.mxu3 %v122_v46  ;;  %v508_v56 = vadd.f32 %v507_v30, %v416_v50  ;;  %v333_v30 = vadd.f32 %v1308_v13, %v1314_v16 }
 0x102   :  { %v691_v59 = vpop.f32.mrf.mxu0  ;;  %v336_v45 = vadd.f32 %v1308_v13, %v1336_v25 }
 0x103   :  { %560 = vmatmul.f32.gmra.mxu2 %v131_v54 }
 0x104   :  { %v599_v58 = vpop.f32.mrf.mxu3 }
 0x105   :  { %v600_v29 = vadd.f32 %v599_v58, %v508_v56  ;;  %802 = vmatmul.msk.f32.gmra.mxu0 %vm215_vm0, %v123_v55  ;;  %v339_v58 = vadd.f32 %v1308_v13, %v1356_v34 }
 0x106   :  { %v418_v61 = vpop.f32.mrf.mxu1  ;;  %v513_v2 = vpop.f32.mrf.mxu2 }
 0x107   :  { %v419_v3 = vadd.f32 %v418_v61, %v327_v60  ;;  %v692_v5 = vadd.f32 %v691_v59, %v600_v29 }
 0x109   :  { %757 = vst.msk [vmem:[%s1699_s3 + $0x28] sm:$0xff] %vm751_vm1, %v692_v5  ;;  %465 = vmatmul.f32.gmra.mxu1 %v125_v0  ;;  %649 = vmatmul.f32.gmra.mxu3 %v127_v1  ;;  %v511_v10 = vadd.f32 %v510_v48, %v419_v3  ;;  %v342_v5 = vadd.f32 %v1308_v13, %v1379_v43 }
 0x10a   :  { %v694_v4 = vpop.f32.mrf.mxu0 }
 0x10b   :  { %563 = vmatmul.f32.gmra.mxu2 %v136_v6 }
 0x10c   :  { %v602_v12 = vpop.f32.mrf.mxu3 }
 0x10d   :  { %v603_v17 = vadd.f32 %v602_v12, %v511_v10  ;;  %803 = vmatmul.msk.f32.gmra.mxu0 %vm215_vm0, %v128_v8 }
 0x10e   :  { %v421_v39 = vpop.f32.mrf.mxu1  ;;  %v516_v19 = vpop.f32.mrf.mxu2 }
 0x10f   :  { %v422_v21 = vadd.f32 %v421_v39, %v330_v14  ;;  %v695_v23 = vadd.f32 %v694_v4, %v603_v17  ;;  %v345_v39 = vadd.f32 %v1308_v13, %v1402_v53 }
 0x111   :  { %758 = vst.msk [vmem:[%s1699_s3 + $0x30] sm:$0xff] %vm751_vm1, %v695_v23  ;;  %468 = vmatmul.f32.gmra.mxu1 %v130_v18  ;;  %652 = vmatmul.f32.gmra.mxu3 %v132_v11  ;;  %v514_v27 = vadd.f32 %v513_v2, %v422_v21 }
 0x112   :  { %v697_v7 = vpop.f32.mrf.mxu0 }
 0x114   :  { %v605_v28 = vpop.f32.mrf.mxu3 }
 0x115   :  { %v606_v31 = vadd.f32 %v605_v28, %v514_v27  ;;  %804 = vmatmul.msk.f32.gmra.mxu0 %vm215_vm0, %v133_v26  ;;  %v348_v27 = vadd.f32 %v1308_v13, %v1425_v63 }
 0x116   :  { %v424_v33 = vpop.f32.mrf.mxu1  ;;  %v519_v36 = vpop.f32.mrf.mxu2 }
 0x117   :  { %v425_v38 = vadd.f32 %v424_v33, %v333_v30  ;;  %v698_v20 = vadd.f32 %v697_v7, %v606_v31 }
 0x119   :  { %759 = vst.msk [vmem:[%s1699_s3 + $0x38] sm:$0xff] %vm751_vm1, %v698_v20  ;;  %471 = vmatmul.f32.gmra.mxu1 %v135_v35  ;;  %655 = vmatmul.f32.gmra.mxu3 %v137_v49  ;;  %v517_v41 = vadd.f32 %v516_v19, %v425_v38  ;;  %v351_v38 = vadd.f32 %v1308_v13, %v1330_v22 }
 0x11a   :  { %v700_v16 = vpop.f32.mrf.mxu0 }
 0x11c   :  { %v608_v44 = vpop.f32.mrf.mxu3 }
 0x11d   :  { %v609_v46 = vadd.f32 %v608_v44, %v517_v41  ;;  %805 = vmatmul.msk.f32.gmra.mxu0 %vm215_vm0, %v138_v40 }
 0x11e   :  { %v427_v48 = vpop.f32.mrf.mxu1  ;;  %v522_v50 = vpop.f32.mrf.mxu2 }
 0x11f   :  { %v428_v51 = vadd.f32 %v427_v48, %v336_v45  ;;  %v701_v54 = vadd.f32 %v700_v16, %v609_v46 }
 0x121   :  { %760 = vst.msk [vmem:[%s1699_s3 + $0x40] sm:$0xff] %vm751_vm1, %v701_v54  ;;  %v520_v55 = vadd.f32 %v519_v36, %v428_v51 }
 0x122   :  { %v703_v59 = vpop.f32.mrf.mxu0 }
 0x124   :  { %v611_v56 = vpop.f32.mrf.mxu3 }
 0x125   :  { %v612_v60 = vadd.f32 %v611_v56, %v520_v55 }
 0x126   :  { %v430_v25 = vpop.f32.mrf.mxu1  ;;  %v525_v29 = vpop.f32.mrf.mxu2 }
 0x127   :  { %v431_v61 = vadd.f32 %v430_v25, %v339_v58  ;;  %v704_v0 = vadd.f32 %v703_v59, %v612_v60 }
 0x129   :  { %761 = vst.msk [vmem:[%s1699_s3 + $0x48] sm:$0xff] %vm751_vm1, %v704_v0  ;;  %v523_v2 = vadd.f32 %v522_v50, %v431_v61 }
 0x12a   :  { %v706_v1 = vpop.f32.mrf.mxu0 }
 0x12c   :  { %v614_v3 = vpop.f32.mrf.mxu3 }
 0x12d   :  { %v615_v6 = vadd.f32 %v614_v3, %v523_v2 }
 0x12e   :  { %v433_v4 = vpop.f32.mrf.mxu1  ;;  %v528_v8 = vpop.f32.mrf.mxu2 }
 0x12f   :  { %v434_v34 = vadd.f32 %v433_v4, %v342_v5  ;;  %v707_v10 = vadd.f32 %v706_v1, %v615_v6 }
 0x131   :  { %762 = vst.msk [vmem:[%s1699_s3 + $0x50] sm:$0xff] %vm751_vm1, %v707_v10  ;;  %v526_v14 = vadd.f32 %v525_v29, %v434_v34 }
 0x132   :  { %v709_v12 = vpop.f32.mrf.mxu0 }
 0x134   :  { %v617_v17 = vpop.f32.mrf.mxu3 }
 0x135   :  { %v618_v18 = vadd.f32 %v617_v17, %v526_v14 }
 0x136   :  { %v436_v11 = vpop.f32.mrf.mxu1  ;;  %v531_v19 = vpop.f32.mrf.mxu2 }
 0x137   :  { %v437_v43 = vadd.f32 %v436_v11, %v345_v39  ;;  %v710_v21 = vadd.f32 %v709_v12, %v618_v18 }
 0x139   :  { %763 = vst.msk [vmem:[%s1699_s3 + $0x58] sm:$0xff] %vm751_vm1, %v710_v21  ;;  %v529_v7 = vadd.f32 %v528_v8, %v437_v43 }
 0x13a   :  { %v712_v23 = vpop.f32.mrf.mxu0 }
 0x13c   :  { %v620_v26 = vpop.f32.mrf.mxu3 }
 0x13d   :  { %v621_v28 = vadd.f32 %v620_v26, %v529_v7 }
 0x13e   :  { %v439_v30 = vpop.f32.mrf.mxu1  ;;  %v534_v31 = vpop.f32.mrf.mxu2 }
 0x13f   :  { %v440_v53 = vadd.f32 %v439_v30, %v348_v27  ;;  %v713_v33 = vadd.f32 %v712_v23, %v621_v28 }
 0x141   :  { %764 = vst.msk [vmem:[%s1699_s3 + $0x60] sm:$0xff] %vm751_vm1, %v713_v33  ;;  %v532_v49 = vadd.f32 %v531_v19, %v440_v53 }
 0x142   :  { %v715_v35 = vpop.f32.mrf.mxu0 }
 0x144   :  { %v623_v36 = vpop.f32.mrf.mxu3 }
 0x145   :  { %v624_v20 = vadd.f32 %v623_v36, %v532_v49 }
 0x146   :  { %v442_v16 = vpop.f32.mrf.mxu1  ;;  %v537_v40 = vpop.f32.mrf.mxu2 }
 0x147   :  { %v443_v63 = vadd.f32 %v442_v16, %v351_v38  ;;  %v716_v41 = vadd.f32 %v715_v35, %v624_v20 }
 0x149   :  { %765 = vst.msk [vmem:[%s1699_s3 + $0x68] sm:$0xff] %vm751_vm1, %v716_v41  ;;  %v535_v45 = vadd.f32 %v534_v31, %v443_v63 }
 0x14a   :  { %v718_v44 = vpop.f32.mrf.mxu0 }
 0x14c   :  { %v626_v46 = vpop.f32.mrf.mxu3 }
 0x14d   :  { %v627_v48 = vadd.f32 %v626_v46, %v535_v45 }
 0x14e   :  { %v445_v50 = vpop.f32.mrf.mxu1  ;;  %v540_v51 = vpop.f32.mrf.mxu2 }
 0x14f   :  { %v446_v54 = vadd.f32 %v445_v50, %v1365_v37  ;;  %v719_v59 = vadd.f32 %v718_v44, %v627_v48 }
 0x151   :  { %766 = vst.msk [vmem:[%s1699_s3 + $0x70] sm:$0xff] %vm751_vm1, %v719_v59  ;;  %v538_v22 = vadd.f32 %v537_v40, %v446_v54 }
 0x152   :  { %v721_v13 = vpop.f32.mrf.mxu0 }
 0x154   :  { %v629_v55 = vpop.f32.mrf.mxu3 }
 0x155   :  { %v630_v56 = vadd.f32 %v629_v55, %v538_v22 }
 0x156   :  { %v448_v58 = vpop.f32.mrf.mxu1  ;;  %v543_v60 = vpop.f32.mrf.mxu2 }
 0x157   :  { %v449_v25 = vadd.f32 %v448_v58, %v1388_v47  ;;  %v722_v29 = vadd.f32 %v721_v13, %v630_v56 }
 0x159   :  { %767 = vst.msk [vmem:[%s1699_s3 + $0x78] sm:$0xff] %vm751_vm1, %v722_v29  ;;  %v541_v61 = vadd.f32 %v540_v51, %v449_v25 }
 0x15a   :  { %v724_v37 = vpop.f32.mrf.mxu0 }
 0x15c   :  { %v632_v0 = vpop.f32.mrf.mxu3 }
 0x15d   :  { %v633_v1 = vadd.f32 %v632_v0, %v541_v61 }
 0x15e   :  { %v451_v2 = vpop.f32.mrf.mxu1  ;;  %v546_v3 = vpop.f32.mrf.mxu2 }
 0x15f   :  { %v452_v5 = vadd.f32 %v451_v2, %v1411_v57  ;;  %v725_v6 = vadd.f32 %v724_v37, %v633_v1 }
 0x161   :  { %768 = vst.msk [vmem:[%s1699_s3 + $0x80] sm:$0xff] %vm751_vm1, %v725_v6  ;;  %v544_v4 = vadd.f32 %v543_v60, %v452_v5 }
 0x162   :  { %v727_v47 = vpop.f32.mrf.mxu0 }
 0x164   :  { %v635_v8 = vpop.f32.mrf.mxu3 }
 0x165   :  { %v636_v34 = vadd.f32 %v635_v8, %v544_v4 }
 0x166   :  { %v454_v10 = vpop.f32.mrf.mxu1  ;;  %v549_v12 = vpop.f32.mrf.mxu2 }
 0x167   :  { %v455_v14 = vadd.f32 %v454_v10, %v1311_v15  ;;  %v728_v17 = vadd.f32 %v727_v47, %v636_v34 }
 0x169   :  { %769 = vst.msk [vmem:[%s1699_s3 + $0x88] sm:$0xff] %vm751_vm1, %v728_v17  ;;  %v547_v39 = vadd.f32 %v546_v3, %v455_v14 }
 0x16a   :  { %v730_v57 = vpop.f32.mrf.mxu0 }
 0x16c   :  { %v638_v18 = vpop.f32.mrf.mxu3 }
 0x16d   :  { %v639_v11 = vadd.f32 %v638_v18, %v547_v39 }
 0x16e   :  { %v457_v19 = vpop.f32.mrf.mxu1  ;;  %v552_v23 = vpop.f32.mrf.mxu2 }
 0x16f   :  { %v458_v43 = vadd.f32 %v457_v19, %v1333_v24  ;;  %v731_v21 = vadd.f32 %v730_v57, %v639_v11 }
 0x171   :  { %770 = vst.msk [vmem:[%s1699_s3 + $0x90] sm:$0xff] %vm751_vm1, %v731_v21  ;;  %v550_v7 = vadd.f32 %v549_v12, %v458_v43 }
 0x172   :  { %v733_v15 = vpop.f32.mrf.mxu0 }
 0x174   :  { %v641_v26 = vpop.f32.mrf.mxu3 }
 0x175   :  { %v642_v27 = vadd.f32 %v641_v26, %v550_v7 }
 0x176   :  { %v460_v28 = vpop.f32.mrf.mxu1  ;;  %v555_v53 = vpop.f32.mrf.mxu2 }
 0x177   :  { %v461_v30 = vadd.f32 %v460_v28, %v1353_v32  ;;  %v734_v31 = vadd.f32 %v733_v15, %v642_v27 }
 0x179   :  { %771 = vst.msk [vmem:[%s1699_s3 + $0x98] sm:$0xff] %vm751_vm1, %v734_v31  ;;  %v553_v33 = vadd.f32 %v552_v23, %v461_v30 }
 0x17a   :  { %v736_v24 = vpop.f32.mrf.mxu0 }
 0x17c   :  { %v644_v35 = vpop.f32.mrf.mxu3 }
 0x17d   :  { %v645_v49 = vadd.f32 %v644_v35, %v553_v33 }
 0x17e   :  { %v463_v36 = vpop.f32.mrf.mxu1  ;;  %v558_v63 = vpop.f32.mrf.mxu2 }
 0x17f   :  { %v464_v38 = vadd.f32 %v463_v36, %v1376_v42  ;;  %v737_v20 = vadd.f32 %v736_v24, %v645_v49 }
 0x181   :  { %772 = vst.msk [vmem:[%s1699_s3 + $0xa0] sm:$0xff] %vm751_vm1, %v737_v20  ;;  %v556_v16 = vadd.f32 %v555_v53, %v464_v38 }
 0x182   :  { %v739_v32 = vpop.f32.mrf.mxu0 }
 0x184   :  { %v647_v40 = vpop.f32.mrf.mxu3 }
 0x185   :  { %v648_v41 = vadd.f32 %v647_v40, %v556_v16 }
 0x186   :  { %v466_v44 = vpop.f32.mrf.mxu1  ;;  %v561_v59 = vpop.f32.mrf.mxu2 }
 0x187   :  { %v467_v45 = vadd.f32 %v466_v44, %v1399_v52  ;;  %v740_v46 = vadd.f32 %v739_v32, %v648_v41 }
 0x189   :  { %773 = vst.msk [vmem:[%s1699_s3 + $0xa8] sm:$0xff] %vm751_vm1, %v740_v46  ;;  %v559_v48 = vadd.f32 %v558_v63, %v467_v45 }
 0x18a   :  { %v742_v42 = vpop.f32.mrf.mxu0 }
 0x18c   :  { %v650_v50 = vpop.f32.mrf.mxu3 }
 0x18d   :  { %v651_v51 = vadd.f32 %v650_v50, %v559_v48 }
 0x18e   :  { %v469_v54 = vpop.f32.mrf.mxu1  ;;  %v564_v37 = vpop.f32.mrf.mxu2 }
 0x18f   :  { %v470_v13 = vadd.f32 %v469_v54, %v1422_v62  ;;  %v743_v22 = vadd.f32 %v742_v42, %v651_v51 }
 0x191   :  { %774 = vst.msk [vmem:[%s1699_s3 + $0xb0] sm:$0xff] %vm751_vm1, %v743_v22  ;;  %v562_v55 = vadd.f32 %v561_v59, %v470_v13 }
 0x192   :  { %v745_v52 = vpop.f32.mrf.mxu0 }
 0x194   :  { %v653_v56 = vpop.f32.mrf.mxu3 }
 0x195   :  { %v654_v58 = vadd.f32 %v653_v56, %v562_v55 }
 0x196   :  { %v472_v60 = vpop.f32.mrf.mxu1 }
 0x197   :  { %v473_v25 = vadd.f32 %v472_v60, %v1444_v9  ;;  %v746_v29 = vadd.f32 %v745_v52, %v654_v58 }
 0x199   :  { %775 = vst.msk [vmem:[%s1699_s3 + $0xb8] sm:$0xff] %vm751_vm1, %v746_v29  ;;  %v565_v62 = vadd.f32 %v564_v37, %v473_v25 }
 0x19a   :  { %v748_v0 = vpop.f32.mrf.mxu0 }
 0x19c   :  { %v656_v61 = vpop.f32.mrf.mxu3 }
 0x19d   :  { %v657_v1 = vadd.f32 %v656_v61, %v565_v62 }
 0x19f   :  { %v749_v2 = vadd.f32 %v748_v0, %v657_v1 }
 0x1a1   :  { %776 = vst.msk [vmem:[%s1699_s3 + $0xc0] sm:$0xff] %vm751_vm1, %v749_v2 }

// kernel: forward.11
= control target key start
LH: loop header
LB: loop body
LE: loop exit
PB: predicated region body
PF: predicated region fallthrough
CT: control target
= control target key end

     0   :  { %vm128_vm0 = vcmask 1043456   ;;  %vm52_vm1 = vcmask 31744   ;;  %vm603_vm2 = vcmask 523264   ;;  %s1627_s1 = inlined_call_operand.vmem [shape: f32[4,576], index: 1, kind: input, shape index: {}]   ;;  %s1628_s0 = inlined_call_operand.vmem [shape: f32[200,4], index: 0, kind: input, shape index: {}]   ;;  %s1629_s2 = inlined_call_operand.vmem [shape: f32[200,576], index: 2, kind: output, shape index: {}]  }
   0x1   :  { %v36_v0 = vld [vmem:[%s1627_s1] sm:$0xff]  ;;  %v37_v1 = vld [vmem:[%s1627_s1 + $0x8] sm:$0xff]  ;;  %v38_v2 = vld [vmem:[%s1627_s1 + $0x10] sm:$0xf] }
   0x2   :  { %42 = vst [vmem:[#allocation1] ss:$2 sm:$0xff] %v36_v0  ;;  %v889_v3 = vld [vmem:[%s1628_s0 + $0x70] sm:$0xff]  ;;  %v894_v5 = vld [vmem:[%s1628_s0] sm:$0xff]  ;;  %v901_v7 = vld [vmem:[%s1628_s0 + $0x38] sm:$0xff] }
   0x3   :  { %44 = vst [vmem:[#allocation1 + $0x10] ss:$2 sm:$0xff] %v37_v1  ;;  %v912_v10 = vld [vmem:[%s1628_s0 + $0xa8] sm:$0xff]  ;;  %v924_v12 = vld [vmem:[%s1628_s0 + $0x78] sm:$0xff]  ;;  %v933_v14 = vld [vmem:[%s1628_s0 + $0x40] sm:$0xff] }
   0x4   :  { %46 = vst [vmem:[#allocation1 + $0x20] ss:$2 sm:$0xff] %v38_v2  ;;  %v12_v13 = vld [vmem:[%s1628_s0 + $0x8] sm:$0xff]  ;;  %v941_v15 = vld [vmem:[%s1628_s0 + $0xb0] sm:$0xff]  ;;  %v950_v16 = vld [vmem:[%s1628_s0 + $0x80] sm:$0xff] }
   0x5   :  { %v13_v17 = vld [vmem:[%s1628_s0 + $0x10] sm:$0xff]  ;;  %v958_v18 = vld [vmem:[%s1628_s0 + $0x48] sm:$0xff]  ;;  %v966_v19 = vld [vmem:[%s1628_s0 + $0xb8] sm:$0xff] }
   0x6   :  { %v975_v20 = vld [vmem:[%s1628_s0 + $0x88] sm:$0xff]  ;;  %v14_v21 = vld [vmem:[%s1628_s0 + $0x18] sm:$0xff]  ;;  %v983_v22 = vld [vmem:[%s1628_s0 + $0x50] sm:$0xff] }
   0x7   :  { %v991_v23 = vld [vmem:[%s1628_s0 + $0xc0] sm:$0xff]  ;;  %v1000_v24 = vld [vmem:[%s1628_s0 + $0x90] sm:$0xff]  ;;  %v1008_v26 = vld [vmem:[%s1628_s0 + $0x58] sm:$0xff] }
   0x8   :  { %v15_v25 = vld [vmem:[%s1628_s0 + $0x20] sm:$0xff]  ;;  %v1020_v27 = vld [vmem:[%s1628_s0 + $0x98] sm:$0xff]  ;;  %v16_v28 = vld [vmem:[%s1628_s0 + $0x28] sm:$0xff] }
   0x9   :  { %v47_v4 = vld.sshfl [vmem:[#allocation1] sm:$0xff pattern:$0x75316420]  ;;  %v48_v8 = vld.sshfl [vmem:[#allocation1 + $0x8] sm:$0xff pattern:$0x75316420] }
   0xa   :  { %860 = vmatpush.msk.msra.mxu2 %vm128_vm0, %v47_v4  ;;  %v49_v6 = vld.sshfl [vmem:[#allocation1 + $0x10] sm:$0xff pattern:$0x75316420]  ;;  %729 = vmatpush.msk.msra.mxu0 %vm128_vm0, %v47_v4  ;;  %v50_v11 = vld.sshfl [vmem:[#allocation1 + $0x18] sm:$0xff pattern:$0x75316420] }
   0xb   :  { %744 = vmatmul.msk.f32.vlgmr.msra.gmra.mxu2 %vm52_vm1, %v889_v3  ;;  %859 = vmatpush.msk.msra.mxu1 %vm128_vm0, %v47_v4  ;;  %v51_v9 = vld.sshfl [vmem:[#allocation1 + $0x20] sm:$0xff pattern:$0x75316420]  ;;  %v17_v31 = vld [vmem:[%s1628_s0 + $0x30] sm:$0xff]  ;;  %v1047_v32 = vld [vmem:[%s1628_s0 + $0x68] sm:$0xff] }
   0xc   :  { %781 = vmatpush.msk.msrb.mxu2 %vm128_vm0, %v49_v6  ;;  %730 = vmatmul.msk.f32.vlgmr.msra.gmra.mxu0 %vm52_vm1, %v894_v5  ;;  %v1028_v29 = vld [vmem:[%s1628_s0 + $0x60] sm:$0xff] }
   0xd   :  { %737 = vmatmul.msk.f32.vlgmr.msra.gmra.mxu1 %vm52_vm1, %v901_v7  ;;  %833 = vmatpush.msk.msrb.mxu0 %vm128_vm0, %v51_v9  ;;  %v1039_v30 = vld [vmem:[%s1628_s0 + $0xa0] sm:$0xff] }
   0xe   :  { %755 = vmatpush.msk.msrb.mxu1 %vm128_vm0, %v48_v8  ;;  %861 = vmatpush.msk.msra.mxu3 %vm128_vm0, %v47_v4 }
   0xf   :  { %751 = vmatmul.msk.f32.vlgmr.msra.gmra.mxu3 %vm52_vm1, %v912_v10 }
  0x10   :  { %807 = vmatpush.msk.msrb.mxu3 %vm128_vm0, %v50_v11 }
  0x13   :  { %745 = vmatmul.msk.f32.gmra.mxu2 %vm52_vm1, %v924_v12 }
  0x14   :  { %731 = vmatmul.msk.f32.gmra.mxu0 %vm52_vm1, %v12_v13 }
  0x15   :  { %738 = vmatmul.msk.f32.gmra.mxu1 %vm52_vm1, %v933_v14 }
  0x17   :  { %752 = vmatmul.msk.f32.gmra.mxu3 %vm52_vm1, %v941_v15 }
  0x1b   :  { %746 = vmatmul.msk.f32.gmra.mxu2 %vm52_vm1, %v950_v16 }
  0x1c   :  { %732 = vmatmul.msk.f32.gmra.mxu0 %vm52_vm1, %v13_v17 }
  0x1d   :  { %739 = vmatmul.msk.f32.gmra.mxu1 %vm52_vm1, %v958_v18 }
  0x1f   :  { %753 = vmatmul.msk.f32.gmra.mxu3 %vm52_vm1, %v966_v19 }
  0x23   :  { %747 = vmatmul.msk.f32.gmra.mxu2 %vm52_vm1, %v975_v20 }
  0x24   :  { %733 = vmatmul.msk.f32.gmra.mxu0 %vm52_vm1, %v14_v21 }
  0x25   :  { %740 = vmatmul.msk.f32.gmra.mxu1 %vm52_vm1, %v983_v22 }
  0x27   :  { %754 = vmatmul.msk.f32.gmra.mxu3 %vm52_vm1, %v991_v23 }
  0x2b   :  { %748 = vmatmul.msk.f32.gmra.mxu2 %vm52_vm1, %v1000_v24 }
  0x2c   :  { %734 = vmatmul.msk.f32.gmra.mxu0 %vm52_vm1, %v15_v25 }
  0x2d   :  { %741 = vmatmul.msk.f32.gmra.mxu1 %vm52_vm1, %v1008_v26 }
  0x2f   :  { %808 = vmatmul.msk.f32.vlgmr.msrb.gmra.mxu3 %vm52_vm1, %v894_v5 }
  0x33   :  { %749 = vmatmul.msk.f32.gmra.mxu2 %vm52_vm1, %v1020_v27 }
  0x34   :  { %735 = vmatmul.msk.f32.gmra.mxu0 %vm52_vm1, %v16_v28 }
  0x35   :  { %742 = vmatmul.msk.f32.gmra.mxu1 %vm52_vm1, %v1028_v29 }
  0x37   :  { %809 = vmatmul.msk.f32.gmra.mxu3 %vm52_vm1, %v12_v13 }
  0x3b   :  { %750 = vmatmul.msk.f32.gmra.mxu2 %vm52_vm1, %v1039_v30 }
  0x3c   :  { %736 = vmatmul.msk.f32.gmra.mxu0 %vm52_vm1, %v17_v31 }
  0x3d   :  { %743 = vmatmul.msk.f32.gmra.mxu1 %vm52_vm1, %v1047_v32 }
  0x3f   :  { %810 = vmatmul.msk.f32.gmra.mxu3 %vm52_vm1, %v13_v17 }
  0x43   :  { %782 = vmatmul.msk.f32.vlgmr.msrb.gmra.mxu2 %vm52_vm1, %v894_v5 }
  0x44   :  { %834 = vmatmul.msk.f32.vlgmr.msrb.gmra.mxu0 %vm52_vm1, %v894_v5 }
  0x45   :  { %756 = vmatmul.msk.f32.vlgmr.msrb.gmra.mxu1 %vm52_vm1, %v894_v5 }
  0x47   :  { %811 = vmatmul.msk.f32.gmra.mxu3 %vm52_vm1, %v14_v21 }
  0x4b   :  { %783 = vmatmul.msk.f32.gmra.mxu2 %vm52_vm1, %v12_v13 }
  0x4c   :  { %835 = vmatmul.msk.f32.gmra.mxu0 %vm52_vm1, %v12_v13 }
  0x4d   :  { %757 = vmatmul.msk.f32.gmra.mxu1 %vm52_vm1, %v12_v13 }
  0x4f   :  { %812 = vmatmul.msk.f32.gmra.mxu3 %vm52_vm1, %v15_v25 }
  0x53   :  { %784 = vmatmul.msk.f32.gmra.mxu2 %vm52_vm1, %v13_v17 }
  0x54   :  { %836 = vmatmul.msk.f32.gmra.mxu0 %vm52_vm1, %v13_v17 }
  0x55   :  { %758 = vmatmul.msk.f32.gmra.mxu1 %vm52_vm1, %v13_v17 }
  0x57   :  { %813 = vmatmul.msk.f32.gmra.mxu3 %vm52_vm1, %v16_v28 }
  0x5b   :  { %785 = vmatmul.msk.f32.gmra.mxu2 %vm52_vm1, %v14_v21 }
  0x5c   :  { %837 = vmatmul.msk.f32.gmra.mxu0 %vm52_vm1, %v14_v21 }
  0x5d   :  { %759 = vmatmul.msk.f32.gmra.mxu1 %vm52_vm1, %v14_v21 }
  0x5f   :  { %814 = vmatmul.msk.f32.gmra.mxu3 %vm52_vm1, %v17_v31 }
  0x63   :  { %786 = vmatmul.msk.f32.gmra.mxu2 %vm52_vm1, %v15_v25 }
  0x64   :  { %838 = vmatmul.msk.f32.gmra.mxu0 %vm52_vm1, %v15_v25 }
  0x65   :  { %760 = vmatmul.msk.f32.gmra.mxu1 %vm52_vm1, %v15_v25 }
  0x67   :  { %815 = vmatmul.msk.f32.gmra.mxu3 %vm52_vm1, %v901_v7 }
  0x6b   :  { %787 = vmatmul.msk.f32.gmra.mxu2 %vm52_vm1, %v16_v28 }
  0x6c   :  { %839 = vmatmul.msk.f32.gmra.mxu0 %vm52_vm1, %v16_v28 }
  0x6d   :  { %761 = vmatmul.msk.f32.gmra.mxu1 %vm52_vm1, %v16_v28 }
  0x6f   :  { %816 = vmatmul.msk.f32.gmra.mxu3 %vm52_vm1, %v933_v14 }
  0x73   :  { %788 = vmatmul.msk.f32.gmra.mxu2 %vm52_vm1, %v17_v31 }
  0x74   :  { %840 = vmatmul.msk.f32.gmra.mxu0 %vm52_vm1, %v17_v31 }
  0x75   :  { %762 = vmatmul.msk.f32.gmra.mxu1 %vm52_vm1, %v17_v31 }
  0x77   :  { %817 = vmatmul.msk.f32.gmra.mxu3 %vm52_vm1, %v958_v18 }
  0x7b   :  { %789 = vmatmul.msk.f32.gmra.mxu2 %vm52_vm1, %v901_v7 }
  0x7c   :  { %841 = vmatmul.msk.f32.gmra.mxu0 %vm52_vm1, %v901_v7 }
  0x7d   :  { %763 = vmatmul.msk.f32.gmra.mxu1 %vm52_vm1, %v901_v7 }
  0x7f   :  { %818 = vmatmul.msk.f32.gmra.mxu3 %vm52_vm1, %v983_v22 }
  0x83   :  { %790 = vmatmul.msk.f32.gmra.mxu2 %vm52_vm1, %v933_v14 }
  0x84   :  { %842 = vmatmul.msk.f32.gmra.mxu0 %vm52_vm1, %v933_v14 }
  0x85   :  { %764 = vmatmul.msk.f32.gmra.mxu1 %vm52_vm1, %v933_v14 }
  0x87   :  { %819 = vmatmul.msk.f32.gmra.mxu3 %vm52_vm1, %v1008_v26 }
  0x89   :  { %v156_v33 = vpop.f32.mrf.mxu0 }
  0x8a   :  { %599 = vst [vmem:[%s1629_s2] sm:$0xff] %v156_v33  ;;  %v177_v34 = vpop.f32.mrf.mxu1 }
  0x8b   :  { %791 = vmatmul.msk.f32.gmra.mxu2 %vm52_vm1, %v958_v18  ;;  %635 = vst [vmem:[%s1629_s2 + $0x118] sm:$0xff] %v177_v34 }
  0x8c   :  { %843 = vmatmul.msk.f32.gmra.mxu0 %vm52_vm1, %v958_v18 }
  0x8d   :  { %765 = vmatmul.msk.f32.gmra.mxu1 %vm52_vm1, %v958_v18 }
  0x8e   :  { %v198_v35 = vpop.f32.mrf.mxu2 }
  0x8f   :  { %670 = vst [vmem:[%s1629_s2 + $0x230] sm:$0xff] %v198_v35  ;;  %820 = vmatmul.msk.f32.gmra.mxu3 %vm52_vm1, %v1028_v29 }
  0x91   :  { %v159_v36 = vpop.f32.mrf.mxu0 }
  0x92   :  { %605 = vst [vmem:[%s1629_s2 + $0x28] sm:$0xff] %v159_v36  ;;  %v180_v37 = vpop.f32.mrf.mxu1  ;;  %v219_v38 = vpop.f32.mrf.mxu3 }
  0x93   :  { %792 = vmatmul.msk.f32.gmra.mxu2 %vm52_vm1, %v983_v22  ;;  %640 = vst [vmem:[%s1629_s2 + $0x140] sm:$0xff] %v180_v37 }
  0x94   :  { %844 = vmatmul.msk.f32.gmra.mxu0 %vm52_vm1, %v983_v22  ;;  %705 = vst [vmem:[%s1629_s2 + $0x348] sm:$0xff] %v219_v38 }
  0x95   :  { %766 = vmatmul.msk.f32.gmra.mxu1 %vm52_vm1, %v983_v22 }
  0x96   :  { %v201_v39 = vpop.f32.mrf.mxu2 }
  0x97   :  { %675 = vst [vmem:[%s1629_s2 + $0x258] sm:$0xff] %v201_v39  ;;  %821 = vmatmul.msk.f32.gmra.mxu3 %vm52_vm1, %v1047_v32 }
  0x99   :  { %v162_v40 = vpop.f32.mrf.mxu0 }
  0x9a   :  { %610 = vst [vmem:[%s1629_s2 + $0x50] sm:$0xff] %v162_v40  ;;  %v183_v41 = vpop.f32.mrf.mxu1  ;;  %v222_v42 = vpop.f32.mrf.mxu3 }
  0x9b   :  { %793 = vmatmul.msk.f32.gmra.mxu2 %vm52_vm1, %v1008_v26  ;;  %645 = vst [vmem:[%s1629_s2 + $0x168] sm:$0xff] %v183_v41 }
  0x9c   :  { %845 = vmatmul.msk.f32.gmra.mxu0 %vm52_vm1, %v1008_v26  ;;  %710 = vst [vmem:[%s1629_s2 + $0x370] sm:$0xff] %v222_v42 }
  0x9d   :  { %767 = vmatmul.msk.f32.gmra.mxu1 %vm52_vm1, %v1008_v26 }
  0x9e   :  { %v204_v43 = vpop.f32.mrf.mxu2 }
  0x9f   :  { %680 = vst [vmem:[%s1629_s2 + $0x280] sm:$0xff] %v204_v43  ;;  %822 = vmatmul.msk.f32.gmra.mxu3 %vm52_vm1, %v889_v3 }
  0xa1   :  { %v165_v44 = vpop.f32.mrf.mxu0 }
  0xa2   :  { %615 = vst [vmem:[%s1629_s2 + $0x78] sm:$0xff] %v165_v44  ;;  %v186_v45 = vpop.f32.mrf.mxu1  ;;  %v225_v46 = vpop.f32.mrf.mxu3 }
  0xa3   :  { %794 = vmatmul.msk.f32.gmra.mxu2 %vm52_vm1, %v1028_v29  ;;  %650 = vst [vmem:[%s1629_s2 + $0x190] sm:$0xff] %v186_v45 }
  0xa4   :  { %846 = vmatmul.msk.f32.gmra.mxu0 %vm52_vm1, %v1028_v29  ;;  %715 = vst [vmem:[%s1629_s2 + $0x398] sm:$0xff] %v225_v46 }
  0xa5   :  { %768 = vmatmul.msk.f32.gmra.mxu1 %vm52_vm1, %v1028_v29 }
  0xa6   :  { %v207_v47 = vpop.f32.mrf.mxu2 }
  0xa7   :  { %685 = vst [vmem:[%s1629_s2 + $0x2a8] sm:$0xff] %v207_v47  ;;  %823 = vmatmul.msk.f32.gmra.mxu3 %vm52_vm1, %v924_v12 }
  0xa9   :  { %v168_v48 = vpop.f32.mrf.mxu0 }
  0xaa   :  { %620 = vst [vmem:[%s1629_s2 + $0xa0] sm:$0xff] %v168_v48  ;;  %v189_v49 = vpop.f32.mrf.mxu1  ;;  %v228_v50 = vpop.f32.mrf.mxu3 }
  0xab   :  { %795 = vmatmul.msk.f32.gmra.mxu2 %vm52_vm1, %v1047_v32  ;;  %655 = vst [vmem:[%s1629_s2 + $0x1b8] sm:$0xff] %v189_v49 }
  0xac   :  { %847 = vmatmul.msk.f32.gmra.mxu0 %vm52_vm1, %v1047_v32  ;;  %720 = vst [vmem:[%s1629_s2 + $0x3c0] sm:$0xff] %v228_v50 }
  0xad   :  { %769 = vmatmul.msk.f32.gmra.mxu1 %vm52_vm1, %v1047_v32 }
  0xae   :  { %v210_v51 = vpop.f32.mrf.mxu2 }
  0xaf   :  { %690 = vst [vmem:[%s1629_s2 + $0x2d0] sm:$0xff] %v210_v51  ;;  %824 = vmatmul.msk.f32.gmra.mxu3 %vm52_vm1, %v950_v16 }
  0xb1   :  { %v171_v52 = vpop.f32.mrf.mxu0 }
  0xb2   :  { %625 = vst [vmem:[%s1629_s2 + $0xc8] sm:$0xff] %v171_v52  ;;  %v192_v53 = vpop.f32.mrf.mxu1  ;;  %v432_v54 = vpop.f32.mrf.mxu3 }
  0xb3   :  { %796 = vmatmul.msk.f32.gmra.mxu2 %vm52_vm1, %v889_v3  ;;  %660 = vst [vmem:[%s1629_s2 + $0x1e0] sm:$0xff] %v192_v53 }
  0xb4   :  { %848 = vmatmul.msk.f32.gmra.mxu0 %vm52_vm1, %v889_v3  ;;  %602 = vst [vmem:[%s1629_s2 + $0x18] sm:$0xff] %v432_v54 }
  0xb5   :  { %770 = vmatmul.msk.f32.gmra.mxu1 %vm52_vm1, %v889_v3 }
  0xb6   :  { %v213_v55 = vpop.f32.mrf.mxu2 }
  0xb7   :  { %695 = vst [vmem:[%s1629_s2 + $0x2f8] sm:$0xff] %v213_v55  ;;  %825 = vmatmul.msk.f32.gmra.mxu3 %vm52_vm1, %v975_v20 }
  0xb9   :  { %v174_v56 = vpop.f32.mrf.mxu0 }
  0xba   :  { %630 = vst [vmem:[%s1629_s2 + $0xf0] sm:$0xff] %v174_v56  ;;  %v195_v57 = vpop.f32.mrf.mxu1  ;;  %v435_v58 = vpop.f32.mrf.mxu3 }
  0xbb   :  { %797 = vmatmul.msk.f32.gmra.mxu2 %vm52_vm1, %v924_v12  ;;  %665 = vst [vmem:[%s1629_s2 + $0x208] sm:$0xff] %v195_v57 }
  0xbc   :  { %849 = vmatmul.msk.f32.gmra.mxu0 %vm52_vm1, %v924_v12  ;;  %608 = vst [vmem:[%s1629_s2 + $0x40] sm:$0xff] %v435_v58 }
  0xbd   :  { %771 = vmatmul.msk.f32.gmra.mxu1 %vm52_vm1, %v924_v12 }
  0xbe   :  { %v216_v59 = vpop.f32.mrf.mxu2 }
  0xbf   :  { %700 = vst [vmem:[%s1629_s2 + $0x320] sm:$0xff] %v216_v59  ;;  %826 = vmatmul.msk.f32.gmra.mxu3 %vm52_vm1, %v1000_v24 }
  0xc1   :  { %v524_v60 = vpop.f32.mrf.mxu0 }
  0xc2   :  { %v248_v61 = vpop.f32.mrf.mxu1  ;;  %604 = vst.msk [vmem:[%s1629_s2 + $0x20] sm:$0xff] %vm603_vm2, %v524_v60  ;;  %v438_v62 = vpop.f32.mrf.mxu3 }
  0xc3   :  { %798 = vmatmul.msk.f32.gmra.mxu2 %vm52_vm1, %v950_v16  ;;  %600 = vst [vmem:[%s1629_s2 + $0x8] sm:$0xff] %v248_v61 }
  0xc4   :  { %850 = vmatmul.msk.f32.gmra.mxu0 %vm52_vm1, %v950_v16  ;;  %613 = vst [vmem:[%s1629_s2 + $0x68] sm:$0xff] %v438_v62 }
  0xc5   :  { %772 = vmatmul.msk.f32.gmra.mxu1 %vm52_vm1, %v950_v16 }
  0xc6   :  { %v340_v63 = vpop.f32.mrf.mxu2 }
  0xc7   :  { %601 = vst [vmem:[%s1629_s2 + $0x10] sm:$0xff] %v340_v63  ;;  %827 = vmatmul.msk.f32.gmra.mxu3 %vm52_vm1, %v1020_v27 }
  0xc9   :  { %v527_v0 = vpop.f32.mrf.mxu0 }
  0xca   :  { %v251_v1 = vpop.f32.mrf.mxu1  ;;  %609 = vst.msk [vmem:[%s1629_s2 + $0x48] sm:$0xff] %vm603_vm2, %v527_v0  ;;  %v441_v2 = vpop.f32.mrf.mxu3 }
  0xcb   :  { %799 = vmatmul.msk.f32.gmra.mxu2 %vm52_vm1, %v975_v20  ;;  %606 = vst [vmem:[%s1629_s2 + $0x30] sm:$0xff] %v251_v1 }
  0xcc   :  { %851 = vmatmul.msk.f32.gmra.mxu0 %vm52_vm1, %v975_v20  ;;  %618 = vst [vmem:[%s1629_s2 + $0x90] sm:$0xff] %v441_v2 }
  0xcd   :  { %773 = vmatmul.msk.f32.gmra.mxu1 %vm52_vm1, %v975_v20 }
  0xce   :  { %v343_v3 = vpop.f32.mrf.mxu2 }
  0xcf   :  { %607 = vst [vmem:[%s1629_s2 + $0x38] sm:$0xff] %v343_v3  ;;  %828 = vmatmul.msk.f32.gmra.mxu3 %vm52_vm1, %v1039_v30 }
  0xd1   :  { %v530_v4 = vpop.f32.mrf.mxu0 }
  0xd2   :  { %v254_v5 = vpop.f32.mrf.mxu1  ;;  %614 = vst.msk [vmem:[%s1629_s2 + $0x70] sm:$0xff] %vm603_vm2, %v530_v4  ;;  %v444_v6 = vpop.f32.mrf.mxu3 }
  0xd3   :  { %800 = vmatmul.msk.f32.gmra.mxu2 %vm52_vm1, %v1000_v24  ;;  %611 = vst [vmem:[%s1629_s2 + $0x58] sm:$0xff] %v254_v5 }
  0xd4   :  { %852 = vmatmul.msk.f32.gmra.mxu0 %vm52_vm1, %v1000_v24  ;;  %623 = vst [vmem:[%s1629_s2 + $0xb8] sm:$0xff] %v444_v6 }
  0xd5   :  { %774 = vmatmul.msk.f32.gmra.mxu1 %vm52_vm1, %v1000_v24 }
  0xd6   :  { %v346_v7 = vpop.f32.mrf.mxu2 }
  0xd7   :  { %612 = vst [vmem:[%s1629_s2 + $0x60] sm:$0xff] %v346_v7  ;;  %829 = vmatmul.msk.f32.gmra.mxu3 %vm52_vm1, %v912_v10 }
  0xd9   :  { %v533_v8 = vpop.f32.mrf.mxu0 }
  0xda   :  { %v257_v9 = vpop.f32.mrf.mxu1  ;;  %619 = vst.msk [vmem:[%s1629_s2 + $0x98] sm:$0xff] %vm603_vm2, %v533_v8  ;;  %v447_v11 = vpop.f32.mrf.mxu3 }
  0xdb   :  { %801 = vmatmul.msk.f32.gmra.mxu2 %vm52_vm1, %v1020_v27  ;;  %616 = vst [vmem:[%s1629_s2 + $0x80] sm:$0xff] %v257_v9 }
  0xdc   :  { %853 = vmatmul.msk.f32.gmra.mxu0 %vm52_vm1, %v1020_v27  ;;  %628 = vst [vmem:[%s1629_s2 + $0xe0] sm:$0xff] %v447_v11 }
  0xdd   :  { %775 = vmatmul.msk.f32.gmra.mxu1 %vm52_vm1, %v1020_v27 }
  0xde   :  { %v349_v12 = vpop.f32.mrf.mxu2 }
  0xdf   :  { %617 = vst [vmem:[%s1629_s2 + $0x88] sm:$0xff] %v349_v12  ;;  %830 = vmatmul.msk.f32.gmra.mxu3 %vm52_vm1, %v941_v15 }
  0xe1   :  { %v536_v13 = vpop.f32.mrf.mxu0 }
  0xe2   :  { %v260_v14 = vpop.f32.mrf.mxu1  ;;  %624 = vst.msk [vmem:[%s1629_s2 + $0xc0] sm:$0xff] %vm603_vm2, %v536_v13  ;;  %v450_v16 = vpop.f32.mrf.mxu3 }
  0xe3   :  { %802 = vmatmul.msk.f32.gmra.mxu2 %vm52_vm1, %v1039_v30  ;;  %621 = vst [vmem:[%s1629_s2 + $0xa8] sm:$0xff] %v260_v14 }
  0xe4   :  { %854 = vmatmul.msk.f32.gmra.mxu0 %vm52_vm1, %v1039_v30  ;;  %633 = vst [vmem:[%s1629_s2 + $0x108] sm:$0xff] %v450_v16 }
  0xe5   :  { %776 = vmatmul.msk.f32.gmra.mxu1 %vm52_vm1, %v1039_v30 }
  0xe6   :  { %v352_v17 = vpop.f32.mrf.mxu2 }
  0xe7   :  { %622 = vst [vmem:[%s1629_s2 + $0xb0] sm:$0xff] %v352_v17  ;;  %831 = vmatmul.msk.f32.gmra.mxu3 %vm52_vm1, %v966_v19 }
  0xe9   :  { %v539_v18 = vpop.f32.mrf.mxu0 }
  0xea   :  { %v263_v20 = vpop.f32.mrf.mxu1  ;;  %629 = vst.msk [vmem:[%s1629_s2 + $0xe8] sm:$0xff] %vm603_vm2, %v539_v18  ;;  %v453_v21 = vpop.f32.mrf.mxu3 }
  0xeb   :  { %803 = vmatmul.msk.f32.gmra.mxu2 %vm52_vm1, %v912_v10  ;;  %626 = vst [vmem:[%s1629_s2 + $0xd0] sm:$0xff] %v263_v20 }
  0xec   :  { %855 = vmatmul.msk.f32.gmra.mxu0 %vm52_vm1, %v912_v10  ;;  %638 = vst [vmem:[%s1629_s2 + $0x130] sm:$0xff] %v453_v21 }
  0xed   :  { %777 = vmatmul.msk.f32.gmra.mxu1 %vm52_vm1, %v912_v10 }
  0xee   :  { %v355_v22 = vpop.f32.mrf.mxu2 }
  0xef   :  { %627 = vst [vmem:[%s1629_s2 + $0xd8] sm:$0xff] %v355_v22  ;;  %832 = vmatmul.msk.f32.gmra.mxu3 %vm52_vm1, %v991_v23 }
  0xf1   :  { %v542_v24 = vpop.f32.mrf.mxu0 }
  0xf2   :  { %v266_v25 = vpop.f32.mrf.mxu1  ;;  %634 = vst.msk [vmem:[%s1629_s2 + $0x110] sm:$0xff] %vm603_vm2, %v542_v24  ;;  %v456_v26 = vpop.f32.mrf.mxu3 }
  0xf3   :  { %804 = vmatmul.msk.f32.gmra.mxu2 %vm52_vm1, %v941_v15  ;;  %631 = vst [vmem:[%s1629_s2 + $0xf8] sm:$0xff] %v266_v25 }
  0xf4   :  { %856 = vmatmul.msk.f32.gmra.mxu0 %vm52_vm1, %v941_v15  ;;  %643 = vst [vmem:[%s1629_s2 + $0x158] sm:$0xff] %v456_v26 }
  0xf5   :  { %778 = vmatmul.msk.f32.gmra.mxu1 %vm52_vm1, %v941_v15 }
  0xf6   :  { %v358_v10 = vpop.f32.mrf.mxu2 }
  0xf7   :  { %632 = vst [vmem:[%s1629_s2 + $0x100] sm:$0xff] %v358_v10 }
  0xf9   :  { %v545_v27 = vpop.f32.mrf.mxu0 }
  0xfa   :  { %v269_v28 = vpop.f32.mrf.mxu1  ;;  %639 = vst.msk [vmem:[%s1629_s2 + $0x138] sm:$0xff] %vm603_vm2, %v545_v27  ;;  %v459_v29 = vpop.f32.mrf.mxu3 }
  0xfb   :  { %805 = vmatmul.msk.f32.gmra.mxu2 %vm52_vm1, %v966_v19  ;;  %636 = vst [vmem:[%s1629_s2 + $0x120] sm:$0xff] %v269_v28 }
  0xfc   :  { %857 = vmatmul.msk.f32.gmra.mxu0 %vm52_vm1, %v966_v19  ;;  %648 = vst [vmem:[%s1629_s2 + $0x180] sm:$0xff] %v459_v29 }
  0xfd   :  { %779 = vmatmul.msk.f32.gmra.mxu1 %vm52_vm1, %v966_v19 }
  0xfe   :  { %v361_v15 = vpop.f32.mrf.mxu2 }
  0xff   :  { %637 = vst [vmem:[%s1629_s2 + $0x128] sm:$0xff] %v361_v15 }
 0x101   :  { %v548_v30 = vpop.f32.mrf.mxu0 }
 0x102   :  { %v272_v31 = vpop.f32.mrf.mxu1  ;;  %644 = vst.msk [vmem:[%s1629_s2 + $0x160] sm:$0xff] %vm603_vm2, %v548_v30  ;;  %v462_v32 = vpop.f32.mrf.mxu3 }
 0x103   :  { %806 = vmatmul.msk.f32.gmra.mxu2 %vm52_vm1, %v991_v23  ;;  %641 = vst [vmem:[%s1629_s2 + $0x148] sm:$0xff] %v272_v31 }
 0x104   :  { %858 = vmatmul.msk.f32.gmra.mxu0 %vm52_vm1, %v991_v23  ;;  %653 = vst [vmem:[%s1629_s2 + $0x1a8] sm:$0xff] %v462_v32 }
 0x105   :  { %780 = vmatmul.msk.f32.gmra.mxu1 %vm52_vm1, %v991_v23 }
 0x106   :  { %v364_v19 = vpop.f32.mrf.mxu2 }
 0x107   :  { %642 = vst [vmem:[%s1629_s2 + $0x150] sm:$0xff] %v364_v19 }
 0x109   :  { %v551_v33 = vpop.f32.mrf.mxu0 }
 0x10a   :  { %v275_v34 = vpop.f32.mrf.mxu1  ;;  %649 = vst.msk [vmem:[%s1629_s2 + $0x188] sm:$0xff] %vm603_vm2, %v551_v33  ;;  %v465_v35 = vpop.f32.mrf.mxu3 }
 0x10b   :  { %646 = vst [vmem:[%s1629_s2 + $0x170] sm:$0xff] %v275_v34 }
 0x10c   :  { %658 = vst [vmem:[%s1629_s2 + $0x1d0] sm:$0xff] %v465_v35 }
 0x10e   :  { %v367_v23 = vpop.f32.mrf.mxu2 }
 0x10f   :  { %647 = vst [vmem:[%s1629_s2 + $0x178] sm:$0xff] %v367_v23 }
 0x111   :  { %v554_v36 = vpop.f32.mrf.mxu0 }
 0x112   :  { %v278_v37 = vpop.f32.mrf.mxu1  ;;  %654 = vst.msk [vmem:[%s1629_s2 + $0x1b0] sm:$0xff] %vm603_vm2, %v554_v36  ;;  %v468_v38 = vpop.f32.mrf.mxu3 }
 0x113   :  { %651 = vst [vmem:[%s1629_s2 + $0x198] sm:$0xff] %v278_v37 }
 0x114   :  { %663 = vst [vmem:[%s1629_s2 + $0x1f8] sm:$0xff] %v468_v38 }
 0x116   :  { %v370_v39 = vpop.f32.mrf.mxu2 }
 0x117   :  { %652 = vst [vmem:[%s1629_s2 + $0x1a0] sm:$0xff] %v370_v39 }
 0x119   :  { %v557_v40 = vpop.f32.mrf.mxu0 }
 0x11a   :  { %v281_v41 = vpop.f32.mrf.mxu1  ;;  %659 = vst.msk [vmem:[%s1629_s2 + $0x1d8] sm:$0xff] %vm603_vm2, %v557_v40  ;;  %v471_v42 = vpop.f32.mrf.mxu3 }
 0x11b   :  { %656 = vst [vmem:[%s1629_s2 + $0x1c0] sm:$0xff] %v281_v41 }
 0x11c   :  { %668 = vst [vmem:[%s1629_s2 + $0x220] sm:$0xff] %v471_v42 }
 0x11e   :  { %v373_v43 = vpop.f32.mrf.mxu2 }
 0x11f   :  { %657 = vst [vmem:[%s1629_s2 + $0x1c8] sm:$0xff] %v373_v43 }
 0x121   :  { %v560_v44 = vpop.f32.mrf.mxu0 }
 0x122   :  { %v284_v45 = vpop.f32.mrf.mxu1  ;;  %664 = vst.msk [vmem:[%s1629_s2 + $0x200] sm:$0xff] %vm603_vm2, %v560_v44  ;;  %v474_v46 = vpop.f32.mrf.mxu3 }
 0x123   :  { %661 = vst [vmem:[%s1629_s2 + $0x1e8] sm:$0xff] %v284_v45 }
 0x124   :  { %673 = vst [vmem:[%s1629_s2 + $0x248] sm:$0xff] %v474_v46 }
 0x126   :  { %v376_v47 = vpop.f32.mrf.mxu2 }
 0x127   :  { %662 = vst [vmem:[%s1629_s2 + $0x1f0] sm:$0xff] %v376_v47 }
 0x129   :  { %v563_v48 = vpop.f32.mrf.mxu0 }
 0x12a   :  { %v287_v49 = vpop.f32.mrf.mxu1  ;;  %669 = vst.msk [vmem:[%s1629_s2 + $0x228] sm:$0xff] %vm603_vm2, %v563_v48  ;;  %v477_v50 = vpop.f32.mrf.mxu3 }
 0x12b   :  { %666 = vst [vmem:[%s1629_s2 + $0x210] sm:$0xff] %v287_v49 }
 0x12c   :  { %678 = vst [vmem:[%s1629_s2 + $0x270] sm:$0xff] %v477_v50 }
 0x12e   :  { %v379_v51 = vpop.f32.mrf.mxu2 }
 0x12f   :  { %667 = vst [vmem:[%s1629_s2 + $0x218] sm:$0xff] %v379_v51 }
 0x131   :  { %v566_v52 = vpop.f32.mrf.mxu0 }
 0x132   :  { %v290_v53 = vpop.f32.mrf.mxu1  ;;  %674 = vst.msk [vmem:[%s1629_s2 + $0x250] sm:$0xff] %vm603_vm2, %v566_v52  ;;  %v480_v54 = vpop.f32.mrf.mxu3 }
 0x133   :  { %671 = vst [vmem:[%s1629_s2 + $0x238] sm:$0xff] %v290_v53 }
 0x134   :  { %683 = vst [vmem:[%s1629_s2 + $0x298] sm:$0xff] %v480_v54 }
 0x136   :  { %v382_v55 = vpop.f32.mrf.mxu2 }
 0x137   :  { %672 = vst [vmem:[%s1629_s2 + $0x240] sm:$0xff] %v382_v55 }
 0x139   :  { %v569_v56 = vpop.f32.mrf.mxu0 }
 0x13a   :  { %v293_v57 = vpop.f32.mrf.mxu1  ;;  %679 = vst.msk [vmem:[%s1629_s2 + $0x278] sm:$0xff] %vm603_vm2, %v569_v56  ;;  %v483_v58 = vpop.f32.mrf.mxu3 }
 0x13b   :  { %676 = vst [vmem:[%s1629_s2 + $0x260] sm:$0xff] %v293_v57 }
 0x13c   :  { %688 = vst [vmem:[%s1629_s2 + $0x2c0] sm:$0xff] %v483_v58 }
 0x13e   :  { %v385_v59 = vpop.f32.mrf.mxu2 }
 0x13f   :  { %677 = vst [vmem:[%s1629_s2 + $0x268] sm:$0xff] %v385_v59 }
 0x141   :  { %v572_v60 = vpop.f32.mrf.mxu0 }
 0x142   :  { %v296_v61 = vpop.f32.mrf.mxu1  ;;  %684 = vst.msk [vmem:[%s1629_s2 + $0x2a0] sm:$0xff] %vm603_vm2, %v572_v60  ;;  %v486_v62 = vpop.f32.mrf.mxu3 }
 0x143   :  { %681 = vst [vmem:[%s1629_s2 + $0x288] sm:$0xff] %v296_v61 }
 0x144   :  { %693 = vst [vmem:[%s1629_s2 + $0x2e8] sm:$0xff] %v486_v62 }
 0x146   :  { %v388_v63 = vpop.f32.mrf.mxu2 }
 0x147   :  { %682 = vst [vmem:[%s1629_s2 + $0x290] sm:$0xff] %v388_v63 }
 0x149   :  { %v575_v0 = vpop.f32.mrf.mxu0 }
 0x14a   :  { %v299_v1 = vpop.f32.mrf.mxu1  ;;  %689 = vst.msk [vmem:[%s1629_s2 + $0x2c8] sm:$0xff] %vm603_vm2, %v575_v0  ;;  %v489_v2 = vpop.f32.mrf.mxu3 }
 0x14b   :  { %686 = vst [vmem:[%s1629_s2 + $0x2b0] sm:$0xff] %v299_v1 }
 0x14c   :  { %698 = vst [vmem:[%s1629_s2 + $0x310] sm:$0xff] %v489_v2 }
 0x14e   :  { %v391_v3 = vpop.f32.mrf.mxu2 }
 0x14f   :  { %687 = vst [vmem:[%s1629_s2 + $0x2b8] sm:$0xff] %v391_v3 }
 0x151   :  { %v578_v4 = vpop.f32.mrf.mxu0 }
 0x152   :  { %v302_v5 = vpop.f32.mrf.mxu1  ;;  %694 = vst.msk [vmem:[%s1629_s2 + $0x2f0] sm:$0xff] %vm603_vm2, %v578_v4  ;;  %v492_v6 = vpop.f32.mrf.mxu3 }
 0x153   :  { %691 = vst [vmem:[%s1629_s2 + $0x2d8] sm:$0xff] %v302_v5 }
 0x154   :  { %703 = vst [vmem:[%s1629_s2 + $0x338] sm:$0xff] %v492_v6 }
 0x156   :  { %v394_v7 = vpop.f32.mrf.mxu2 }
 0x157   :  { %692 = vst [vmem:[%s1629_s2 + $0x2e0] sm:$0xff] %v394_v7 }
 0x159   :  { %v581_v8 = vpop.f32.mrf.mxu0 }
 0x15a   :  { %v305_v9 = vpop.f32.mrf.mxu1  ;;  %699 = vst.msk [vmem:[%s1629_s2 + $0x318] sm:$0xff] %vm603_vm2, %v581_v8  ;;  %v495_v11 = vpop.f32.mrf.mxu3 }
 0x15b   :  { %696 = vst [vmem:[%s1629_s2 + $0x300] sm:$0xff] %v305_v9 }
 0x15c   :  { %708 = vst [vmem:[%s1629_s2 + $0x360] sm:$0xff] %v495_v11 }
 0x15e   :  { %v397_v12 = vpop.f32.mrf.mxu2 }
 0x15f   :  { %697 = vst [vmem:[%s1629_s2 + $0x308] sm:$0xff] %v397_v12 }
 0x161   :  { %v584_v13 = vpop.f32.mrf.mxu0 }
 0x162   :  { %v308_v14 = vpop.f32.mrf.mxu1  ;;  %704 = vst.msk [vmem:[%s1629_s2 + $0x340] sm:$0xff] %vm603_vm2, %v584_v13  ;;  %v498_v16 = vpop.f32.mrf.mxu3 }
 0x163   :  { %701 = vst [vmem:[%s1629_s2 + $0x328] sm:$0xff] %v308_v14 }
 0x164   :  { %713 = vst [vmem:[%s1629_s2 + $0x388] sm:$0xff] %v498_v16 }
 0x166   :  { %v400_v17 = vpop.f32.mrf.mxu2 }
 0x167   :  { %702 = vst [vmem:[%s1629_s2 + $0x330] sm:$0xff] %v400_v17 }
 0x169   :  { %v587_v18 = vpop.f32.mrf.mxu0 }
 0x16a   :  { %v311_v20 = vpop.f32.mrf.mxu1  ;;  %709 = vst.msk [vmem:[%s1629_s2 + $0x368] sm:$0xff] %vm603_vm2, %v587_v18  ;;  %v501_v21 = vpop.f32.mrf.mxu3 }
 0x16b   :  { %706 = vst [vmem:[%s1629_s2 + $0x350] sm:$0xff] %v311_v20 }
 0x16c   :  { %718 = vst [vmem:[%s1629_s2 + $0x3b0] sm:$0xff] %v501_v21 }
 0x16e   :  { %v403_v22 = vpop.f32.mrf.mxu2 }
 0x16f   :  { %707 = vst [vmem:[%s1629_s2 + $0x358] sm:$0xff] %v403_v22 }
 0x171   :  { %v590_v24 = vpop.f32.mrf.mxu0 }
 0x172   :  { %v314_v25 = vpop.f32.mrf.mxu1  ;;  %714 = vst.msk [vmem:[%s1629_s2 + $0x390] sm:$0xff] %vm603_vm2, %v590_v24  ;;  %v504_v26 = vpop.f32.mrf.mxu3 }
 0x173   :  { %711 = vst [vmem:[%s1629_s2 + $0x378] sm:$0xff] %v314_v25 }
 0x174   :  { %723 = vst [vmem:[%s1629_s2 + $0x3d8] sm:$0xff] %v504_v26 }
 0x176   :  { %v406_v10 = vpop.f32.mrf.mxu2 }
 0x177   :  { %712 = vst [vmem:[%s1629_s2 + $0x380] sm:$0xff] %v406_v10 }
 0x179   :  { %v593_v27 = vpop.f32.mrf.mxu0 }
 0x17a   :  { %v317_v28 = vpop.f32.mrf.mxu1  ;;  %719 = vst.msk [vmem:[%s1629_s2 + $0x3b8] sm:$0xff] %vm603_vm2, %v593_v27 }
 0x17b   :  { %716 = vst [vmem:[%s1629_s2 + $0x3a0] sm:$0xff] %v317_v28 }
 0x17e   :  { %v409_v29 = vpop.f32.mrf.mxu2 }
 0x17f   :  { %717 = vst [vmem:[%s1629_s2 + $0x3a8] sm:$0xff] %v409_v29 }
 0x181   :  { %v596_v15 = vpop.f32.mrf.mxu0 }
 0x182   :  { %v320_v30 = vpop.f32.mrf.mxu1  ;;  %724 = vst.msk [vmem:[%s1629_s2 + $0x3e0] sm:$0xff] %vm603_vm2, %v596_v15 }
 0x183   :  { %721 = vst [vmem:[%s1629_s2 + $0x3c8] sm:$0xff] %v320_v30 }
 0x186   :  { %v412_v31 = vpop.f32.mrf.mxu2 }
 0x187   :  { %722 = vst [vmem:[%s1629_s2 + $0x3d0] sm:$0xff] %v412_v31 }

// kernel: forward.12
= control target key start
LH: loop header
LB: loop body
LE: loop exit
PB: predicated region body
PF: predicated region fallthrough
CT: control target
= control target key end

     0   :  { %s3701_s9 = smov 0   ;;  %s3703_s10 = smov 0   ;;  %s5260_s0 = inlined_call_operand.vmem [shape: f32[882,64], index: 0, kind: input, shape index: {}]   ;;  %s5261_s1 = inlined_call_operand.vmem [shape: f32[64,1024], index: 1, kind: input, shape index: {}]   ;;  %s5262_s2 = inlined_call_operand.vmem [shape: f32[882,1024], index: 2, kind: output, shape index: {}]  }
   0x1   :  { %s3705_s11 = smov 0  }
   0x2 LB: > { %s3714_s12 = sadd.s32 4294967295, %s3652_s11   ;;  %s3716_s13 = sadd.s32 1, %s3652_s11   ;;  %s3652_s11 = sphi %s3705_s11, %s5275_s11   ;;  %s3648_s10 = sphi %s3703_s10, %s5274_s10   ;;  %s3644_s9 = sphi %s3701_s9, %s5273_s9  }
   0x3   : > { %s63_s14 = ssub.s32 %s3652_s11, %s3716_s13  ;;  %s66_s15 = sadd.s32 1, %s3648_s10 }
   0x4   : > { %p64_p0 = scmp.eq.s32.totalorder %s63_s14, 0  ;;  %p76_p1 = scmp.ne.s32.totalorder %s3648_s10, %s3644_s9 }
   0x5   : > { %p77_p2 = scmp.eq.s32.totalorder %s3714_s12, 1  ;;  %p2906_p3 = scmp.ge.s32.totalorder %s3652_s11, 1 }
   0x6   : > { %s3724_s16 = scalar_select %p64_p0, %s3648_s10, %s66_s15  }
   0x7   : > { %p3726_p4 = por %p77_p2, %p76_p1  ;;  %p121_p5 = scmp.lt.s32.totalorder %s3652_s11, 3 }
   0x9   : > { %p122_p6 = pnand %p2906_p3, %p121_p5 }
   0xa   : > { %s3740_s24 = sshll.u32 (!%p122_p6), %s3714_s12, 6  ;;  %s143_s30 = sand.u32 (!%p122_p6), 1, %s3644_s9  }
   0xb   : > { %125 = sbr.rel (%p122_p6) target bundleno = 1249 (0x4e1), region = 28  ;;  %p151_p7 = scmp.lt.s32.totalorder (!%p122_p6), %s3740_s24, 110 }
   0xc   : > { %s2907_s3 = sshll.u32 (!%p122_p6), %s143_s30, 12 }
   0xd   : > { %s3959_s4 = scalar_lea.vmem (!%p122_p6), [#allocation2], %s2907_s3  }
  0x10   : > { %v288_v0 = vld [vmem:[%s5261_s1 + $0x1d0] sm:$0xff]  ;;  %v289_v1 = vld [vmem:[%s5261_s1 + $0x1d8] sm:$0xff]  ;;  %v286_v6 = vld [vmem:[%s5261_s1 + $0x1c0] sm:$0xff]  ;;  %s3765_s15 = scalar_select %p151_p7, %s3740_s24, 110  ;;  %vm294_vm0 = vcmask 523264  }
  0x11   : > { %v280_v2 = vld [vmem:[%s5261_s1 + $0x190] sm:$0xff]  ;;  %913 = vmatpush.msra.mxu2 %v288_v0  ;;  %1122 = vmatpush.msra.mxu3 %v289_v1  ;;  %v281_v3 = vld [vmem:[%s5261_s1 + $0x198] sm:$0xff]  ;;  %v287_v7 = vld [vmem:[%s5261_s1 + $0x1c8] sm:$0xff]  ;;  %s3443_s9 = sshll.u32 (%p3726_p4), %s3714_s12, 12 }
  0x12   : > { %v272_v4 = vld [vmem:[%s5261_s1 + $0x150] sm:$0xff]  ;;  %v273_v5 = vld [vmem:[%s5261_s1 + $0x158] sm:$0xff]  ;;  %v278_v8 = vld [vmem:[%s5261_s1 + $0x180] sm:$0xff]  ;;  %495 = vmatpush.msra.mxu0 %v286_v6  ;;  %704 = vmatpush.msra.mxu1 %v287_v7  ;;  %s2909_s7 = sshll.u32 %s3765_s15, 3  ;;  %s5097_s8 = scalar_lea.vmem (%p3726_p4), %s5262_s2, %s3443_s9  }
  0x13   : > { %914 = vmatpush.msra.mxu2 %v280_v2  ;;  %1123 = vmatpush.msra.mxu3 %v281_v3  ;;  %v279_v9 = vld [vmem:[%s5261_s1 + $0x188] sm:$0xff]  ;;  %v264_v10 = vld [vmem:[%s5261_s1 + $0x110] sm:$0xff]  ;;  %v265_v11 = vld [vmem:[%s5261_s1 + $0x118] sm:$0xff]  ;;  %s3813_s29 = scalar_lea.vmem %s5260_s0, %s2909_s7 }
  0x14   : > { %v270_v12 = vld [vmem:[%s5261_s1 + $0x140] sm:$0xff]  ;;  %v271_v13 = vld [vmem:[%s5261_s1 + $0x148] sm:$0xff]  ;;  %496 = vmatpush.msra.mxu0 %v278_v8  ;;  %705 = vmatpush.msra.mxu1 %v279_v9  ;;  %v256_v14 = vld [vmem:[%s5261_s1 + $0xd0] sm:$0xff] }
  0x15   : > { %915 = vmatpush.msra.mxu2 %v272_v4  ;;  %1124 = vmatpush.msra.mxu3 %v273_v5  ;;  %v257_v15 = vld [vmem:[%s5261_s1 + $0xd8] sm:$0xff]  ;;  %v262_v16 = vld [vmem:[%s5261_s1 + $0x100] sm:$0xff]  ;;  %v263_v17 = vld [vmem:[%s5261_s1 + $0x108] sm:$0xff] }
  0x16   : > { %497 = vmatpush.msra.mxu0 %v270_v12  ;;  %706 = vmatpush.msra.mxu1 %v271_v13  ;;  %v248_v18 = vld [vmem:[%s5261_s1 + $0x90] sm:$0xff]  ;;  %v249_v19 = vld [vmem:[%s5261_s1 + $0x98] sm:$0xff]  ;;  %v254_v20 = vld [vmem:[%s5261_s1 + $0xc0] sm:$0xff] }
  0x17   : > { %916 = vmatpush.msra.mxu2 %v264_v10  ;;  %1125 = vmatpush.msra.mxu3 %v265_v11  ;;  %v255_v21 = vld [vmem:[%s5261_s1 + $0xc8] sm:$0xff]  ;;  %v240_v22 = vld [vmem:[%s5261_s1 + $0x50] sm:$0xff]  ;;  %v241_v23 = vld [vmem:[%s5261_s1 + $0x58] sm:$0xff] }
  0x18   : > { %498 = vmatpush.msra.mxu0 %v262_v16  ;;  %707 = vmatpush.msra.mxu1 %v263_v17  ;;  %v246_v24 = vld [vmem:[%s5261_s1 + $0x80] sm:$0xff]  ;;  %v247_v25 = vld [vmem:[%s5261_s1 + $0x88] sm:$0xff]  ;;  %v232_v26 = vld [vmem:[%s5261_s1 + $0x10] sm:$0xff] }
  0x19   : > { %917 = vmatpush.msra.mxu2 %v256_v14  ;;  %1126 = vmatpush.msra.mxu3 %v257_v15  ;;  %v233_v27 = vld [vmem:[%s5261_s1 + $0x18] sm:$0xff]  ;;  %v166_v28 = vld [vmem:[%s3813_s29] sm:$0xff]  ;;  %v292_v29 = vld [vmem:[%s5261_s1 + $0x1f0] sm:$0xff] }
  0x1a   : > { %499 = vmatpush.msra.mxu0 %v254_v20  ;;  %708 = vmatpush.msra.mxu1 %v255_v21  ;;  %v293_v30 = vld [vmem:[%s5261_s1 + $0x1f8] sm:$0xff]  ;;  %v238_v31 = vld [vmem:[%s5261_s1 + $0x40] sm:$0xff]  ;;  %v239_v32 = vld [vmem:[%s5261_s1 + $0x48] sm:$0xff] }
  0x1b   : > { %918 = vmatpush.msra.mxu2 %v248_v18  ;;  %1127 = vmatpush.msra.mxu3 %v249_v19  ;;  %v230_v33 = vld [vmem:[%s5261_s1] sm:$0xff]  ;;  %v231_v34 = vld [vmem:[%s5261_s1 + $0x8] sm:$0xff]  ;;  %v168_v38 = vld [vmem:[%s3813_s29 + $0x10] sm:$0xff] }
  0x1c   : > { %500 = vmatpush.msra.mxu0 %v246_v24  ;;  %709 = vmatpush.msra.mxu1 %v247_v25  ;;  %v290_v35 = vld [vmem:[%s5261_s1 + $0x1e0] sm:$0xff]  ;;  %v291_v36 = vld [vmem:[%s5261_s1 + $0x1e8] sm:$0xff]  ;;  %v169_v39 = vld [vmem:[%s3813_s29 + $0x18] sm:$0xff] }
  0x1d   : > { %919 = vmatpush.msra.mxu2 %v240_v22  ;;  %1128 = vmatpush.msra.mxu3 %v241_v23  ;;  %v167_v37 = vld [vmem:[%s3813_s29 + $0x8] sm:$0xff]  ;;  %v170_v40 = vld [vmem:[%s3813_s29 + $0x20] sm:$0xff]  ;;  %v284_v41 = vld [vmem:[%s5261_s1 + $0x1b0] sm:$0xff] }
  0x1e   : > { %501 = vmatpush.msra.mxu0 %v238_v31  ;;  %710 = vmatpush.msra.mxu1 %v239_v32  ;;  %v285_v42 = vld [vmem:[%s5261_s1 + $0x1b8] sm:$0xff]  ;;  %v171_v43 = vld [vmem:[%s3813_s29 + $0x28] sm:$0xff]  ;;  %v282_v44 = vld [vmem:[%s5261_s1 + $0x1a0] sm:$0xff] }
  0x1f   : > { %920 = vmatpush.msra.mxu2 %v232_v26  ;;  %1129 = vmatpush.msra.mxu3 %v233_v27  ;;  %v283_v45 = vld [vmem:[%s5261_s1 + $0x1a8] sm:$0xff]  ;;  %v172_v46 = vld [vmem:[%s3813_s29 + $0x30] sm:$0xff]  ;;  %v173_v47 = vld [vmem:[%s3813_s29 + $0x38] sm:$0xff] }
  0x20   : > { %3038 = vmatmul.msk.f32.vlgmr.msra.gmra.mxu2 %vm294_vm0, %v166_v28  ;;  %3102 = vmatmul.msk.f32.vlgmr.msra.gmra.mxu3 %vm294_vm0, %v166_v28  ;;  %v174_v48 = vld [vmem:[%s3813_s29 + $0x40] sm:$0xff]  ;;  %v175_v49 = vld [vmem:[%s3813_s29 + $0x48] sm:$0xff]  ;;  %v176_v50 = vld [vmem:[%s3813_s29 + $0x50] sm:$0xff] }
  0x21   : > { %1749 = vmatpush.msrb.mxu2 %v292_v29  ;;  %1958 = vmatpush.msrb.mxu3 %v293_v30  ;;  %v177_v51 = vld [vmem:[%s3813_s29 + $0x58] sm:$0xff]  ;;  %v178_v52 = vld [vmem:[%s3813_s29 + $0x60] sm:$0xff]  ;;  %v276_v53 = vld [vmem:[%s5261_s1 + $0x170] sm:$0xff] }
  0x22   : > { %502 = vmatpush.msra.mxu0 %v230_v33  ;;  %711 = vmatpush.msra.mxu1 %v231_v34  ;;  %v277_v54 = vld [vmem:[%s5261_s1 + $0x178] sm:$0xff]  ;;  %v179_v55 = vld [vmem:[%s3813_s29 + $0x68] sm:$0xff]  ;;  %v274_v56 = vld [vmem:[%s5261_s1 + $0x160] sm:$0xff] }
  0x23   : > { %2910 = vmatmul.msk.f32.vlgmr.msra.gmra.mxu0 %vm294_vm0, %v166_v28  ;;  %2974 = vmatmul.msk.f32.vlgmr.msra.gmra.mxu1 %vm294_vm0, %v166_v28  ;;  %v275_v57 = vld [vmem:[%s5261_s1 + $0x168] sm:$0xff]  ;;  %v180_v58 = vld [vmem:[%s3813_s29 + $0x70] sm:$0xff]  ;;  %v181_v59 = vld [vmem:[%s3813_s29 + $0x78] sm:$0xff] }
  0x24   : > { %1331 = vmatpush.msrb.mxu0 %v290_v35  ;;  %1540 = vmatpush.msrb.mxu1 %v291_v36  ;;  %v182_v60 = vld [vmem:[%s3813_s29 + $0x80] sm:$0xff]  ;;  %v183_v1 = vld [vmem:[%s3813_s29 + $0x88] sm:$0xff]  ;;  %v184_v6 = vld [vmem:[%s3813_s29 + $0x90] sm:$0xff] }
  0x25   : > { %1750 = vmatpush.msrb.mxu2 %v284_v41  ;;  %1959 = vmatpush.msrb.mxu3 %v285_v42  ;;  %v185_v11 = vld [vmem:[%s3813_s29 + $0x98] sm:$0xff]  ;;  %v186_v16 = vld [vmem:[%s3813_s29 + $0xa0] sm:$0xff]  ;;  %v268_v17 = vld [vmem:[%s5261_s1 + $0x130] sm:$0xff] }
  0x26   : > { %1332 = vmatpush.msrb.mxu0 %v282_v44  ;;  %1541 = vmatpush.msrb.mxu1 %v283_v45  ;;  %v269_v18 = vld [vmem:[%s5261_s1 + $0x138] sm:$0xff]  ;;  %v187_v23 = vld [vmem:[%s3813_s29 + $0xa8] sm:$0xff]  ;;  %v266_v24 = vld [vmem:[%s5261_s1 + $0x120] sm:$0xff] }
  0x27   : > { %1751 = vmatpush.msrb.mxu2 %v276_v53  ;;  %1960 = vmatpush.msrb.mxu3 %v277_v54  ;;  %v267_v25 = vld [vmem:[%s5261_s1 + $0x128] sm:$0xff]  ;;  %v188_v30 = vld [vmem:[%s3813_s29 + $0xb0] sm:$0xff]  ;;  %v189_v35 = vld [vmem:[%s3813_s29 + $0xb8] sm:$0xff] }
  0x28   : > { %3039 = vmatmul.msk.f32.gmra.mxu2 %vm294_vm0, %v167_v37  ;;  %3103 = vmatmul.msk.f32.gmra.mxu3 %vm294_vm0, %v167_v37  ;;  %v191_v45 = vld [vmem:[%s3813_s29 + $0xc8] sm:$0xff] }
  0x29   : > { %1333 = vmatpush.msrb.mxu0 %v274_v56  ;;  %1542 = vmatpush.msrb.mxu1 %v275_v57 }
  0x2a   : > { %1752 = vmatpush.msrb.mxu2 %v268_v17  ;;  %1961 = vmatpush.msrb.mxu3 %v269_v18 }
  0x2b   : > { %2911 = vmatmul.msk.f32.gmra.mxu0 %vm294_vm0, %v167_v37  ;;  %2975 = vmatmul.msk.f32.gmra.mxu1 %vm294_vm0, %v167_v37 }
  0x2c   : > { %1334 = vmatpush.msrb.mxu0 %v266_v24  ;;  %1543 = vmatpush.msrb.mxu1 %v267_v25  ;;  %v199_v25 = vld [vmem:[%s3813_s29 + $0x108] sm:$0xff] }
  0x30   : > { %3040 = vmatmul.msk.f32.gmra.mxu2 %vm294_vm0, %v168_v38  ;;  %3104 = vmatmul.msk.f32.gmra.mxu3 %vm294_vm0, %v168_v38 }
  0x33   : > { %2912 = vmatmul.msk.f32.gmra.mxu0 %vm294_vm0, %v168_v38  ;;  %2976 = vmatmul.msk.f32.gmra.mxu1 %vm294_vm0, %v168_v38 }
  0x38   : > { %3041 = vmatmul.msk.f32.gmra.mxu2 %vm294_vm0, %v169_v39  ;;  %3105 = vmatmul.msk.f32.gmra.mxu3 %vm294_vm0, %v169_v39 }
  0x3b   : > { %2913 = vmatmul.msk.f32.gmra.mxu0 %vm294_vm0, %v169_v39  ;;  %2977 = vmatmul.msk.f32.gmra.mxu1 %vm294_vm0, %v169_v39 }
  0x40   : > { %3042 = vmatmul.msk.f32.gmra.mxu2 %vm294_vm0, %v170_v40  ;;  %3106 = vmatmul.msk.f32.gmra.mxu3 %vm294_vm0, %v170_v40 }
  0x43   : > { %2914 = vmatmul.msk.f32.gmra.mxu0 %vm294_vm0, %v170_v40  ;;  %2978 = vmatmul.msk.f32.gmra.mxu1 %vm294_vm0, %v170_v40  ;;  %v190_v40 = vld [vmem:[%s3813_s29 + $0xc0] sm:$0xff] }
  0x48   : > { %3043 = vmatmul.msk.f32.gmra.mxu2 %vm294_vm0, %v171_v43  ;;  %3107 = vmatmul.msk.f32.gmra.mxu3 %vm294_vm0, %v171_v43 }
  0x4b   : > { %2915 = vmatmul.msk.f32.gmra.mxu0 %vm294_vm0, %v171_v43  ;;  %2979 = vmatmul.msk.f32.gmra.mxu1 %vm294_vm0, %v171_v43 }
  0x50   : > { %3044 = vmatmul.msk.f32.gmra.mxu2 %vm294_vm0, %v172_v46  ;;  %3108 = vmatmul.msk.f32.gmra.mxu3 %vm294_vm0, %v172_v46 }
  0x53   : > { %2916 = vmatmul.msk.f32.gmra.mxu0 %vm294_vm0, %v172_v46  ;;  %2980 = vmatmul.msk.f32.gmra.mxu1 %vm294_vm0, %v172_v46 }
  0x58   : > { %3045 = vmatmul.msk.f32.gmra.mxu2 %vm294_vm0, %v173_v47  ;;  %3109 = vmatmul.msk.f32.gmra.mxu3 %vm294_vm0, %v173_v47 }
  0x5b   : > { %2917 = vmatmul.msk.f32.gmra.mxu0 %vm294_vm0, %v173_v47  ;;  %2981 = vmatmul.msk.f32.gmra.mxu1 %vm294_vm0, %v173_v47 }
  0x60   : > { %3046 = vmatmul.msk.f32.gmra.mxu2 %vm294_vm0, %v174_v48  ;;  %3110 = vmatmul.msk.f32.gmra.mxu3 %vm294_vm0, %v174_v48 }
  0x63   : > { %2918 = vmatmul.msk.f32.gmra.mxu0 %vm294_vm0, %v174_v48  ;;  %2982 = vmatmul.msk.f32.gmra.mxu1 %vm294_vm0, %v174_v48 }
  0x68   : > { %3047 = vmatmul.msk.f32.gmra.mxu2 %vm294_vm0, %v175_v49  ;;  %3111 = vmatmul.msk.f32.gmra.mxu3 %vm294_vm0, %v175_v49 }
  0x6b   : > { %2919 = vmatmul.msk.f32.gmra.mxu0 %vm294_vm0, %v175_v49  ;;  %2983 = vmatmul.msk.f32.gmra.mxu1 %vm294_vm0, %v175_v49 }
  0x70   : > { %3048 = vmatmul.msk.f32.gmra.mxu2 %vm294_vm0, %v176_v50  ;;  %3112 = vmatmul.msk.f32.gmra.mxu3 %vm294_vm0, %v176_v50 }
  0x73   : > { %2920 = vmatmul.msk.f32.gmra.mxu0 %vm294_vm0, %v176_v50  ;;  %2984 = vmatmul.msk.f32.gmra.mxu1 %vm294_vm0, %v176_v50  ;;  %v192_v50 = vld [vmem:[%s3813_s29 + $0xd0] sm:$0xff] }
  0x78   : > { %3049 = vmatmul.msk.f32.gmra.mxu2 %vm294_vm0, %v177_v51  ;;  %3113 = vmatmul.msk.f32.gmra.mxu3 %vm294_vm0, %v177_v51 }
  0x7b   : > { %2921 = vmatmul.msk.f32.gmra.mxu0 %vm294_vm0, %v177_v51  ;;  %2985 = vmatmul.msk.f32.gmra.mxu1 %vm294_vm0, %v177_v51 }
  0x80   : > { %3050 = vmatmul.msk.f32.gmra.mxu2 %vm294_vm0, %v178_v52  ;;  %3114 = vmatmul.msk.f32.gmra.mxu3 %vm294_vm0, %v178_v52 }
  0x83   : > { %2922 = vmatmul.msk.f32.gmra.mxu0 %vm294_vm0, %v178_v52  ;;  %2986 = vmatmul.msk.f32.gmra.mxu1 %vm294_vm0, %v178_v52 }
  0x88   : > { %3051 = vmatmul.msk.f32.gmra.mxu2 %vm294_vm0, %v179_v55  ;;  %3115 = vmatmul.msk.f32.gmra.mxu3 %vm294_vm0, %v179_v55 }
  0x8b   : > { %2923 = vmatmul.msk.f32.gmra.mxu0 %vm294_vm0, %v179_v55  ;;  %2987 = vmatmul.msk.f32.gmra.mxu1 %vm294_vm0, %v179_v55  ;;  %v193_v55 = vld [vmem:[%s3813_s29 + $0xd8] sm:$0xff] }
  0x90   : > { %3052 = vmatmul.msk.f32.gmra.mxu2 %vm294_vm0, %v180_v58  ;;  %3116 = vmatmul.msk.f32.gmra.mxu3 %vm294_vm0, %v180_v58 }
  0x93   : > { %2924 = vmatmul.msk.f32.gmra.mxu0 %vm294_vm0, %v180_v58  ;;  %2988 = vmatmul.msk.f32.gmra.mxu1 %vm294_vm0, %v180_v58 }
  0x98   : > { %3053 = vmatmul.msk.f32.gmra.mxu2 %vm294_vm0, %v181_v59  ;;  %3117 = vmatmul.msk.f32.gmra.mxu3 %vm294_vm0, %v181_v59 }
  0x9b   : > { %2925 = vmatmul.msk.f32.gmra.mxu0 %vm294_vm0, %v181_v59  ;;  %2989 = vmatmul.msk.f32.gmra.mxu1 %vm294_vm0, %v181_v59 }
  0xa0   : > { %3054 = vmatmul.msk.f32.gmra.mxu2 %vm294_vm0, %v182_v60  ;;  %3118 = vmatmul.msk.f32.gmra.mxu3 %vm294_vm0, %v182_v60  ;;  %v504_v61 = vpop.f32.mrf.mxu0  ;;  %v713_v62 = vpop.f32.mrf.mxu1 }
  0xa1   : > { %2159 = vst [vmem:[%s3959_s4] sm:$0xff] %v504_v61  ;;  %v260_v61 = vld [vmem:[%s5261_s1 + $0xf0] sm:$0xff] }
  0xa2   : > { %2160 = vst [vmem:[%s3959_s4 + $0x8] sm:$0xff] %v713_v62  ;;  %v261_v62 = vld [vmem:[%s5261_s1 + $0xf8] sm:$0xff]  ;;  %1753 = vmatpush.msrb.mxu2 %v260_v61 }
  0xa3   : > { %v922_v63 = vpop.f32.mrf.mxu2  ;;  %v1131_v0 = vpop.f32.mrf.mxu3  ;;  %2926 = vmatmul.msk.f32.gmra.mxu0 %vm294_vm0, %v182_v60  ;;  %2990 = vmatmul.msk.f32.gmra.mxu1 %vm294_vm0, %v182_v60  ;;  %v194_v60 = vld [vmem:[%s3813_s29 + $0xe0] sm:$0xff] }
  0xa4   : > { %2161 = vst [vmem:[%s3959_s4 + $0x10] sm:$0xff] %v922_v63  ;;  %1962 = vmatpush.msrb.mxu3 %v261_v62 }
  0xa5   : > { %2162 = vst [vmem:[%s3959_s4 + $0x18] sm:$0xff] %v1131_v0 }
  0xa8   : > { %3055 = vmatmul.msk.f32.gmra.mxu2 %vm294_vm0, %v183_v1  ;;  %3119 = vmatmul.msk.f32.gmra.mxu3 %vm294_vm0, %v183_v1  ;;  %v507_v2 = vpop.f32.mrf.mxu0  ;;  %v716_v3 = vpop.f32.mrf.mxu1 }
  0xa9   : > { %2167 = vst [vmem:[%s3959_s4 + $0x40] sm:$0xff] %v507_v2 }
  0xaa   : > { %2168 = vst [vmem:[%s3959_s4 + $0x48] sm:$0xff] %v716_v3  ;;  %v195_v3 = vld [vmem:[%s3813_s29 + $0xe8] sm:$0xff] }
  0xab   : > { %v925_v4 = vpop.f32.mrf.mxu2  ;;  %v1134_v5 = vpop.f32.mrf.mxu3  ;;  %2927 = vmatmul.msk.f32.gmra.mxu0 %vm294_vm0, %v183_v1  ;;  %2991 = vmatmul.msk.f32.gmra.mxu1 %vm294_vm0, %v183_v1 }
  0xac   : > { %2169 = vst [vmem:[%s3959_s4 + $0x50] sm:$0xff] %v925_v4  ;;  %v258_v4 = vld [vmem:[%s5261_s1 + $0xe0] sm:$0xff] }
  0xad   : > { %2170 = vst [vmem:[%s3959_s4 + $0x58] sm:$0xff] %v1134_v5  ;;  %v259_v5 = vld [vmem:[%s5261_s1 + $0xe8] sm:$0xff]  ;;  %1335 = vmatpush.msrb.mxu0 %v258_v4 }
  0xae   : > { %1544 = vmatpush.msrb.mxu1 %v259_v5  ;;  %v207_v5 = vld [vmem:[%s3813_s29 + $0x148] sm:$0xff] }
  0xb0   : > { %3056 = vmatmul.msk.f32.gmra.mxu2 %vm294_vm0, %v184_v6  ;;  %3120 = vmatmul.msk.f32.gmra.mxu3 %vm294_vm0, %v184_v6  ;;  %v510_v7 = vpop.f32.mrf.mxu0  ;;  %v719_v8 = vpop.f32.mrf.mxu1 }
  0xb1   : > { %2175 = vst [vmem:[%s3959_s4 + $0x80] sm:$0xff] %v510_v7 }
  0xb2   : > { %2176 = vst [vmem:[%s3959_s4 + $0x88] sm:$0xff] %v719_v8 }
  0xb3   : > { %v928_v9 = vpop.f32.mrf.mxu2  ;;  %v1137_v10 = vpop.f32.mrf.mxu3  ;;  %2928 = vmatmul.msk.f32.gmra.mxu0 %vm294_vm0, %v184_v6  ;;  %2992 = vmatmul.msk.f32.gmra.mxu1 %vm294_vm0, %v184_v6 }
  0xb4   : > { %2177 = vst [vmem:[%s3959_s4 + $0x90] sm:$0xff] %v928_v9 }
  0xb5   : > { %2178 = vst [vmem:[%s3959_s4 + $0x98] sm:$0xff] %v1137_v10  ;;  %v196_v10 = vld [vmem:[%s3813_s29 + $0xf0] sm:$0xff] }
  0xb8   : > { %3057 = vmatmul.msk.f32.gmra.mxu2 %vm294_vm0, %v185_v11  ;;  %3121 = vmatmul.msk.f32.gmra.mxu3 %vm294_vm0, %v185_v11  ;;  %v513_v12 = vpop.f32.mrf.mxu0  ;;  %v722_v13 = vpop.f32.mrf.mxu1 }
  0xb9   : > { %2183 = vst [vmem:[%s3959_s4 + $0xc0] sm:$0xff] %v513_v12 }
  0xba   : > { %2184 = vst [vmem:[%s3959_s4 + $0xc8] sm:$0xff] %v722_v13 }
  0xbb   : > { %v931_v14 = vpop.f32.mrf.mxu2  ;;  %v1140_v15 = vpop.f32.mrf.mxu3  ;;  %2929 = vmatmul.msk.f32.gmra.mxu0 %vm294_vm0, %v185_v11  ;;  %2993 = vmatmul.msk.f32.gmra.mxu1 %vm294_vm0, %v185_v11 }
  0xbc   : > { %2185 = vst [vmem:[%s3959_s4 + $0xd0] sm:$0xff] %v931_v14 }
  0xbd   : > { %2186 = vst [vmem:[%s3959_s4 + $0xd8] sm:$0xff] %v1140_v15  ;;  %v197_v15 = vld [vmem:[%s3813_s29 + $0xf8] sm:$0xff] }
  0xc0   : > { %3058 = vmatmul.msk.f32.gmra.mxu2 %vm294_vm0, %v186_v16  ;;  %3122 = vmatmul.msk.f32.gmra.mxu3 %vm294_vm0, %v186_v16  ;;  %v516_v19 = vpop.f32.mrf.mxu0  ;;  %v725_v20 = vpop.f32.mrf.mxu1 }
  0xc1   : > { %2191 = vst [vmem:[%s3959_s4 + $0x100] sm:$0xff] %v516_v19 }
  0xc2   : > { %2192 = vst [vmem:[%s3959_s4 + $0x108] sm:$0xff] %v725_v20  ;;  %v198_v20 = vld [vmem:[%s3813_s29 + $0x100] sm:$0xff] }
  0xc3   : > { %v934_v21 = vpop.f32.mrf.mxu2  ;;  %v1143_v22 = vpop.f32.mrf.mxu3  ;;  %2930 = vmatmul.msk.f32.gmra.mxu0 %vm294_vm0, %v186_v16  ;;  %2994 = vmatmul.msk.f32.gmra.mxu1 %vm294_vm0, %v186_v16 }
  0xc4   : > { %2193 = vst [vmem:[%s3959_s4 + $0x110] sm:$0xff] %v934_v21 }
  0xc5   : > { %2194 = vst [vmem:[%s3959_s4 + $0x118] sm:$0xff] %v1143_v22 }
  0xc8   : > { %3059 = vmatmul.msk.f32.gmra.mxu2 %vm294_vm0, %v187_v23  ;;  %3123 = vmatmul.msk.f32.gmra.mxu3 %vm294_vm0, %v187_v23  ;;  %v519_v26 = vpop.f32.mrf.mxu0  ;;  %v728_v27 = vpop.f32.mrf.mxu1 }
  0xc9   : > { %2199 = vst [vmem:[%s3959_s4 + $0x140] sm:$0xff] %v519_v26 }
  0xca   : > { %2200 = vst [vmem:[%s3959_s4 + $0x148] sm:$0xff] %v728_v27 }
  0xcb   : > { %v937_v28 = vpop.f32.mrf.mxu2  ;;  %v1146_v29 = vpop.f32.mrf.mxu3  ;;  %2931 = vmatmul.msk.f32.gmra.mxu0 %vm294_vm0, %v187_v23  ;;  %2995 = vmatmul.msk.f32.gmra.mxu1 %vm294_vm0, %v187_v23 }
  0xcc   : > { %2201 = vst [vmem:[%s3959_s4 + $0x150] sm:$0xff] %v937_v28 }
  0xcd   : > { %2202 = vst [vmem:[%s3959_s4 + $0x158] sm:$0xff] %v1146_v29 }
  0xd0   : > { %3060 = vmatmul.msk.f32.gmra.mxu2 %vm294_vm0, %v188_v30  ;;  %3124 = vmatmul.msk.f32.gmra.mxu3 %vm294_vm0, %v188_v30  ;;  %v522_v31 = vpop.f32.mrf.mxu0  ;;  %v731_v32 = vpop.f32.mrf.mxu1 }
  0xd1   : > { %2207 = vst [vmem:[%s3959_s4 + $0x180] sm:$0xff] %v522_v31 }
  0xd2   : > { %2208 = vst [vmem:[%s3959_s4 + $0x188] sm:$0xff] %v731_v32 }
  0xd3   : > { %v940_v33 = vpop.f32.mrf.mxu2  ;;  %v1149_v34 = vpop.f32.mrf.mxu3  ;;  %2932 = vmatmul.msk.f32.gmra.mxu0 %vm294_vm0, %v188_v30  ;;  %2996 = vmatmul.msk.f32.gmra.mxu1 %vm294_vm0, %v188_v30  ;;  %v200_v30 = vld [vmem:[%s3813_s29 + $0x110] sm:$0xff] }
  0xd4   : > { %2209 = vst [vmem:[%s3959_s4 + $0x190] sm:$0xff] %v940_v33 }
  0xd5   : > { %2210 = vst [vmem:[%s3959_s4 + $0x198] sm:$0xff] %v1149_v34 }
  0xd8   : > { %3061 = vmatmul.msk.f32.gmra.mxu2 %vm294_vm0, %v189_v35  ;;  %3125 = vmatmul.msk.f32.gmra.mxu3 %vm294_vm0, %v189_v35  ;;  %v525_v36 = vpop.f32.mrf.mxu0  ;;  %v734_v37 = vpop.f32.mrf.mxu1 }
  0xd9   : > { %2215 = vst [vmem:[%s3959_s4 + $0x1c0] sm:$0xff] %v525_v36 }
  0xda   : > { %2216 = vst [vmem:[%s3959_s4 + $0x1c8] sm:$0xff] %v734_v37 }
  0xdb   : > { %v943_v38 = vpop.f32.mrf.mxu2  ;;  %v1152_v39 = vpop.f32.mrf.mxu3  ;;  %2933 = vmatmul.msk.f32.gmra.mxu0 %vm294_vm0, %v189_v35  ;;  %2997 = vmatmul.msk.f32.gmra.mxu1 %vm294_vm0, %v189_v35  ;;  %v201_v35 = vld [vmem:[%s3813_s29 + $0x118] sm:$0xff] }
  0xdc   : > { %2217 = vst [vmem:[%s3959_s4 + $0x1d0] sm:$0xff] %v943_v38 }
  0xdd   : > { %2218 = vst [vmem:[%s3959_s4 + $0x1d8] sm:$0xff] %v1152_v39 }
  0xe0   : > { %3062 = vmatmul.msk.f32.gmra.mxu2 %vm294_vm0, %v190_v40  ;;  %3126 = vmatmul.msk.f32.gmra.mxu3 %vm294_vm0, %v190_v40  ;;  %v528_v41 = vpop.f32.mrf.mxu0  ;;  %v737_v42 = vpop.f32.mrf.mxu1 }
  0xe1   : > { %2223 = vst [vmem:[%s3959_s4 + $0x200] sm:$0xff] %v528_v41  ;;  %v252_v41 = vld [vmem:[%s5261_s1 + $0xb0] sm:$0xff] }
  0xe2   : > { %2224 = vst [vmem:[%s3959_s4 + $0x208] sm:$0xff] %v737_v42  ;;  %v253_v42 = vld [vmem:[%s5261_s1 + $0xb8] sm:$0xff]  ;;  %1754 = vmatpush.msrb.mxu2 %v252_v41 }
  0xe3   : > { %v946_v43 = vpop.f32.mrf.mxu2  ;;  %v1155_v44 = vpop.f32.mrf.mxu3  ;;  %2934 = vmatmul.msk.f32.gmra.mxu0 %vm294_vm0, %v190_v40  ;;  %2998 = vmatmul.msk.f32.gmra.mxu1 %vm294_vm0, %v190_v40  ;;  %v202_v40 = vld [vmem:[%s3813_s29 + $0x120] sm:$0xff] }
  0xe4   : > { %2225 = vst [vmem:[%s3959_s4 + $0x210] sm:$0xff] %v946_v43  ;;  %1963 = vmatpush.msrb.mxu3 %v253_v42 }
  0xe5   : > { %2226 = vst [vmem:[%s3959_s4 + $0x218] sm:$0xff] %v1155_v44 }
  0xe8   : > { %3063 = vmatmul.msk.f32.gmra.mxu2 %vm294_vm0, %v191_v45  ;;  %3127 = vmatmul.msk.f32.gmra.mxu3 %vm294_vm0, %v191_v45  ;;  %v531_v46 = vpop.f32.mrf.mxu0  ;;  %v740_v47 = vpop.f32.mrf.mxu1 }
  0xe9   : > { %2231 = vst [vmem:[%s3959_s4 + $0x240] sm:$0xff] %v531_v46 }
  0xea   : > { %2232 = vst [vmem:[%s3959_s4 + $0x248] sm:$0xff] %v740_v47  ;;  %v203_v47 = vld [vmem:[%s3813_s29 + $0x128] sm:$0xff] }
  0xeb   : > { %v949_v48 = vpop.f32.mrf.mxu2  ;;  %v1158_v49 = vpop.f32.mrf.mxu3  ;;  %2935 = vmatmul.msk.f32.gmra.mxu0 %vm294_vm0, %v191_v45  ;;  %2999 = vmatmul.msk.f32.gmra.mxu1 %vm294_vm0, %v191_v45 }
  0xec   : > { %2233 = vst [vmem:[%s3959_s4 + $0x250] sm:$0xff] %v949_v48  ;;  %v250_v48 = vld [vmem:[%s5261_s1 + $0xa0] sm:$0xff] }
  0xed   : > { %2234 = vst [vmem:[%s3959_s4 + $0x258] sm:$0xff] %v1158_v49  ;;  %v251_v49 = vld [vmem:[%s5261_s1 + $0xa8] sm:$0xff]  ;;  %1336 = vmatpush.msrb.mxu0 %v250_v48 }
  0xee   : > { %1545 = vmatpush.msrb.mxu1 %v251_v49  ;;  %v215_v49 = vld [vmem:[%s3813_s29 + $0x188] sm:$0xff] }
  0xf0   : > { %3064 = vmatmul.msk.f32.gmra.mxu2 %vm294_vm0, %v192_v50  ;;  %3128 = vmatmul.msk.f32.gmra.mxu3 %vm294_vm0, %v192_v50  ;;  %v534_v51 = vpop.f32.mrf.mxu0  ;;  %v743_v52 = vpop.f32.mrf.mxu1 }
  0xf1   : > { %2239 = vst [vmem:[%s3959_s4 + $0x280] sm:$0xff] %v534_v51 }
  0xf2   : > { %2240 = vst [vmem:[%s3959_s4 + $0x288] sm:$0xff] %v743_v52 }
  0xf3   : > { %v952_v53 = vpop.f32.mrf.mxu2  ;;  %v1161_v54 = vpop.f32.mrf.mxu3  ;;  %2936 = vmatmul.msk.f32.gmra.mxu0 %vm294_vm0, %v192_v50  ;;  %3000 = vmatmul.msk.f32.gmra.mxu1 %vm294_vm0, %v192_v50 }
  0xf4   : > { %2241 = vst [vmem:[%s3959_s4 + $0x290] sm:$0xff] %v952_v53 }
  0xf5   : > { %2242 = vst [vmem:[%s3959_s4 + $0x298] sm:$0xff] %v1161_v54  ;;  %v204_v54 = vld [vmem:[%s3813_s29 + $0x130] sm:$0xff] }
  0xf8   : > { %3065 = vmatmul.msk.f32.gmra.mxu2 %vm294_vm0, %v193_v55  ;;  %3129 = vmatmul.msk.f32.gmra.mxu3 %vm294_vm0, %v193_v55  ;;  %v537_v56 = vpop.f32.mrf.mxu0  ;;  %v746_v57 = vpop.f32.mrf.mxu1 }
  0xf9   : > { %2247 = vst [vmem:[%s3959_s4 + $0x2c0] sm:$0xff] %v537_v56 }
  0xfa   : > { %2248 = vst [vmem:[%s3959_s4 + $0x2c8] sm:$0xff] %v746_v57 }
  0xfb   : > { %v955_v58 = vpop.f32.mrf.mxu2  ;;  %v1164_v59 = vpop.f32.mrf.mxu3  ;;  %2937 = vmatmul.msk.f32.gmra.mxu0 %vm294_vm0, %v193_v55  ;;  %3001 = vmatmul.msk.f32.gmra.mxu1 %vm294_vm0, %v193_v55 }
  0xfc   : > { %2249 = vst [vmem:[%s3959_s4 + $0x2d0] sm:$0xff] %v955_v58 }
  0xfd   : > { %2250 = vst [vmem:[%s3959_s4 + $0x2d8] sm:$0xff] %v1164_v59  ;;  %v205_v59 = vld [vmem:[%s3813_s29 + $0x138] sm:$0xff] }
 0x100   : > { %3066 = vmatmul.msk.f32.gmra.mxu2 %vm294_vm0, %v194_v60  ;;  %3130 = vmatmul.msk.f32.gmra.mxu3 %vm294_vm0, %v194_v60  ;;  %v540_v63 = vpop.f32.mrf.mxu0  ;;  %v749_v0 = vpop.f32.mrf.mxu1 }
 0x101   : > { %2255 = vst [vmem:[%s3959_s4 + $0x300] sm:$0xff] %v540_v63 }
 0x102   : > { %2256 = vst [vmem:[%s3959_s4 + $0x308] sm:$0xff] %v749_v0  ;;  %v206_v0 = vld [vmem:[%s3813_s29 + $0x140] sm:$0xff] }
 0x103   : > { %v958_v1 = vpop.f32.mrf.mxu2  ;;  %v1167_v2 = vpop.f32.mrf.mxu3  ;;  %2938 = vmatmul.msk.f32.gmra.mxu0 %vm294_vm0, %v194_v60  ;;  %3002 = vmatmul.msk.f32.gmra.mxu1 %vm294_vm0, %v194_v60 }
 0x104   : > { %2257 = vst [vmem:[%s3959_s4 + $0x310] sm:$0xff] %v958_v1 }
 0x105   : > { %2258 = vst [vmem:[%s3959_s4 + $0x318] sm:$0xff] %v1167_v2 }
 0x108   : > { %3067 = vmatmul.msk.f32.gmra.mxu2 %vm294_vm0, %v195_v3  ;;  %3131 = vmatmul.msk.f32.gmra.mxu3 %vm294_vm0, %v195_v3  ;;  %v543_v6 = vpop.f32.mrf.mxu0  ;;  %v752_v7 = vpop.f32.mrf.mxu1 }
 0x109   : > { %2263 = vst [vmem:[%s3959_s4 + $0x340] sm:$0xff] %v543_v6 }
 0x10a   : > { %2264 = vst [vmem:[%s3959_s4 + $0x348] sm:$0xff] %v752_v7 }
 0x10b   : > { %v961_v8 = vpop.f32.mrf.mxu2  ;;  %v1170_v9 = vpop.f32.mrf.mxu3  ;;  %2939 = vmatmul.msk.f32.gmra.mxu0 %vm294_vm0, %v195_v3  ;;  %3003 = vmatmul.msk.f32.gmra.mxu1 %vm294_vm0, %v195_v3 }
 0x10c   : > { %2265 = vst [vmem:[%s3959_s4 + $0x350] sm:$0xff] %v961_v8 }
 0x10d   : > { %2266 = vst [vmem:[%s3959_s4 + $0x358] sm:$0xff] %v1170_v9 }
 0x110   : > { %3068 = vmatmul.msk.f32.gmra.mxu2 %vm294_vm0, %v196_v10  ;;  %3132 = vmatmul.msk.f32.gmra.mxu3 %vm294_vm0, %v196_v10  ;;  %v546_v11 = vpop.f32.mrf.mxu0  ;;  %v755_v12 = vpop.f32.mrf.mxu1 }
 0x111   : > { %2271 = vst [vmem:[%s3959_s4 + $0x380] sm:$0xff] %v546_v11 }
 0x112   : > { %2272 = vst [vmem:[%s3959_s4 + $0x388] sm:$0xff] %v755_v12 }
 0x113   : > { %v964_v13 = vpop.f32.mrf.mxu2  ;;  %v1173_v14 = vpop.f32.mrf.mxu3  ;;  %2940 = vmatmul.msk.f32.gmra.mxu0 %vm294_vm0, %v196_v10  ;;  %3004 = vmatmul.msk.f32.gmra.mxu1 %vm294_vm0, %v196_v10  ;;  %v208_v10 = vld [vmem:[%s3813_s29 + $0x150] sm:$0xff] }
 0x114   : > { %2273 = vst [vmem:[%s3959_s4 + $0x390] sm:$0xff] %v964_v13 }
 0x115   : > { %2274 = vst [vmem:[%s3959_s4 + $0x398] sm:$0xff] %v1173_v14 }
 0x118   : > { %3069 = vmatmul.msk.f32.gmra.mxu2 %vm294_vm0, %v197_v15  ;;  %3133 = vmatmul.msk.f32.gmra.mxu3 %vm294_vm0, %v197_v15  ;;  %v549_v16 = vpop.f32.mrf.mxu0  ;;  %v758_v17 = vpop.f32.mrf.mxu1 }
 0x119   : > { %2279 = vst [vmem:[%s3959_s4 + $0x3c0] sm:$0xff] %v549_v16 }
 0x11a   : > { %2280 = vst [vmem:[%s3959_s4 + $0x3c8] sm:$0xff] %v758_v17 }
 0x11b   : > { %v967_v18 = vpop.f32.mrf.mxu2  ;;  %v1176_v19 = vpop.f32.mrf.mxu3  ;;  %2941 = vmatmul.msk.f32.gmra.mxu0 %vm294_vm0, %v197_v15  ;;  %3005 = vmatmul.msk.f32.gmra.mxu1 %vm294_vm0, %v197_v15  ;;  %v209_v15 = vld [vmem:[%s3813_s29 + $0x158] sm:$0xff] }
 0x11c   : > { %2281 = vst [vmem:[%s3959_s4 + $0x3d0] sm:$0xff] %v967_v18 }
 0x11d   : > { %2282 = vst [vmem:[%s3959_s4 + $0x3d8] sm:$0xff] %v1176_v19 }
 0x120   : > { %3070 = vmatmul.msk.f32.gmra.mxu2 %vm294_vm0, %v198_v20  ;;  %3134 = vmatmul.msk.f32.gmra.mxu3 %vm294_vm0, %v198_v20  ;;  %v552_v21 = vpop.f32.mrf.mxu0  ;;  %v761_v22 = vpop.f32.mrf.mxu1 }
 0x121   : > { %2287 = vst [vmem:[%s3959_s4 + $0x400] sm:$0xff] %v552_v21  ;;  %v244_v21 = vld [vmem:[%s5261_s1 + $0x70] sm:$0xff] }
 0x122   : > { %2288 = vst [vmem:[%s3959_s4 + $0x408] sm:$0xff] %v761_v22  ;;  %v245_v22 = vld [vmem:[%s5261_s1 + $0x78] sm:$0xff]  ;;  %1755 = vmatpush.msrb.mxu2 %v244_v21 }
 0x123   : > { %v970_v23 = vpop.f32.mrf.mxu2  ;;  %v1179_v24 = vpop.f32.mrf.mxu3  ;;  %2942 = vmatmul.msk.f32.gmra.mxu0 %vm294_vm0, %v198_v20  ;;  %3006 = vmatmul.msk.f32.gmra.mxu1 %vm294_vm0, %v198_v20  ;;  %v210_v20 = vld [vmem:[%s3813_s29 + $0x160] sm:$0xff] }
 0x124   : > { %2289 = vst [vmem:[%s3959_s4 + $0x410] sm:$0xff] %v970_v23  ;;  %1964 = vmatpush.msrb.mxu3 %v245_v22 }
 0x125   : > { %2290 = vst [vmem:[%s3959_s4 + $0x418] sm:$0xff] %v1179_v24 }
 0x128   : > { %3071 = vmatmul.msk.f32.gmra.mxu2 %vm294_vm0, %v199_v25  ;;  %3135 = vmatmul.msk.f32.gmra.mxu3 %vm294_vm0, %v199_v25  ;;  %v555_v26 = vpop.f32.mrf.mxu0  ;;  %v764_v27 = vpop.f32.mrf.mxu1 }
 0x129   : > { %2295 = vst [vmem:[%s3959_s4 + $0x440] sm:$0xff] %v555_v26 }
 0x12a   : > { %2296 = vst [vmem:[%s3959_s4 + $0x448] sm:$0xff] %v764_v27  ;;  %v211_v27 = vld [vmem:[%s3813_s29 + $0x168] sm:$0xff] }
 0x12b   : > { %v973_v28 = vpop.f32.mrf.mxu2  ;;  %v1182_v29 = vpop.f32.mrf.mxu3  ;;  %2943 = vmatmul.msk.f32.gmra.mxu0 %vm294_vm0, %v199_v25  ;;  %3007 = vmatmul.msk.f32.gmra.mxu1 %vm294_vm0, %v199_v25 }
 0x12c   : > { %2297 = vst [vmem:[%s3959_s4 + $0x450] sm:$0xff] %v973_v28  ;;  %v242_v28 = vld [vmem:[%s5261_s1 + $0x60] sm:$0xff] }
 0x12d   : > { %2298 = vst [vmem:[%s3959_s4 + $0x458] sm:$0xff] %v1182_v29  ;;  %v243_v29 = vld [vmem:[%s5261_s1 + $0x68] sm:$0xff]  ;;  %1337 = vmatpush.msrb.mxu0 %v242_v28 }
 0x12e   : > { %1546 = vmatpush.msrb.mxu1 %v243_v29  ;;  %v223_v29 = vld [vmem:[%s3813_s29 + $0x1c8] sm:$0xff] }
 0x130   : > { %3072 = vmatmul.msk.f32.gmra.mxu2 %vm294_vm0, %v200_v30  ;;  %3136 = vmatmul.msk.f32.gmra.mxu3 %vm294_vm0, %v200_v30  ;;  %v558_v31 = vpop.f32.mrf.mxu0  ;;  %v767_v32 = vpop.f32.mrf.mxu1 }
 0x131   : > { %2303 = vst [vmem:[%s3959_s4 + $0x480] sm:$0xff] %v558_v31 }
 0x132   : > { %2304 = vst [vmem:[%s3959_s4 + $0x488] sm:$0xff] %v767_v32 }
 0x133   : > { %v976_v33 = vpop.f32.mrf.mxu2  ;;  %v1185_v34 = vpop.f32.mrf.mxu3  ;;  %2944 = vmatmul.msk.f32.gmra.mxu0 %vm294_vm0, %v200_v30  ;;  %3008 = vmatmul.msk.f32.gmra.mxu1 %vm294_vm0, %v200_v30 }
 0x134   : > { %2305 = vst [vmem:[%s3959_s4 + $0x490] sm:$0xff] %v976_v33 }
 0x135   : > { %2306 = vst [vmem:[%s3959_s4 + $0x498] sm:$0xff] %v1185_v34  ;;  %v212_v34 = vld [vmem:[%s3813_s29 + $0x170] sm:$0xff] }
 0x138   : > { %3073 = vmatmul.msk.f32.gmra.mxu2 %vm294_vm0, %v201_v35  ;;  %3137 = vmatmul.msk.f32.gmra.mxu3 %vm294_vm0, %v201_v35  ;;  %v561_v36 = vpop.f32.mrf.mxu0  ;;  %v770_v37 = vpop.f32.mrf.mxu1 }
 0x139   : > { %2311 = vst [vmem:[%s3959_s4 + $0x4c0] sm:$0xff] %v561_v36 }
 0x13a   : > { %2312 = vst [vmem:[%s3959_s4 + $0x4c8] sm:$0xff] %v770_v37 }
 0x13b   : > { %v979_v38 = vpop.f32.mrf.mxu2  ;;  %v1188_v39 = vpop.f32.mrf.mxu3  ;;  %2945 = vmatmul.msk.f32.gmra.mxu0 %vm294_vm0, %v201_v35  ;;  %3009 = vmatmul.msk.f32.gmra.mxu1 %vm294_vm0, %v201_v35 }
 0x13c   : > { %2313 = vst [vmem:[%s3959_s4 + $0x4d0] sm:$0xff] %v979_v38 }
 0x13d   : > { %2314 = vst [vmem:[%s3959_s4 + $0x4d8] sm:$0xff] %v1188_v39  ;;  %v213_v39 = vld [vmem:[%s3813_s29 + $0x178] sm:$0xff] }
 0x140   : > { %3074 = vmatmul.msk.f32.gmra.mxu2 %vm294_vm0, %v202_v40  ;;  %3138 = vmatmul.msk.f32.gmra.mxu3 %vm294_vm0, %v202_v40  ;;  %v564_v43 = vpop.f32.mrf.mxu0  ;;  %v773_v44 = vpop.f32.mrf.mxu1 }
 0x141   : > { %2319 = vst [vmem:[%s3959_s4 + $0x500] sm:$0xff] %v564_v43 }
 0x142   : > { %2320 = vst [vmem:[%s3959_s4 + $0x508] sm:$0xff] %v773_v44  ;;  %v214_v44 = vld [vmem:[%s3813_s29 + $0x180] sm:$0xff] }
 0x143   : > { %v982_v45 = vpop.f32.mrf.mxu2  ;;  %v1191_v46 = vpop.f32.mrf.mxu3  ;;  %2946 = vmatmul.msk.f32.gmra.mxu0 %vm294_vm0, %v202_v40  ;;  %3010 = vmatmul.msk.f32.gmra.mxu1 %vm294_vm0, %v202_v40 }
 0x144   : > { %2321 = vst [vmem:[%s3959_s4 + $0x510] sm:$0xff] %v982_v45 }
 0x145   : > { %2322 = vst [vmem:[%s3959_s4 + $0x518] sm:$0xff] %v1191_v46 }
 0x148   : > { %3075 = vmatmul.msk.f32.gmra.mxu2 %vm294_vm0, %v203_v47  ;;  %3139 = vmatmul.msk.f32.gmra.mxu3 %vm294_vm0, %v203_v47  ;;  %v567_v50 = vpop.f32.mrf.mxu0  ;;  %v776_v51 = vpop.f32.mrf.mxu1 }
 0x149   : > { %2327 = vst [vmem:[%s3959_s4 + $0x540] sm:$0xff] %v567_v50 }
 0x14a   : > { %2328 = vst [vmem:[%s3959_s4 + $0x548] sm:$0xff] %v776_v51 }
 0x14b   : > { %v985_v52 = vpop.f32.mrf.mxu2  ;;  %v1194_v53 = vpop.f32.mrf.mxu3  ;;  %2947 = vmatmul.msk.f32.gmra.mxu0 %vm294_vm0, %v203_v47  ;;  %3011 = vmatmul.msk.f32.gmra.mxu1 %vm294_vm0, %v203_v47 }
 0x14c   : > { %2329 = vst [vmem:[%s3959_s4 + $0x550] sm:$0xff] %v985_v52 }
 0x14d   : > { %2330 = vst [vmem:[%s3959_s4 + $0x558] sm:$0xff] %v1194_v53 }
 0x150   : > { %3076 = vmatmul.msk.f32.gmra.mxu2 %vm294_vm0, %v204_v54  ;;  %3140 = vmatmul.msk.f32.gmra.mxu3 %vm294_vm0, %v204_v54  ;;  %v570_v55 = vpop.f32.mrf.mxu0  ;;  %v779_v56 = vpop.f32.mrf.mxu1 }
 0x151   : > { %2335 = vst [vmem:[%s3959_s4 + $0x580] sm:$0xff] %v570_v55 }
 0x152   : > { %2336 = vst [vmem:[%s3959_s4 + $0x588] sm:$0xff] %v779_v56 }
 0x153   : > { %v988_v57 = vpop.f32.mrf.mxu2  ;;  %v1197_v58 = vpop.f32.mrf.mxu3  ;;  %2948 = vmatmul.msk.f32.gmra.mxu0 %vm294_vm0, %v204_v54  ;;  %3012 = vmatmul.msk.f32.gmra.mxu1 %vm294_vm0, %v204_v54  ;;  %v216_v54 = vld [vmem:[%s3813_s29 + $0x190] sm:$0xff] }
 0x154   : > { %2337 = vst [vmem:[%s3959_s4 + $0x590] sm:$0xff] %v988_v57 }
 0x155   : > { %2338 = vst [vmem:[%s3959_s4 + $0x598] sm:$0xff] %v1197_v58 }
 0x158   : > { %3077 = vmatmul.msk.f32.gmra.mxu2 %vm294_vm0, %v205_v59  ;;  %3141 = vmatmul.msk.f32.gmra.mxu3 %vm294_vm0, %v205_v59  ;;  %v573_v60 = vpop.f32.mrf.mxu0  ;;  %v782_v61 = vpop.f32.mrf.mxu1 }
 0x159   : > { %2343 = vst [vmem:[%s3959_s4 + $0x5c0] sm:$0xff] %v573_v60 }
 0x15a   : > { %2344 = vst [vmem:[%s3959_s4 + $0x5c8] sm:$0xff] %v782_v61 }
 0x15b   : > { %v991_v62 = vpop.f32.mrf.mxu2  ;;  %v1200_v63 = vpop.f32.mrf.mxu3  ;;  %2949 = vmatmul.msk.f32.gmra.mxu0 %vm294_vm0, %v205_v59  ;;  %3013 = vmatmul.msk.f32.gmra.mxu1 %vm294_vm0, %v205_v59  ;;  %v217_v59 = vld [vmem:[%s3813_s29 + $0x198] sm:$0xff] }
 0x15c   : > { %2345 = vst [vmem:[%s3959_s4 + $0x5d0] sm:$0xff] %v991_v62 }
 0x15d   : > { %2346 = vst [vmem:[%s3959_s4 + $0x5d8] sm:$0xff] %v1200_v63 }
 0x160   : > { %3078 = vmatmul.msk.f32.gmra.mxu2 %vm294_vm0, %v206_v0  ;;  %3142 = vmatmul.msk.f32.gmra.mxu3 %vm294_vm0, %v206_v0  ;;  %v576_v1 = vpop.f32.mrf.mxu0  ;;  %v785_v2 = vpop.f32.mrf.mxu1 }
 0x161   : > { %2351 = vst [vmem:[%s3959_s4 + $0x600] sm:$0xff] %v576_v1  ;;  %v236_v1 = vld [vmem:[%s5261_s1 + $0x30] sm:$0xff] }
 0x162   : > { %2352 = vst [vmem:[%s3959_s4 + $0x608] sm:$0xff] %v785_v2  ;;  %v237_v2 = vld [vmem:[%s5261_s1 + $0x38] sm:$0xff]  ;;  %1756 = vmatpush.msrb.mxu2 %v236_v1 }
 0x163   : > { %v994_v3 = vpop.f32.mrf.mxu2  ;;  %v1203_v4 = vpop.f32.mrf.mxu3  ;;  %2950 = vmatmul.msk.f32.gmra.mxu0 %vm294_vm0, %v206_v0  ;;  %3014 = vmatmul.msk.f32.gmra.mxu1 %vm294_vm0, %v206_v0  ;;  %v218_v0 = vld [vmem:[%s3813_s29 + $0x1a0] sm:$0xff] }
 0x164   : > { %2353 = vst [vmem:[%s3959_s4 + $0x610] sm:$0xff] %v994_v3  ;;  %1965 = vmatpush.msrb.mxu3 %v237_v2 }
 0x165   : > { %2354 = vst [vmem:[%s3959_s4 + $0x618] sm:$0xff] %v1203_v4 }
 0x168   : > { %3079 = vmatmul.msk.f32.gmra.mxu2 %vm294_vm0, %v207_v5  ;;  %3143 = vmatmul.msk.f32.gmra.mxu3 %vm294_vm0, %v207_v5  ;;  %v579_v6 = vpop.f32.mrf.mxu0  ;;  %v788_v7 = vpop.f32.mrf.mxu1 }
 0x169   : > { %2359 = vst [vmem:[%s3959_s4 + $0x640] sm:$0xff] %v579_v6 }
 0x16a   : > { %2360 = vst [vmem:[%s3959_s4 + $0x648] sm:$0xff] %v788_v7  ;;  %v219_v7 = vld [vmem:[%s3813_s29 + $0x1a8] sm:$0xff] }
 0x16b   : > { %v997_v8 = vpop.f32.mrf.mxu2  ;;  %v1206_v9 = vpop.f32.mrf.mxu3  ;;  %2951 = vmatmul.msk.f32.gmra.mxu0 %vm294_vm0, %v207_v5  ;;  %3015 = vmatmul.msk.f32.gmra.mxu1 %vm294_vm0, %v207_v5 }
 0x16c   : > { %2361 = vst [vmem:[%s3959_s4 + $0x650] sm:$0xff] %v997_v8  ;;  %v234_v8 = vld [vmem:[%s5261_s1 + $0x20] sm:$0xff] }
 0x16d   : > { %2362 = vst [vmem:[%s3959_s4 + $0x658] sm:$0xff] %v1206_v9  ;;  %v235_v9 = vld [vmem:[%s5261_s1 + $0x28] sm:$0xff]  ;;  %1338 = vmatpush.msrb.mxu0 %v234_v8 }
 0x16e   : > { %1547 = vmatpush.msrb.mxu1 %v235_v9 }
 0x170   : > { %3080 = vmatmul.msk.f32.gmra.mxu2 %vm294_vm0, %v208_v10  ;;  %3144 = vmatmul.msk.f32.gmra.mxu3 %vm294_vm0, %v208_v10  ;;  %v582_v11 = vpop.f32.mrf.mxu0  ;;  %v791_v12 = vpop.f32.mrf.mxu1 }
 0x171   : > { %2367 = vst [vmem:[%s3959_s4 + $0x680] sm:$0xff] %v582_v11 }
 0x172   : > { %2368 = vst [vmem:[%s3959_s4 + $0x688] sm:$0xff] %v791_v12 }
 0x173   : > { %v1000_v13 = vpop.f32.mrf.mxu2  ;;  %v1209_v14 = vpop.f32.mrf.mxu3  ;;  %2952 = vmatmul.msk.f32.gmra.mxu0 %vm294_vm0, %v208_v10  ;;  %3016 = vmatmul.msk.f32.gmra.mxu1 %vm294_vm0, %v208_v10 }
 0x174   : > { %2369 = vst [vmem:[%s3959_s4 + $0x690] sm:$0xff] %v1000_v13 }
 0x175   : > { %2370 = vst [vmem:[%s3959_s4 + $0x698] sm:$0xff] %v1209_v14  ;;  %v220_v14 = vld [vmem:[%s3813_s29 + $0x1b0] sm:$0xff] }
 0x178   : > { %3081 = vmatmul.msk.f32.gmra.mxu2 %vm294_vm0, %v209_v15  ;;  %3145 = vmatmul.msk.f32.gmra.mxu3 %vm294_vm0, %v209_v15  ;;  %v585_v16 = vpop.f32.mrf.mxu0  ;;  %v794_v17 = vpop.f32.mrf.mxu1 }
 0x179   : > { %2375 = vst [vmem:[%s3959_s4 + $0x6c0] sm:$0xff] %v585_v16 }
 0x17a   : > { %2376 = vst [vmem:[%s3959_s4 + $0x6c8] sm:$0xff] %v794_v17 }
 0x17b   : > { %v1003_v18 = vpop.f32.mrf.mxu2  ;;  %v1212_v19 = vpop.f32.mrf.mxu3  ;;  %2953 = vmatmul.msk.f32.gmra.mxu0 %vm294_vm0, %v209_v15  ;;  %3017 = vmatmul.msk.f32.gmra.mxu1 %vm294_vm0, %v209_v15 }
 0x17c   : > { %2377 = vst [vmem:[%s3959_s4 + $0x6d0] sm:$0xff] %v1003_v18 }
 0x17d   : > { %2378 = vst [vmem:[%s3959_s4 + $0x6d8] sm:$0xff] %v1212_v19  ;;  %v221_v19 = vld [vmem:[%s3813_s29 + $0x1b8] sm:$0xff] }
 0x180   : > { %3082 = vmatmul.msk.f32.gmra.mxu2 %vm294_vm0, %v210_v20  ;;  %3146 = vmatmul.msk.f32.gmra.mxu3 %vm294_vm0, %v210_v20  ;;  %v588_v23 = vpop.f32.mrf.mxu0  ;;  %v797_v24 = vpop.f32.mrf.mxu1 }
 0x181   : > { %2383 = vst [vmem:[%s3959_s4 + $0x700] sm:$0xff] %v588_v23 }
 0x182   : > { %2384 = vst [vmem:[%s3959_s4 + $0x708] sm:$0xff] %v797_v24  ;;  %v222_v24 = vld [vmem:[%s3813_s29 + $0x1c0] sm:$0xff] }
 0x183   : > { %v1006_v25 = vpop.f32.mrf.mxu2  ;;  %v1215_v26 = vpop.f32.mrf.mxu3  ;;  %2954 = vmatmul.msk.f32.gmra.mxu0 %vm294_vm0, %v210_v20  ;;  %3018 = vmatmul.msk.f32.gmra.mxu1 %vm294_vm0, %v210_v20 }
 0x184   : > { %2385 = vst [vmem:[%s3959_s4 + $0x710] sm:$0xff] %v1006_v25 }
 0x185   : > { %2386 = vst [vmem:[%s3959_s4 + $0x718] sm:$0xff] %v1215_v26 }
 0x188   : > { %3083 = vmatmul.msk.f32.gmra.mxu2 %vm294_vm0, %v211_v27  ;;  %3147 = vmatmul.msk.f32.gmra.mxu3 %vm294_vm0, %v211_v27  ;;  %v591_v30 = vpop.f32.mrf.mxu0  ;;  %v800_v31 = vpop.f32.mrf.mxu1 }
 0x189   : > { %2391 = vst [vmem:[%s3959_s4 + $0x740] sm:$0xff] %v591_v30 }
 0x18a   : > { %2392 = vst [vmem:[%s3959_s4 + $0x748] sm:$0xff] %v800_v31 }
 0x18b   : > { %v1009_v32 = vpop.f32.mrf.mxu2  ;;  %v1218_v33 = vpop.f32.mrf.mxu3  ;;  %2955 = vmatmul.msk.f32.gmra.mxu0 %vm294_vm0, %v211_v27  ;;  %3019 = vmatmul.msk.f32.gmra.mxu1 %vm294_vm0, %v211_v27 }
 0x18c   : > { %2393 = vst [vmem:[%s3959_s4 + $0x750] sm:$0xff] %v1009_v32 }
 0x18d   : > { %2394 = vst [vmem:[%s3959_s4 + $0x758] sm:$0xff] %v1218_v33 }
 0x190   : > { %3084 = vmatmul.msk.f32.gmra.mxu2 %vm294_vm0, %v212_v34  ;;  %3148 = vmatmul.msk.f32.gmra.mxu3 %vm294_vm0, %v212_v34  ;;  %v594_v35 = vpop.f32.mrf.mxu0  ;;  %v803_v36 = vpop.f32.mrf.mxu1 }
 0x191   : > { %2399 = vst [vmem:[%s3959_s4 + $0x780] sm:$0xff] %v594_v35 }
 0x192   : > { %2400 = vst [vmem:[%s3959_s4 + $0x788] sm:$0xff] %v803_v36 }
 0x193   : > { %v1012_v37 = vpop.f32.mrf.mxu2  ;;  %v1221_v38 = vpop.f32.mrf.mxu3  ;;  %2956 = vmatmul.msk.f32.gmra.mxu0 %vm294_vm0, %v212_v34  ;;  %3020 = vmatmul.msk.f32.gmra.mxu1 %vm294_vm0, %v212_v34  ;;  %v224_v34 = vld [vmem:[%s3813_s29 + $0x1d0] sm:$0xff] }
 0x194   : > { %2401 = vst [vmem:[%s3959_s4 + $0x790] sm:$0xff] %v1012_v37 }
 0x195   : > { %2402 = vst [vmem:[%s3959_s4 + $0x798] sm:$0xff] %v1221_v38 }
 0x198   : > { %3085 = vmatmul.msk.f32.gmra.mxu2 %vm294_vm0, %v213_v39  ;;  %3149 = vmatmul.msk.f32.gmra.mxu3 %vm294_vm0, %v213_v39  ;;  %v597_v40 = vpop.f32.mrf.mxu0  ;;  %v806_v41 = vpop.f32.mrf.mxu1 }
 0x199   : > { %2407 = vst [vmem:[%s3959_s4 + $0x7c0] sm:$0xff] %v597_v40 }
 0x19a   : > { %2408 = vst [vmem:[%s3959_s4 + $0x7c8] sm:$0xff] %v806_v41 }
 0x19b   : > { %v1015_v42 = vpop.f32.mrf.mxu2  ;;  %v1224_v43 = vpop.f32.mrf.mxu3  ;;  %2957 = vmatmul.msk.f32.gmra.mxu0 %vm294_vm0, %v213_v39  ;;  %3021 = vmatmul.msk.f32.gmra.mxu1 %vm294_vm0, %v213_v39  ;;  %v225_v39 = vld [vmem:[%s3813_s29 + $0x1d8] sm:$0xff] }
 0x19c   : > { %2409 = vst [vmem:[%s3959_s4 + $0x7d0] sm:$0xff] %v1015_v42 }
 0x19d   : > { %2410 = vst [vmem:[%s3959_s4 + $0x7d8] sm:$0xff] %v1224_v43 }
 0x1a0   : > { %3086 = vmatmul.msk.f32.gmra.mxu2 %vm294_vm0, %v214_v44  ;;  %3150 = vmatmul.msk.f32.gmra.mxu3 %vm294_vm0, %v214_v44  ;;  %v600_v45 = vpop.f32.mrf.mxu0  ;;  %v809_v46 = vpop.f32.mrf.mxu1 }
 0x1a1   : > { %2415 = vst [vmem:[%s3959_s4 + $0x800] sm:$0xff] %v600_v45 }
 0x1a2   : > { %2416 = vst [vmem:[%s3959_s4 + $0x808] sm:$0xff] %v809_v46 }
 0x1a3   : > { %v1018_v47 = vpop.f32.mrf.mxu2  ;;  %v1227_v48 = vpop.f32.mrf.mxu3  ;;  %2958 = vmatmul.msk.f32.gmra.mxu0 %vm294_vm0, %v214_v44  ;;  %3022 = vmatmul.msk.f32.gmra.mxu1 %vm294_vm0, %v214_v44  ;;  %v226_v44 = vld [vmem:[%s3813_s29 + $0x1e0] sm:$0xff] }
 0x1a4   : > { %2417 = vst [vmem:[%s3959_s4 + $0x810] sm:$0xff] %v1018_v47 }
 0x1a5   : > { %2418 = vst [vmem:[%s3959_s4 + $0x818] sm:$0xff] %v1227_v48 }
 0x1a8   : > { %3087 = vmatmul.msk.f32.gmra.mxu2 %vm294_vm0, %v215_v49  ;;  %3151 = vmatmul.msk.f32.gmra.mxu3 %vm294_vm0, %v215_v49  ;;  %v603_v50 = vpop.f32.mrf.mxu0  ;;  %v812_v51 = vpop.f32.mrf.mxu1 }
 0x1a9   : > { %2423 = vst [vmem:[%s3959_s4 + $0x840] sm:$0xff] %v603_v50 }
 0x1aa   : > { %2424 = vst [vmem:[%s3959_s4 + $0x848] sm:$0xff] %v812_v51 }
 0x1ab   : > { %v1021_v52 = vpop.f32.mrf.mxu2  ;;  %v1230_v53 = vpop.f32.mrf.mxu3  ;;  %2959 = vmatmul.msk.f32.gmra.mxu0 %vm294_vm0, %v215_v49  ;;  %3023 = vmatmul.msk.f32.gmra.mxu1 %vm294_vm0, %v215_v49  ;;  %v227_v49 = vld [vmem:[%s3813_s29 + $0x1e8] sm:$0xff] }
 0x1ac   : > { %2425 = vst [vmem:[%s3959_s4 + $0x850] sm:$0xff] %v1021_v52 }
 0x1ad   : > { %2426 = vst [vmem:[%s3959_s4 + $0x858] sm:$0xff] %v1230_v53 }
 0x1b0   : > { %3088 = vmatmul.msk.f32.gmra.mxu2 %vm294_vm0, %v216_v54  ;;  %3152 = vmatmul.msk.f32.gmra.mxu3 %vm294_vm0, %v216_v54  ;;  %v606_v55 = vpop.f32.mrf.mxu0  ;;  %v815_v56 = vpop.f32.mrf.mxu1 }
 0x1b1   : > { %2431 = vst [vmem:[%s3959_s4 + $0x880] sm:$0xff] %v606_v55 }
 0x1b2   : > { %2432 = vst [vmem:[%s3959_s4 + $0x888] sm:$0xff] %v815_v56 }
 0x1b3   : > { %v1024_v57 = vpop.f32.mrf.mxu2  ;;  %v1233_v58 = vpop.f32.mrf.mxu3  ;;  %2960 = vmatmul.msk.f32.gmra.mxu0 %vm294_vm0, %v216_v54  ;;  %3024 = vmatmul.msk.f32.gmra.mxu1 %vm294_vm0, %v216_v54  ;;  %v228_v54 = vld [vmem:[%s3813_s29 + $0x1f0] sm:$0xff] }
 0x1b4   : > { %2433 = vst [vmem:[%s3959_s4 + $0x890] sm:$0xff] %v1024_v57 }
 0x1b5   : > { %2434 = vst [vmem:[%s3959_s4 + $0x898] sm:$0xff] %v1233_v58 }
 0x1b8   : > { %3089 = vmatmul.msk.f32.gmra.mxu2 %vm294_vm0, %v217_v59  ;;  %3153 = vmatmul.msk.f32.gmra.mxu3 %vm294_vm0, %v217_v59  ;;  %v609_v60 = vpop.f32.mrf.mxu0  ;;  %v818_v61 = vpop.f32.mrf.mxu1 }
 0x1b9   : > { %2439 = vst [vmem:[%s3959_s4 + $0x8c0] sm:$0xff] %v609_v60 }
 0x1ba   : > { %2440 = vst [vmem:[%s3959_s4 + $0x8c8] sm:$0xff] %v818_v61 }
 0x1bb   : > { %v1027_v62 = vpop.f32.mrf.mxu2  ;;  %v1236_v63 = vpop.f32.mrf.mxu3  ;;  %2961 = vmatmul.msk.f32.gmra.mxu0 %vm294_vm0, %v217_v59  ;;  %3025 = vmatmul.msk.f32.gmra.mxu1 %vm294_vm0, %v217_v59  ;;  %v229_v59 = vld [vmem:[%s3813_s29 + $0x1f8] sm:$0xff] }
 0x1bc   : > { %2441 = vst [vmem:[%s3959_s4 + $0x8d0] sm:$0xff] %v1027_v62 }
 0x1bd   : > { %2442 = vst [vmem:[%s3959_s4 + $0x8d8] sm:$0xff] %v1236_v63 }
 0x1c0   : > { %3090 = vmatmul.msk.f32.gmra.mxu2 %vm294_vm0, %v218_v0  ;;  %3154 = vmatmul.msk.f32.gmra.mxu3 %vm294_vm0, %v218_v0  ;;  %v612_v3 = vpop.f32.mrf.mxu0  ;;  %v821_v4 = vpop.f32.mrf.mxu1 }
 0x1c1   : > { %2447 = vst [vmem:[%s3959_s4 + $0x900] sm:$0xff] %v612_v3 }
 0x1c2   : > { %2448 = vst [vmem:[%s3959_s4 + $0x908] sm:$0xff] %v821_v4 }
 0x1c3   : > { %v1030_v5 = vpop.f32.mrf.mxu2  ;;  %v1239_v6 = vpop.f32.mrf.mxu3  ;;  %2962 = vmatmul.msk.f32.gmra.mxu0 %vm294_vm0, %v218_v0  ;;  %3026 = vmatmul.msk.f32.gmra.mxu1 %vm294_vm0, %v218_v0  ;;  %v3534_v0 = vld [vmem:[%s3813_s29] sm:$0xff] }
 0x1c4   : > { %2449 = vst [vmem:[%s3959_s4 + $0x910] sm:$0xff] %v1030_v5  ;;  %v3535_v5 = vld [vmem:[%s3813_s29 + $0x8] sm:$0xff] }
 0x1c5   : > { %2450 = vst [vmem:[%s3959_s4 + $0x918] sm:$0xff] %v1239_v6 }
 0x1c8   : > { %3091 = vmatmul.msk.f32.gmra.mxu2 %vm294_vm0, %v219_v7  ;;  %3155 = vmatmul.msk.f32.gmra.mxu3 %vm294_vm0, %v219_v7  ;;  %v615_v10 = vpop.f32.mrf.mxu0  ;;  %v824_v11 = vpop.f32.mrf.mxu1 }
 0x1c9   : > { %2455 = vst [vmem:[%s3959_s4 + $0x940] sm:$0xff] %v615_v10  ;;  %v3536_v10 = vld [vmem:[%s3813_s29 + $0x10] sm:$0xff] }
 0x1ca   : > { %2456 = vst [vmem:[%s3959_s4 + $0x948] sm:$0xff] %v824_v11 }
 0x1cb   : > { %v1033_v12 = vpop.f32.mrf.mxu2  ;;  %v1242_v13 = vpop.f32.mrf.mxu3  ;;  %2963 = vmatmul.msk.f32.gmra.mxu0 %vm294_vm0, %v219_v7  ;;  %3027 = vmatmul.msk.f32.gmra.mxu1 %vm294_vm0, %v219_v7 }
 0x1cc   : > { %2457 = vst [vmem:[%s3959_s4 + $0x950] sm:$0xff] %v1033_v12 }
 0x1cd   : > { %2458 = vst [vmem:[%s3959_s4 + $0x958] sm:$0xff] %v1242_v13 }
 0x1d0   : > { %3092 = vmatmul.msk.f32.gmra.mxu2 %vm294_vm0, %v220_v14  ;;  %3156 = vmatmul.msk.f32.gmra.mxu3 %vm294_vm0, %v220_v14  ;;  %v618_v15 = vpop.f32.mrf.mxu0  ;;  %v827_v16 = vpop.f32.mrf.mxu1 }
 0x1d1   : > { %2463 = vst [vmem:[%s3959_s4 + $0x980] sm:$0xff] %v618_v15  ;;  %v3537_v15 = vld [vmem:[%s3813_s29 + $0x18] sm:$0xff] }
 0x1d2   : > { %2464 = vst [vmem:[%s3959_s4 + $0x988] sm:$0xff] %v827_v16 }
 0x1d3   : > { %v1036_v17 = vpop.f32.mrf.mxu2  ;;  %v1245_v18 = vpop.f32.mrf.mxu3  ;;  %2964 = vmatmul.msk.f32.gmra.mxu0 %vm294_vm0, %v220_v14  ;;  %3028 = vmatmul.msk.f32.gmra.mxu1 %vm294_vm0, %v220_v14 }
 0x1d4   : > { %2465 = vst [vmem:[%s3959_s4 + $0x990] sm:$0xff] %v1036_v17 }
 0x1d5   : > { %2466 = vst [vmem:[%s3959_s4 + $0x998] sm:$0xff] %v1245_v18 }
 0x1d8   : > { %3093 = vmatmul.msk.f32.gmra.mxu2 %vm294_vm0, %v221_v19  ;;  %3157 = vmatmul.msk.f32.gmra.mxu3 %vm294_vm0, %v221_v19  ;;  %v621_v20 = vpop.f32.mrf.mxu0  ;;  %v830_v21 = vpop.f32.mrf.mxu1 }
 0x1d9   : > { %2471 = vst [vmem:[%s3959_s4 + $0x9c0] sm:$0xff] %v621_v20  ;;  %v3538_v20 = vld [vmem:[%s3813_s29 + $0x20] sm:$0xff] }
 0x1da   : > { %2472 = vst [vmem:[%s3959_s4 + $0x9c8] sm:$0xff] %v830_v21 }
 0x1db   : > { %v1039_v22 = vpop.f32.mrf.mxu2  ;;  %v1248_v23 = vpop.f32.mrf.mxu3  ;;  %2965 = vmatmul.msk.f32.gmra.mxu0 %vm294_vm0, %v221_v19  ;;  %3029 = vmatmul.msk.f32.gmra.mxu1 %vm294_vm0, %v221_v19 }
 0x1dc   : > { %2473 = vst [vmem:[%s3959_s4 + $0x9d0] sm:$0xff] %v1039_v22 }
 0x1dd   : > { %2474 = vst [vmem:[%s3959_s4 + $0x9d8] sm:$0xff] %v1248_v23 }
 0x1e0   : > { %3094 = vmatmul.msk.f32.gmra.mxu2 %vm294_vm0, %v222_v24  ;;  %3158 = vmatmul.msk.f32.gmra.mxu3 %vm294_vm0, %v222_v24  ;;  %v624_v25 = vpop.f32.mrf.mxu0  ;;  %v833_v26 = vpop.f32.mrf.mxu1 }
 0x1e1   : > { %2479 = vst [vmem:[%s3959_s4 + $0xa00] sm:$0xff] %v624_v25  ;;  %v3539_v25 = vld [vmem:[%s3813_s29 + $0x28] sm:$0xff] }
 0x1e2   : > { %2480 = vst [vmem:[%s3959_s4 + $0xa08] sm:$0xff] %v833_v26 }
 0x1e3   : > { %v1042_v27 = vpop.f32.mrf.mxu2  ;;  %v1251_v28 = vpop.f32.mrf.mxu3  ;;  %2966 = vmatmul.msk.f32.gmra.mxu0 %vm294_vm0, %v222_v24  ;;  %3030 = vmatmul.msk.f32.gmra.mxu1 %vm294_vm0, %v222_v24 }
 0x1e4   : > { %2481 = vst [vmem:[%s3959_s4 + $0xa10] sm:$0xff] %v1042_v27 }
 0x1e5   : > { %2482 = vst [vmem:[%s3959_s4 + $0xa18] sm:$0xff] %v1251_v28 }
 0x1e8   : > { %3095 = vmatmul.msk.f32.gmra.mxu2 %vm294_vm0, %v223_v29  ;;  %3159 = vmatmul.msk.f32.gmra.mxu3 %vm294_vm0, %v223_v29  ;;  %v627_v30 = vpop.f32.mrf.mxu0  ;;  %v836_v31 = vpop.f32.mrf.mxu1 }
 0x1e9   : > { %2487 = vst [vmem:[%s3959_s4 + $0xa40] sm:$0xff] %v627_v30  ;;  %v3540_v30 = vld [vmem:[%s3813_s29 + $0x30] sm:$0xff] }
 0x1ea   : > { %2488 = vst [vmem:[%s3959_s4 + $0xa48] sm:$0xff] %v836_v31 }
 0x1eb   : > { %v1045_v32 = vpop.f32.mrf.mxu2  ;;  %v1254_v33 = vpop.f32.mrf.mxu3  ;;  %2967 = vmatmul.msk.f32.gmra.mxu0 %vm294_vm0, %v223_v29  ;;  %3031 = vmatmul.msk.f32.gmra.mxu1 %vm294_vm0, %v223_v29 }
 0x1ec   : > { %2489 = vst [vmem:[%s3959_s4 + $0xa50] sm:$0xff] %v1045_v32 }
 0x1ed   : > { %2490 = vst [vmem:[%s3959_s4 + $0xa58] sm:$0xff] %v1254_v33 }
 0x1f0   : > { %3096 = vmatmul.msk.f32.gmra.mxu2 %vm294_vm0, %v224_v34  ;;  %3160 = vmatmul.msk.f32.gmra.mxu3 %vm294_vm0, %v224_v34  ;;  %v630_v35 = vpop.f32.mrf.mxu0  ;;  %v839_v36 = vpop.f32.mrf.mxu1 }
 0x1f1   : > { %2495 = vst [vmem:[%s3959_s4 + $0xa80] sm:$0xff] %v630_v35  ;;  %v3541_v35 = vld [vmem:[%s3813_s29 + $0x38] sm:$0xff] }
 0x1f2   : > { %2496 = vst [vmem:[%s3959_s4 + $0xa88] sm:$0xff] %v839_v36 }
 0x1f3   : > { %v1048_v37 = vpop.f32.mrf.mxu2  ;;  %v1257_v38 = vpop.f32.mrf.mxu3  ;;  %2968 = vmatmul.msk.f32.gmra.mxu0 %vm294_vm0, %v224_v34  ;;  %3032 = vmatmul.msk.f32.gmra.mxu1 %vm294_vm0, %v224_v34 }
 0x1f4   : > { %2497 = vst [vmem:[%s3959_s4 + $0xa90] sm:$0xff] %v1048_v37 }
 0x1f5   : > { %2498 = vst [vmem:[%s3959_s4 + $0xa98] sm:$0xff] %v1257_v38 }
 0x1f8   : > { %3097 = vmatmul.msk.f32.gmra.mxu2 %vm294_vm0, %v225_v39  ;;  %3161 = vmatmul.msk.f32.gmra.mxu3 %vm294_vm0, %v225_v39  ;;  %v633_v40 = vpop.f32.mrf.mxu0  ;;  %v842_v41 = vpop.f32.mrf.mxu1 }
 0x1f9   : > { %2503 = vst [vmem:[%s3959_s4 + $0xac0] sm:$0xff] %v633_v40  ;;  %v3542_v40 = vld [vmem:[%s3813_s29 + $0x40] sm:$0xff] }
 0x1fa   : > { %2504 = vst [vmem:[%s3959_s4 + $0xac8] sm:$0xff] %v842_v41 }
 0x1fb   : > { %v1051_v42 = vpop.f32.mrf.mxu2  ;;  %v1260_v43 = vpop.f32.mrf.mxu3  ;;  %2969 = vmatmul.msk.f32.gmra.mxu0 %vm294_vm0, %v225_v39  ;;  %3033 = vmatmul.msk.f32.gmra.mxu1 %vm294_vm0, %v225_v39 }
 0x1fc   : > { %2505 = vst [vmem:[%s3959_s4 + $0xad0] sm:$0xff] %v1051_v42 }
 0x1fd   : > { %2506 = vst [vmem:[%s3959_s4 + $0xad8] sm:$0xff] %v1260_v43 }
 0x200   : > { %3098 = vmatmul.msk.f32.gmra.mxu2 %vm294_vm0, %v226_v44  ;;  %3162 = vmatmul.msk.f32.gmra.mxu3 %vm294_vm0, %v226_v44  ;;  %v636_v45 = vpop.f32.mrf.mxu0  ;;  %v845_v46 = vpop.f32.mrf.mxu1 }
 0x201   : > { %2511 = vst [vmem:[%s3959_s4 + $0xb00] sm:$0xff] %v636_v45  ;;  %v3543_v45 = vld [vmem:[%s3813_s29 + $0x48] sm:$0xff] }
 0x202   : > { %2512 = vst [vmem:[%s3959_s4 + $0xb08] sm:$0xff] %v845_v46 }
 0x203   : > { %v1054_v47 = vpop.f32.mrf.mxu2  ;;  %v1263_v48 = vpop.f32.mrf.mxu3  ;;  %2970 = vmatmul.msk.f32.gmra.mxu0 %vm294_vm0, %v226_v44  ;;  %3034 = vmatmul.msk.f32.gmra.mxu1 %vm294_vm0, %v226_v44 }
 0x204   : > { %2513 = vst [vmem:[%s3959_s4 + $0xb10] sm:$0xff] %v1054_v47 }
 0x205   : > { %2514 = vst [vmem:[%s3959_s4 + $0xb18] sm:$0xff] %v1263_v48 }
 0x208   : > { %3099 = vmatmul.msk.f32.gmra.mxu2 %vm294_vm0, %v227_v49  ;;  %3163 = vmatmul.msk.f32.gmra.mxu3 %vm294_vm0, %v227_v49  ;;  %v639_v50 = vpop.f32.mrf.mxu0  ;;  %v848_v51 = vpop.f32.mrf.mxu1 }
 0x209   : > { %2519 = vst [vmem:[%s3959_s4 + $0xb40] sm:$0xff] %v639_v50  ;;  %v3544_v50 = vld [vmem:[%s3813_s29 + $0x50] sm:$0xff] }
 0x20a   : > { %2520 = vst [vmem:[%s3959_s4 + $0xb48] sm:$0xff] %v848_v51 }
 0x20b   : > { %v1057_v52 = vpop.f32.mrf.mxu2  ;;  %v1266_v53 = vpop.f32.mrf.mxu3  ;;  %2971 = vmatmul.msk.f32.gmra.mxu0 %vm294_vm0, %v227_v49  ;;  %3035 = vmatmul.msk.f32.gmra.mxu1 %vm294_vm0, %v227_v49 }
 0x20c   : > { %2521 = vst [vmem:[%s3959_s4 + $0xb50] sm:$0xff] %v1057_v52 }
 0x20d   : > { %2522 = vst [vmem:[%s3959_s4 + $0xb58] sm:$0xff] %v1266_v53 }
 0x210   : > { %3100 = vmatmul.msk.f32.gmra.mxu2 %vm294_vm0, %v228_v54  ;;  %3164 = vmatmul.msk.f32.gmra.mxu3 %vm294_vm0, %v228_v54  ;;  %v642_v55 = vpop.f32.mrf.mxu0  ;;  %v851_v56 = vpop.f32.mrf.mxu1 }
 0x211   : > { %2527 = vst [vmem:[%s3959_s4 + $0xb80] sm:$0xff] %v642_v55  ;;  %v3545_v55 = vld [vmem:[%s3813_s29 + $0x58] sm:$0xff] }
 0x212   : > { %2528 = vst [vmem:[%s3959_s4 + $0xb88] sm:$0xff] %v851_v56 }
 0x213   : > { %v1060_v57 = vpop.f32.mrf.mxu2  ;;  %v1269_v58 = vpop.f32.mrf.mxu3  ;;  %2972 = vmatmul.msk.f32.gmra.mxu0 %vm294_vm0, %v228_v54  ;;  %3036 = vmatmul.msk.f32.gmra.mxu1 %vm294_vm0, %v228_v54 }
 0x214   : > { %2529 = vst [vmem:[%s3959_s4 + $0xb90] sm:$0xff] %v1060_v57 }
 0x215   : > { %2530 = vst [vmem:[%s3959_s4 + $0xb98] sm:$0xff] %v1269_v58 }
 0x218   : > { %3101 = vmatmul.msk.f32.gmra.mxu2 %vm294_vm0, %v229_v59  ;;  %3165 = vmatmul.msk.f32.gmra.mxu3 %vm294_vm0, %v229_v59  ;;  %v645_v60 = vpop.f32.mrf.mxu0  ;;  %v854_v61 = vpop.f32.mrf.mxu1 }
 0x219   : > { %2535 = vst [vmem:[%s3959_s4 + $0xbc0] sm:$0xff] %v645_v60  ;;  %v3546_v60 = vld [vmem:[%s3813_s29 + $0x60] sm:$0xff] }
 0x21a   : > { %2536 = vst [vmem:[%s3959_s4 + $0xbc8] sm:$0xff] %v854_v61 }
 0x21b   : > { %v1063_v62 = vpop.f32.mrf.mxu2  ;;  %v1272_v63 = vpop.f32.mrf.mxu3  ;;  %2973 = vmatmul.msk.f32.gmra.mxu0 %vm294_vm0, %v229_v59  ;;  %3037 = vmatmul.msk.f32.gmra.mxu1 %vm294_vm0, %v229_v59 }
 0x21c   : > { %2537 = vst [vmem:[%s3959_s4 + $0xbd0] sm:$0xff] %v1063_v62 }
 0x21d   : > { %2538 = vst [vmem:[%s3959_s4 + $0xbd8] sm:$0xff] %v1272_v63 }
 0x220   : > { %3294 = vmatmul.msk.f32.vlgmr.msrb.gmra.mxu2 %vm294_vm0, %v3534_v0  ;;  %3358 = vmatmul.msk.f32.vlgmr.msrb.gmra.mxu3 %vm294_vm0, %v3534_v0  ;;  %v648_v1 = vpop.f32.mrf.mxu0  ;;  %v857_v2 = vpop.f32.mrf.mxu1 }
 0x221   : > { %2543 = vst [vmem:[%s3959_s4 + $0xc00] sm:$0xff] %v648_v1  ;;  %v3547_v1 = vld [vmem:[%s3813_s29 + $0x68] sm:$0xff] }
 0x222   : > { %2544 = vst [vmem:[%s3959_s4 + $0xc08] sm:$0xff] %v857_v2 }
 0x223   : > { %v1066_v3 = vpop.f32.mrf.mxu2  ;;  %v1275_v4 = vpop.f32.mrf.mxu3  ;;  %3166 = vmatmul.msk.f32.vlgmr.msrb.gmra.mxu0 %vm294_vm0, %v3534_v0  ;;  %3230 = vmatmul.msk.f32.vlgmr.msrb.gmra.mxu1 %vm294_vm0, %v3534_v0 }
 0x224   : > { %2545 = vst [vmem:[%s3959_s4 + $0xc10] sm:$0xff] %v1066_v3 }
 0x225   : > { %2546 = vst [vmem:[%s3959_s4 + $0xc18] sm:$0xff] %v1275_v4 }
 0x228   : > { %3295 = vmatmul.msk.f32.gmra.mxu2 %vm294_vm0, %v3535_v5  ;;  %3359 = vmatmul.msk.f32.gmra.mxu3 %vm294_vm0, %v3535_v5  ;;  %v651_v6 = vpop.f32.mrf.mxu0  ;;  %v860_v7 = vpop.f32.mrf.mxu1 }
 0x229   : > { %2551 = vst [vmem:[%s3959_s4 + $0xc40] sm:$0xff] %v651_v6  ;;  %v3548_v6 = vld [vmem:[%s3813_s29 + $0x70] sm:$0xff] }
 0x22a   : > { %2552 = vst [vmem:[%s3959_s4 + $0xc48] sm:$0xff] %v860_v7 }
 0x22b   : > { %v1069_v8 = vpop.f32.mrf.mxu2  ;;  %v1278_v9 = vpop.f32.mrf.mxu3  ;;  %3167 = vmatmul.msk.f32.gmra.mxu0 %vm294_vm0, %v3535_v5  ;;  %3231 = vmatmul.msk.f32.gmra.mxu1 %vm294_vm0, %v3535_v5 }
 0x22c   : > { %2553 = vst [vmem:[%s3959_s4 + $0xc50] sm:$0xff] %v1069_v8 }
 0x22d   : > { %2554 = vst [vmem:[%s3959_s4 + $0xc58] sm:$0xff] %v1278_v9 }
 0x230   : > { %3296 = vmatmul.msk.f32.gmra.mxu2 %vm294_vm0, %v3536_v10  ;;  %3360 = vmatmul.msk.f32.gmra.mxu3 %vm294_vm0, %v3536_v10  ;;  %v654_v11 = vpop.f32.mrf.mxu0  ;;  %v863_v12 = vpop.f32.mrf.mxu1 }
 0x231   : > { %2559 = vst [vmem:[%s3959_s4 + $0xc80] sm:$0xff] %v654_v11  ;;  %v3549_v11 = vld [vmem:[%s3813_s29 + $0x78] sm:$0xff] }
 0x232   : > { %2560 = vst [vmem:[%s3959_s4 + $0xc88] sm:$0xff] %v863_v12 }
 0x233   : > { %v1072_v13 = vpop.f32.mrf.mxu2  ;;  %v1281_v14 = vpop.f32.mrf.mxu3  ;;  %3168 = vmatmul.msk.f32.gmra.mxu0 %vm294_vm0, %v3536_v10  ;;  %3232 = vmatmul.msk.f32.gmra.mxu1 %vm294_vm0, %v3536_v10 }
 0x234   : > { %2561 = vst [vmem:[%s3959_s4 + $0xc90] sm:$0xff] %v1072_v13 }
 0x235   : > { %2562 = vst [vmem:[%s3959_s4 + $0xc98] sm:$0xff] %v1281_v14 }
 0x238   : > { %3297 = vmatmul.msk.f32.gmra.mxu2 %vm294_vm0, %v3537_v15  ;;  %3361 = vmatmul.msk.f32.gmra.mxu3 %vm294_vm0, %v3537_v15  ;;  %v657_v16 = vpop.f32.mrf.mxu0  ;;  %v866_v17 = vpop.f32.mrf.mxu1 }
 0x239   : > { %2567 = vst [vmem:[%s3959_s4 + $0xcc0] sm:$0xff] %v657_v16  ;;  %v3550_v16 = vld [vmem:[%s3813_s29 + $0x80] sm:$0xff] }
 0x23a   : > { %2568 = vst [vmem:[%s3959_s4 + $0xcc8] sm:$0xff] %v866_v17 }
 0x23b   : > { %v1075_v18 = vpop.f32.mrf.mxu2  ;;  %v1284_v19 = vpop.f32.mrf.mxu3  ;;  %3169 = vmatmul.msk.f32.gmra.mxu0 %vm294_vm0, %v3537_v15  ;;  %3233 = vmatmul.msk.f32.gmra.mxu1 %vm294_vm0, %v3537_v15 }
 0x23c   : > { %2569 = vst [vmem:[%s3959_s4 + $0xcd0] sm:$0xff] %v1075_v18 }
 0x23d   : > { %2570 = vst [vmem:[%s3959_s4 + $0xcd8] sm:$0xff] %v1284_v19 }
 0x240   : > { %3298 = vmatmul.msk.f32.gmra.mxu2 %vm294_vm0, %v3538_v20  ;;  %3362 = vmatmul.msk.f32.gmra.mxu3 %vm294_vm0, %v3538_v20  ;;  %v660_v21 = vpop.f32.mrf.mxu0  ;;  %v869_v22 = vpop.f32.mrf.mxu1 }
 0x241   : > { %2575 = vst [vmem:[%s3959_s4 + $0xd00] sm:$0xff] %v660_v21  ;;  %v3551_v21 = vld [vmem:[%s3813_s29 + $0x88] sm:$0xff] }
 0x242   : > { %2576 = vst [vmem:[%s3959_s4 + $0xd08] sm:$0xff] %v869_v22 }
 0x243   : > { %v1078_v23 = vpop.f32.mrf.mxu2  ;;  %v1287_v24 = vpop.f32.mrf.mxu3  ;;  %3170 = vmatmul.msk.f32.gmra.mxu0 %vm294_vm0, %v3538_v20  ;;  %3234 = vmatmul.msk.f32.gmra.mxu1 %vm294_vm0, %v3538_v20 }
 0x244   : > { %2577 = vst [vmem:[%s3959_s4 + $0xd10] sm:$0xff] %v1078_v23 }
 0x245   : > { %2578 = vst [vmem:[%s3959_s4 + $0xd18] sm:$0xff] %v1287_v24 }
 0x248   : > { %3299 = vmatmul.msk.f32.gmra.mxu2 %vm294_vm0, %v3539_v25  ;;  %3363 = vmatmul.msk.f32.gmra.mxu3 %vm294_vm0, %v3539_v25  ;;  %v663_v26 = vpop.f32.mrf.mxu0  ;;  %v872_v27 = vpop.f32.mrf.mxu1 }
 0x249   : > { %2583 = vst [vmem:[%s3959_s4 + $0xd40] sm:$0xff] %v663_v26  ;;  %v3552_v26 = vld [vmem:[%s3813_s29 + $0x90] sm:$0xff] }
 0x24a   : > { %2584 = vst [vmem:[%s3959_s4 + $0xd48] sm:$0xff] %v872_v27 }
 0x24b   : > { %v1081_v28 = vpop.f32.mrf.mxu2  ;;  %v1290_v29 = vpop.f32.mrf.mxu3  ;;  %3171 = vmatmul.msk.f32.gmra.mxu0 %vm294_vm0, %v3539_v25  ;;  %3235 = vmatmul.msk.f32.gmra.mxu1 %vm294_vm0, %v3539_v25 }
 0x24c   : > { %2585 = vst [vmem:[%s3959_s4 + $0xd50] sm:$0xff] %v1081_v28 }
 0x24d   : > { %2586 = vst [vmem:[%s3959_s4 + $0xd58] sm:$0xff] %v1290_v29 }
 0x250   : > { %3300 = vmatmul.msk.f32.gmra.mxu2 %vm294_vm0, %v3540_v30  ;;  %3364 = vmatmul.msk.f32.gmra.mxu3 %vm294_vm0, %v3540_v30  ;;  %v666_v31 = vpop.f32.mrf.mxu0  ;;  %v875_v32 = vpop.f32.mrf.mxu1 }
 0x251   : > { %2591 = vst [vmem:[%s3959_s4 + $0xd80] sm:$0xff] %v666_v31  ;;  %v3553_v31 = vld [vmem:[%s3813_s29 + $0x98] sm:$0xff] }
 0x252   : > { %2592 = vst [vmem:[%s3959_s4 + $0xd88] sm:$0xff] %v875_v32 }
 0x253   : > { %v1084_v33 = vpop.f32.mrf.mxu2  ;;  %v1293_v34 = vpop.f32.mrf.mxu3  ;;  %3172 = vmatmul.msk.f32.gmra.mxu0 %vm294_vm0, %v3540_v30  ;;  %3236 = vmatmul.msk.f32.gmra.mxu1 %vm294_vm0, %v3540_v30 }
 0x254   : > { %2593 = vst [vmem:[%s3959_s4 + $0xd90] sm:$0xff] %v1084_v33 }
 0x255   : > { %2594 = vst [vmem:[%s3959_s4 + $0xd98] sm:$0xff] %v1293_v34 }
 0x258   : > { %3301 = vmatmul.msk.f32.gmra.mxu2 %vm294_vm0, %v3541_v35  ;;  %3365 = vmatmul.msk.f32.gmra.mxu3 %vm294_vm0, %v3541_v35  ;;  %v669_v36 = vpop.f32.mrf.mxu0  ;;  %v878_v37 = vpop.f32.mrf.mxu1 }
 0x259   : > { %2599 = vst [vmem:[%s3959_s4 + $0xdc0] sm:$0xff] %v669_v36  ;;  %v3554_v36 = vld [vmem:[%s3813_s29 + $0xa0] sm:$0xff] }
 0x25a   : > { %2600 = vst [vmem:[%s3959_s4 + $0xdc8] sm:$0xff] %v878_v37 }
 0x25b   : > { %v1087_v38 = vpop.f32.mrf.mxu2  ;;  %v1296_v39 = vpop.f32.mrf.mxu3  ;;  %3173 = vmatmul.msk.f32.gmra.mxu0 %vm294_vm0, %v3541_v35  ;;  %3237 = vmatmul.msk.f32.gmra.mxu1 %vm294_vm0, %v3541_v35 }
 0x25c   : > { %2601 = vst [vmem:[%s3959_s4 + $0xdd0] sm:$0xff] %v1087_v38 }
 0x25d   : > { %2602 = vst [vmem:[%s3959_s4 + $0xdd8] sm:$0xff] %v1296_v39 }
 0x260   : > { %3302 = vmatmul.msk.f32.gmra.mxu2 %vm294_vm0, %v3542_v40  ;;  %3366 = vmatmul.msk.f32.gmra.mxu3 %vm294_vm0, %v3542_v40  ;;  %v672_v41 = vpop.f32.mrf.mxu0  ;;  %v881_v42 = vpop.f32.mrf.mxu1 }
 0x261   : > { %2607 = vst [vmem:[%s3959_s4 + $0xe00] sm:$0xff] %v672_v41  ;;  %v3555_v41 = vld [vmem:[%s3813_s29 + $0xa8] sm:$0xff] }
 0x262   : > { %2608 = vst [vmem:[%s3959_s4 + $0xe08] sm:$0xff] %v881_v42 }
 0x263   : > { %v1090_v43 = vpop.f32.mrf.mxu2  ;;  %v1299_v44 = vpop.f32.mrf.mxu3  ;;  %3174 = vmatmul.msk.f32.gmra.mxu0 %vm294_vm0, %v3542_v40  ;;  %3238 = vmatmul.msk.f32.gmra.mxu1 %vm294_vm0, %v3542_v40 }
 0x264   : > { %2609 = vst [vmem:[%s3959_s4 + $0xe10] sm:$0xff] %v1090_v43 }
 0x265   : > { %2610 = vst [vmem:[%s3959_s4 + $0xe18] sm:$0xff] %v1299_v44 }
 0x268   : > { %3303 = vmatmul.msk.f32.gmra.mxu2 %vm294_vm0, %v3543_v45  ;;  %3367 = vmatmul.msk.f32.gmra.mxu3 %vm294_vm0, %v3543_v45  ;;  %v675_v46 = vpop.f32.mrf.mxu0  ;;  %v884_v47 = vpop.f32.mrf.mxu1 }
 0x269   : > { %2615 = vst [vmem:[%s3959_s4 + $0xe40] sm:$0xff] %v675_v46  ;;  %v3556_v46 = vld [vmem:[%s3813_s29 + $0xb0] sm:$0xff] }
 0x26a   : > { %2616 = vst [vmem:[%s3959_s4 + $0xe48] sm:$0xff] %v884_v47 }
 0x26b   : > { %v1093_v48 = vpop.f32.mrf.mxu2  ;;  %v1302_v49 = vpop.f32.mrf.mxu3  ;;  %3175 = vmatmul.msk.f32.gmra.mxu0 %vm294_vm0, %v3543_v45  ;;  %3239 = vmatmul.msk.f32.gmra.mxu1 %vm294_vm0, %v3543_v45 }
 0x26c   : > { %2617 = vst [vmem:[%s3959_s4 + $0xe50] sm:$0xff] %v1093_v48 }
 0x26d   : > { %2618 = vst [vmem:[%s3959_s4 + $0xe58] sm:$0xff] %v1302_v49 }
 0x270   : > { %3304 = vmatmul.msk.f32.gmra.mxu2 %vm294_vm0, %v3544_v50  ;;  %3368 = vmatmul.msk.f32.gmra.mxu3 %vm294_vm0, %v3544_v50  ;;  %v678_v51 = vpop.f32.mrf.mxu0  ;;  %v887_v52 = vpop.f32.mrf.mxu1 }
 0x271   : > { %2623 = vst [vmem:[%s3959_s4 + $0xe80] sm:$0xff] %v678_v51  ;;  %v3557_v51 = vld [vmem:[%s3813_s29 + $0xb8] sm:$0xff] }
 0x272   : > { %2624 = vst [vmem:[%s3959_s4 + $0xe88] sm:$0xff] %v887_v52 }
 0x273   : > { %v1096_v53 = vpop.f32.mrf.mxu2  ;;  %v1305_v54 = vpop.f32.mrf.mxu3  ;;  %3176 = vmatmul.msk.f32.gmra.mxu0 %vm294_vm0, %v3544_v50  ;;  %3240 = vmatmul.msk.f32.gmra.mxu1 %vm294_vm0, %v3544_v50 }
 0x274   : > { %2625 = vst [vmem:[%s3959_s4 + $0xe90] sm:$0xff] %v1096_v53 }
 0x275   : > { %2626 = vst [vmem:[%s3959_s4 + $0xe98] sm:$0xff] %v1305_v54 }
 0x278   : > { %3305 = vmatmul.msk.f32.gmra.mxu2 %vm294_vm0, %v3545_v55  ;;  %3369 = vmatmul.msk.f32.gmra.mxu3 %vm294_vm0, %v3545_v55  ;;  %v681_v56 = vpop.f32.mrf.mxu0  ;;  %v890_v57 = vpop.f32.mrf.mxu1 }
 0x279   : > { %2631 = vst [vmem:[%s3959_s4 + $0xec0] sm:$0xff] %v681_v56  ;;  %v3558_v56 = vld [vmem:[%s3813_s29 + $0xc0] sm:$0xff] }
 0x27a   : > { %2632 = vst [vmem:[%s3959_s4 + $0xec8] sm:$0xff] %v890_v57 }
 0x27b   : > { %v1099_v58 = vpop.f32.mrf.mxu2  ;;  %v1308_v59 = vpop.f32.mrf.mxu3  ;;  %3177 = vmatmul.msk.f32.gmra.mxu0 %vm294_vm0, %v3545_v55  ;;  %3241 = vmatmul.msk.f32.gmra.mxu1 %vm294_vm0, %v3545_v55 }
 0x27c   : > { %2633 = vst [vmem:[%s3959_s4 + $0xed0] sm:$0xff] %v1099_v58 }
 0x27d   : > { %2634 = vst [vmem:[%s3959_s4 + $0xed8] sm:$0xff] %v1308_v59 }
 0x280   : > { %3306 = vmatmul.msk.f32.gmra.mxu2 %vm294_vm0, %v3546_v60  ;;  %3370 = vmatmul.msk.f32.gmra.mxu3 %vm294_vm0, %v3546_v60  ;;  %v684_v61 = vpop.f32.mrf.mxu0  ;;  %v893_v62 = vpop.f32.mrf.mxu1 }
 0x281   : > { %2639 = vst [vmem:[%s3959_s4 + $0xf00] sm:$0xff] %v684_v61  ;;  %v3559_v61 = vld [vmem:[%s3813_s29 + $0xc8] sm:$0xff] }
 0x282   : > { %2640 = vst [vmem:[%s3959_s4 + $0xf08] sm:$0xff] %v893_v62 }
 0x283   : > { %v1102_v63 = vpop.f32.mrf.mxu2  ;;  %v1311_v0 = vpop.f32.mrf.mxu3  ;;  %3178 = vmatmul.msk.f32.gmra.mxu0 %vm294_vm0, %v3546_v60  ;;  %3242 = vmatmul.msk.f32.gmra.mxu1 %vm294_vm0, %v3546_v60 }
 0x284   : > { %2641 = vst [vmem:[%s3959_s4 + $0xf10] sm:$0xff] %v1102_v63 }
 0x285   : > { %2642 = vst [vmem:[%s3959_s4 + $0xf18] sm:$0xff] %v1311_v0 }
 0x288   : > { %3307 = vmatmul.msk.f32.gmra.mxu2 %vm294_vm0, %v3547_v1  ;;  %3371 = vmatmul.msk.f32.gmra.mxu3 %vm294_vm0, %v3547_v1  ;;  %v687_v2 = vpop.f32.mrf.mxu0  ;;  %v896_v3 = vpop.f32.mrf.mxu1 }
 0x289   : > { %2647 = vst [vmem:[%s3959_s4 + $0xf40] sm:$0xff] %v687_v2  ;;  %v3560_v2 = vld [vmem:[%s3813_s29 + $0xd0] sm:$0xff] }
 0x28a   : > { %2648 = vst [vmem:[%s3959_s4 + $0xf48] sm:$0xff] %v896_v3 }
 0x28b   : > { %v1105_v4 = vpop.f32.mrf.mxu2  ;;  %v1314_v5 = vpop.f32.mrf.mxu3  ;;  %3179 = vmatmul.msk.f32.gmra.mxu0 %vm294_vm0, %v3547_v1  ;;  %3243 = vmatmul.msk.f32.gmra.mxu1 %vm294_vm0, %v3547_v1 }
 0x28c   : > { %2649 = vst [vmem:[%s3959_s4 + $0xf50] sm:$0xff] %v1105_v4 }
 0x28d   : > { %2650 = vst [vmem:[%s3959_s4 + $0xf58] sm:$0xff] %v1314_v5 }
 0x290   : > { %3308 = vmatmul.msk.f32.gmra.mxu2 %vm294_vm0, %v3548_v6  ;;  %3372 = vmatmul.msk.f32.gmra.mxu3 %vm294_vm0, %v3548_v6  ;;  %v690_v7 = vpop.f32.mrf.mxu0  ;;  %v899_v8 = vpop.f32.mrf.mxu1 }
 0x291   : > { %2655 = vst [vmem:[%s3959_s4 + $0xf80] sm:$0xff] %v690_v7  ;;  %v3561_v7 = vld [vmem:[%s3813_s29 + $0xd8] sm:$0xff] }
 0x292   : > { %2656 = vst [vmem:[%s3959_s4 + $0xf88] sm:$0xff] %v899_v8 }
 0x293   : > { %v1108_v9 = vpop.f32.mrf.mxu2  ;;  %v1317_v10 = vpop.f32.mrf.mxu3  ;;  %3180 = vmatmul.msk.f32.gmra.mxu0 %vm294_vm0, %v3548_v6  ;;  %3244 = vmatmul.msk.f32.gmra.mxu1 %vm294_vm0, %v3548_v6 }
 0x294   : > { %2657 = vst [vmem:[%s3959_s4 + $0xf90] sm:$0xff] %v1108_v9 }
 0x295   : > { %2658 = vst [vmem:[%s3959_s4 + $0xf98] sm:$0xff] %v1317_v10 }
 0x298   : > { %3309 = vmatmul.msk.f32.gmra.mxu2 %vm294_vm0, %v3549_v11  ;;  %3373 = vmatmul.msk.f32.gmra.mxu3 %vm294_vm0, %v3549_v11  ;;  %v693_v12 = vpop.f32.mrf.mxu0  ;;  %v902_v13 = vpop.f32.mrf.mxu1 }
 0x299   : > { %2663 = vst [vmem:[%s3959_s4 + $0xfc0] sm:$0xff] %v693_v12  ;;  %v3562_v12 = vld [vmem:[%s3813_s29 + $0xe0] sm:$0xff] }
 0x29a   : > { %2664 = vst [vmem:[%s3959_s4 + $0xfc8] sm:$0xff] %v902_v13 }
 0x29b   : > { %v1111_v14 = vpop.f32.mrf.mxu2  ;;  %v1320_v15 = vpop.f32.mrf.mxu3  ;;  %3181 = vmatmul.msk.f32.gmra.mxu0 %vm294_vm0, %v3549_v11  ;;  %3245 = vmatmul.msk.f32.gmra.mxu1 %vm294_vm0, %v3549_v11 }
 0x29c   : > { %2665 = vst [vmem:[%s3959_s4 + $0xfd0] sm:$0xff] %v1111_v14 }
 0x29d   : > { %2666 = vst [vmem:[%s3959_s4 + $0xfd8] sm:$0xff] %v1320_v15 }
 0x2a0   : > { %3310 = vmatmul.msk.f32.gmra.mxu2 %vm294_vm0, %v3550_v16  ;;  %3374 = vmatmul.msk.f32.gmra.mxu3 %vm294_vm0, %v3550_v16  ;;  %v1340_v17 = vpop.f32.mrf.mxu0  ;;  %v1549_v18 = vpop.f32.mrf.mxu1 }
 0x2a1   : > { %2163 = vst [vmem:[%s3959_s4 + $0x20] sm:$0xff] %v1340_v17  ;;  %v3563_v17 = vld [vmem:[%s3813_s29 + $0xe8] sm:$0xff] }
 0x2a2   : > { %2164 = vst [vmem:[%s3959_s4 + $0x28] sm:$0xff] %v1549_v18 }
 0x2a3   : > { %v1758_v19 = vpop.f32.mrf.mxu2  ;;  %v1967_v20 = vpop.f32.mrf.mxu3  ;;  %3182 = vmatmul.msk.f32.gmra.mxu0 %vm294_vm0, %v3550_v16  ;;  %3246 = vmatmul.msk.f32.gmra.mxu1 %vm294_vm0, %v3550_v16 }
 0x2a4   : > { %2165 = vst [vmem:[%s3959_s4 + $0x30] sm:$0xff] %v1758_v19 }
 0x2a5   : > { %2166 = vst [vmem:[%s3959_s4 + $0x38] sm:$0xff] %v1967_v20 }
 0x2a8   : > { %3311 = vmatmul.msk.f32.gmra.mxu2 %vm294_vm0, %v3551_v21  ;;  %3375 = vmatmul.msk.f32.gmra.mxu3 %vm294_vm0, %v3551_v21  ;;  %v1343_v22 = vpop.f32.mrf.mxu0  ;;  %v1552_v23 = vpop.f32.mrf.mxu1 }
 0x2a9   : > { %2171 = vst [vmem:[%s3959_s4 + $0x60] sm:$0xff] %v1343_v22  ;;  %v3564_v22 = vld [vmem:[%s3813_s29 + $0xf0] sm:$0xff] }
 0x2aa   : > { %2172 = vst [vmem:[%s3959_s4 + $0x68] sm:$0xff] %v1552_v23 }
 0x2ab   : > { %v1761_v24 = vpop.f32.mrf.mxu2  ;;  %v1970_v25 = vpop.f32.mrf.mxu3  ;;  %3183 = vmatmul.msk.f32.gmra.mxu0 %vm294_vm0, %v3551_v21  ;;  %3247 = vmatmul.msk.f32.gmra.mxu1 %vm294_vm0, %v3551_v21 }
 0x2ac   : > { %2173 = vst [vmem:[%s3959_s4 + $0x70] sm:$0xff] %v1761_v24 }
 0x2ad   : > { %2174 = vst [vmem:[%s3959_s4 + $0x78] sm:$0xff] %v1970_v25 }
 0x2b0   : > { %3312 = vmatmul.msk.f32.gmra.mxu2 %vm294_vm0, %v3552_v26  ;;  %3376 = vmatmul.msk.f32.gmra.mxu3 %vm294_vm0, %v3552_v26  ;;  %v1346_v27 = vpop.f32.mrf.mxu0  ;;  %v1555_v28 = vpop.f32.mrf.mxu1 }
 0x2b1   : > { %2179 = vst [vmem:[%s3959_s4 + $0xa0] sm:$0xff] %v1346_v27  ;;  %v3565_v27 = vld [vmem:[%s3813_s29 + $0xf8] sm:$0xff] }
 0x2b2   : > { %2180 = vst [vmem:[%s3959_s4 + $0xa8] sm:$0xff] %v1555_v28 }
 0x2b3   : > { %v1764_v29 = vpop.f32.mrf.mxu2  ;;  %v1973_v30 = vpop.f32.mrf.mxu3  ;;  %3184 = vmatmul.msk.f32.gmra.mxu0 %vm294_vm0, %v3552_v26  ;;  %3248 = vmatmul.msk.f32.gmra.mxu1 %vm294_vm0, %v3552_v26 }
 0x2b4   : > { %2181 = vst [vmem:[%s3959_s4 + $0xb0] sm:$0xff] %v1764_v29 }
 0x2b5   : > { %2182 = vst [vmem:[%s3959_s4 + $0xb8] sm:$0xff] %v1973_v30 }
 0x2b8   : > { %3313 = vmatmul.msk.f32.gmra.mxu2 %vm294_vm0, %v3553_v31  ;;  %3377 = vmatmul.msk.f32.gmra.mxu3 %vm294_vm0, %v3553_v31  ;;  %v1349_v32 = vpop.f32.mrf.mxu0  ;;  %v1558_v33 = vpop.f32.mrf.mxu1 }
 0x2b9   : > { %2187 = vst [vmem:[%s3959_s4 + $0xe0] sm:$0xff] %v1349_v32  ;;  %v3566_v32 = vld [vmem:[%s3813_s29 + $0x100] sm:$0xff] }
 0x2ba   : > { %2188 = vst [vmem:[%s3959_s4 + $0xe8] sm:$0xff] %v1558_v33 }
 0x2bb   : > { %v1767_v34 = vpop.f32.mrf.mxu2  ;;  %v1976_v35 = vpop.f32.mrf.mxu3  ;;  %3185 = vmatmul.msk.f32.gmra.mxu0 %vm294_vm0, %v3553_v31  ;;  %3249 = vmatmul.msk.f32.gmra.mxu1 %vm294_vm0, %v3553_v31 }
 0x2bc   : > { %2189 = vst [vmem:[%s3959_s4 + $0xf0] sm:$0xff] %v1767_v34 }
 0x2bd   : > { %2190 = vst [vmem:[%s3959_s4 + $0xf8] sm:$0xff] %v1976_v35 }
 0x2c0   : > { %3314 = vmatmul.msk.f32.gmra.mxu2 %vm294_vm0, %v3554_v36  ;;  %3378 = vmatmul.msk.f32.gmra.mxu3 %vm294_vm0, %v3554_v36  ;;  %v1352_v37 = vpop.f32.mrf.mxu0  ;;  %v1561_v38 = vpop.f32.mrf.mxu1 }
 0x2c1   : > { %2195 = vst [vmem:[%s3959_s4 + $0x120] sm:$0xff] %v1352_v37  ;;  %v3567_v37 = vld [vmem:[%s3813_s29 + $0x108] sm:$0xff] }
 0x2c2   : > { %2196 = vst [vmem:[%s3959_s4 + $0x128] sm:$0xff] %v1561_v38 }
 0x2c3   : > { %v1770_v39 = vpop.f32.mrf.mxu2  ;;  %v1979_v40 = vpop.f32.mrf.mxu3  ;;  %3186 = vmatmul.msk.f32.gmra.mxu0 %vm294_vm0, %v3554_v36  ;;  %3250 = vmatmul.msk.f32.gmra.mxu1 %vm294_vm0, %v3554_v36 }
 0x2c4   : > { %2197 = vst [vmem:[%s3959_s4 + $0x130] sm:$0xff] %v1770_v39 }
 0x2c5   : > { %2198 = vst [vmem:[%s3959_s4 + $0x138] sm:$0xff] %v1979_v40 }
 0x2c8   : > { %3315 = vmatmul.msk.f32.gmra.mxu2 %vm294_vm0, %v3555_v41  ;;  %3379 = vmatmul.msk.f32.gmra.mxu3 %vm294_vm0, %v3555_v41  ;;  %v1355_v42 = vpop.f32.mrf.mxu0  ;;  %v1564_v43 = vpop.f32.mrf.mxu1 }
 0x2c9   : > { %2203 = vst [vmem:[%s3959_s4 + $0x160] sm:$0xff] %v1355_v42  ;;  %v3568_v42 = vld [vmem:[%s3813_s29 + $0x110] sm:$0xff] }
 0x2ca   : > { %2204 = vst [vmem:[%s3959_s4 + $0x168] sm:$0xff] %v1564_v43 }
 0x2cb   : > { %v1773_v44 = vpop.f32.mrf.mxu2  ;;  %v1982_v45 = vpop.f32.mrf.mxu3  ;;  %3187 = vmatmul.msk.f32.gmra.mxu0 %vm294_vm0, %v3555_v41  ;;  %3251 = vmatmul.msk.f32.gmra.mxu1 %vm294_vm0, %v3555_v41 }
 0x2cc   : > { %2205 = vst [vmem:[%s3959_s4 + $0x170] sm:$0xff] %v1773_v44 }
 0x2cd   : > { %2206 = vst [vmem:[%s3959_s4 + $0x178] sm:$0xff] %v1982_v45 }
 0x2d0   : > { %3316 = vmatmul.msk.f32.gmra.mxu2 %vm294_vm0, %v3556_v46  ;;  %3380 = vmatmul.msk.f32.gmra.mxu3 %vm294_vm0, %v3556_v46  ;;  %v1358_v47 = vpop.f32.mrf.mxu0  ;;  %v1567_v48 = vpop.f32.mrf.mxu1 }
 0x2d1   : > { %2211 = vst [vmem:[%s3959_s4 + $0x1a0] sm:$0xff] %v1358_v47  ;;  %v3569_v47 = vld [vmem:[%s3813_s29 + $0x118] sm:$0xff] }
 0x2d2   : > { %2212 = vst [vmem:[%s3959_s4 + $0x1a8] sm:$0xff] %v1567_v48 }
 0x2d3   : > { %v1776_v49 = vpop.f32.mrf.mxu2  ;;  %v1985_v50 = vpop.f32.mrf.mxu3  ;;  %3188 = vmatmul.msk.f32.gmra.mxu0 %vm294_vm0, %v3556_v46  ;;  %3252 = vmatmul.msk.f32.gmra.mxu1 %vm294_vm0, %v3556_v46 }
 0x2d4   : > { %2213 = vst [vmem:[%s3959_s4 + $0x1b0] sm:$0xff] %v1776_v49 }
 0x2d5   : > { %2214 = vst [vmem:[%s3959_s4 + $0x1b8] sm:$0xff] %v1985_v50 }
 0x2d8   : > { %3317 = vmatmul.msk.f32.gmra.mxu2 %vm294_vm0, %v3557_v51  ;;  %3381 = vmatmul.msk.f32.gmra.mxu3 %vm294_vm0, %v3557_v51  ;;  %v1361_v52 = vpop.f32.mrf.mxu0  ;;  %v1570_v53 = vpop.f32.mrf.mxu1 }
 0x2d9   : > { %2219 = vst [vmem:[%s3959_s4 + $0x1e0] sm:$0xff] %v1361_v52  ;;  %v3570_v52 = vld [vmem:[%s3813_s29 + $0x120] sm:$0xff] }
 0x2da   : > { %2220 = vst [vmem:[%s3959_s4 + $0x1e8] sm:$0xff] %v1570_v53 }
 0x2db   : > { %v1779_v54 = vpop.f32.mrf.mxu2  ;;  %v1988_v55 = vpop.f32.mrf.mxu3  ;;  %3189 = vmatmul.msk.f32.gmra.mxu0 %vm294_vm0, %v3557_v51  ;;  %3253 = vmatmul.msk.f32.gmra.mxu1 %vm294_vm0, %v3557_v51 }
 0x2dc   : > { %2221 = vst [vmem:[%s3959_s4 + $0x1f0] sm:$0xff] %v1779_v54 }
 0x2dd   : > { %2222 = vst [vmem:[%s3959_s4 + $0x1f8] sm:$0xff] %v1988_v55 }
 0x2e0   : > { %3318 = vmatmul.msk.f32.gmra.mxu2 %vm294_vm0, %v3558_v56  ;;  %3382 = vmatmul.msk.f32.gmra.mxu3 %vm294_vm0, %v3558_v56  ;;  %v1364_v57 = vpop.f32.mrf.mxu0  ;;  %v1573_v58 = vpop.f32.mrf.mxu1 }
 0x2e1   : > { %2227 = vst [vmem:[%s3959_s4 + $0x220] sm:$0xff] %v1364_v57  ;;  %v3571_v57 = vld [vmem:[%s3813_s29 + $0x128] sm:$0xff] }
 0x2e2   : > { %2228 = vst [vmem:[%s3959_s4 + $0x228] sm:$0xff] %v1573_v58 }
 0x2e3   : > { %v1782_v59 = vpop.f32.mrf.mxu2  ;;  %v1991_v60 = vpop.f32.mrf.mxu3  ;;  %3190 = vmatmul.msk.f32.gmra.mxu0 %vm294_vm0, %v3558_v56  ;;  %3254 = vmatmul.msk.f32.gmra.mxu1 %vm294_vm0, %v3558_v56 }
 0x2e4   : > { %2229 = vst [vmem:[%s3959_s4 + $0x230] sm:$0xff] %v1782_v59 }
 0x2e5   : > { %2230 = vst [vmem:[%s3959_s4 + $0x238] sm:$0xff] %v1991_v60 }
 0x2e8   : > { %3319 = vmatmul.msk.f32.gmra.mxu2 %vm294_vm0, %v3559_v61  ;;  %3383 = vmatmul.msk.f32.gmra.mxu3 %vm294_vm0, %v3559_v61  ;;  %v1367_v62 = vpop.f32.mrf.mxu0  ;;  %v1576_v63 = vpop.f32.mrf.mxu1 }
 0x2e9   : > { %2235 = vst [vmem:[%s3959_s4 + $0x260] sm:$0xff] %v1367_v62  ;;  %v3572_v62 = vld [vmem:[%s3813_s29 + $0x130] sm:$0xff] }
 0x2ea   : > { %2236 = vst [vmem:[%s3959_s4 + $0x268] sm:$0xff] %v1576_v63 }
 0x2eb   : > { %v1785_v0 = vpop.f32.mrf.mxu2  ;;  %v1994_v1 = vpop.f32.mrf.mxu3  ;;  %3191 = vmatmul.msk.f32.gmra.mxu0 %vm294_vm0, %v3559_v61  ;;  %3255 = vmatmul.msk.f32.gmra.mxu1 %vm294_vm0, %v3559_v61 }
 0x2ec   : > { %2237 = vst [vmem:[%s3959_s4 + $0x270] sm:$0xff] %v1785_v0 }
 0x2ed   : > { %2238 = vst [vmem:[%s3959_s4 + $0x278] sm:$0xff] %v1994_v1 }
 0x2f0   : > { %3320 = vmatmul.msk.f32.gmra.mxu2 %vm294_vm0, %v3560_v2  ;;  %3384 = vmatmul.msk.f32.gmra.mxu3 %vm294_vm0, %v3560_v2  ;;  %v1370_v3 = vpop.f32.mrf.mxu0  ;;  %v1579_v4 = vpop.f32.mrf.mxu1 }
 0x2f1   : > { %2243 = vst [vmem:[%s3959_s4 + $0x2a0] sm:$0xff] %v1370_v3  ;;  %v3573_v3 = vld [vmem:[%s3813_s29 + $0x138] sm:$0xff] }
 0x2f2   : > { %2244 = vst [vmem:[%s3959_s4 + $0x2a8] sm:$0xff] %v1579_v4 }
 0x2f3   : > { %v1788_v5 = vpop.f32.mrf.mxu2  ;;  %v1997_v6 = vpop.f32.mrf.mxu3  ;;  %3192 = vmatmul.msk.f32.gmra.mxu0 %vm294_vm0, %v3560_v2  ;;  %3256 = vmatmul.msk.f32.gmra.mxu1 %vm294_vm0, %v3560_v2 }
 0x2f4   : > { %2245 = vst [vmem:[%s3959_s4 + $0x2b0] sm:$0xff] %v1788_v5 }
 0x2f5   : > { %2246 = vst [vmem:[%s3959_s4 + $0x2b8] sm:$0xff] %v1997_v6 }
 0x2f8   : > { %3321 = vmatmul.msk.f32.gmra.mxu2 %vm294_vm0, %v3561_v7  ;;  %3385 = vmatmul.msk.f32.gmra.mxu3 %vm294_vm0, %v3561_v7  ;;  %v1373_v8 = vpop.f32.mrf.mxu0  ;;  %v1582_v9 = vpop.f32.mrf.mxu1 }
 0x2f9   : > { %2251 = vst [vmem:[%s3959_s4 + $0x2e0] sm:$0xff] %v1373_v8  ;;  %v3574_v8 = vld [vmem:[%s3813_s29 + $0x140] sm:$0xff] }
 0x2fa   : > { %2252 = vst [vmem:[%s3959_s4 + $0x2e8] sm:$0xff] %v1582_v9 }
 0x2fb   : > { %v1791_v10 = vpop.f32.mrf.mxu2  ;;  %v2000_v11 = vpop.f32.mrf.mxu3  ;;  %3193 = vmatmul.msk.f32.gmra.mxu0 %vm294_vm0, %v3561_v7  ;;  %3257 = vmatmul.msk.f32.gmra.mxu1 %vm294_vm0, %v3561_v7 }
 0x2fc   : > { %2253 = vst [vmem:[%s3959_s4 + $0x2f0] sm:$0xff] %v1791_v10 }
 0x2fd   : > { %2254 = vst [vmem:[%s3959_s4 + $0x2f8] sm:$0xff] %v2000_v11 }
 0x300   : > { %3322 = vmatmul.msk.f32.gmra.mxu2 %vm294_vm0, %v3562_v12  ;;  %3386 = vmatmul.msk.f32.gmra.mxu3 %vm294_vm0, %v3562_v12  ;;  %v1376_v13 = vpop.f32.mrf.mxu0  ;;  %v1585_v14 = vpop.f32.mrf.mxu1 }
 0x301   : > { %2259 = vst [vmem:[%s3959_s4 + $0x320] sm:$0xff] %v1376_v13  ;;  %v3575_v13 = vld [vmem:[%s3813_s29 + $0x148] sm:$0xff] }
 0x302   : > { %2260 = vst [vmem:[%s3959_s4 + $0x328] sm:$0xff] %v1585_v14 }
 0x303   : > { %v1794_v15 = vpop.f32.mrf.mxu2  ;;  %v2003_v16 = vpop.f32.mrf.mxu3  ;;  %3194 = vmatmul.msk.f32.gmra.mxu0 %vm294_vm0, %v3562_v12  ;;  %3258 = vmatmul.msk.f32.gmra.mxu1 %vm294_vm0, %v3562_v12 }
 0x304   : > { %2261 = vst [vmem:[%s3959_s4 + $0x330] sm:$0xff] %v1794_v15 }
 0x305   : > { %2262 = vst [vmem:[%s3959_s4 + $0x338] sm:$0xff] %v2003_v16 }
 0x308   : > { %3323 = vmatmul.msk.f32.gmra.mxu2 %vm294_vm0, %v3563_v17  ;;  %3387 = vmatmul.msk.f32.gmra.mxu3 %vm294_vm0, %v3563_v17  ;;  %v1379_v18 = vpop.f32.mrf.mxu0  ;;  %v1588_v19 = vpop.f32.mrf.mxu1 }
 0x309   : > { %2267 = vst [vmem:[%s3959_s4 + $0x360] sm:$0xff] %v1379_v18  ;;  %v3576_v18 = vld [vmem:[%s3813_s29 + $0x150] sm:$0xff] }
 0x30a   : > { %2268 = vst [vmem:[%s3959_s4 + $0x368] sm:$0xff] %v1588_v19 }
 0x30b   : > { %v1797_v20 = vpop.f32.mrf.mxu2  ;;  %v2006_v21 = vpop.f32.mrf.mxu3  ;;  %3195 = vmatmul.msk.f32.gmra.mxu0 %vm294_vm0, %v3563_v17  ;;  %3259 = vmatmul.msk.f32.gmra.mxu1 %vm294_vm0, %v3563_v17 }
 0x30c   : > { %2269 = vst [vmem:[%s3959_s4 + $0x370] sm:$0xff] %v1797_v20 }
 0x30d   : > { %2270 = vst [vmem:[%s3959_s4 + $0x378] sm:$0xff] %v2006_v21 }
 0x310   : > { %3324 = vmatmul.msk.f32.gmra.mxu2 %vm294_vm0, %v3564_v22  ;;  %3388 = vmatmul.msk.f32.gmra.mxu3 %vm294_vm0, %v3564_v22  ;;  %v1382_v23 = vpop.f32.mrf.mxu0  ;;  %v1591_v24 = vpop.f32.mrf.mxu1 }
 0x311   : > { %2275 = vst [vmem:[%s3959_s4 + $0x3a0] sm:$0xff] %v1382_v23  ;;  %v3577_v23 = vld [vmem:[%s3813_s29 + $0x158] sm:$0xff] }
 0x312   : > { %2276 = vst [vmem:[%s3959_s4 + $0x3a8] sm:$0xff] %v1591_v24 }
 0x313   : > { %v1800_v25 = vpop.f32.mrf.mxu2  ;;  %v2009_v26 = vpop.f32.mrf.mxu3  ;;  %3196 = vmatmul.msk.f32.gmra.mxu0 %vm294_vm0, %v3564_v22  ;;  %3260 = vmatmul.msk.f32.gmra.mxu1 %vm294_vm0, %v3564_v22 }
 0x314   : > { %2277 = vst [vmem:[%s3959_s4 + $0x3b0] sm:$0xff] %v1800_v25 }
 0x315   : > { %2278 = vst [vmem:[%s3959_s4 + $0x3b8] sm:$0xff] %v2009_v26 }
 0x318   : > { %3325 = vmatmul.msk.f32.gmra.mxu2 %vm294_vm0, %v3565_v27  ;;  %3389 = vmatmul.msk.f32.gmra.mxu3 %vm294_vm0, %v3565_v27  ;;  %v1385_v28 = vpop.f32.mrf.mxu0  ;;  %v1594_v29 = vpop.f32.mrf.mxu1 }
 0x319   : > { %2283 = vst [vmem:[%s3959_s4 + $0x3e0] sm:$0xff] %v1385_v28  ;;  %v3578_v28 = vld [vmem:[%s3813_s29 + $0x160] sm:$0xff] }
 0x31a   : > { %2284 = vst [vmem:[%s3959_s4 + $0x3e8] sm:$0xff] %v1594_v29 }
 0x31b   : > { %v1803_v30 = vpop.f32.mrf.mxu2  ;;  %v2012_v31 = vpop.f32.mrf.mxu3  ;;  %3197 = vmatmul.msk.f32.gmra.mxu0 %vm294_vm0, %v3565_v27  ;;  %3261 = vmatmul.msk.f32.gmra.mxu1 %vm294_vm0, %v3565_v27 }
 0x31c   : > { %2285 = vst [vmem:[%s3959_s4 + $0x3f0] sm:$0xff] %v1803_v30 }
 0x31d   : > { %2286 = vst [vmem:[%s3959_s4 + $0x3f8] sm:$0xff] %v2012_v31 }
 0x320   : > { %3326 = vmatmul.msk.f32.gmra.mxu2 %vm294_vm0, %v3566_v32  ;;  %3390 = vmatmul.msk.f32.gmra.mxu3 %vm294_vm0, %v3566_v32  ;;  %v1388_v33 = vpop.f32.mrf.mxu0  ;;  %v1597_v34 = vpop.f32.mrf.mxu1 }
 0x321   : > { %2291 = vst [vmem:[%s3959_s4 + $0x420] sm:$0xff] %v1388_v33  ;;  %v3579_v33 = vld [vmem:[%s3813_s29 + $0x168] sm:$0xff] }
 0x322   : > { %2292 = vst [vmem:[%s3959_s4 + $0x428] sm:$0xff] %v1597_v34 }
 0x323   : > { %v1806_v35 = vpop.f32.mrf.mxu2  ;;  %v2015_v36 = vpop.f32.mrf.mxu3  ;;  %3198 = vmatmul.msk.f32.gmra.mxu0 %vm294_vm0, %v3566_v32  ;;  %3262 = vmatmul.msk.f32.gmra.mxu1 %vm294_vm0, %v3566_v32 }
 0x324   : > { %2293 = vst [vmem:[%s3959_s4 + $0x430] sm:$0xff] %v1806_v35 }
 0x325   : > { %2294 = vst [vmem:[%s3959_s4 + $0x438] sm:$0xff] %v2015_v36 }
 0x328   : > { %3327 = vmatmul.msk.f32.gmra.mxu2 %vm294_vm0, %v3567_v37  ;;  %3391 = vmatmul.msk.f32.gmra.mxu3 %vm294_vm0, %v3567_v37  ;;  %v1391_v38 = vpop.f32.mrf.mxu0  ;;  %v1600_v39 = vpop.f32.mrf.mxu1 }
 0x329   : > { %2299 = vst [vmem:[%s3959_s4 + $0x460] sm:$0xff] %v1391_v38  ;;  %v3580_v38 = vld [vmem:[%s3813_s29 + $0x170] sm:$0xff] }
 0x32a   : > { %2300 = vst [vmem:[%s3959_s4 + $0x468] sm:$0xff] %v1600_v39 }
 0x32b   : > { %v1809_v40 = vpop.f32.mrf.mxu2  ;;  %v2018_v41 = vpop.f32.mrf.mxu3  ;;  %3199 = vmatmul.msk.f32.gmra.mxu0 %vm294_vm0, %v3567_v37  ;;  %3263 = vmatmul.msk.f32.gmra.mxu1 %vm294_vm0, %v3567_v37 }
 0x32c   : > { %2301 = vst [vmem:[%s3959_s4 + $0x470] sm:$0xff] %v1809_v40 }
 0x32d   : > { %2302 = vst [vmem:[%s3959_s4 + $0x478] sm:$0xff] %v2018_v41 }
 0x330   : > { %3328 = vmatmul.msk.f32.gmra.mxu2 %vm294_vm0, %v3568_v42  ;;  %3392 = vmatmul.msk.f32.gmra.mxu3 %vm294_vm0, %v3568_v42  ;;  %v1394_v43 = vpop.f32.mrf.mxu0  ;;  %v1603_v44 = vpop.f32.mrf.mxu1 }
 0x331   : > { %2307 = vst [vmem:[%s3959_s4 + $0x4a0] sm:$0xff] %v1394_v43  ;;  %v3581_v43 = vld [vmem:[%s3813_s29 + $0x178] sm:$0xff] }
 0x332   : > { %2308 = vst [vmem:[%s3959_s4 + $0x4a8] sm:$0xff] %v1603_v44 }
 0x333   : > { %v1812_v45 = vpop.f32.mrf.mxu2  ;;  %v2021_v46 = vpop.f32.mrf.mxu3  ;;  %3200 = vmatmul.msk.f32.gmra.mxu0 %vm294_vm0, %v3568_v42  ;;  %3264 = vmatmul.msk.f32.gmra.mxu1 %vm294_vm0, %v3568_v42 }
 0x334   : > { %2309 = vst [vmem:[%s3959_s4 + $0x4b0] sm:$0xff] %v1812_v45 }
 0x335   : > { %2310 = vst [vmem:[%s3959_s4 + $0x4b8] sm:$0xff] %v2021_v46 }
 0x338   : > { %3329 = vmatmul.msk.f32.gmra.mxu2 %vm294_vm0, %v3569_v47  ;;  %3393 = vmatmul.msk.f32.gmra.mxu3 %vm294_vm0, %v3569_v47  ;;  %v1397_v48 = vpop.f32.mrf.mxu0  ;;  %v1606_v49 = vpop.f32.mrf.mxu1 }
 0x339   : > { %2315 = vst [vmem:[%s3959_s4 + $0x4e0] sm:$0xff] %v1397_v48  ;;  %v3582_v48 = vld [vmem:[%s3813_s29 + $0x180] sm:$0xff] }
 0x33a   : > { %2316 = vst [vmem:[%s3959_s4 + $0x4e8] sm:$0xff] %v1606_v49 }
 0x33b   : > { %v1815_v50 = vpop.f32.mrf.mxu2  ;;  %v2024_v51 = vpop.f32.mrf.mxu3  ;;  %3201 = vmatmul.msk.f32.gmra.mxu0 %vm294_vm0, %v3569_v47  ;;  %3265 = vmatmul.msk.f32.gmra.mxu1 %vm294_vm0, %v3569_v47 }
 0x33c   : > { %2317 = vst [vmem:[%s3959_s4 + $0x4f0] sm:$0xff] %v1815_v50 }
 0x33d   : > { %2318 = vst [vmem:[%s3959_s4 + $0x4f8] sm:$0xff] %v2024_v51 }
 0x340   : > { %3330 = vmatmul.msk.f32.gmra.mxu2 %vm294_vm0, %v3570_v52  ;;  %3394 = vmatmul.msk.f32.gmra.mxu3 %vm294_vm0, %v3570_v52  ;;  %v1400_v53 = vpop.f32.mrf.mxu0  ;;  %v1609_v54 = vpop.f32.mrf.mxu1 }
 0x341   : > { %2323 = vst [vmem:[%s3959_s4 + $0x520] sm:$0xff] %v1400_v53  ;;  %v3583_v53 = vld [vmem:[%s3813_s29 + $0x188] sm:$0xff] }
 0x342   : > { %2324 = vst [vmem:[%s3959_s4 + $0x528] sm:$0xff] %v1609_v54 }
 0x343   : > { %v1818_v55 = vpop.f32.mrf.mxu2  ;;  %v2027_v56 = vpop.f32.mrf.mxu3  ;;  %3202 = vmatmul.msk.f32.gmra.mxu0 %vm294_vm0, %v3570_v52  ;;  %3266 = vmatmul.msk.f32.gmra.mxu1 %vm294_vm0, %v3570_v52 }
 0x344   : > { %2325 = vst [vmem:[%s3959_s4 + $0x530] sm:$0xff] %v1818_v55 }
 0x345   : > { %2326 = vst [vmem:[%s3959_s4 + $0x538] sm:$0xff] %v2027_v56 }
 0x348   : > { %3331 = vmatmul.msk.f32.gmra.mxu2 %vm294_vm0, %v3571_v57  ;;  %3395 = vmatmul.msk.f32.gmra.mxu3 %vm294_vm0, %v3571_v57  ;;  %v1403_v58 = vpop.f32.mrf.mxu0  ;;  %v1612_v59 = vpop.f32.mrf.mxu1 }
 0x349   : > { %2331 = vst [vmem:[%s3959_s4 + $0x560] sm:$0xff] %v1403_v58  ;;  %v3584_v58 = vld [vmem:[%s3813_s29 + $0x190] sm:$0xff] }
 0x34a   : > { %2332 = vst [vmem:[%s3959_s4 + $0x568] sm:$0xff] %v1612_v59 }
 0x34b   : > { %v1821_v60 = vpop.f32.mrf.mxu2  ;;  %v2030_v61 = vpop.f32.mrf.mxu3  ;;  %3203 = vmatmul.msk.f32.gmra.mxu0 %vm294_vm0, %v3571_v57  ;;  %3267 = vmatmul.msk.f32.gmra.mxu1 %vm294_vm0, %v3571_v57 }
 0x34c   : > { %2333 = vst [vmem:[%s3959_s4 + $0x570] sm:$0xff] %v1821_v60 }
 0x34d   : > { %2334 = vst [vmem:[%s3959_s4 + $0x578] sm:$0xff] %v2030_v61 }
 0x350   : > { %3332 = vmatmul.msk.f32.gmra.mxu2 %vm294_vm0, %v3572_v62  ;;  %3396 = vmatmul.msk.f32.gmra.mxu3 %vm294_vm0, %v3572_v62  ;;  %v1406_v63 = vpop.f32.mrf.mxu0  ;;  %v1615_v0 = vpop.f32.mrf.mxu1 }
 0x351   : > { %2339 = vst [vmem:[%s3959_s4 + $0x5a0] sm:$0xff] %v1406_v63  ;;  %v3585_v63 = vld [vmem:[%s3813_s29 + $0x198] sm:$0xff] }
 0x352   : > { %2340 = vst [vmem:[%s3959_s4 + $0x5a8] sm:$0xff] %v1615_v0 }
 0x353   : > { %v1824_v1 = vpop.f32.mrf.mxu2  ;;  %v2033_v2 = vpop.f32.mrf.mxu3  ;;  %3204 = vmatmul.msk.f32.gmra.mxu0 %vm294_vm0, %v3572_v62  ;;  %3268 = vmatmul.msk.f32.gmra.mxu1 %vm294_vm0, %v3572_v62 }
 0x354   : > { %2341 = vst [vmem:[%s3959_s4 + $0x5b0] sm:$0xff] %v1824_v1 }
 0x355   : > { %2342 = vst [vmem:[%s3959_s4 + $0x5b8] sm:$0xff] %v2033_v2 }
 0x358   : > { %3333 = vmatmul.msk.f32.gmra.mxu2 %vm294_vm0, %v3573_v3  ;;  %3397 = vmatmul.msk.f32.gmra.mxu3 %vm294_vm0, %v3573_v3  ;;  %v1409_v4 = vpop.f32.mrf.mxu0  ;;  %v1618_v5 = vpop.f32.mrf.mxu1 }
 0x359   : > { %2347 = vst [vmem:[%s3959_s4 + $0x5e0] sm:$0xff] %v1409_v4  ;;  %v3586_v4 = vld [vmem:[%s3813_s29 + $0x1a0] sm:$0xff] }
 0x35a   : > { %2348 = vst [vmem:[%s3959_s4 + $0x5e8] sm:$0xff] %v1618_v5 }
 0x35b   : > { %v1827_v6 = vpop.f32.mrf.mxu2  ;;  %v2036_v7 = vpop.f32.mrf.mxu3  ;;  %3205 = vmatmul.msk.f32.gmra.mxu0 %vm294_vm0, %v3573_v3  ;;  %3269 = vmatmul.msk.f32.gmra.mxu1 %vm294_vm0, %v3573_v3 }
 0x35c   : > { %2349 = vst [vmem:[%s3959_s4 + $0x5f0] sm:$0xff] %v1827_v6 }
 0x35d   : > { %2350 = vst [vmem:[%s3959_s4 + $0x5f8] sm:$0xff] %v2036_v7 }
 0x360   : > { %3334 = vmatmul.msk.f32.gmra.mxu2 %vm294_vm0, %v3574_v8  ;;  %3398 = vmatmul.msk.f32.gmra.mxu3 %vm294_vm0, %v3574_v8  ;;  %v1412_v9 = vpop.f32.mrf.mxu0  ;;  %v1621_v10 = vpop.f32.mrf.mxu1 }
 0x361   : > { %2355 = vst [vmem:[%s3959_s4 + $0x620] sm:$0xff] %v1412_v9  ;;  %v3587_v9 = vld [vmem:[%s3813_s29 + $0x1a8] sm:$0xff] }
 0x362   : > { %2356 = vst [vmem:[%s3959_s4 + $0x628] sm:$0xff] %v1621_v10 }
 0x363   : > { %v1830_v11 = vpop.f32.mrf.mxu2  ;;  %v2039_v12 = vpop.f32.mrf.mxu3  ;;  %3206 = vmatmul.msk.f32.gmra.mxu0 %vm294_vm0, %v3574_v8  ;;  %3270 = vmatmul.msk.f32.gmra.mxu1 %vm294_vm0, %v3574_v8 }
 0x364   : > { %2357 = vst [vmem:[%s3959_s4 + $0x630] sm:$0xff] %v1830_v11 }
 0x365   : > { %2358 = vst [vmem:[%s3959_s4 + $0x638] sm:$0xff] %v2039_v12 }
 0x368   : > { %3335 = vmatmul.msk.f32.gmra.mxu2 %vm294_vm0, %v3575_v13  ;;  %3399 = vmatmul.msk.f32.gmra.mxu3 %vm294_vm0, %v3575_v13  ;;  %v1415_v14 = vpop.f32.mrf.mxu0  ;;  %v1624_v15 = vpop.f32.mrf.mxu1 }
 0x369   : > { %2363 = vst [vmem:[%s3959_s4 + $0x660] sm:$0xff] %v1415_v14  ;;  %v3588_v14 = vld [vmem:[%s3813_s29 + $0x1b0] sm:$0xff] }
 0x36a   : > { %2364 = vst [vmem:[%s3959_s4 + $0x668] sm:$0xff] %v1624_v15 }
 0x36b   : > { %v1833_v16 = vpop.f32.mrf.mxu2  ;;  %v2042_v17 = vpop.f32.mrf.mxu3  ;;  %3207 = vmatmul.msk.f32.gmra.mxu0 %vm294_vm0, %v3575_v13  ;;  %3271 = vmatmul.msk.f32.gmra.mxu1 %vm294_vm0, %v3575_v13 }
 0x36c   : > { %2365 = vst [vmem:[%s3959_s4 + $0x670] sm:$0xff] %v1833_v16 }
 0x36d   : > { %2366 = vst [vmem:[%s3959_s4 + $0x678] sm:$0xff] %v2042_v17 }
 0x370   : > { %3336 = vmatmul.msk.f32.gmra.mxu2 %vm294_vm0, %v3576_v18  ;;  %3400 = vmatmul.msk.f32.gmra.mxu3 %vm294_vm0, %v3576_v18  ;;  %v1418_v19 = vpop.f32.mrf.mxu0  ;;  %v1627_v20 = vpop.f32.mrf.mxu1 }
 0x371   : > { %2371 = vst [vmem:[%s3959_s4 + $0x6a0] sm:$0xff] %v1418_v19  ;;  %v3589_v19 = vld [vmem:[%s3813_s29 + $0x1b8] sm:$0xff] }
 0x372   : > { %2372 = vst [vmem:[%s3959_s4 + $0x6a8] sm:$0xff] %v1627_v20 }
 0x373   : > { %v1836_v21 = vpop.f32.mrf.mxu2  ;;  %v2045_v22 = vpop.f32.mrf.mxu3  ;;  %3208 = vmatmul.msk.f32.gmra.mxu0 %vm294_vm0, %v3576_v18  ;;  %3272 = vmatmul.msk.f32.gmra.mxu1 %vm294_vm0, %v3576_v18 }
 0x374   : > { %2373 = vst [vmem:[%s3959_s4 + $0x6b0] sm:$0xff] %v1836_v21 }
 0x375   : > { %2374 = vst [vmem:[%s3959_s4 + $0x6b8] sm:$0xff] %v2045_v22 }
 0x378   : > { %3337 = vmatmul.msk.f32.gmra.mxu2 %vm294_vm0, %v3577_v23  ;;  %3401 = vmatmul.msk.f32.gmra.mxu3 %vm294_vm0, %v3577_v23  ;;  %v1421_v24 = vpop.f32.mrf.mxu0  ;;  %v1630_v25 = vpop.f32.mrf.mxu1 }
 0x379   : > { %2379 = vst [vmem:[%s3959_s4 + $0x6e0] sm:$0xff] %v1421_v24  ;;  %v3590_v24 = vld [vmem:[%s3813_s29 + $0x1c0] sm:$0xff] }
 0x37a   : > { %2380 = vst [vmem:[%s3959_s4 + $0x6e8] sm:$0xff] %v1630_v25 }
 0x37b   : > { %v1839_v26 = vpop.f32.mrf.mxu2  ;;  %v2048_v27 = vpop.f32.mrf.mxu3  ;;  %3209 = vmatmul.msk.f32.gmra.mxu0 %vm294_vm0, %v3577_v23  ;;  %3273 = vmatmul.msk.f32.gmra.mxu1 %vm294_vm0, %v3577_v23 }
 0x37c   : > { %2381 = vst [vmem:[%s3959_s4 + $0x6f0] sm:$0xff] %v1839_v26 }
 0x37d   : > { %2382 = vst [vmem:[%s3959_s4 + $0x6f8] sm:$0xff] %v2048_v27 }
 0x380   : > { %3338 = vmatmul.msk.f32.gmra.mxu2 %vm294_vm0, %v3578_v28  ;;  %3402 = vmatmul.msk.f32.gmra.mxu3 %vm294_vm0, %v3578_v28  ;;  %v1424_v29 = vpop.f32.mrf.mxu0  ;;  %v1633_v30 = vpop.f32.mrf.mxu1 }
 0x381   : > { %2387 = vst [vmem:[%s3959_s4 + $0x720] sm:$0xff] %v1424_v29  ;;  %v3591_v29 = vld [vmem:[%s3813_s29 + $0x1c8] sm:$0xff] }
 0x382   : > { %2388 = vst [vmem:[%s3959_s4 + $0x728] sm:$0xff] %v1633_v30 }
 0x383   : > { %v1842_v31 = vpop.f32.mrf.mxu2  ;;  %v2051_v32 = vpop.f32.mrf.mxu3  ;;  %3210 = vmatmul.msk.f32.gmra.mxu0 %vm294_vm0, %v3578_v28  ;;  %3274 = vmatmul.msk.f32.gmra.mxu1 %vm294_vm0, %v3578_v28 }
 0x384   : > { %2389 = vst [vmem:[%s3959_s4 + $0x730] sm:$0xff] %v1842_v31 }
 0x385   : > { %2390 = vst [vmem:[%s3959_s4 + $0x738] sm:$0xff] %v2051_v32 }
 0x388   : > { %3339 = vmatmul.msk.f32.gmra.mxu2 %vm294_vm0, %v3579_v33  ;;  %3403 = vmatmul.msk.f32.gmra.mxu3 %vm294_vm0, %v3579_v33  ;;  %v1427_v34 = vpop.f32.mrf.mxu0  ;;  %v1636_v35 = vpop.f32.mrf.mxu1 }
 0x389   : > { %2395 = vst [vmem:[%s3959_s4 + $0x760] sm:$0xff] %v1427_v34  ;;  %v3592_v34 = vld [vmem:[%s3813_s29 + $0x1d0] sm:$0xff] }
 0x38a   : > { %2396 = vst [vmem:[%s3959_s4 + $0x768] sm:$0xff] %v1636_v35 }
 0x38b   : > { %v1845_v36 = vpop.f32.mrf.mxu2  ;;  %v2054_v37 = vpop.f32.mrf.mxu3  ;;  %3211 = vmatmul.msk.f32.gmra.mxu0 %vm294_vm0, %v3579_v33  ;;  %3275 = vmatmul.msk.f32.gmra.mxu1 %vm294_vm0, %v3579_v33 }
 0x38c   : > { %2397 = vst [vmem:[%s3959_s4 + $0x770] sm:$0xff] %v1845_v36 }
 0x38d   : > { %2398 = vst [vmem:[%s3959_s4 + $0x778] sm:$0xff] %v2054_v37 }
 0x390   : > { %3340 = vmatmul.msk.f32.gmra.mxu2 %vm294_vm0, %v3580_v38  ;;  %3404 = vmatmul.msk.f32.gmra.mxu3 %vm294_vm0, %v3580_v38  ;;  %v1430_v39 = vpop.f32.mrf.mxu0  ;;  %v1639_v40 = vpop.f32.mrf.mxu1 }
 0x391   : > { %2403 = vst [vmem:[%s3959_s4 + $0x7a0] sm:$0xff] %v1430_v39  ;;  %v3593_v39 = vld [vmem:[%s3813_s29 + $0x1d8] sm:$0xff] }
 0x392   : > { %2404 = vst [vmem:[%s3959_s4 + $0x7a8] sm:$0xff] %v1639_v40 }
 0x393   : > { %v1848_v41 = vpop.f32.mrf.mxu2  ;;  %v2057_v42 = vpop.f32.mrf.mxu3  ;;  %3212 = vmatmul.msk.f32.gmra.mxu0 %vm294_vm0, %v3580_v38  ;;  %3276 = vmatmul.msk.f32.gmra.mxu1 %vm294_vm0, %v3580_v38 }
 0x394   : > { %2405 = vst [vmem:[%s3959_s4 + $0x7b0] sm:$0xff] %v1848_v41 }
 0x395   : > { %2406 = vst [vmem:[%s3959_s4 + $0x7b8] sm:$0xff] %v2057_v42 }
 0x398   : > { %3341 = vmatmul.msk.f32.gmra.mxu2 %vm294_vm0, %v3581_v43  ;;  %3405 = vmatmul.msk.f32.gmra.mxu3 %vm294_vm0, %v3581_v43  ;;  %v1433_v44 = vpop.f32.mrf.mxu0  ;;  %v1642_v45 = vpop.f32.mrf.mxu1 }
 0x399   : > { %2411 = vst [vmem:[%s3959_s4 + $0x7e0] sm:$0xff] %v1433_v44  ;;  %v3594_v44 = vld [vmem:[%s3813_s29 + $0x1e0] sm:$0xff] }
 0x39a   : > { %2412 = vst [vmem:[%s3959_s4 + $0x7e8] sm:$0xff] %v1642_v45 }
 0x39b   : > { %v1851_v46 = vpop.f32.mrf.mxu2  ;;  %v2060_v47 = vpop.f32.mrf.mxu3  ;;  %3213 = vmatmul.msk.f32.gmra.mxu0 %vm294_vm0, %v3581_v43  ;;  %3277 = vmatmul.msk.f32.gmra.mxu1 %vm294_vm0, %v3581_v43 }
 0x39c   : > { %2413 = vst [vmem:[%s3959_s4 + $0x7f0] sm:$0xff] %v1851_v46 }
 0x39d   : > { %2414 = vst [vmem:[%s3959_s4 + $0x7f8] sm:$0xff] %v2060_v47 }
 0x3a0   : > { %3342 = vmatmul.msk.f32.gmra.mxu2 %vm294_vm0, %v3582_v48  ;;  %3406 = vmatmul.msk.f32.gmra.mxu3 %vm294_vm0, %v3582_v48  ;;  %v1436_v49 = vpop.f32.mrf.mxu0  ;;  %v1645_v50 = vpop.f32.mrf.mxu1 }
 0x3a1   : > { %2419 = vst [vmem:[%s3959_s4 + $0x820] sm:$0xff] %v1436_v49  ;;  %v3595_v49 = vld [vmem:[%s3813_s29 + $0x1e8] sm:$0xff] }
 0x3a2   : > { %2420 = vst [vmem:[%s3959_s4 + $0x828] sm:$0xff] %v1645_v50 }
 0x3a3   : > { %v1854_v51 = vpop.f32.mrf.mxu2  ;;  %v2063_v52 = vpop.f32.mrf.mxu3  ;;  %3214 = vmatmul.msk.f32.gmra.mxu0 %vm294_vm0, %v3582_v48  ;;  %3278 = vmatmul.msk.f32.gmra.mxu1 %vm294_vm0, %v3582_v48 }
 0x3a4   : > { %2421 = vst [vmem:[%s3959_s4 + $0x830] sm:$0xff] %v1854_v51 }
 0x3a5   : > { %2422 = vst [vmem:[%s3959_s4 + $0x838] sm:$0xff] %v2063_v52 }
 0x3a8   : > { %3343 = vmatmul.msk.f32.gmra.mxu2 %vm294_vm0, %v3583_v53  ;;  %3407 = vmatmul.msk.f32.gmra.mxu3 %vm294_vm0, %v3583_v53  ;;  %v1439_v54 = vpop.f32.mrf.mxu0  ;;  %v1648_v55 = vpop.f32.mrf.mxu1 }
 0x3a9   : > { %2427 = vst [vmem:[%s3959_s4 + $0x860] sm:$0xff] %v1439_v54  ;;  %v3596_v54 = vld [vmem:[%s3813_s29 + $0x1f0] sm:$0xff] }
 0x3aa   : > { %2428 = vst [vmem:[%s3959_s4 + $0x868] sm:$0xff] %v1648_v55 }
 0x3ab   : > { %v1857_v56 = vpop.f32.mrf.mxu2  ;;  %v2066_v57 = vpop.f32.mrf.mxu3  ;;  %3215 = vmatmul.msk.f32.gmra.mxu0 %vm294_vm0, %v3583_v53  ;;  %3279 = vmatmul.msk.f32.gmra.mxu1 %vm294_vm0, %v3583_v53 }
 0x3ac   : > { %2429 = vst [vmem:[%s3959_s4 + $0x870] sm:$0xff] %v1857_v56 }
 0x3ad   : > { %2430 = vst [vmem:[%s3959_s4 + $0x878] sm:$0xff] %v2066_v57 }
 0x3b0   : > { %3344 = vmatmul.msk.f32.gmra.mxu2 %vm294_vm0, %v3584_v58  ;;  %3408 = vmatmul.msk.f32.gmra.mxu3 %vm294_vm0, %v3584_v58  ;;  %v1442_v59 = vpop.f32.mrf.mxu0  ;;  %v1651_v60 = vpop.f32.mrf.mxu1 }
 0x3b1   : > { %2435 = vst [vmem:[%s3959_s4 + $0x8a0] sm:$0xff] %v1442_v59  ;;  %v3597_v59 = vld [vmem:[%s3813_s29 + $0x1f8] sm:$0xff]  ;;  %s2679_s29 = ssub.s32 (%p3726_p4), 111, %s3740_s24 }
 0x3b2   : > { %2436 = vst [vmem:[%s3959_s4 + $0x8a8] sm:$0xff] %v1651_v60  ;;  %p2680_p8 = scmp.lt.s32.totalorder (%p3726_p4), %s2679_s29, 64 }
 0x3b3   : > { %v1860_v61 = vpop.f32.mrf.mxu2  ;;  %v2069_v62 = vpop.f32.mrf.mxu3  ;;  %3216 = vmatmul.msk.f32.gmra.mxu0 %vm294_vm0, %v3584_v58  ;;  %3280 = vmatmul.msk.f32.gmra.mxu1 %vm294_vm0, %v3584_v58 }
 0x3b4   : > { %2437 = vst [vmem:[%s3959_s4 + $0x8b0] sm:$0xff] %v1860_v61 }
 0x3b5   : > { %2438 = vst [vmem:[%s3959_s4 + $0x8b8] sm:$0xff] %v2069_v62 }
 0x3b8   : > { %3345 = vmatmul.msk.f32.gmra.mxu2 %vm294_vm0, %v3585_v63  ;;  %3409 = vmatmul.msk.f32.gmra.mxu3 %vm294_vm0, %v3585_v63  ;;  %v1445_v0 = vpop.f32.mrf.mxu0  ;;  %v1654_v1 = vpop.f32.mrf.mxu1 }
 0x3b9   : > { %2443 = vst [vmem:[%s3959_s4 + $0x8e0] sm:$0xff] %v1445_v0 }
 0x3ba   : > { %2444 = vst [vmem:[%s3959_s4 + $0x8e8] sm:$0xff] %v1654_v1 }
 0x3bb   : > { %v1863_v2 = vpop.f32.mrf.mxu2  ;;  %v2072_v3 = vpop.f32.mrf.mxu3  ;;  %3217 = vmatmul.msk.f32.gmra.mxu0 %vm294_vm0, %v3585_v63  ;;  %3281 = vmatmul.msk.f32.gmra.mxu1 %vm294_vm0, %v3585_v63 }
 0x3bc   : > { %2445 = vst [vmem:[%s3959_s4 + $0x8f0] sm:$0xff] %v1863_v2 }
 0x3bd   : > { %2446 = vst [vmem:[%s3959_s4 + $0x8f8] sm:$0xff] %v2072_v3 }
 0x3c0   : > { %3346 = vmatmul.msk.f32.gmra.mxu2 %vm294_vm0, %v3586_v4  ;;  %3410 = vmatmul.msk.f32.gmra.mxu3 %vm294_vm0, %v3586_v4  ;;  %v1448_v5 = vpop.f32.mrf.mxu0  ;;  %v1657_v6 = vpop.f32.mrf.mxu1 }
 0x3c1   : > { %2451 = vst [vmem:[%s3959_s4 + $0x920] sm:$0xff] %v1448_v5 }
 0x3c2   : > { %2452 = vst [vmem:[%s3959_s4 + $0x928] sm:$0xff] %v1657_v6 }
 0x3c3   : > { %v1866_v7 = vpop.f32.mrf.mxu2  ;;  %v2075_v8 = vpop.f32.mrf.mxu3  ;;  %3218 = vmatmul.msk.f32.gmra.mxu0 %vm294_vm0, %v3586_v4  ;;  %3282 = vmatmul.msk.f32.gmra.mxu1 %vm294_vm0, %v3586_v4 }
 0x3c4   : > { %2453 = vst [vmem:[%s3959_s4 + $0x930] sm:$0xff] %v1866_v7 }
 0x3c5   : > { %2454 = vst [vmem:[%s3959_s4 + $0x938] sm:$0xff] %v2075_v8 }
 0x3c8   : > { %3347 = vmatmul.msk.f32.gmra.mxu2 %vm294_vm0, %v3587_v9  ;;  %3411 = vmatmul.msk.f32.gmra.mxu3 %vm294_vm0, %v3587_v9  ;;  %v1451_v10 = vpop.f32.mrf.mxu0  ;;  %v1660_v11 = vpop.f32.mrf.mxu1 }
 0x3c9   : > { %2459 = vst [vmem:[%s3959_s4 + $0x960] sm:$0xff] %v1451_v10 }
 0x3ca   : > { %2460 = vst [vmem:[%s3959_s4 + $0x968] sm:$0xff] %v1660_v11 }
 0x3cb   : > { %v1869_v12 = vpop.f32.mrf.mxu2  ;;  %v2078_v13 = vpop.f32.mrf.mxu3  ;;  %3219 = vmatmul.msk.f32.gmra.mxu0 %vm294_vm0, %v3587_v9  ;;  %3283 = vmatmul.msk.f32.gmra.mxu1 %vm294_vm0, %v3587_v9 }
 0x3cc   : > { %2461 = vst [vmem:[%s3959_s4 + $0x970] sm:$0xff] %v1869_v12 }
 0x3cd   : > { %2462 = vst [vmem:[%s3959_s4 + $0x978] sm:$0xff] %v2078_v13 }
 0x3d0   : > { %3348 = vmatmul.msk.f32.gmra.mxu2 %vm294_vm0, %v3588_v14  ;;  %3412 = vmatmul.msk.f32.gmra.mxu3 %vm294_vm0, %v3588_v14  ;;  %v1454_v15 = vpop.f32.mrf.mxu0  ;;  %v1663_v16 = vpop.f32.mrf.mxu1 }
 0x3d1   : > { %2467 = vst [vmem:[%s3959_s4 + $0x9a0] sm:$0xff] %v1454_v15 }
 0x3d2   : > { %2468 = vst [vmem:[%s3959_s4 + $0x9a8] sm:$0xff] %v1663_v16 }
 0x3d3   : > { %v1872_v17 = vpop.f32.mrf.mxu2  ;;  %v2081_v18 = vpop.f32.mrf.mxu3  ;;  %3220 = vmatmul.msk.f32.gmra.mxu0 %vm294_vm0, %v3588_v14  ;;  %3284 = vmatmul.msk.f32.gmra.mxu1 %vm294_vm0, %v3588_v14 }
 0x3d4   : > { %2469 = vst [vmem:[%s3959_s4 + $0x9b0] sm:$0xff] %v1872_v17 }
 0x3d5   : > { %2470 = vst [vmem:[%s3959_s4 + $0x9b8] sm:$0xff] %v2081_v18 }
 0x3d8   : > { %3349 = vmatmul.msk.f32.gmra.mxu2 %vm294_vm0, %v3589_v19  ;;  %3413 = vmatmul.msk.f32.gmra.mxu3 %vm294_vm0, %v3589_v19  ;;  %v1457_v20 = vpop.f32.mrf.mxu0  ;;  %v1666_v21 = vpop.f32.mrf.mxu1 }
 0x3d9   : > { %2475 = vst [vmem:[%s3959_s4 + $0x9e0] sm:$0xff] %v1457_v20 }
 0x3da   : > { %2476 = vst [vmem:[%s3959_s4 + $0x9e8] sm:$0xff] %v1666_v21 }
 0x3db   : > { %v1875_v22 = vpop.f32.mrf.mxu2  ;;  %v2084_v23 = vpop.f32.mrf.mxu3  ;;  %3221 = vmatmul.msk.f32.gmra.mxu0 %vm294_vm0, %v3589_v19  ;;  %3285 = vmatmul.msk.f32.gmra.mxu1 %vm294_vm0, %v3589_v19 }
 0x3dc   : > { %2477 = vst [vmem:[%s3959_s4 + $0x9f0] sm:$0xff] %v1875_v22 }
 0x3dd   : > { %2478 = vst [vmem:[%s3959_s4 + $0x9f8] sm:$0xff] %v2084_v23 }
 0x3e0   : > { %3350 = vmatmul.msk.f32.gmra.mxu2 %vm294_vm0, %v3590_v24  ;;  %3414 = vmatmul.msk.f32.gmra.mxu3 %vm294_vm0, %v3590_v24  ;;  %v1460_v25 = vpop.f32.mrf.mxu0  ;;  %v1669_v26 = vpop.f32.mrf.mxu1 }
 0x3e1   : > { %2483 = vst [vmem:[%s3959_s4 + $0xa20] sm:$0xff] %v1460_v25 }
 0x3e2   : > { %2484 = vst [vmem:[%s3959_s4 + $0xa28] sm:$0xff] %v1669_v26 }
 0x3e3   : > { %v1878_v27 = vpop.f32.mrf.mxu2  ;;  %v2087_v28 = vpop.f32.mrf.mxu3  ;;  %3222 = vmatmul.msk.f32.gmra.mxu0 %vm294_vm0, %v3590_v24  ;;  %3286 = vmatmul.msk.f32.gmra.mxu1 %vm294_vm0, %v3590_v24 }
 0x3e4   : > { %2485 = vst [vmem:[%s3959_s4 + $0xa30] sm:$0xff] %v1878_v27 }
 0x3e5   : > { %2486 = vst [vmem:[%s3959_s4 + $0xa38] sm:$0xff] %v2087_v28 }
 0x3e8   : > { %3351 = vmatmul.msk.f32.gmra.mxu2 %vm294_vm0, %v3591_v29  ;;  %3415 = vmatmul.msk.f32.gmra.mxu3 %vm294_vm0, %v3591_v29  ;;  %v1463_v30 = vpop.f32.mrf.mxu0  ;;  %v1672_v31 = vpop.f32.mrf.mxu1 }
 0x3e9   : > { %2491 = vst [vmem:[%s3959_s4 + $0xa60] sm:$0xff] %v1463_v30 }
 0x3ea   : > { %2492 = vst [vmem:[%s3959_s4 + $0xa68] sm:$0xff] %v1672_v31 }
 0x3eb   : > { %v1881_v32 = vpop.f32.mrf.mxu2  ;;  %v2090_v33 = vpop.f32.mrf.mxu3  ;;  %3223 = vmatmul.msk.f32.gmra.mxu0 %vm294_vm0, %v3591_v29  ;;  %3287 = vmatmul.msk.f32.gmra.mxu1 %vm294_vm0, %v3591_v29 }
 0x3ec   : > { %2493 = vst [vmem:[%s3959_s4 + $0xa70] sm:$0xff] %v1881_v32 }
 0x3ed   : > { %2494 = vst [vmem:[%s3959_s4 + $0xa78] sm:$0xff] %v2090_v33 }
 0x3f0   : > { %3352 = vmatmul.msk.f32.gmra.mxu2 %vm294_vm0, %v3592_v34  ;;  %3416 = vmatmul.msk.f32.gmra.mxu3 %vm294_vm0, %v3592_v34  ;;  %v1466_v35 = vpop.f32.mrf.mxu0  ;;  %v1675_v36 = vpop.f32.mrf.mxu1 }
 0x3f1   : > { %2499 = vst [vmem:[%s3959_s4 + $0xaa0] sm:$0xff] %v1466_v35 }
 0x3f2   : > { %2500 = vst [vmem:[%s3959_s4 + $0xaa8] sm:$0xff] %v1675_v36 }
 0x3f3   : > { %v1884_v37 = vpop.f32.mrf.mxu2  ;;  %v2093_v38 = vpop.f32.mrf.mxu3  ;;  %3224 = vmatmul.msk.f32.gmra.mxu0 %vm294_vm0, %v3592_v34  ;;  %3288 = vmatmul.msk.f32.gmra.mxu1 %vm294_vm0, %v3592_v34 }
 0x3f4   : > { %2501 = vst [vmem:[%s3959_s4 + $0xab0] sm:$0xff] %v1884_v37 }
 0x3f5   : > { %2502 = vst [vmem:[%s3959_s4 + $0xab8] sm:$0xff] %v2093_v38 }
 0x3f8   : > { %3353 = vmatmul.msk.f32.gmra.mxu2 %vm294_vm0, %v3593_v39  ;;  %3417 = vmatmul.msk.f32.gmra.mxu3 %vm294_vm0, %v3593_v39  ;;  %v1469_v40 = vpop.f32.mrf.mxu0  ;;  %v1678_v41 = vpop.f32.mrf.mxu1 }
 0x3f9   : > { %2507 = vst [vmem:[%s3959_s4 + $0xae0] sm:$0xff] %v1469_v40 }
 0x3fa   : > { %2508 = vst [vmem:[%s3959_s4 + $0xae8] sm:$0xff] %v1678_v41 }
 0x3fb   : > { %v1887_v42 = vpop.f32.mrf.mxu2  ;;  %v2096_v43 = vpop.f32.mrf.mxu3  ;;  %3225 = vmatmul.msk.f32.gmra.mxu0 %vm294_vm0, %v3593_v39  ;;  %3289 = vmatmul.msk.f32.gmra.mxu1 %vm294_vm0, %v3593_v39 }
 0x3fc   : > { %2509 = vst [vmem:[%s3959_s4 + $0xaf0] sm:$0xff] %v1887_v42 }
 0x3fd   : > { %2510 = vst [vmem:[%s3959_s4 + $0xaf8] sm:$0xff] %v2096_v43 }
 0x400   : > { %3354 = vmatmul.msk.f32.gmra.mxu2 %vm294_vm0, %v3594_v44  ;;  %3418 = vmatmul.msk.f32.gmra.mxu3 %vm294_vm0, %v3594_v44  ;;  %v1472_v45 = vpop.f32.mrf.mxu0  ;;  %v1681_v46 = vpop.f32.mrf.mxu1 }
 0x401   : > { %2515 = vst [vmem:[%s3959_s4 + $0xb20] sm:$0xff] %v1472_v45 }
 0x402   : > { %2516 = vst [vmem:[%s3959_s4 + $0xb28] sm:$0xff] %v1681_v46 }
 0x403   : > { %v1890_v47 = vpop.f32.mrf.mxu2  ;;  %v2099_v48 = vpop.f32.mrf.mxu3  ;;  %3226 = vmatmul.msk.f32.gmra.mxu0 %vm294_vm0, %v3594_v44  ;;  %3290 = vmatmul.msk.f32.gmra.mxu1 %vm294_vm0, %v3594_v44 }
 0x404   : > { %2517 = vst [vmem:[%s3959_s4 + $0xb30] sm:$0xff] %v1890_v47 }
 0x405   : > { %2518 = vst [vmem:[%s3959_s4 + $0xb38] sm:$0xff] %v2099_v48 }
 0x408   : > { %3355 = vmatmul.msk.f32.gmra.mxu2 %vm294_vm0, %v3595_v49  ;;  %3419 = vmatmul.msk.f32.gmra.mxu3 %vm294_vm0, %v3595_v49  ;;  %v1475_v50 = vpop.f32.mrf.mxu0  ;;  %v1684_v51 = vpop.f32.mrf.mxu1 }
 0x409   : > { %2523 = vst [vmem:[%s3959_s4 + $0xb60] sm:$0xff] %v1475_v50 }
 0x40a   : > { %2524 = vst [vmem:[%s3959_s4 + $0xb68] sm:$0xff] %v1684_v51 }
 0x40b   : > { %v1893_v52 = vpop.f32.mrf.mxu2  ;;  %v2102_v53 = vpop.f32.mrf.mxu3  ;;  %3227 = vmatmul.msk.f32.gmra.mxu0 %vm294_vm0, %v3595_v49  ;;  %3291 = vmatmul.msk.f32.gmra.mxu1 %vm294_vm0, %v3595_v49 }
 0x40c   : > { %2525 = vst [vmem:[%s3959_s4 + $0xb70] sm:$0xff] %v1893_v52 }
 0x40d   : > { %2526 = vst [vmem:[%s3959_s4 + $0xb78] sm:$0xff] %v2102_v53 }
 0x410   : > { %3356 = vmatmul.msk.f32.gmra.mxu2 %vm294_vm0, %v3596_v54  ;;  %3420 = vmatmul.msk.f32.gmra.mxu3 %vm294_vm0, %v3596_v54  ;;  %v1478_v55 = vpop.f32.mrf.mxu0  ;;  %v1687_v56 = vpop.f32.mrf.mxu1 }
 0x411   : > { %2531 = vst [vmem:[%s3959_s4 + $0xba0] sm:$0xff] %v1478_v55 }
 0x412   : > { %2532 = vst [vmem:[%s3959_s4 + $0xba8] sm:$0xff] %v1687_v56 }
 0x413   : > { %v1896_v57 = vpop.f32.mrf.mxu2  ;;  %v2105_v58 = vpop.f32.mrf.mxu3  ;;  %3228 = vmatmul.msk.f32.gmra.mxu0 %vm294_vm0, %v3596_v54  ;;  %3292 = vmatmul.msk.f32.gmra.mxu1 %vm294_vm0, %v3596_v54 }
 0x414   : > { %2533 = vst [vmem:[%s3959_s4 + $0xbb0] sm:$0xff] %v1896_v57 }
 0x415   : > { %2534 = vst [vmem:[%s3959_s4 + $0xbb8] sm:$0xff] %v2105_v58 }
 0x418   : > { %3357 = vmatmul.msk.f32.gmra.mxu2 %vm294_vm0, %v3597_v59  ;;  %3421 = vmatmul.msk.f32.gmra.mxu3 %vm294_vm0, %v3597_v59  ;;  %v1481_v60 = vpop.f32.mrf.mxu0  ;;  %v1690_v61 = vpop.f32.mrf.mxu1 }
 0x419   : > { %2539 = vst [vmem:[%s3959_s4 + $0xbe0] sm:$0xff] %v1481_v60 }
 0x41a   : > { %2540 = vst [vmem:[%s3959_s4 + $0xbe8] sm:$0xff] %v1690_v61 }
 0x41b   : > { %v1899_v62 = vpop.f32.mrf.mxu2  ;;  %v2108_v63 = vpop.f32.mrf.mxu3  ;;  %3229 = vmatmul.msk.f32.gmra.mxu0 %vm294_vm0, %v3597_v59  ;;  %3293 = vmatmul.msk.f32.gmra.mxu1 %vm294_vm0, %v3597_v59 }
 0x41c   : > { %2541 = vst [vmem:[%s3959_s4 + $0xbf0] sm:$0xff] %v1899_v62 }
 0x41d   : > { %2542 = vst [vmem:[%s3959_s4 + $0xbf8] sm:$0xff] %v2108_v63 }
 0x420   : > { %v1484_v0 = vpop.f32.mrf.mxu0  ;;  %v1693_v1 = vpop.f32.mrf.mxu1 }
 0x421   : > { %2547 = vst [vmem:[%s3959_s4 + $0xc20] sm:$0xff] %v1484_v0 }
 0x422   : > { %2548 = vst [vmem:[%s3959_s4 + $0xc28] sm:$0xff] %v1693_v1 }
 0x423   : > { %v1902_v2 = vpop.f32.mrf.mxu2  ;;  %v2111_v3 = vpop.f32.mrf.mxu3 }
 0x424   : > { %2549 = vst [vmem:[%s3959_s4 + $0xc30] sm:$0xff] %v1902_v2 }
 0x425   : > { %2550 = vst [vmem:[%s3959_s4 + $0xc38] sm:$0xff] %v2111_v3 }
 0x428   : > { %v1487_v4 = vpop.f32.mrf.mxu0  ;;  %v1696_v5 = vpop.f32.mrf.mxu1 }
 0x429   : > { %2555 = vst [vmem:[%s3959_s4 + $0xc60] sm:$0xff] %v1487_v4 }
 0x42a   : > { %2556 = vst [vmem:[%s3959_s4 + $0xc68] sm:$0xff] %v1696_v5 }
 0x42b   : > { %v1905_v6 = vpop.f32.mrf.mxu2  ;;  %v2114_v7 = vpop.f32.mrf.mxu3 }
 0x42c   : > { %2557 = vst [vmem:[%s3959_s4 + $0xc70] sm:$0xff] %v1905_v6 }
 0x42d   : > { %2558 = vst [vmem:[%s3959_s4 + $0xc78] sm:$0xff] %v2114_v7 }
 0x430   : > { %v1490_v8 = vpop.f32.mrf.mxu0  ;;  %v1699_v9 = vpop.f32.mrf.mxu1 }
 0x431   : > { %2563 = vst [vmem:[%s3959_s4 + $0xca0] sm:$0xff] %v1490_v8 }
 0x432   : > { %2564 = vst [vmem:[%s3959_s4 + $0xca8] sm:$0xff] %v1699_v9 }
 0x433   : > { %v1908_v10 = vpop.f32.mrf.mxu2  ;;  %v2117_v11 = vpop.f32.mrf.mxu3 }
 0x434   : > { %2565 = vst [vmem:[%s3959_s4 + $0xcb0] sm:$0xff] %v1908_v10 }
 0x435   : > { %2566 = vst [vmem:[%s3959_s4 + $0xcb8] sm:$0xff] %v2117_v11 }
 0x438   : > { %v1493_v12 = vpop.f32.mrf.mxu0  ;;  %v1702_v13 = vpop.f32.mrf.mxu1 }
 0x439   : > { %2571 = vst [vmem:[%s3959_s4 + $0xce0] sm:$0xff] %v1493_v12 }
 0x43a   : > { %2572 = vst [vmem:[%s3959_s4 + $0xce8] sm:$0xff] %v1702_v13 }
 0x43b   : > { %v1911_v14 = vpop.f32.mrf.mxu2  ;;  %v2120_v15 = vpop.f32.mrf.mxu3 }
 0x43c   : > { %2573 = vst [vmem:[%s3959_s4 + $0xcf0] sm:$0xff] %v1911_v14 }
 0x43d   : > { %2574 = vst [vmem:[%s3959_s4 + $0xcf8] sm:$0xff] %v2120_v15 }
 0x440   : > { %v1496_v16 = vpop.f32.mrf.mxu0  ;;  %v1705_v17 = vpop.f32.mrf.mxu1 }
 0x441   : > { %2579 = vst [vmem:[%s3959_s4 + $0xd20] sm:$0xff] %v1496_v16 }
 0x442   : > { %2580 = vst [vmem:[%s3959_s4 + $0xd28] sm:$0xff] %v1705_v17 }
 0x443   : > { %v1914_v18 = vpop.f32.mrf.mxu2  ;;  %v2123_v19 = vpop.f32.mrf.mxu3 }
 0x444   : > { %2581 = vst [vmem:[%s3959_s4 + $0xd30] sm:$0xff] %v1914_v18 }
 0x445   : > { %2582 = vst [vmem:[%s3959_s4 + $0xd38] sm:$0xff] %v2123_v19 }
 0x448   : > { %v1499_v20 = vpop.f32.mrf.mxu0  ;;  %v1708_v21 = vpop.f32.mrf.mxu1 }
 0x449   : > { %2587 = vst [vmem:[%s3959_s4 + $0xd60] sm:$0xff] %v1499_v20 }
 0x44a   : > { %2588 = vst [vmem:[%s3959_s4 + $0xd68] sm:$0xff] %v1708_v21 }
 0x44b   : > { %v1917_v22 = vpop.f32.mrf.mxu2  ;;  %v2126_v23 = vpop.f32.mrf.mxu3 }
 0x44c   : > { %2589 = vst [vmem:[%s3959_s4 + $0xd70] sm:$0xff] %v1917_v22 }
 0x44d   : > { %2590 = vst [vmem:[%s3959_s4 + $0xd78] sm:$0xff] %v2126_v23 }
 0x450   : > { %v1502_v24 = vpop.f32.mrf.mxu0  ;;  %v1711_v25 = vpop.f32.mrf.mxu1 }
 0x451   : > { %2595 = vst [vmem:[%s3959_s4 + $0xda0] sm:$0xff] %v1502_v24 }
 0x452   : > { %2596 = vst [vmem:[%s3959_s4 + $0xda8] sm:$0xff] %v1711_v25 }
 0x453   : > { %v1920_v26 = vpop.f32.mrf.mxu2  ;;  %v2129_v27 = vpop.f32.mrf.mxu3 }
 0x454   : > { %2597 = vst [vmem:[%s3959_s4 + $0xdb0] sm:$0xff] %v1920_v26 }
 0x455   : > { %2598 = vst [vmem:[%s3959_s4 + $0xdb8] sm:$0xff] %v2129_v27 }
 0x458   : > { %v1505_v28 = vpop.f32.mrf.mxu0  ;;  %v1714_v29 = vpop.f32.mrf.mxu1 }
 0x459   : > { %2603 = vst [vmem:[%s3959_s4 + $0xde0] sm:$0xff] %v1505_v28 }
 0x45a   : > { %2604 = vst [vmem:[%s3959_s4 + $0xde8] sm:$0xff] %v1714_v29 }
 0x45b   : > { %v1923_v30 = vpop.f32.mrf.mxu2  ;;  %v2132_v31 = vpop.f32.mrf.mxu3 }
 0x45c   : > { %2605 = vst [vmem:[%s3959_s4 + $0xdf0] sm:$0xff] %v1923_v30 }
 0x45d   : > { %2606 = vst [vmem:[%s3959_s4 + $0xdf8] sm:$0xff] %v2132_v31 }
 0x460   : > { %v1508_v32 = vpop.f32.mrf.mxu0  ;;  %v1717_v33 = vpop.f32.mrf.mxu1 }
 0x461   : > { %2611 = vst [vmem:[%s3959_s4 + $0xe20] sm:$0xff] %v1508_v32 }
 0x462   : > { %2612 = vst [vmem:[%s3959_s4 + $0xe28] sm:$0xff] %v1717_v33 }
 0x463   : > { %v1926_v34 = vpop.f32.mrf.mxu2  ;;  %v2135_v35 = vpop.f32.mrf.mxu3 }
 0x464   : > { %2613 = vst [vmem:[%s3959_s4 + $0xe30] sm:$0xff] %v1926_v34 }
 0x465   : > { %2614 = vst [vmem:[%s3959_s4 + $0xe38] sm:$0xff] %v2135_v35 }
 0x468   : > { %v1511_v36 = vpop.f32.mrf.mxu0  ;;  %v1720_v37 = vpop.f32.mrf.mxu1 }
 0x469   : > { %2619 = vst [vmem:[%s3959_s4 + $0xe60] sm:$0xff] %v1511_v36 }
 0x46a   : > { %2620 = vst [vmem:[%s3959_s4 + $0xe68] sm:$0xff] %v1720_v37 }
 0x46b   : > { %v1929_v38 = vpop.f32.mrf.mxu2  ;;  %v2138_v39 = vpop.f32.mrf.mxu3 }
 0x46c   : > { %2621 = vst [vmem:[%s3959_s4 + $0xe70] sm:$0xff] %v1929_v38 }
 0x46d   : > { %2622 = vst [vmem:[%s3959_s4 + $0xe78] sm:$0xff] %v2138_v39 }
 0x470   : > { %v1514_v40 = vpop.f32.mrf.mxu0  ;;  %v1723_v41 = vpop.f32.mrf.mxu1 }
 0x471   : > { %2627 = vst [vmem:[%s3959_s4 + $0xea0] sm:$0xff] %v1514_v40 }
 0x472   : > { %2628 = vst [vmem:[%s3959_s4 + $0xea8] sm:$0xff] %v1723_v41 }
 0x473   : > { %v1932_v42 = vpop.f32.mrf.mxu2  ;;  %v2141_v43 = vpop.f32.mrf.mxu3 }
 0x474   : > { %2629 = vst [vmem:[%s3959_s4 + $0xeb0] sm:$0xff] %v1932_v42 }
 0x475   : > { %2630 = vst [vmem:[%s3959_s4 + $0xeb8] sm:$0xff] %v2141_v43 }
 0x478   : > { %v1517_v44 = vpop.f32.mrf.mxu0  ;;  %v1726_v45 = vpop.f32.mrf.mxu1 }
 0x479   : > { %2635 = vst [vmem:[%s3959_s4 + $0xee0] sm:$0xff] %v1517_v44 }
 0x47a   : > { %2636 = vst [vmem:[%s3959_s4 + $0xee8] sm:$0xff] %v1726_v45 }
 0x47b   : > { %v1935_v46 = vpop.f32.mrf.mxu2  ;;  %v2144_v47 = vpop.f32.mrf.mxu3 }
 0x47c   : > { %2637 = vst [vmem:[%s3959_s4 + $0xef0] sm:$0xff] %v1935_v46 }
 0x47d   : > { %2638 = vst [vmem:[%s3959_s4 + $0xef8] sm:$0xff] %v2144_v47 }
 0x480   : > { %v1520_v48 = vpop.f32.mrf.mxu0  ;;  %v1729_v49 = vpop.f32.mrf.mxu1 }
 0x481   : > { %2643 = vst [vmem:[%s3959_s4 + $0xf20] sm:$0xff] %v1520_v48 }
 0x482   : > { %2644 = vst [vmem:[%s3959_s4 + $0xf28] sm:$0xff] %v1729_v49 }
 0x483   : > { %v1938_v50 = vpop.f32.mrf.mxu2  ;;  %v2147_v51 = vpop.f32.mrf.mxu3 }
 0x484   : > { %2645 = vst [vmem:[%s3959_s4 + $0xf30] sm:$0xff] %v1938_v50 }
 0x485   : > { %2646 = vst [vmem:[%s3959_s4 + $0xf38] sm:$0xff] %v2147_v51 }
 0x488   : > { %v1523_v52 = vpop.f32.mrf.mxu0  ;;  %v1732_v53 = vpop.f32.mrf.mxu1 }
 0x489   : > { %2651 = vst [vmem:[%s3959_s4 + $0xf60] sm:$0xff] %v1523_v52 }
 0x48a   : > { %2652 = vst [vmem:[%s3959_s4 + $0xf68] sm:$0xff] %v1732_v53 }
 0x48b   : > { %v1941_v54 = vpop.f32.mrf.mxu2  ;;  %v2150_v55 = vpop.f32.mrf.mxu3 }
 0x48c   : > { %2653 = vst [vmem:[%s3959_s4 + $0xf70] sm:$0xff] %v1941_v54 }
 0x48d   : > { %2654 = vst [vmem:[%s3959_s4 + $0xf78] sm:$0xff] %v2150_v55 }
 0x490   : > { %v1526_v56 = vpop.f32.mrf.mxu0  ;;  %v1735_v57 = vpop.f32.mrf.mxu1 }
 0x491   : > { %2659 = vst [vmem:[%s3959_s4 + $0xfa0] sm:$0xff] %v1526_v56 }
 0x492   : > { %2660 = vst [vmem:[%s3959_s4 + $0xfa8] sm:$0xff] %v1735_v57 }
 0x493   : > { %v1944_v58 = vpop.f32.mrf.mxu2  ;;  %v2153_v59 = vpop.f32.mrf.mxu3 }
 0x494   : > { %2661 = vst [vmem:[%s3959_s4 + $0xfb0] sm:$0xff] %v1944_v58 }
 0x495   : > { %2662 = vst [vmem:[%s3959_s4 + $0xfb8] sm:$0xff] %v2153_v59 }
 0x498   : > { %v1529_v60 = vpop.f32.mrf.mxu0  ;;  %v1738_v61 = vpop.f32.mrf.mxu1 }
 0x499   : > { %2667 = vst [vmem:[%s3959_s4 + $0xfe0] sm:$0xff] %v1529_v60  ;;  %2677 = sbr.rel (!%p3726_p4) target bundleno = 1249 (0x4e1), region = 32 }
 0x49a   : > { %2668 = vst [vmem:[%s3959_s4 + $0xfe8] sm:$0xff] %v1738_v61 }
 0x49b   : > { %v1947_v62 = vpop.f32.mrf.mxu2  ;;  %v2156_v63 = vpop.f32.mrf.mxu3 }
 0x49c   : > { %2669 = vst [vmem:[%s3959_s4 + $0xff0] sm:$0xff] %v1947_v62 }
 0x49d   : > { %2670 = vst [vmem:[%s3959_s4 + $0xff8] sm:$0xff] %v2156_v63 }
 0x49e   : > { %s5277_s29 = smov (!%p2680_p8, %s2679_s29), 64 }
 0x49f   : > { %s3441_s11 = sshll.u32 %s5277_s29, 6 }
 0x4a0   : > { %p3429_p9 = scmp.eq.s32.totalorder %s3441_s11, 0 }
 0x4a1   : > { %s5103_s7 = sshrl.u32 (!%p3429_p9), %s5277_s29, 2 }
 0x4a2   : > { %2690 = sbr.rel (%p3429_p9) target bundleno = 1249 (0x4e1), region = 36  ;;  %p3430_p10 = scmp.le.s32.totalorder (!%p3429_p9), %s5103_s7, 0 }
 0x4a7   : > { %2859 = sbr.rel (%p3430_p10) target bundleno = 1229 (0x4cd), region = 84  ;;  %s5264_s12 = smov (!%p3430_p10), %s5097_s8 }
 0x4a8   : > { %s5265_s17 = smov (!%p3430_p10), %s3959_s4  ;;  %s5112_s24 = smov (!%p3430_p10), 0  }
 0x4a9   : > { %s5114_s14 = smov (!%p3430_p10), 0  }
 0x4ac LB: >> { %v2703_v0 = vld [vmem:[%s3660_s17] sm:$0xff]  ;;  %s2767_s18 = sadd.s32 1, %s3664_s24  ;;  %v2711_v4 = vld [vmem:[%s3660_s17 + $0x8] sm:$0xff]  ;;  %v2719_v8 = vld [vmem:[%s3660_s17 + $0x10] sm:$0xff]  ;;  %s2697_s14 = sadd.s32 1, %s3668_s14   ;;  %s3668_s14 = sphi %s5114_s14, %s2697_s14   ;;  %s3664_s24 = sphi %s5112_s24, %s5268_s24   ;;  %s3660_s17 = sphi %s5265_s17, %s5267_s17   ;;  %s3656_s12 = sphi %s5264_s12, %s5266_s12  }
 0x4ad   : >> { %v2705_v1 = vld [vmem:[%s3660_s17 + $0x40] sm:$0xff]  ;;  %2704 = vst [vmem:[%s3656_s12] sm:$0xff] %v2703_v0  ;;  %p2768_p11 = scmp.ge.s32.totalorder %s2767_s18, %s5103_s7  ;;  %v2713_v5 = vld [vmem:[%s3660_s17 + $0x48] sm:$0xff]  ;;  %v2721_v9 = vld [vmem:[%s3660_s17 + $0x50] sm:$0xff]  ;;  %p2696_p12 = scmp.ge.s32.totalorder %s2697_s14, %s5103_s7 }
 0x4ae   : >> { %v2707_v2 = vld [vmem:[%s3660_s17 + $0x80] sm:$0xff]  ;;  %2706 = vst [vmem:[%s3656_s12 + $0x40] sm:$0xff] %v2705_v1  ;;  %v2715_v6 = vld [vmem:[%s3660_s17 + $0x88] sm:$0xff]  ;;  %v2723_v10 = vld [vmem:[%s3660_s17 + $0x90] sm:$0xff] }
 0x4af   : >> { %v2709_v3 = vld [vmem:[%s3660_s17 + $0xc0] sm:$0xff]  ;;  %2708 = vst [vmem:[%s3656_s12 + $0x80] sm:$0xff] %v2707_v2  ;;  %s5279_s18 = smov (%p2768_p11, %s2767_s18), 0  ;;  %v2717_v7 = vld [vmem:[%s3660_s17 + $0xc8] sm:$0xff]  ;;  %v2725_v11 = vld [vmem:[%s3660_s17 + $0xd0] sm:$0xff] }
 0x4b0   : >> { %2710 = vst [vmem:[%s3656_s12 + $0xc0] sm:$0xff] %v2709_v3  ;;  %s3431_s19 = sshll.u32 %s5279_s18, 8  ;;  %v2727_v12 = vld [vmem:[%s3660_s17 + $0x18] sm:$0xff]  ;;  %v2735_v16 = vld [vmem:[%s3660_s17 + $0x20] sm:$0xff]  ;;  %v2743_v20 = vld [vmem:[%s3660_s17 + $0x28] sm:$0xff]  ;;  %s5268_s24 = smov %s5279_s18 }
 0x4b1   : >> { %2712 = vst [vmem:[%s3656_s12 + $0x8] sm:$0xff] %v2711_v4  ;;  %s5146_s20 = scalar_lea.vmem %s3959_s4, %s3431_s19 [#allocation2]   ;;  %s5149_s21 = scalar_lea.vmem %s5097_s8, %s3431_s19   ;;  %v2729_v13 = vld [vmem:[%s3660_s17 + $0x58] sm:$0xff]  ;;  %v2737_v17 = vld [vmem:[%s3660_s17 + $0x60] sm:$0xff]  ;;  %v2745_v21 = vld [vmem:[%s3660_s17 + $0x68] sm:$0xff] }
 0x4b2   : >> { %2714 = vst [vmem:[%s3656_s12 + $0x48] sm:$0xff] %v2713_v5  ;;  %v2731_v14 = vld [vmem:[%s3660_s17 + $0x98] sm:$0xff]  ;;  %v2739_v18 = vld [vmem:[%s3660_s17 + $0xa0] sm:$0xff]  ;;  %v2747_v22 = vld [vmem:[%s3660_s17 + $0xa8] sm:$0xff] }
 0x4b3   : >> { %2716 = vst [vmem:[%s3656_s12 + $0x88] sm:$0xff] %v2715_v6  ;;  %v2733_v15 = vld [vmem:[%s3660_s17 + $0xd8] sm:$0xff]  ;;  %v2741_v19 = vld [vmem:[%s3660_s17 + $0xe0] sm:$0xff]  ;;  %v2749_v23 = vld [vmem:[%s3660_s17 + $0xe8] sm:$0xff] }
 0x4b4   : >> { %2718 = vst [vmem:[%s3656_s12 + $0xc8] sm:$0xff] %v2717_v7  ;;  %v2751_v24 = vld [vmem:[%s3660_s17 + $0x30] sm:$0xff]  ;;  %v2759_v28 = vld [vmem:[%s3660_s17 + $0x38] sm:$0xff] }
 0x4b5   : >> { %2720 = vst [vmem:[%s3656_s12 + $0x10] sm:$0xff] %v2719_v8  ;;  %v2753_v25 = vld [vmem:[%s3660_s17 + $0x70] sm:$0xff]  ;;  %v2761_v29 = vld [vmem:[%s3660_s17 + $0x78] sm:$0xff] }
 0x4b6   : >> { %2722 = vst [vmem:[%s3656_s12 + $0x50] sm:$0xff] %v2721_v9  ;;  %v2755_v26 = vld [vmem:[%s3660_s17 + $0xb0] sm:$0xff]  ;;  %v2763_v30 = vld [vmem:[%s3660_s17 + $0xb8] sm:$0xff] }
 0x4b7   : >> { %2724 = vst [vmem:[%s3656_s12 + $0x90] sm:$0xff] %v2723_v10  ;;  %v2757_v27 = vld [vmem:[%s3660_s17 + $0xf0] sm:$0xff]  ;;  %v2765_v31 = vld [vmem:[%s3660_s17 + $0xf8] sm:$0xff]  ;;  %s5267_s17 = smov %s5146_s20 }
 0x4b8   : >> { %2726 = vst [vmem:[%s3656_s12 + $0xd0] sm:$0xff] %v2725_v11 }
 0x4b9   : >> { %2728 = vst [vmem:[%s3656_s12 + $0x18] sm:$0xff] %v2727_v12 }
 0x4ba   : >> { %2730 = vst [vmem:[%s3656_s12 + $0x58] sm:$0xff] %v2729_v13 }
 0x4bb   : >> { %2732 = vst [vmem:[%s3656_s12 + $0x98] sm:$0xff] %v2731_v14 }
 0x4bc   : >> { %2734 = vst [vmem:[%s3656_s12 + $0xd8] sm:$0xff] %v2733_v15 }
 0x4bd   : >> { %2736 = vst [vmem:[%s3656_s12 + $0x20] sm:$0xff] %v2735_v16 }
 0x4be   : >> { %2738 = vst [vmem:[%s3656_s12 + $0x60] sm:$0xff] %v2737_v17 }
 0x4bf   : >> { %2740 = vst [vmem:[%s3656_s12 + $0xa0] sm:$0xff] %v2739_v18 }
 0x4c0   : >> { %2742 = vst [vmem:[%s3656_s12 + $0xe0] sm:$0xff] %v2741_v19 }
 0x4c1   : >> { %2744 = vst [vmem:[%s3656_s12 + $0x28] sm:$0xff] %v2743_v20 }
 0x4c2   : >> { %2746 = vst [vmem:[%s3656_s12 + $0x68] sm:$0xff] %v2745_v21 }
 0x4c3   : >> { %2748 = vst [vmem:[%s3656_s12 + $0xa8] sm:$0xff] %v2747_v22 }
 0x4c4   : >> { %2750 = vst [vmem:[%s3656_s12 + $0xe8] sm:$0xff] %v2749_v23 }
 0x4c5   : >> { %2752 = vst [vmem:[%s3656_s12 + $0x30] sm:$0xff] %v2751_v24 }
 0x4c6   : >> { %2754 = vst [vmem:[%s3656_s12 + $0x70] sm:$0xff] %v2753_v25 }
 0x4c7   : >> { %2756 = vst [vmem:[%s3656_s12 + $0xb0] sm:$0xff] %v2755_v26 }
 0x4c8   : >> { %2758 = vst [vmem:[%s3656_s12 + $0xf0] sm:$0xff] %v2757_v27  ;;  %2699 = sbr.rel (!%p2696_p12) target bundleno = 1196 (0x4ac), region = 90 }
 0x4c9   : >> { %2760 = vst [vmem:[%s3656_s12 + $0x38] sm:$0xff] %v2759_v28 }
 0x4ca   : >> { %2762 = vst [vmem:[%s3656_s12 + $0x78] sm:$0xff] %v2761_v29 }
 0x4cb   : >> { %2764 = vst [vmem:[%s3656_s12 + $0xb8] sm:$0xff] %v2763_v30 }
 0x4cc   : >> { %2766 = vst [vmem:[%s3656_s12 + $0xf8] sm:$0xff] %v2765_v31  ;;  %s5266_s12 = smov %s5149_s21 }
 0x4cd PF: > { %s5214_s22 = sand.u32 3, %s5277_s29   ;;  %s3444_s15 = sshll.u32 %s5103_s7, 8 }
 0x4ce   : > { %s5218_s23 = scalar_lea.vmem %s3959_s4, %s3444_s15 [#allocation2]   ;;  %s5221_s25 = scalar_lea.vmem %s5097_s8, %s3444_s15  }
 0x4cf   : > { %p3436_p13 = scmp.le.s32.totalorder %s5214_s22, 0 }
 0x4d0   : > { %s5269_s26 = smov (!%p3436_p13), %s5221_s25  ;;  %s5270_s27 = smov (!%p3436_p13), %s5218_s23 }
 0x4d1   : > { %2873 = sbr.rel (%p3436_p13) target bundleno = 1249 (0x4e1), region = 95  ;;  %s5230_s28 = smov (!%p3436_p13), 0  }
 0x4d2   : > { %s5232_s30 = smov (!%p3436_p13), 0  }
 0x4d6 LB: >> { %v2790_v32 = vld [vmem:[%s3676_s27] sm:$0xff]  ;;  %v2792_v33 = vld [vmem:[%s3676_s27 + $0x8] sm:$0xff]  ;;  %v2794_v34 = vld [vmem:[%s3676_s27 + $0x10] sm:$0xff]  ;;  %s2806_s4 = sadd.s32 1, %s3680_s28  ;;  %s2784_s30 = sadd.s32 1, %s3684_s30   ;;  %s3684_s30 = sphi %s5232_s30, %s2784_s30   ;;  %s3680_s28 = sphi %s5230_s28, %s5272_s28   ;;  %s3676_s27 = sphi %s5270_s27, %s2811_s27   ;;  %s3672_s26 = sphi %s5269_s26, %s5271_s26  }
 0x4d7   : >> { %2791 = vst [vmem:[%s3672_s26] sm:$0xff] %v2790_v32  ;;  %v2796_v35 = vld [vmem:[%s3676_s27 + $0x18] sm:$0xff]  ;;  %p2807_p0 = scmp.ge.s32.totalorder %s2806_s4, %s5214_s22  ;;  %v2798_v36 = vld [vmem:[%s3676_s27 + $0x20] sm:$0xff]  ;;  %v2800_v37 = vld [vmem:[%s3676_s27 + $0x28] sm:$0xff]  ;;  %p2783_p1 = scmp.ge.s32.totalorder %s2784_s30, %s5214_s22 }
 0x4d8   : >> { %2793 = vst [vmem:[%s3672_s26 + $0x8] sm:$0xff] %v2792_v33  ;;  %v2802_v38 = vld [vmem:[%s3676_s27 + $0x30] sm:$0xff]  ;;  %v2804_v39 = vld [vmem:[%s3676_s27 + $0x38] sm:$0xff] }
 0x4d9   : >> { %2795 = vst [vmem:[%s3672_s26 + $0x10] sm:$0xff] %v2794_v34  ;;  %s5281_s4 = smov (%p2807_p0, %s2806_s4), 0 }
 0x4da   : >> { %2797 = vst [vmem:[%s3672_s26 + $0x18] sm:$0xff] %v2796_v35  ;;  %s3437_s3 = sshll.u32 %s5281_s4, 6  ;;  %s5272_s28 = smov %s5281_s4 }
 0x4db   : >> { %2799 = vst [vmem:[%s3672_s26 + $0x20] sm:$0xff] %v2798_v36  ;;  %s2811_s27 = scalar_lea.vmem %s5218_s23, %s3437_s3 [#allocation2]   ;;  %s2812_s29 = scalar_lea.vmem %s5221_s25, %s3437_s3  }
 0x4dc   : >> { %2801 = vst [vmem:[%s3672_s26 + $0x28] sm:$0xff] %v2800_v37  ;;  %2786 = sbr.rel (!%p2783_p1) target bundleno = 1238 (0x4d6), region = 101 }
 0x4dd   : >> { %2803 = vst [vmem:[%s3672_s26 + $0x30] sm:$0xff] %v2802_v38 }
 0x4de   : >> { %2805 = vst [vmem:[%s3672_s26 + $0x38] sm:$0xff] %v2804_v39  ;;  %s5271_s26 = smov %s2812_s29 }
 0x4e1 PF: > { %p9_p2 = scmp.ge.s32.totalorder %s3716_s13, 4   ;;  %s5273_s9 = smov %s3648_s10 }
 0x4e2   : > { %s5274_s10 = smov %s3724_s16  ;;  %s5275_s11 = smov %s3716_s13 }
 0x4e3   :  { %11 = sbr.rel (!%p9_p2) target bundleno = 2 (0x2), region = 112 }

// kernel: forward.13
= control target key start
LH: loop header
LB: loop body
LE: loop exit
PB: predicated region body
PF: predicated region fallthrough
CT: control target
= control target key end

     0   :  { %s1350_s9 = smov 0   ;;  %s1352_s10 = smov 0   ;;  %s1814_s0 = inlined_call_operand.vmem [shape: f32[3872,64], index: 0, kind: input, shape index: {}]   ;;  %s1815_s1 = inlined_call_operand.vmem [shape: f32[64,16], index: 1, kind: input, shape index: {}]   ;;  %s1816_s2 = inlined_call_operand.vmem [shape: f32[3872,16], index: 2, kind: output, shape index: {}]  }
   0x1   :  { %s1354_s11 = smov 0  }
   0x2 LB: > { %s1363_s12 = sadd.s32 4294967295, %s1301_s11   ;;  %s1365_s13 = sadd.s32 1, %s1301_s11   ;;  %s1301_s11 = sphi %s1354_s11, %s1825_s11   ;;  %s1297_s10 = sphi %s1352_s10, %s1824_s10   ;;  %s1293_s9 = sphi %s1350_s9, %s1823_s9  }
   0x3   : > { %s63_s14 = ssub.s32 %s1301_s11, %s1365_s13  ;;  %s66_s15 = sadd.s32 1, %s1297_s10 }
   0x4   : > { %p64_p0 = scmp.eq.s32.totalorder %s63_s14, 0  ;;  %p76_p1 = scmp.ne.s32.totalorder %s1297_s10, %s1293_s9 }
   0x5   : > { %p77_p2 = scmp.eq.s32.totalorder %s1363_s12, 7  ;;  %p1047_p3 = scmp.ge.s32.totalorder %s1301_s11, 1 }
   0x6   : > { %s1373_s16 = scalar_select %p64_p0, %s1297_s10, %s66_s15  }
   0x7   : > { %p1375_p4 = por %p77_p2, %p76_p1  ;;  %p121_p5 = scmp.lt.s32.totalorder %s1301_s11, 9 }
   0x9   : > { %p122_p6 = pnand %p1047_p3, %p121_p5 }
   0xa   : > { %s1386_s22 = sshll.u32 (!%p122_p6), %s1363_s12, 6  ;;  %s143_s18 = sand.u32 (!%p122_p6), 1, %s1293_s9  }
   0xb   : > { %125 = sbr.rel (%p122_p6) target bundleno = 350 (0x15e), region = 28  ;;  %p151_p7 = scmp.lt.s32.totalorder (!%p122_p6), %s1386_s22, 483 }
   0xc   : > { %s1048_s19 = sshll.u32 (!%p122_p6), %s143_s18, 9 }
   0xd   : > { %s1542_s20 = scalar_lea.vmem (!%p122_p6), [#allocation2], %s1048_s19  }
  0x10   : > { %v236_v0 = vld [vmem:[%s1815_s1 + $0x38] sm:$0xff]  ;;  %v235_v1 = vld [vmem:[%s1815_s1 + $0x30] sm:$0xff]  ;;  %v234_v2 = vld [vmem:[%s1815_s1 + $0x28] sm:$0xff]  ;;  %s152_s25 = scalar_select %p151_p7, %s1386_s22, 483  ;;  %vm237_vm0 = vcmask 523264   ;;  %vm639_vm1 = vcmask 130048  }
  0x11   : > { %1136 = vmatpush.msra.mxu2 %v236_v0  ;;  %1137 = vmatpush.msra.mxu3 %v236_v0  ;;  %v233_v3 = vld [vmem:[%s1815_s1 + $0x20] sm:$0xff]  ;;  %v232_v4 = vld [vmem:[%s1815_s1 + $0x18] sm:$0xff]  ;;  %v231_v5 = vld [vmem:[%s1815_s1 + $0x10] sm:$0xff]  ;;  %s712_s9 = ssub.s32 (%p1375_p4), 484, %s1386_s22  ;;  %s1132_s21 = sshll.u32 (%p1375_p4), %s1363_s12, 9 }
  0x12   : > { %438 = vmatpush.msra.mxu0 %v236_v0  ;;  %1135 = vmatpush.msra.mxu1 %v236_v0  ;;  %s1050_s30 = sshll.u32 %s152_s25, 3  ;;  %v230_v6 = vld [vmem:[%s1815_s1 + $0x8] sm:$0xff]  ;;  %v229_v7 = vld [vmem:[%s1815_s1] sm:$0xff]  ;;  %p713_p8 = scmp.lt.s32.totalorder (%p1375_p4), %s712_s9, 64 }
  0x13   : > { %1139 = vmatpush.msra.mxu2 %v235_v1  ;;  %1140 = vmatpush.msra.mxu3 %v235_v1  ;;  %s1408_s11 = scalar_lea.vmem %s1814_s0, %s1050_s30  ;;  %s1679_s25 = scalar_lea.vmem (%p1375_p4), %s1816_s2, %s1132_s21  }
  0x14   : > { %439 = vmatpush.msra.mxu0 %v235_v1  ;;  %1138 = vmatpush.msra.mxu1 %v235_v1  ;;  %v197_v8 = vld [vmem:[%s1408_s11 + $0x100] sm:$0xff]  ;;  %v198_v12 = vld [vmem:[%s1408_s11 + $0x108] sm:$0xff]  ;;  %v199_v16 = vld [vmem:[%s1408_s11 + $0x110] sm:$0xff] }
  0x15   : > { %1142 = vmatpush.msra.mxu2 %v234_v2  ;;  %1143 = vmatpush.msra.mxu3 %v234_v2  ;;  %v213_v9 = vld [vmem:[%s1408_s11 + $0x180] sm:$0xff]  ;;  %v214_v13 = vld [vmem:[%s1408_s11 + $0x188] sm:$0xff]  ;;  %v215_v17 = vld [vmem:[%s1408_s11 + $0x190] sm:$0xff] }
  0x16   : > { %440 = vmatpush.msra.mxu0 %v234_v2  ;;  %1141 = vmatpush.msra.mxu1 %v234_v2  ;;  %v165_v10 = vld [vmem:[%s1408_s11] sm:$0xff]  ;;  %v166_v14 = vld [vmem:[%s1408_s11 + $0x8] sm:$0xff]  ;;  %v167_v18 = vld [vmem:[%s1408_s11 + $0x10] sm:$0xff] }
  0x17   : > { %1145 = vmatpush.msra.mxu2 %v233_v3  ;;  %1146 = vmatpush.msra.mxu3 %v233_v3  ;;  %v181_v11 = vld [vmem:[%s1408_s11 + $0x80] sm:$0xff]  ;;  %v182_v15 = vld [vmem:[%s1408_s11 + $0x88] sm:$0xff]  ;;  %v183_v19 = vld [vmem:[%s1408_s11 + $0x90] sm:$0xff] }
  0x18   : > { %441 = vmatpush.msra.mxu0 %v233_v3  ;;  %1144 = vmatpush.msra.mxu1 %v233_v3  ;;  %v200_v20 = vld [vmem:[%s1408_s11 + $0x118] sm:$0xff]  ;;  %v201_v24 = vld [vmem:[%s1408_s11 + $0x120] sm:$0xff]  ;;  %v202_v28 = vld [vmem:[%s1408_s11 + $0x128] sm:$0xff] }
  0x19   : > { %1148 = vmatpush.msra.mxu2 %v232_v4  ;;  %1149 = vmatpush.msra.mxu3 %v232_v4  ;;  %v216_v21 = vld [vmem:[%s1408_s11 + $0x198] sm:$0xff]  ;;  %v217_v25 = vld [vmem:[%s1408_s11 + $0x1a0] sm:$0xff]  ;;  %v218_v29 = vld [vmem:[%s1408_s11 + $0x1a8] sm:$0xff] }
  0x1a   : > { %442 = vmatpush.msra.mxu0 %v232_v4  ;;  %1147 = vmatpush.msra.mxu1 %v232_v4  ;;  %v168_v22 = vld [vmem:[%s1408_s11 + $0x18] sm:$0xff]  ;;  %v169_v26 = vld [vmem:[%s1408_s11 + $0x20] sm:$0xff]  ;;  %v170_v30 = vld [vmem:[%s1408_s11 + $0x28] sm:$0xff] }
  0x1b   : > { %1151 = vmatpush.msra.mxu2 %v231_v5  ;;  %1152 = vmatpush.msra.mxu3 %v231_v5  ;;  %v184_v23 = vld [vmem:[%s1408_s11 + $0x98] sm:$0xff]  ;;  %v185_v27 = vld [vmem:[%s1408_s11 + $0xa0] sm:$0xff]  ;;  %v186_v31 = vld [vmem:[%s1408_s11 + $0xa8] sm:$0xff] }
  0x1c   : > { %443 = vmatpush.msra.mxu0 %v231_v5  ;;  %1150 = vmatpush.msra.mxu1 %v231_v5  ;;  %v203_v32 = vld [vmem:[%s1408_s11 + $0x130] sm:$0xff]  ;;  %v204_v36 = vld [vmem:[%s1408_s11 + $0x138] sm:$0xff]  ;;  %v205_v40 = vld [vmem:[%s1408_s11 + $0x140] sm:$0xff] }
  0x1d   : > { %1154 = vmatpush.msra.mxu2 %v230_v6  ;;  %1155 = vmatpush.msra.mxu3 %v230_v6  ;;  %v219_v33 = vld [vmem:[%s1408_s11 + $0x1b0] sm:$0xff]  ;;  %v220_v37 = vld [vmem:[%s1408_s11 + $0x1b8] sm:$0xff]  ;;  %v221_v41 = vld [vmem:[%s1408_s11 + $0x1c0] sm:$0xff] }
  0x1e   : > { %444 = vmatpush.msra.mxu0 %v230_v6  ;;  %1153 = vmatpush.msra.mxu1 %v230_v6  ;;  %v171_v34 = vld [vmem:[%s1408_s11 + $0x30] sm:$0xff]  ;;  %v172_v38 = vld [vmem:[%s1408_s11 + $0x38] sm:$0xff]  ;;  %v173_v42 = vld [vmem:[%s1408_s11 + $0x40] sm:$0xff] }
  0x1f   : > { %1157 = vmatpush.msra.mxu2 %v229_v7  ;;  %1158 = vmatpush.msra.mxu3 %v229_v7  ;;  %v187_v35 = vld [vmem:[%s1408_s11 + $0xb0] sm:$0xff]  ;;  %v188_v39 = vld [vmem:[%s1408_s11 + $0xb8] sm:$0xff]  ;;  %v189_v43 = vld [vmem:[%s1408_s11 + $0xc0] sm:$0xff] }
  0x20   : > { %1083 = vmatmul.msk.f32.vlgmr.msra.gmra.mxu2 %vm237_vm0, %v197_v8  ;;  %1099 = vmatmul.msk.f32.vlgmr.msra.gmra.mxu3 %vm237_vm0, %v213_v9  ;;  %v206_v44 = vld [vmem:[%s1408_s11 + $0x148] sm:$0xff]  ;;  %v207_v48 = vld [vmem:[%s1408_s11 + $0x150] sm:$0xff]  ;;  %v208_v52 = vld [vmem:[%s1408_s11 + $0x158] sm:$0xff] }
  0x21   : > { %445 = vmatpush.msra.mxu0 %v229_v7  ;;  %1156 = vmatpush.msra.mxu1 %v229_v7  ;;  %v222_v45 = vld [vmem:[%s1408_s11 + $0x1c8] sm:$0xff]  ;;  %v223_v49 = vld [vmem:[%s1408_s11 + $0x1d0] sm:$0xff]  ;;  %v224_v53 = vld [vmem:[%s1408_s11 + $0x1d8] sm:$0xff] }
  0x22   : > { %1051 = vmatmul.msk.f32.vlgmr.msra.gmra.mxu0 %vm237_vm0, %v165_v10  ;;  %1067 = vmatmul.msk.f32.vlgmr.msra.gmra.mxu1 %vm237_vm0, %v181_v11  ;;  %v174_v46 = vld [vmem:[%s1408_s11 + $0x48] sm:$0xff]  ;;  %v175_v50 = vld [vmem:[%s1408_s11 + $0x50] sm:$0xff]  ;;  %v176_v54 = vld [vmem:[%s1408_s11 + $0x58] sm:$0xff] }
  0x23   : > { %v190_v47 = vld [vmem:[%s1408_s11 + $0xc8] sm:$0xff]  ;;  %v191_v51 = vld [vmem:[%s1408_s11 + $0xd0] sm:$0xff]  ;;  %v192_v55 = vld [vmem:[%s1408_s11 + $0xd8] sm:$0xff] }
  0x24   : > { %v209_v56 = vld [vmem:[%s1408_s11 + $0x160] sm:$0xff]  ;;  %v210_v60 = vld [vmem:[%s1408_s11 + $0x168] sm:$0xff]  ;;  %v211_v0 = vld [vmem:[%s1408_s11 + $0x170] sm:$0xff] }
  0x25   : > { %v225_v57 = vld [vmem:[%s1408_s11 + $0x1e0] sm:$0xff]  ;;  %v226_v61 = vld [vmem:[%s1408_s11 + $0x1e8] sm:$0xff]  ;;  %v227_v1 = vld [vmem:[%s1408_s11 + $0x1f0] sm:$0xff] }
  0x26   : > { %v177_v58 = vld [vmem:[%s1408_s11 + $0x60] sm:$0xff]  ;;  %v178_v62 = vld [vmem:[%s1408_s11 + $0x68] sm:$0xff]  ;;  %v179_v2 = vld [vmem:[%s1408_s11 + $0x70] sm:$0xff] }
  0x27   : > { %v193_v59 = vld [vmem:[%s1408_s11 + $0xe0] sm:$0xff]  ;;  %v194_v63 = vld [vmem:[%s1408_s11 + $0xe8] sm:$0xff]  ;;  %v195_v3 = vld [vmem:[%s1408_s11 + $0xf0] sm:$0xff] }
  0x28   : > { %1084 = vmatmul.msk.f32.gmra.mxu2 %vm237_vm0, %v198_v12  ;;  %1100 = vmatmul.msk.f32.gmra.mxu3 %vm237_vm0, %v214_v13  ;;  %v212_v4 = vld [vmem:[%s1408_s11 + $0x178] sm:$0xff] }
  0x29   : > { %v228_v5 = vld [vmem:[%s1408_s11 + $0x1f8] sm:$0xff] }
  0x2a   : > { %1052 = vmatmul.msk.f32.gmra.mxu0 %vm237_vm0, %v166_v14  ;;  %1068 = vmatmul.msk.f32.gmra.mxu1 %vm237_vm0, %v182_v15  ;;  %v180_v6 = vld [vmem:[%s1408_s11 + $0x78] sm:$0xff] }
  0x2b   : > { %v196_v7 = vld [vmem:[%s1408_s11 + $0xf8] sm:$0xff] }
  0x30   : > { %1085 = vmatmul.msk.f32.gmra.mxu2 %vm237_vm0, %v199_v16  ;;  %1101 = vmatmul.msk.f32.gmra.mxu3 %vm237_vm0, %v215_v17 }
  0x32   : > { %1053 = vmatmul.msk.f32.gmra.mxu0 %vm237_vm0, %v167_v18  ;;  %1069 = vmatmul.msk.f32.gmra.mxu1 %vm237_vm0, %v183_v19 }
  0x38   : > { %1086 = vmatmul.msk.f32.gmra.mxu2 %vm237_vm0, %v200_v20  ;;  %1102 = vmatmul.msk.f32.gmra.mxu3 %vm237_vm0, %v216_v21 }
  0x3a   : > { %1054 = vmatmul.msk.f32.gmra.mxu0 %vm237_vm0, %v168_v22  ;;  %1070 = vmatmul.msk.f32.gmra.mxu1 %vm237_vm0, %v184_v23 }
  0x40   : > { %1087 = vmatmul.msk.f32.gmra.mxu2 %vm237_vm0, %v201_v24  ;;  %1103 = vmatmul.msk.f32.gmra.mxu3 %vm237_vm0, %v217_v25 }
  0x42   : > { %1055 = vmatmul.msk.f32.gmra.mxu0 %vm237_vm0, %v169_v26  ;;  %1071 = vmatmul.msk.f32.gmra.mxu1 %vm237_vm0, %v185_v27 }
  0x48   : > { %1088 = vmatmul.msk.f32.gmra.mxu2 %vm237_vm0, %v202_v28  ;;  %1104 = vmatmul.msk.f32.gmra.mxu3 %vm237_vm0, %v218_v29 }
  0x4a   : > { %1056 = vmatmul.msk.f32.gmra.mxu0 %vm237_vm0, %v170_v30  ;;  %1072 = vmatmul.msk.f32.gmra.mxu1 %vm237_vm0, %v186_v31 }
  0x50   : > { %1089 = vmatmul.msk.f32.gmra.mxu2 %vm237_vm0, %v203_v32  ;;  %1105 = vmatmul.msk.f32.gmra.mxu3 %vm237_vm0, %v219_v33 }
  0x52   : > { %1057 = vmatmul.msk.f32.gmra.mxu0 %vm237_vm0, %v171_v34  ;;  %1073 = vmatmul.msk.f32.gmra.mxu1 %vm237_vm0, %v187_v35 }
  0x58   : > { %1090 = vmatmul.msk.f32.gmra.mxu2 %vm237_vm0, %v204_v36  ;;  %1106 = vmatmul.msk.f32.gmra.mxu3 %vm237_vm0, %v220_v37 }
  0x5a   : > { %1058 = vmatmul.msk.f32.gmra.mxu0 %vm237_vm0, %v172_v38  ;;  %1074 = vmatmul.msk.f32.gmra.mxu1 %vm237_vm0, %v188_v39 }
  0x60   : > { %1091 = vmatmul.msk.f32.gmra.mxu2 %vm237_vm0, %v205_v40  ;;  %1107 = vmatmul.msk.f32.gmra.mxu3 %vm237_vm0, %v221_v41 }
  0x62   : > { %1059 = vmatmul.msk.f32.gmra.mxu0 %vm237_vm0, %v173_v42  ;;  %1075 = vmatmul.msk.f32.gmra.mxu1 %vm237_vm0, %v189_v43 }
  0x68   : > { %1092 = vmatmul.msk.f32.gmra.mxu2 %vm237_vm0, %v206_v44  ;;  %1108 = vmatmul.msk.f32.gmra.mxu3 %vm237_vm0, %v222_v45 }
  0x6a   : > { %1060 = vmatmul.msk.f32.gmra.mxu0 %vm237_vm0, %v174_v46  ;;  %1076 = vmatmul.msk.f32.gmra.mxu1 %vm237_vm0, %v190_v47 }
  0x70   : > { %1093 = vmatmul.msk.f32.gmra.mxu2 %vm237_vm0, %v207_v48  ;;  %1109 = vmatmul.msk.f32.gmra.mxu3 %vm237_vm0, %v223_v49 }
  0x72   : > { %1061 = vmatmul.msk.f32.gmra.mxu0 %vm237_vm0, %v175_v50  ;;  %1077 = vmatmul.msk.f32.gmra.mxu1 %vm237_vm0, %v191_v51 }
  0x78   : > { %1094 = vmatmul.msk.f32.gmra.mxu2 %vm237_vm0, %v208_v52  ;;  %1110 = vmatmul.msk.f32.gmra.mxu3 %vm237_vm0, %v224_v53 }
  0x7a   : > { %1062 = vmatmul.msk.f32.gmra.mxu0 %vm237_vm0, %v176_v54  ;;  %1078 = vmatmul.msk.f32.gmra.mxu1 %vm237_vm0, %v192_v55 }
  0x80   : > { %1095 = vmatmul.msk.f32.gmra.mxu2 %vm237_vm0, %v209_v56  ;;  %1111 = vmatmul.msk.f32.gmra.mxu3 %vm237_vm0, %v225_v57 }
  0x82   : > { %1063 = vmatmul.msk.f32.gmra.mxu0 %vm237_vm0, %v177_v58  ;;  %1079 = vmatmul.msk.f32.gmra.mxu1 %vm237_vm0, %v193_v59 }
  0x88   : > { %1096 = vmatmul.msk.f32.gmra.mxu2 %vm237_vm0, %v210_v60  ;;  %1112 = vmatmul.msk.f32.gmra.mxu3 %vm237_vm0, %v226_v61 }
  0x8a   : > { %1064 = vmatmul.msk.f32.gmra.mxu0 %vm237_vm0, %v178_v62  ;;  %1080 = vmatmul.msk.f32.gmra.mxu1 %vm237_vm0, %v194_v63 }
  0x90   : > { %1097 = vmatmul.msk.f32.gmra.mxu2 %vm237_vm0, %v211_v0  ;;  %1113 = vmatmul.msk.f32.gmra.mxu3 %vm237_vm0, %v227_v1 }
  0x92   : > { %1065 = vmatmul.msk.f32.gmra.mxu0 %vm237_vm0, %v179_v2  ;;  %1081 = vmatmul.msk.f32.gmra.mxu1 %vm237_vm0, %v195_v3 }
  0x98   : > { %1098 = vmatmul.msk.f32.gmra.mxu2 %vm237_vm0, %v212_v4  ;;  %1114 = vmatmul.msk.f32.gmra.mxu3 %vm237_vm0, %v228_v5 }
  0x9a   : > { %1066 = vmatmul.msk.f32.gmra.mxu0 %vm237_vm0, %v180_v6  ;;  %1082 = vmatmul.msk.f32.gmra.mxu1 %vm237_vm0, %v196_v7 }
  0x9f   : > { %v447_v8 = vpop.f32.mrf.mxu0  ;;  %v495_v9 = vpop.f32.mrf.mxu1 }
  0xa0   : > { %640 = vst.msk [vmem:[%s1542_s20] sm:$0xff] %vm639_vm1, %v447_v8 }
  0xa1   : > { %656 = vst.msk [vmem:[%s1542_s20 + $0x80] sm:$0xff] %vm639_vm1, %v495_v9 }
  0xa3   : > { %v543_v10 = vpop.f32.mrf.mxu2  ;;  %v591_v11 = vpop.f32.mrf.mxu3 }
  0xa4   : > { %672 = vst.msk [vmem:[%s1542_s20 + $0x100] sm:$0xff] %vm639_vm1, %v543_v10 }
  0xa5   : > { %688 = vst.msk [vmem:[%s1542_s20 + $0x180] sm:$0xff] %vm639_vm1, %v591_v11 }
  0xa7   : > { %v450_v12 = vpop.f32.mrf.mxu0  ;;  %v498_v13 = vpop.f32.mrf.mxu1 }
  0xa8   : > { %641 = vst.msk [vmem:[%s1542_s20 + $0x8] sm:$0xff] %vm639_vm1, %v450_v12 }
  0xa9   : > { %657 = vst.msk [vmem:[%s1542_s20 + $0x88] sm:$0xff] %vm639_vm1, %v498_v13 }
  0xab   : > { %v546_v14 = vpop.f32.mrf.mxu2  ;;  %v594_v15 = vpop.f32.mrf.mxu3 }
  0xac   : > { %673 = vst.msk [vmem:[%s1542_s20 + $0x108] sm:$0xff] %vm639_vm1, %v546_v14 }
  0xad   : > { %689 = vst.msk [vmem:[%s1542_s20 + $0x188] sm:$0xff] %vm639_vm1, %v594_v15 }
  0xaf   : > { %v453_v16 = vpop.f32.mrf.mxu0  ;;  %v501_v17 = vpop.f32.mrf.mxu1 }
  0xb0   : > { %642 = vst.msk [vmem:[%s1542_s20 + $0x10] sm:$0xff] %vm639_vm1, %v453_v16 }
  0xb1   : > { %658 = vst.msk [vmem:[%s1542_s20 + $0x90] sm:$0xff] %vm639_vm1, %v501_v17 }
  0xb3   : > { %v549_v18 = vpop.f32.mrf.mxu2  ;;  %v597_v19 = vpop.f32.mrf.mxu3 }
  0xb4   : > { %674 = vst.msk [vmem:[%s1542_s20 + $0x110] sm:$0xff] %vm639_vm1, %v549_v18 }
  0xb5   : > { %690 = vst.msk [vmem:[%s1542_s20 + $0x190] sm:$0xff] %vm639_vm1, %v597_v19 }
  0xb7   : > { %v456_v20 = vpop.f32.mrf.mxu0  ;;  %v504_v21 = vpop.f32.mrf.mxu1 }
  0xb8   : > { %643 = vst.msk [vmem:[%s1542_s20 + $0x18] sm:$0xff] %vm639_vm1, %v456_v20 }
  0xb9   : > { %659 = vst.msk [vmem:[%s1542_s20 + $0x98] sm:$0xff] %vm639_vm1, %v504_v21 }
  0xbb   : > { %v552_v22 = vpop.f32.mrf.mxu2  ;;  %v600_v23 = vpop.f32.mrf.mxu3 }
  0xbc   : > { %675 = vst.msk [vmem:[%s1542_s20 + $0x118] sm:$0xff] %vm639_vm1, %v552_v22 }
  0xbd   : > { %691 = vst.msk [vmem:[%s1542_s20 + $0x198] sm:$0xff] %vm639_vm1, %v600_v23 }
  0xbf   : > { %v459_v24 = vpop.f32.mrf.mxu0  ;;  %v507_v25 = vpop.f32.mrf.mxu1 }
  0xc0   : > { %644 = vst.msk [vmem:[%s1542_s20 + $0x20] sm:$0xff] %vm639_vm1, %v459_v24 }
  0xc1   : > { %660 = vst.msk [vmem:[%s1542_s20 + $0xa0] sm:$0xff] %vm639_vm1, %v507_v25 }
  0xc3   : > { %v555_v26 = vpop.f32.mrf.mxu2  ;;  %v603_v27 = vpop.f32.mrf.mxu3 }
  0xc4   : > { %676 = vst.msk [vmem:[%s1542_s20 + $0x120] sm:$0xff] %vm639_vm1, %v555_v26 }
  0xc5   : > { %692 = vst.msk [vmem:[%s1542_s20 + $0x1a0] sm:$0xff] %vm639_vm1, %v603_v27 }
  0xc7   : > { %v462_v28 = vpop.f32.mrf.mxu0  ;;  %v510_v29 = vpop.f32.mrf.mxu1 }
  0xc8   : > { %645 = vst.msk [vmem:[%s1542_s20 + $0x28] sm:$0xff] %vm639_vm1, %v462_v28 }
  0xc9   : > { %661 = vst.msk [vmem:[%s1542_s20 + $0xa8] sm:$0xff] %vm639_vm1, %v510_v29 }
  0xcb   : > { %v558_v30 = vpop.f32.mrf.mxu2  ;;  %v606_v31 = vpop.f32.mrf.mxu3 }
  0xcc   : > { %677 = vst.msk [vmem:[%s1542_s20 + $0x128] sm:$0xff] %vm639_vm1, %v558_v30 }
  0xcd   : > { %693 = vst.msk [vmem:[%s1542_s20 + $0x1a8] sm:$0xff] %vm639_vm1, %v606_v31 }
  0xcf   : > { %v465_v32 = vpop.f32.mrf.mxu0  ;;  %v513_v33 = vpop.f32.mrf.mxu1 }
  0xd0   : > { %646 = vst.msk [vmem:[%s1542_s20 + $0x30] sm:$0xff] %vm639_vm1, %v465_v32 }
  0xd1   : > { %662 = vst.msk [vmem:[%s1542_s20 + $0xb0] sm:$0xff] %vm639_vm1, %v513_v33 }
  0xd3   : > { %v561_v34 = vpop.f32.mrf.mxu2  ;;  %v609_v35 = vpop.f32.mrf.mxu3 }
  0xd4   : > { %678 = vst.msk [vmem:[%s1542_s20 + $0x130] sm:$0xff] %vm639_vm1, %v561_v34 }
  0xd5   : > { %694 = vst.msk [vmem:[%s1542_s20 + $0x1b0] sm:$0xff] %vm639_vm1, %v609_v35 }
  0xd7   : > { %v468_v36 = vpop.f32.mrf.mxu0  ;;  %v516_v37 = vpop.f32.mrf.mxu1 }
  0xd8   : > { %647 = vst.msk [vmem:[%s1542_s20 + $0x38] sm:$0xff] %vm639_vm1, %v468_v36 }
  0xd9   : > { %663 = vst.msk [vmem:[%s1542_s20 + $0xb8] sm:$0xff] %vm639_vm1, %v516_v37 }
  0xdb   : > { %v564_v38 = vpop.f32.mrf.mxu2  ;;  %v612_v39 = vpop.f32.mrf.mxu3 }
  0xdc   : > { %679 = vst.msk [vmem:[%s1542_s20 + $0x138] sm:$0xff] %vm639_vm1, %v564_v38 }
  0xdd   : > { %695 = vst.msk [vmem:[%s1542_s20 + $0x1b8] sm:$0xff] %vm639_vm1, %v612_v39 }
  0xdf   : > { %v471_v40 = vpop.f32.mrf.mxu0  ;;  %v519_v41 = vpop.f32.mrf.mxu1 }
  0xe0   : > { %648 = vst.msk [vmem:[%s1542_s20 + $0x40] sm:$0xff] %vm639_vm1, %v471_v40 }
  0xe1   : > { %664 = vst.msk [vmem:[%s1542_s20 + $0xc0] sm:$0xff] %vm639_vm1, %v519_v41 }
  0xe3   : > { %v567_v42 = vpop.f32.mrf.mxu2  ;;  %v615_v43 = vpop.f32.mrf.mxu3 }
  0xe4   : > { %680 = vst.msk [vmem:[%s1542_s20 + $0x140] sm:$0xff] %vm639_vm1, %v567_v42 }
  0xe5   : > { %696 = vst.msk [vmem:[%s1542_s20 + $0x1c0] sm:$0xff] %vm639_vm1, %v615_v43 }
  0xe7   : > { %v474_v44 = vpop.f32.mrf.mxu0  ;;  %v522_v45 = vpop.f32.mrf.mxu1 }
  0xe8   : > { %649 = vst.msk [vmem:[%s1542_s20 + $0x48] sm:$0xff] %vm639_vm1, %v474_v44 }
  0xe9   : > { %665 = vst.msk [vmem:[%s1542_s20 + $0xc8] sm:$0xff] %vm639_vm1, %v522_v45 }
  0xeb   : > { %v570_v46 = vpop.f32.mrf.mxu2  ;;  %v618_v47 = vpop.f32.mrf.mxu3 }
  0xec   : > { %681 = vst.msk [vmem:[%s1542_s20 + $0x148] sm:$0xff] %vm639_vm1, %v570_v46 }
  0xed   : > { %697 = vst.msk [vmem:[%s1542_s20 + $0x1c8] sm:$0xff] %vm639_vm1, %v618_v47 }
  0xef   : > { %v477_v48 = vpop.f32.mrf.mxu0  ;;  %v525_v49 = vpop.f32.mrf.mxu1 }
  0xf0   : > { %650 = vst.msk [vmem:[%s1542_s20 + $0x50] sm:$0xff] %vm639_vm1, %v477_v48 }
  0xf1   : > { %666 = vst.msk [vmem:[%s1542_s20 + $0xd0] sm:$0xff] %vm639_vm1, %v525_v49 }
  0xf3   : > { %v573_v50 = vpop.f32.mrf.mxu2  ;;  %v621_v51 = vpop.f32.mrf.mxu3 }
  0xf4   : > { %682 = vst.msk [vmem:[%s1542_s20 + $0x150] sm:$0xff] %vm639_vm1, %v573_v50 }
  0xf5   : > { %698 = vst.msk [vmem:[%s1542_s20 + $0x1d0] sm:$0xff] %vm639_vm1, %v621_v51 }
  0xf7   : > { %v480_v52 = vpop.f32.mrf.mxu0  ;;  %v528_v53 = vpop.f32.mrf.mxu1 }
  0xf8   : > { %651 = vst.msk [vmem:[%s1542_s20 + $0x58] sm:$0xff] %vm639_vm1, %v480_v52 }
  0xf9   : > { %667 = vst.msk [vmem:[%s1542_s20 + $0xd8] sm:$0xff] %vm639_vm1, %v528_v53 }
  0xfb   : > { %v576_v54 = vpop.f32.mrf.mxu2  ;;  %v624_v55 = vpop.f32.mrf.mxu3 }
  0xfc   : > { %683 = vst.msk [vmem:[%s1542_s20 + $0x158] sm:$0xff] %vm639_vm1, %v576_v54 }
  0xfd   : > { %699 = vst.msk [vmem:[%s1542_s20 + $0x1d8] sm:$0xff] %vm639_vm1, %v624_v55 }
  0xff   : > { %v483_v56 = vpop.f32.mrf.mxu0  ;;  %v531_v57 = vpop.f32.mrf.mxu1 }
 0x100   : > { %652 = vst.msk [vmem:[%s1542_s20 + $0x60] sm:$0xff] %vm639_vm1, %v483_v56 }
 0x101   : > { %668 = vst.msk [vmem:[%s1542_s20 + $0xe0] sm:$0xff] %vm639_vm1, %v531_v57 }
 0x103   : > { %v579_v58 = vpop.f32.mrf.mxu2  ;;  %v627_v59 = vpop.f32.mrf.mxu3 }
 0x104   : > { %684 = vst.msk [vmem:[%s1542_s20 + $0x160] sm:$0xff] %vm639_vm1, %v579_v58 }
 0x105   : > { %700 = vst.msk [vmem:[%s1542_s20 + $0x1e0] sm:$0xff] %vm639_vm1, %v627_v59 }
 0x107   : > { %v486_v60 = vpop.f32.mrf.mxu0  ;;  %v534_v61 = vpop.f32.mrf.mxu1 }
 0x108   : > { %653 = vst.msk [vmem:[%s1542_s20 + $0x68] sm:$0xff] %vm639_vm1, %v486_v60 }
 0x109   : > { %669 = vst.msk [vmem:[%s1542_s20 + $0xe8] sm:$0xff] %vm639_vm1, %v534_v61 }
 0x10b   : > { %v582_v62 = vpop.f32.mrf.mxu2  ;;  %v630_v63 = vpop.f32.mrf.mxu3 }
 0x10c   : > { %685 = vst.msk [vmem:[%s1542_s20 + $0x168] sm:$0xff] %vm639_vm1, %v582_v62 }
 0x10d   : > { %701 = vst.msk [vmem:[%s1542_s20 + $0x1e8] sm:$0xff] %vm639_vm1, %v630_v63 }
 0x10f   : > { %v489_v0 = vpop.f32.mrf.mxu0  ;;  %v537_v1 = vpop.f32.mrf.mxu1 }
 0x110   : > { %654 = vst.msk [vmem:[%s1542_s20 + $0x70] sm:$0xff] %vm639_vm1, %v489_v0 }
 0x111   : > { %670 = vst.msk [vmem:[%s1542_s20 + $0xf0] sm:$0xff] %vm639_vm1, %v537_v1 }
 0x113   : > { %v585_v2 = vpop.f32.mrf.mxu2  ;;  %v633_v3 = vpop.f32.mrf.mxu3 }
 0x114   : > { %686 = vst.msk [vmem:[%s1542_s20 + $0x170] sm:$0xff] %vm639_vm1, %v585_v2 }
 0x115   : > { %702 = vst.msk [vmem:[%s1542_s20 + $0x1f0] sm:$0xff] %vm639_vm1, %v633_v3 }
 0x117   : > { %v492_v4 = vpop.f32.mrf.mxu0  ;;  %v540_v5 = vpop.f32.mrf.mxu1 }
 0x118   : > { %655 = vst.msk [vmem:[%s1542_s20 + $0x78] sm:$0xff] %vm639_vm1, %v492_v4 }
 0x119   : > { %671 = vst.msk [vmem:[%s1542_s20 + $0xf8] sm:$0xff] %vm639_vm1, %v540_v5  ;;  %710 = sbr.rel (!%p1375_p4) target bundleno = 350 (0x15e), region = 32 }
 0x11b   : > { %v588_v6 = vpop.f32.mrf.mxu2  ;;  %v636_v7 = vpop.f32.mrf.mxu3 }
 0x11c   : > { %687 = vst.msk [vmem:[%s1542_s20 + $0x178] sm:$0xff] %vm639_vm1, %v588_v6 }
 0x11d   : > { %703 = vst.msk [vmem:[%s1542_s20 + $0x1f8] sm:$0xff] %vm639_vm1, %v636_v7 }
 0x11e   : > { %s1827_s9 = smov (!%p713_p8, %s712_s9), 64 }
 0x11f   : > { %s1117_s26 = sshll.u32 %s1827_s9, 3 }
 0x120   : > { %p1120_p9 = scmp.eq.s32.totalorder %s1117_s26, 0 }
 0x121   : > { %s1685_s27 = sshrl.u32 (!%p1120_p9), %s1827_s9, 5 }
 0x122   : > { %721 = sbr.rel (%p1120_p9) target bundleno = 350 (0x15e), region = 36  ;;  %p1121_p10 = scmp.le.s32.totalorder (!%p1120_p9), %s1685_s27, 0 }
 0x127   : > { %1000 = sbr.rel (%p1121_p10) target bundleno = 333 (0x14d), region = 112  ;;  %s1818_s12 = smov (!%p1121_p10), %s1679_s25 }
 0x128   : > { %s1819_s17 = smov (!%p1121_p10), %s1542_s20  ;;  %s1694_s22 = smov (!%p1121_p10), 0  }
 0x129   : > { %s1696_s28 = smov (!%p1121_p10), 0  }
 0x12c LB: >> { %v846_v8 = vld [vmem:[%s1309_s17] sm:$0xff]  ;;  %v848_v9 = vld [vmem:[%s1309_s17 + $0x8] sm:$0xff]  ;;  %v850_v10 = vld [vmem:[%s1309_s17 + $0x10] sm:$0xff]  ;;  %s910_s29 = sadd.s32 1, %s1313_s22  ;;  %s840_s28 = sadd.s32 1, %s1317_s28   ;;  %s1317_s28 = sphi %s1696_s28, %s840_s28   ;;  %s1313_s22 = sphi %s1694_s22, %s1822_s22   ;;  %s1309_s17 = sphi %s1819_s17, %s1821_s17   ;;  %s1305_s12 = sphi %s1818_s12, %s1820_s12  }
 0x12d   : >> { %847 = vst [vmem:[%s1305_s12] sm:$0xff] %v846_v8  ;;  %v852_v11 = vld [vmem:[%s1309_s17 + $0x18] sm:$0xff]  ;;  %p911_p11 = scmp.ge.s32.totalorder %s910_s29, %s1685_s27  ;;  %v854_v12 = vld [vmem:[%s1309_s17 + $0x20] sm:$0xff]  ;;  %v856_v13 = vld [vmem:[%s1309_s17 + $0x28] sm:$0xff]  ;;  %p839_p12 = scmp.ge.s32.totalorder %s840_s28, %s1685_s27 }
 0x12e   : >> { %849 = vst [vmem:[%s1305_s12 + $0x8] sm:$0xff] %v848_v9  ;;  %v858_v14 = vld [vmem:[%s1309_s17 + $0x30] sm:$0xff]  ;;  %v860_v15 = vld [vmem:[%s1309_s17 + $0x38] sm:$0xff]  ;;  %v862_v16 = vld [vmem:[%s1309_s17 + $0x40] sm:$0xff] }
 0x12f   : >> { %851 = vst [vmem:[%s1305_s12 + $0x10] sm:$0xff] %v850_v10  ;;  %s1829_s29 = smov (%p911_p11, %s910_s29), 0  ;;  %v864_v17 = vld [vmem:[%s1309_s17 + $0x48] sm:$0xff]  ;;  %v866_v18 = vld [vmem:[%s1309_s17 + $0x50] sm:$0xff]  ;;  %v868_v19 = vld [vmem:[%s1309_s17 + $0x58] sm:$0xff] }
 0x130   : >> { %853 = vst [vmem:[%s1305_s12 + $0x18] sm:$0xff] %v852_v11  ;;  %s1122_s30 = sshll.u32 %s1829_s29, 8  ;;  %v870_v20 = vld [vmem:[%s1309_s17 + $0x60] sm:$0xff]  ;;  %v872_v21 = vld [vmem:[%s1309_s17 + $0x68] sm:$0xff]  ;;  %v874_v22 = vld [vmem:[%s1309_s17 + $0x70] sm:$0xff]  ;;  %s1822_s22 = smov %s1829_s29 }
 0x131   : >> { %855 = vst [vmem:[%s1305_s12 + $0x20] sm:$0xff] %v854_v12  ;;  %s1728_s3 = scalar_lea.vmem %s1542_s20, %s1122_s30 [#allocation2]   ;;  %s1731_s4 = scalar_lea.vmem %s1679_s25, %s1122_s30   ;;  %v876_v23 = vld [vmem:[%s1309_s17 + $0x78] sm:$0xff]  ;;  %v878_v24 = vld [vmem:[%s1309_s17 + $0x80] sm:$0xff]  ;;  %v880_v25 = vld [vmem:[%s1309_s17 + $0x88] sm:$0xff] }
 0x132   : >> { %857 = vst [vmem:[%s1305_s12 + $0x28] sm:$0xff] %v856_v13  ;;  %v882_v26 = vld [vmem:[%s1309_s17 + $0x90] sm:$0xff]  ;;  %v884_v27 = vld [vmem:[%s1309_s17 + $0x98] sm:$0xff]  ;;  %v886_v28 = vld [vmem:[%s1309_s17 + $0xa0] sm:$0xff] }
 0x133   : >> { %859 = vst [vmem:[%s1305_s12 + $0x30] sm:$0xff] %v858_v14  ;;  %v888_v29 = vld [vmem:[%s1309_s17 + $0xa8] sm:$0xff]  ;;  %v890_v30 = vld [vmem:[%s1309_s17 + $0xb0] sm:$0xff]  ;;  %v892_v31 = vld [vmem:[%s1309_s17 + $0xb8] sm:$0xff] }
 0x134   : >> { %861 = vst [vmem:[%s1305_s12 + $0x38] sm:$0xff] %v860_v15  ;;  %v894_v32 = vld [vmem:[%s1309_s17 + $0xc0] sm:$0xff]  ;;  %v896_v33 = vld [vmem:[%s1309_s17 + $0xc8] sm:$0xff]  ;;  %v898_v34 = vld [vmem:[%s1309_s17 + $0xd0] sm:$0xff] }
 0x135   : >> { %863 = vst [vmem:[%s1305_s12 + $0x40] sm:$0xff] %v862_v16  ;;  %v900_v35 = vld [vmem:[%s1309_s17 + $0xd8] sm:$0xff]  ;;  %v902_v36 = vld [vmem:[%s1309_s17 + $0xe0] sm:$0xff]  ;;  %v904_v37 = vld [vmem:[%s1309_s17 + $0xe8] sm:$0xff] }
 0x136   : >> { %865 = vst [vmem:[%s1305_s12 + $0x48] sm:$0xff] %v864_v17  ;;  %v906_v38 = vld [vmem:[%s1309_s17 + $0xf0] sm:$0xff]  ;;  %v908_v39 = vld [vmem:[%s1309_s17 + $0xf8] sm:$0xff]  ;;  %s1821_s17 = smov %s1728_s3 }
 0x137   : >> { %867 = vst [vmem:[%s1305_s12 + $0x50] sm:$0xff] %v866_v18 }
 0x138   : >> { %869 = vst [vmem:[%s1305_s12 + $0x58] sm:$0xff] %v868_v19 }
 0x139   : >> { %871 = vst [vmem:[%s1305_s12 + $0x60] sm:$0xff] %v870_v20 }
 0x13a   : >> { %873 = vst [vmem:[%s1305_s12 + $0x68] sm:$0xff] %v872_v21 }
 0x13b   : >> { %875 = vst [vmem:[%s1305_s12 + $0x70] sm:$0xff] %v874_v22 }
 0x13c   : >> { %877 = vst [vmem:[%s1305_s12 + $0x78] sm:$0xff] %v876_v23 }
 0x13d   : >> { %879 = vst [vmem:[%s1305_s12 + $0x80] sm:$0xff] %v878_v24 }
 0x13e   : >> { %881 = vst [vmem:[%s1305_s12 + $0x88] sm:$0xff] %v880_v25 }
 0x13f   : >> { %883 = vst [vmem:[%s1305_s12 + $0x90] sm:$0xff] %v882_v26 }
 0x140   : >> { %885 = vst [vmem:[%s1305_s12 + $0x98] sm:$0xff] %v884_v27 }
 0x141   : >> { %887 = vst [vmem:[%s1305_s12 + $0xa0] sm:$0xff] %v886_v28 }
 0x142   : >> { %889 = vst [vmem:[%s1305_s12 + $0xa8] sm:$0xff] %v888_v29 }
 0x143   : >> { %891 = vst [vmem:[%s1305_s12 + $0xb0] sm:$0xff] %v890_v30 }
 0x144   : >> { %893 = vst [vmem:[%s1305_s12 + $0xb8] sm:$0xff] %v892_v31 }
 0x145   : >> { %895 = vst [vmem:[%s1305_s12 + $0xc0] sm:$0xff] %v894_v32 }
 0x146   : >> { %897 = vst [vmem:[%s1305_s12 + $0xc8] sm:$0xff] %v896_v33 }
 0x147   : >> { %899 = vst [vmem:[%s1305_s12 + $0xd0] sm:$0xff] %v898_v34 }
 0x148   : >> { %901 = vst [vmem:[%s1305_s12 + $0xd8] sm:$0xff] %v900_v35  ;;  %842 = sbr.rel (!%p839_p12) target bundleno = 300 (0x12c), region = 118 }
 0x149   : >> { %903 = vst [vmem:[%s1305_s12 + $0xe0] sm:$0xff] %v902_v36 }
 0x14a   : >> { %905 = vst [vmem:[%s1305_s12 + $0xe8] sm:$0xff] %v904_v37 }
 0x14b   : >> { %907 = vst [vmem:[%s1305_s12 + $0xf0] sm:$0xff] %v906_v38 }
 0x14c   : >> { %909 = vst [vmem:[%s1305_s12 + $0xf8] sm:$0xff] %v908_v39  ;;  %s1820_s12 = smov %s1731_s4 }
 0x14d PF: > { %s1796_s5 = sand.u32 31, %s1827_s9   ;;  %s1133_s6 = sshll.u32 %s1685_s27, 8 }
 0x14e   : > { %s921_s7 = scalar_lea.vmem %s1542_s20, %s1133_s6 [#allocation2]   ;;  %s923_s8 = scalar_lea.vmem %s1679_s25, %s1133_s6  }
 0x14f   : > { %p1127_p13 = scmp.le.s32.totalorder %s1796_s5, 0 }
 0x150   : > { %s1319_s11 = smov (!%p1127_p13), %s923_s8   ;;  %s1323_s14 = smov (!%p1127_p13), %s921_s7  }
 0x151   : > { %1014 = sbr.rel (%p1127_p13) target bundleno = 350 (0x15e), region = 123  ;;  %s1327_s15 = smov (!%p1127_p13), 0  }
 0x152   : > { %s1331_s18 = smov (!%p1127_p13), 0  }
 0x156 LB: >> { %v933_v40 = vld [vmem:[%s1325_s14] sm:$0xff]  ;;  %s935_s19 = sadd.s32 1, %s1329_s15  ;;  %s927_s18 = sadd.s32 1, %s1333_s18   ;;  %s1333_s18 = sphi %s1331_s18, %s927_s18   ;;  %s1329_s15 = sphi %s1327_s15, %s1328_s15   ;;  %s1325_s14 = sphi %s1323_s14, %s940_s14   ;;  %s1321_s11 = sphi %s1319_s11, %s941_s11  }
 0x157   : >> { %934 = vst [vmem:[%s1321_s11] sm:$0xff] %v933_v40  ;;  %p936_p0 = scmp.ge.s32.totalorder %s935_s19, %s1796_s5  ;;  %p926_p1 = scmp.ge.s32.totalorder %s927_s18, %s1796_s5 }
 0x159   : >> { %s1831_s19 = smov (%p936_p0, %s935_s19), 0  ;;  %929 = sbr.rel (!%p926_p1) target bundleno = 342 (0x156), region = 129 }
 0x15a   : >> { %s1128_s20 = sshll.u32 %s1831_s19, 3  ;;  %s1328_s15 = smov %s1831_s19  }
 0x15b   : >> { %s940_s14 = scalar_lea.vmem %s921_s7, %s1128_s20 [#allocation2]   ;;  %s941_s11 = scalar_lea.vmem %s923_s8, %s1128_s20  }
 0x15e PF: > { %p9_p2 = scmp.ge.s32.totalorder %s1365_s13, 10   ;;  %s1823_s9 = smov %s1297_s10 }
 0x15f   : > { %s1824_s10 = smov %s1373_s16  ;;  %s1825_s11 = smov %s1365_s13 }
 0x160   :  { %11 = sbr.rel (!%p9_p2) target bundleno = 2 (0x2), region = 140 }

</bundles_post_ra>
